<compile_context>
chip_gen: v5e
topology: v5e:2x2
jax: 0.10.0
libtpu: 0.0.40
codegen_flags: <defaults>
</compile_context>

<pallas_src>
import numpy as np
import jax
import jax.numpy as jnp
from jax.experimental import pallas as pl
from jax.experimental.pallas import tpu as pltpu

CPAD = 128  # every conv channel dim is zero-padded to one full lane tile


# ------------------------------ fused kernel --------------------------------

def make_chessnet_kernel(width, per_pad):
    wp = width + 2
    # tap t = (ky, kx): contributing row offset s = (ky-1)*(W+2) + (kx-1)
    shifts = [(ky - 1) * wp + (kx - 1) for ky in range(3) for kx in range(3)]

    def kernel(x0_ref, mask_ref,
               c1w_ref, c1b_ref, c2w_ref, c2b_ref, c3w_ref, c3b_ref,
               h1w_ref, h1b_ref, h2w_ref, h2b_ref,
               pu_ref, pb_ref, vu_ref, vb1_ref, vw2_ref, vb2_ref,
               pol_ref, val_ref):
        mask = mask_ref[...]                      # (per_pad, 128) f32, hoisted

        def conv_roll(xf, w_ref, b_ref):
            # 3x3 conv as 9 accumulating bf16 matmuls (f32 accumulate); each
            # rolled tap is cast to bf16 right away -> no wide concat temp.
            acc = None
            for t, s in enumerate(shifts):
                tap = xf if s == 0 else pltpu.roll(xf, (-s) % per_pad, axis=0)
                y = jnp.dot(tap.astype(jnp.bfloat16), w_ref[t],
                            preferred_element_type=jnp.float32)
                acc = y if acc is None else acc + y
            # bias + ReLU, then re-zero border/pad rows for the next layer
            return jnp.maximum(acc + b_ref[...], 0.0) * mask

        # conv1: host-side im2col (9 taps x 4 ch = 36 lanes) -> one K=128 matmul
        x = jnp.dot(x0_ref[...], c1w_ref[...], preferred_element_type=jnp.float32)
        x = jnp.maximum(x + c1b_ref[...], 0.0) * mask

        x = conv_roll(x, c2w_ref, c2b_ref)        # 32 -> 64
        x = conv_roll(x, c3w_ref, c3b_ref)        # 64 -> 128
        # fused heads: policy_conv1 (lanes 0..31) + value_conv1 (lanes 32..47)
        xh = conv_roll(x, h1w_ref, h1b_ref)
        # fused: policy_conv2 (lanes 0..3) + value_conv2 (lanes 4..5)
        xh = conv_roll(xh, h2w_ref, h2b_ref)

        # ---- policy head: FC (NCHW flatten folded into pu) + log_softmax ----
        pacc = xh[:, 0:1] * pu_ref[0]
        for ch in range(1, 4):
            pacc = pacc + xh[:, ch:ch + 1] * pu_ref[ch]
        logits = jnp.sum(pacc, axis=0, keepdims=True) + pb_ref[...]   # (1, A)
        z = logits - jnp.max(logits, axis=-1, keepdims=True)
        pol_ref[...] = z - jnp.log(jnp.sum(jnp.exp(z), axis=-1, keepdims=True))

        # ---- value head: FC -> ReLU -> FC -> tanh ----
        vacc = xh[:, 4:5] * vu_ref[0] + xh[:, 5:6] * vu_ref[1]
        hid = jnp.maximum(jnp.sum(vacc, axis=0, keepdims=True) + vb1_ref[...],
                          0.0)                                        # (1, 64)
        v = jnp.sum(hid * vw2_ref[...], axis=-1, keepdims=True) + vb2_ref[...]
        val_ref[...] = jnp.tanh(v)                                    # (1, 1)

    return kernel


# ------------------------------ forward wrapper ------------------------------

def chessnet_forward(x_nchw, kp):
    n, c, h, w = x_nchw.shape
    per = (h + 2) * (w + 2)
    per_pad = kp["mask"].shape[0]
    a = kp["pb"].shape[1]

    # Host-side glue: im2col for conv1 only, laid out per sample in the
    # padded-flat (per_pad, 128) layout (bf16: it feeds the MXU directly).
    xh = jnp.transpose(x_nchw.astype(jnp.float32), (0, 2, 3, 1))        # NHWC
    xp = jnp.pad(xh, ((0, 0), (1, 1), (1, 1), (0, 0)))
    taps = [xp[:, dy:dy + h, dx:dx + w, :]
            for dy in range(3) for dx in range(3)]
    col = jnp.concatenate(taps, axis=-1)                                # (N,H,W,9C)
    col = jnp.pad(col, ((0, 0), (1, 1), (1, 1), (0, CPAD - 9 * c)))     # zero borders
    x0 = col.reshape(n, per, CPAD)
    x0 = jnp.pad(x0, ((0, 0), (0, per_pad - per), (0, 0))).astype(jnp.bfloat16)

    weights = (kp["mask"],
               kp["c1w"], kp["c1b"], kp["c2w"], kp["c2b"], kp["c3w"], kp["c3b"],
               kp["h1w"], kp["h1b"], kp["h2w"], kp["h2b"],
               kp["pu"], kp["pb"], kp["vu"], kp["vb1"], kp["vw2"], kp["vb2"])
    vmem = pl.BlockSpec(memory_space=pltpu.MemorySpace.VMEM)           # untiled, resident

    pol, val = pl.pallas_call(
        make_chessnet_kernel(w, per_pad),
        out_shape=(jax.ShapeDtypeStruct((n, 1, a), jnp.float32),
                   jax.ShapeDtypeStruct((n, 1, 1), jnp.float32)),
        grid=(n,),
        in_specs=[pl.BlockSpec((None, per_pad, CPAD), lambda b: (b, 0, 0))]
                 + [vmem] * len(weights),
        out_specs=(pl.BlockSpec((None, 1, a), lambda b: (b, 0, 0)),
                   pl.BlockSpec((None, 1, 1), lambda b: (b, 0, 0))),
        compiler_params=pltpu.CompilerParams(
            dimension_semantics=("parallel",)),
    )(x0, *weights)
    return pol[:, 0, :], val[:, 0, :]


# ------------------------------ param packing --------------------------------

def pack_params(p, height, width, cpad=CPAD):
    """Fold all layout work (tap ordering, channel padding, head-conv fusion,
    the NCHW-flatten permutation of the head FCs, interior mask) into static,
    batch-independent arrays; the per-forward path is just one pallas_call."""
    hp, wp = height + 2, width + 2
    per = hp * wp
    per_pad = ((per + 7) // 8) * 8                  # sublane-aligned rows/sample

    def conv_w(wt):                                  # (cout,cin,3,3)->(9,128,128) bf16
        cout, cin = wt.shape[0], wt.shape[1]
        w4 = jnp.transpose(wt, (2, 3, 1, 0))         # (ky, kx, cin, cout)
        w4 = jnp.pad(w4, ((0, 0), (0, 0), (0, cpad - cin), (0, cpad - cout)))
        return w4.reshape(9, cpad, cpad).astype(jnp.bfloat16)

    def bias_lane(pairs):                            # [(lane_offset, vec), ...]
        b = np.zeros((1, cpad), np.float32)
        for off, vec in pairs:
            v = np.asarray(vec)
            b[0, off:off + v.shape[0]] = v
        return jnp.asarray(b)

    def head_u(wt, chans):                           # (c*H*W, A) -> (c, per_pad, A)
        a = wt.shape[1]
        w4 = wt.reshape(chans, height, width, a)
        w4 = jnp.pad(w4, ((0, 0), (1, 1), (1, 1), (0, 0)))   # zero at borders
        u = w4.reshape(chans, per, a)
        return jnp.pad(u, ((0, 0), (0, per_pad - per), (0, 0))).astype(jnp.float32)

    # interior mask, pre-broadcast to a full lane tile (hoisted out of kernel)
    q = np.arange(per_pad)
    py, px = q // wp, q % wp
    interior = (q < per) & (py >= 1) & (py <= height) & (px >= 1) & (px <= width)
    mask = jnp.asarray(np.broadcast_to(
        interior.astype(np.float32)[:, None], (per_pad, cpad)).copy())

    kp = {"mask": mask}

    # conv1 packed for host-side im2col: rows ordered (ky, kx, cin)
    cout1, cin1 = p["conv1_w"].shape[0], p["conv1_w"].shape[1]
    assert 9 * cin1 <= cpad, "conv1 im2col needs 9*cin <= 128"
    c1 = jnp.transpose(p["conv1_w"], (2, 3, 1, 0)).reshape(9 * cin1, cout1)
    kp["c1w"] = jnp.pad(c1, ((0, cpad - 9 * cin1),
                             (0, cpad - cout1))).astype(jnp.bfloat16)
    kp["c1b"] = bias_lane([(0, p["conv1_b"])])

    kp["c2w"], kp["c2b"] = conv_w(p["conv2_w"]), bias_lane([(0, p["conv2_b"])])
    kp["c3w"], kp["c3b"] = conv_w(p["conv3_w"]), bias_lane([(0, p["conv3_b"])])

    # fused head conv 1: policy_conv1 -> lanes 0..31, value_conv1 -> lanes 32..47
    h1 = jnp.concatenate([p["pconv1_w"], p["vconv1_w"]], axis=0)   # (48,128,3,3)
    kp["h1w"] = conv_w(h1)
    kp["h1b"] = bias_lane([(0, p["pconv1_b"]), (32, p["vconv1_b"])])

    # fused head conv 2: policy_conv2 (in lanes 0..31 -> out 0..3),
    #                    value_conv2  (in lanes 32..47 -> out 4..5)
    h2 = np.zeros((6, 48, 3, 3), np.float32)
    h2[0:4, 0:32] = np.asarray(p["pconv2_w"])
    h2[4:6, 32:48] = np.asarray(p["vconv2_w"])
    kp["h2w"] = conv_w(jnp.asarray(h2))
    kp["h2b"] = bias_lane([(0, p["pconv2_b"]), (4, p["vconv2_b"])])

    kp["pu"] = head_u(p["pfc1_w"], 4)
    kp["pb"] = p["pfc1_b"].reshape(1, -1).astype(jnp.float32)
    kp["vu"] = head_u(p["vfc1_w"], 2)
    kp["vb1"] = p["vfc1_b"].reshape(1, -1).astype(jnp.float32)
    kp["vw2"] = p["vfc2_w"].reshape(1, -1).astype(jnp.float32)       # (1, 64)
    kp["vb2"] = p["vfc2_b"].reshape(1, 1).astype(jnp.float32)
    return kp


# ------------------------------ param init -----------------------------------

def init_params(key, height, width, channel, n_actions):
    def conv_w(k, cout, cin):
        return 0.1 * jax.random.normal(k, (cout, cin, 3, 3), jnp.float32)

    def lin_w(k, fin, fout):
        return 0.1 * jax.random.normal(k, (fin, fout), jnp.float32)   # (in, out)

    ks = jax.random.split(key, 20)
    hw = height * width
    return {
        "conv1_w": conv_w(ks[0], 32, channel),  "conv1_b": 0.01 * jax.random.normal(ks[1], (32,)),
        "conv2_w": conv_w(ks[2], 64, 32),       "conv2_b": 0.01 * jax.random.normal(ks[3], (64,)),
        "conv3_w": conv_w(ks[4], 128, 64),      "conv3_b": 0.01 * jax.random.normal(ks[5], (128,)),
        "pconv1_w": conv_w(ks[6], 32, 128),     "pconv1_b": 0.01 * jax.random.normal(ks[7], (32,)),
        "pconv2_w": conv_w(ks[8], 4, 32),       "pconv2_b": 0.01 * jax.random.normal(ks[9], (4,)),
        "pfc1_w": lin_w(ks[10], 4 * hw, n_actions),
        "pfc1_b": 0.01 * jax.random.normal(ks[11], (n_actions,)),
        "vconv1_w": conv_w(ks[12], 16, 128),    "vconv1_b": 0.01 * jax.random.normal(ks[13], (16,)),
        "vconv2_w": conv_w(ks[14], 2, 16),      "vconv2_b": 0.01 * jax.random.normal(ks[15], (2,)),
        "vfc1_w": lin_w(ks[16], 2 * hw, 64),
        "vfc1_b": 0.01 * jax.random.normal(ks[17], (64,)),
        "vfc2_w": lin_w(ks[18], 64, 1),
        "vfc2_b": 0.01 * jax.random.normal(ks[19], (1,)),
    }


# ------------------------------ reference (pure JAX) --------------------------

def reference_forward(x, p):
    def conv(h, wt, b):
        y = jax.lax.conv_general_dilated(
            h, wt, window_strides=(1, 1), padding="SAME",
            dimension_numbers=("NCHW", "OIHW", "NCHW"))
        return jax.nn.relu(y + b[None, :, None, None])

    n = x.shape[0]
    x1 = conv(x, p["conv1_w"], p["conv1_b"])
    x2 = conv(x1, p["conv2_w"], p["conv2_b"])
    x3 = conv(x2, p["conv3_w"], p["conv3_b"])
    xp = conv(x3, p["pconv1_w"], p["pconv1_b"])
    xp = conv(xp, p["pconv2_w"], p["pconv2_b"])
    logits = xp.reshape(n, -1) @ p["pfc1_w"] + p["pfc1_b"]
    logp = jax.nn.log_softmax(logits, axis=-1)
    xv = conv(x3, p["vconv1_w"], p["vconv1_b"])
    xv = conv(xv, p["vconv2_w"], p["vconv2_b"])
    hid = jax.nn.relu(xv.reshape(n, -1) @ p["vfc1_w"] + p["vfc1_b"])
    val = jnp.tanh(hid @ p["vfc2_w"] + p["vfc2_b"])
    return logp, val


# --------------------------------- main ---------------------------------------

if __name__ == "__main__":
    height, width, channel, n_actions = 8, 8, 4, 64
    batch = 2

    key = jax.random.PRNGKey(0)
    k_in, k_par = jax.random.split(key)
    x = jax.random.normal(k_in, (batch, channel, height, width), jnp.float32)  # NCHW
    params = init_params(k_par, height, width, channel, n_actions)
    kparams = pack_params(params, height, width)        # one-time, batch-independent

    fwd = jax.jit(chessnet_forward)
    log_policy, value = fwd(x, kparams)
    jax.block_until_ready((log_policy, value))

    assert log_policy.shape == (batch, n_actions)
    assert value.shape == (batch, 1)
    # log_softmax rows sum (in prob space) to ~1; value is tanh-bounded
    assert jnp.allclose(jnp.sum(jnp.exp(log_policy), axis=1), 1.0, atol=1e-4)
    assert jnp.all(jnp.abs(value) <= 1.0 + 1e-6)

    # numerical check against the pure-JAX f32 reference; kernel uses bf16 conv
    # operands, so tolerances are loose — layout/tap bugs would give O(1) errors.
    ref_logp, ref_val = reference_forward(x, params)
    pol_err = float(jnp.max(jnp.abs(log_policy - ref_logp)))
    val_err = float(jnp.max(jnp.abs(value - ref_val)))
    assert pol_err < 0.5, f"policy mismatch vs reference: {pol_err}"
    assert val_err < 0.1, f"value mismatch vs reference: {val_err}"

    print("KERNEL_OK")
</pallas_src>

<mosaic_0001>
module attributes {stable_mosaic.version = 11 : i64} {
  func.func @kernel(%arg0: i32, %arg1: memref<1x104x128xbf16, #tpu.memory_space<vmem>>, %arg2: memref<104x128xf32, #tpu.memory_space<vmem>>, %arg3: memref<128x128xbf16, #tpu.memory_space<vmem>>, %arg4: memref<1x128xf32, #tpu.memory_space<vmem>>, %arg5: memref<9x128x128xbf16, #tpu.memory_space<vmem>>, %arg6: memref<1x128xf32, #tpu.memory_space<vmem>>, %arg7: memref<9x128x128xbf16, #tpu.memory_space<vmem>>, %arg8: memref<1x128xf32, #tpu.memory_space<vmem>>, %arg9: memref<9x128x128xbf16, #tpu.memory_space<vmem>>, %arg10: memref<1x128xf32, #tpu.memory_space<vmem>>, %arg11: memref<9x128x128xbf16, #tpu.memory_space<vmem>>, %arg12: memref<1x128xf32, #tpu.memory_space<vmem>>, %arg13: memref<4x104x64xf32, #tpu.memory_space<vmem>>, %arg14: memref<1x64xf32, #tpu.memory_space<vmem>>, %arg15: memref<2x104x64xf32, #tpu.memory_space<vmem>>, %arg16: memref<1x64xf32, #tpu.memory_space<vmem>>, %arg17: memref<1x64xf32, #tpu.memory_space<vmem>>, %arg18: memref<1x1xf32, #tpu.memory_space<vmem>>, %arg19: memref<1x1x64xf32, #tpu.memory_space<vmem>>, %arg20: memref<1x1x1xf32, #tpu.memory_space<vmem>>) attributes {dimension_semantics = [#tpu.dimension_semantics<parallel>], iteration_bounds = array<i64: 2>, scalar_prefetch = 0 : i64, scratch_operands = 0 : i64, tpu.core_type = #tpu.core_type<tc>, window_params = [{transform_indices = @transform_0, window_bounds = array<i64: 1, 104, 128>}, {pipeline_mode = #tpu.pipeline_mode<synchronous>, transform_indices = @transform_1, window_bounds = array<i64: 104, 128>}, {pipeline_mode = #tpu.pipeline_mode<synchronous>, transform_indices = @transform_2, window_bounds = array<i64: 128, 128>}, {pipeline_mode = #tpu.pipeline_mode<synchronous>, transform_indices = @transform_3, window_bounds = array<i64: 1, 128>}, {pipeline_mode = #tpu.pipeline_mode<synchronous>, transform_indices = @transform_4, window_bounds = array<i64: 9, 128, 128>}, {pipeline_mode = #tpu.pipeline_mode<synchronous>, transform_indices = @transform_5, window_bounds = array<i64: 1, 128>}, {pipeline_mode = #tpu.pipeline_mode<synchronous>, transform_indices = @transform_6, window_bounds = array<i64: 9, 128, 128>}, {pipeline_mode = #tpu.pipeline_mode<synchronous>, transform_indices = @transform_7, window_bounds = array<i64: 1, 128>}, {pipeline_mode = #tpu.pipeline_mode<synchronous>, transform_indices = @transform_8, window_bounds = array<i64: 9, 128, 128>}, {pipeline_mode = #tpu.pipeline_mode<synchronous>, transform_indices = @transform_9, window_bounds = array<i64: 1, 128>}, {pipeline_mode = #tpu.pipeline_mode<synchronous>, transform_indices = @transform_10, window_bounds = array<i64: 9, 128, 128>}, {pipeline_mode = #tpu.pipeline_mode<synchronous>, transform_indices = @transform_11, window_bounds = array<i64: 1, 128>}, {pipeline_mode = #tpu.pipeline_mode<synchronous>, transform_indices = @transform_12, window_bounds = array<i64: 4, 104, 64>}, {pipeline_mode = #tpu.pipeline_mode<synchronous>, transform_indices = @transform_13, window_bounds = array<i64: 1, 64>}, {pipeline_mode = #tpu.pipeline_mode<synchronous>, transform_indices = @transform_14, window_bounds = array<i64: 2, 104, 64>}, {pipeline_mode = #tpu.pipeline_mode<synchronous>, transform_indices = @transform_15, window_bounds = array<i64: 1, 64>}, {pipeline_mode = #tpu.pipeline_mode<synchronous>, transform_indices = @transform_16, window_bounds = array<i64: 1, 64>}, {pipeline_mode = #tpu.pipeline_mode<synchronous>, transform_indices = @transform_17, window_bounds = array<i64: 1, 1>}, {transform_indices = @transform_18, window_bounds = array<i64: 1, 1, 64>}, {transform_indices = @transform_19, window_bounds = array<i64: 1, 1, 1>}]} {
    %c0 = arith.constant 0 : index
    %c0_0 = arith.constant 0 : index
    %0 = vector.load %arg2[%c0, %c0_0] : memref<104x128xf32, #tpu.memory_space<vmem>>, vector<104x128xf32>
    %c0_1 = arith.constant 0 : index
    %c0_2 = arith.constant 0 : index
    %c0_3 = arith.constant 0 : index
    %1 = vector.load %arg1[%c0_1, %c0_2, %c0_3] : memref<1x104x128xbf16, #tpu.memory_space<vmem>>, vector<1x104x128xbf16>
    %2 = vector.shape_cast %1 : vector<1x104x128xbf16> to vector<104x128xbf16>
    %c0_4 = arith.constant 0 : index
    %c0_5 = arith.constant 0 : index
    %3 = vector.load %arg3[%c0_4, %c0_5] : memref<128x128xbf16, #tpu.memory_space<vmem>>, vector<128x128xbf16>
    %cst = arith.constant dense<0.000000e+00> : vector<104x128xf32>
    %4 = tpu.matmul %2, %3, %cst {dimension_numbers = #tpu.dot_dimension_numbers<[1], [0], [0], [1], [0, 0, 1, 1], [], []>} : vector<104x128xbf16>, vector<128x128xbf16>, vector<104x128xf32> -> vector<104x128xf32>
    %c0_6 = arith.constant 0 : index
    %c0_7 = arith.constant 0 : index
    %5 = vector.load %arg4[%c0_6, %c0_7] : memref<1x128xf32, #tpu.memory_space<vmem>>, vector<1x128xf32>
    %6 = vector.broadcast %5 : vector<1x128xf32> to vector<104x128xf32>
    %7 = arith.addf %4, %6 : vector<104x128xf32>
    %cst_8 = arith.constant 0.000000e+00 : f32
    %8 = vector.broadcast %cst_8 : f32 to vector<104x128xf32>
    %9 = arith.maximumf %7, %8 : vector<104x128xf32>
    %10 = arith.mulf %9, %0 : vector<104x128xf32>
    %c11_i32 = arith.constant 11 : i32
    %11 = tpu.dynamic_rotate %10 by %c11_i32 dim 0 : vector<104x128xf32>, i32 -> vector<104x128xf32>
    %12 = arith.truncf %11 : vector<104x128xf32> to vector<104x128xbf16>
    %c0_9 = arith.constant 0 : index
    %c0_10 = arith.constant 0 : index
    %c0_11 = arith.constant 0 : index
    %13 = vector.load %arg5[%c0_9, %c0_10, %c0_11] : memref<9x128x128xbf16, #tpu.memory_space<vmem>>, vector<1x128x128xbf16>
    %14 = vector.shape_cast %13 : vector<1x128x128xbf16> to vector<128x128xbf16>
    %cst_12 = arith.constant dense<0.000000e+00> : vector<104x128xf32>
    %15 = tpu.matmul %12, %14, %cst_12 {dimension_numbers = #tpu.dot_dimension_numbers<[1], [0], [0], [1], [0, 0, 1, 1], [], []>} : vector<104x128xbf16>, vector<128x128xbf16>, vector<104x128xf32> -> vector<104x128xf32>
    %c10_i32 = arith.constant 10 : i32
    %16 = tpu.dynamic_rotate %10 by %c10_i32 dim 0 : vector<104x128xf32>, i32 -> vector<104x128xf32>
    %17 = arith.truncf %16 : vector<104x128xf32> to vector<104x128xbf16>
    %c1 = arith.constant 1 : index
    %c0_13 = arith.constant 0 : index
    %c0_14 = arith.constant 0 : index
    %18 = vector.load %arg5[%c1, %c0_13, %c0_14] : memref<9x128x128xbf16, #tpu.memory_space<vmem>>, vector<1x128x128xbf16>
    %19 = vector.shape_cast %18 : vector<1x128x128xbf16> to vector<128x128xbf16>
    %cst_15 = arith.constant dense<0.000000e+00> : vector<104x128xf32>
    %20 = tpu.matmul %17, %19, %cst_15 {dimension_numbers = #tpu.dot_dimension_numbers<[1], [0], [0], [1], [0, 0, 1, 1], [], []>} : vector<104x128xbf16>, vector<128x128xbf16>, vector<104x128xf32> -> vector<104x128xf32>
    %21 = arith.addf %15, %20 : vector<104x128xf32>
    %c9_i32 = arith.constant 9 : i32
    %22 = tpu.dynamic_rotate %10 by %c9_i32 dim 0 : vector<104x128xf32>, i32 -> vector<104x128xf32>
    %23 = arith.truncf %22 : vector<104x128xf32> to vector<104x128xbf16>
    %c2 = arith.constant 2 : index
    %c0_16 = arith.constant 0 : index
    %c0_17 = arith.constant 0 : index
    %24 = vector.load %arg5[%c2, %c0_16, %c0_17] : memref<9x128x128xbf16, #tpu.memory_space<vmem>>, vector<1x128x128xbf16>
    %25 = vector.shape_cast %24 : vector<1x128x128xbf16> to vector<128x128xbf16>
    %cst_18 = arith.constant dense<0.000000e+00> : vector<104x128xf32>
    %26 = tpu.matmul %23, %25, %cst_18 {dimension_numbers = #tpu.dot_dimension_numbers<[1], [0], [0], [1], [0, 0, 1, 1], [], []>} : vector<104x128xbf16>, vector<128x128xbf16>, vector<104x128xf32> -> vector<104x128xf32>
    %27 = arith.addf %21, %26 : vector<104x128xf32>
    %c1_i32 = arith.constant 1 : i32
    %28 = tpu.dynamic_rotate %10 by %c1_i32 dim 0 : vector<104x128xf32>, i32 -> vector<104x128xf32>
    %29 = arith.truncf %28 : vector<104x128xf32> to vector<104x128xbf16>
    %c3 = arith.constant 3 : index
    %c0_19 = arith.constant 0 : index
    %c0_20 = arith.constant 0 : index
    %30 = vector.load %arg5[%c3, %c0_19, %c0_20] : memref<9x128x128xbf16, #tpu.memory_space<vmem>>, vector<1x128x128xbf16>
    %31 = vector.shape_cast %30 : vector<1x128x128xbf16> to vector<128x128xbf16>
    %cst_21 = arith.constant dense<0.000000e+00> : vector<104x128xf32>
    %32 = tpu.matmul %29, %31, %cst_21 {dimension_numbers = #tpu.dot_dimension_numbers<[1], [0], [0], [1], [0, 0, 1, 1], [], []>} : vector<104x128xbf16>, vector<128x128xbf16>, vector<104x128xf32> -> vector<104x128xf32>
    %33 = arith.addf %27, %32 : vector<104x128xf32>
    %34 = arith.truncf %10 : vector<104x128xf32> to vector<104x128xbf16>
    %c4 = arith.constant 4 : index
    %c0_22 = arith.constant 0 : index
    %c0_23 = arith.constant 0 : index
    %35 = vector.load %arg5[%c4, %c0_22, %c0_23] : memref<9x128x128xbf16, #tpu.memory_space<vmem>>, vector<1x128x128xbf16>
    %36 = vector.shape_cast %35 : vector<1x128x128xbf16> to vector<128x128xbf16>
    %cst_24 = arith.constant dense<0.000000e+00> : vector<104x128xf32>
    %37 = tpu.matmul %34, %36, %cst_24 {dimension_numbers = #tpu.dot_dimension_numbers<[1], [0], [0], [1], [0, 0, 1, 1], [], []>} : vector<104x128xbf16>, vector<128x128xbf16>, vector<104x128xf32> -> vector<104x128xf32>
    %38 = arith.addf %33, %37 : vector<104x128xf32>
    %c103_i32 = arith.constant 103 : i32
    %39 = tpu.dynamic_rotate %10 by %c103_i32 dim 0 : vector<104x128xf32>, i32 -> vector<104x128xf32>
    %40 = arith.truncf %39 : vector<104x128xf32> to vector<104x128xbf16>
    %c5 = arith.constant 5 : index
    %c0_25 = arith.constant 0 : index
    %c0_26 = arith.constant 0 : index
    %41 = vector.load %arg5[%c5, %c0_25, %c0_26] : memref<9x128x128xbf16, #tpu.memory_space<vmem>>, vector<1x128x128xbf16>
    %42 = vector.shape_cast %41 : vector<1x128x128xbf16> to vector<128x128xbf16>
    %cst_27 = arith.constant dense<0.000000e+00> : vector<104x128xf32>
    %43 = tpu.matmul %40, %42, %cst_27 {dimension_numbers = #tpu.dot_dimension_numbers<[1], [0], [0], [1], [0, 0, 1, 1], [], []>} : vector<104x128xbf16>, vector<128x128xbf16>, vector<104x128xf32> -> vector<104x128xf32>
    %44 = arith.addf %38, %43 : vector<104x128xf32>
    %c95_i32 = arith.constant 95 : i32
    %45 = tpu.dynamic_rotate %10 by %c95_i32 dim 0 : vector<104x128xf32>, i32 -> vector<104x128xf32>
    %46 = arith.truncf %45 : vector<104x128xf32> to vector<104x128xbf16>
    %c6 = arith.constant 6 : index
    %c0_28 = arith.constant 0 : index
    %c0_29 = arith.constant 0 : index
    %47 = vector.load %arg5[%c6, %c0_28, %c0_29] : memref<9x128x128xbf16, #tpu.memory_space<vmem>>, vector<1x128x128xbf16>
    %48 = vector.shape_cast %47 : vector<1x128x128xbf16> to vector<128x128xbf16>
    %cst_30 = arith.constant dense<0.000000e+00> : vector<104x128xf32>
    %49 = tpu.matmul %46, %48, %cst_30 {dimension_numbers = #tpu.dot_dimension_numbers<[1], [0], [0], [1], [0, 0, 1, 1], [], []>} : vector<104x128xbf16>, vector<128x128xbf16>, vector<104x128xf32> -> vector<104x128xf32>
    %50 = arith.addf %44, %49 : vector<104x128xf32>
    %c94_i32 = arith.constant 94 : i32
    %51 = tpu.dynamic_rotate %10 by %c94_i32 dim 0 : vector<104x128xf32>, i32 -> vector<104x128xf32>
    %52 = arith.truncf %51 : vector<104x128xf32> to vector<104x128xbf16>
    %c7 = arith.constant 7 : index
    %c0_31 = arith.constant 0 : index
    %c0_32 = arith.constant 0 : index
    %53 = vector.load %arg5[%c7, %c0_31, %c0_32] : memref<9x128x128xbf16, #tpu.memory_space<vmem>>, vector<1x128x128xbf16>
    %54 = vector.shape_cast %53 : vector<1x128x128xbf16> to vector<128x128xbf16>
    %cst_33 = arith.constant dense<0.000000e+00> : vector<104x128xf32>
    %55 = tpu.matmul %52, %54, %cst_33 {dimension_numbers = #tpu.dot_dimension_numbers<[1], [0], [0], [1], [0, 0, 1, 1], [], []>} : vector<104x128xbf16>, vector<128x128xbf16>, vector<104x128xf32> -> vector<104x128xf32>
    %56 = arith.addf %50, %55 : vector<104x128xf32>
    %c93_i32 = arith.constant 93 : i32
    %57 = tpu.dynamic_rotate %10 by %c93_i32 dim 0 : vector<104x128xf32>, i32 -> vector<104x128xf32>
    %58 = arith.truncf %57 : vector<104x128xf32> to vector<104x128xbf16>
    %c8 = arith.constant 8 : index
    %c0_34 = arith.constant 0 : index
    %c0_35 = arith.constant 0 : index
    %59 = vector.load %arg5[%c8, %c0_34, %c0_35] : memref<9x128x128xbf16, #tpu.memory_space<vmem>>, vector<1x128x128xbf16>
    %60 = vector.shape_cast %59 : vector<1x128x128xbf16> to vector<128x128xbf16>
    %cst_36 = arith.constant dense<0.000000e+00> : vector<104x128xf32>
    %61 = tpu.matmul %58, %60, %cst_36 {dimension_numbers = #tpu.dot_dimension_numbers<[1], [0], [0], [1], [0, 0, 1, 1], [], []>} : vector<104x128xbf16>, vector<128x128xbf16>, vector<104x128xf32> -> vector<104x128xf32>
    %62 = arith.addf %56, %61 : vector<104x128xf32>
    %c0_37 = arith.constant 0 : index
    %c0_38 = arith.constant 0 : index
    %63 = vector.load %arg6[%c0_37, %c0_38] : memref<1x128xf32, #tpu.memory_space<vmem>>, vector<1x128xf32>
    %64 = vector.broadcast %63 : vector<1x128xf32> to vector<104x128xf32>
    %65 = arith.addf %62, %64 : vector<104x128xf32>
    %cst_39 = arith.constant 0.000000e+00 : f32
    %66 = vector.broadcast %cst_39 : f32 to vector<104x128xf32>
    %67 = arith.maximumf %65, %66 : vector<104x128xf32>
    %68 = arith.mulf %67, %0 : vector<104x128xf32>
    %c11_i32_40 = arith.constant 11 : i32
    %69 = tpu.dynamic_rotate %68 by %c11_i32_40 dim 0 : vector<104x128xf32>, i32 -> vector<104x128xf32>
    %70 = arith.truncf %69 : vector<104x128xf32> to vector<104x128xbf16>
    %c0_41 = arith.constant 0 : index
    %c0_42 = arith.constant 0 : index
    %c0_43 = arith.constant 0 : index
    %71 = vector.load %arg7[%c0_41, %c0_42, %c0_43] : memref<9x128x128xbf16, #tpu.memory_space<vmem>>, vector<1x128x128xbf16>
    %72 = vector.shape_cast %71 : vector<1x128x128xbf16> to vector<128x128xbf16>
    %cst_44 = arith.constant dense<0.000000e+00> : vector<104x128xf32>
    %73 = tpu.matmul %70, %72, %cst_44 {dimension_numbers = #tpu.dot_dimension_numbers<[1], [0], [0], [1], [0, 0, 1, 1], [], []>} : vector<104x128xbf16>, vector<128x128xbf16>, vector<104x128xf32> -> vector<104x128xf32>
    %c10_i32_45 = arith.constant 10 : i32
    %74 = tpu.dynamic_rotate %68 by %c10_i32_45 dim 0 : vector<104x128xf32>, i32 -> vector<104x128xf32>
    %75 = arith.truncf %74 : vector<104x128xf32> to vector<104x128xbf16>
    %c1_46 = arith.constant 1 : index
    %c0_47 = arith.constant 0 : index
    %c0_48 = arith.constant 0 : index
    %76 = vector.load %arg7[%c1_46, %c0_47, %c0_48] : memref<9x128x128xbf16, #tpu.memory_space<vmem>>, vector<1x128x128xbf16>
    %77 = vector.shape_cast %76 : vector<1x128x128xbf16> to vector<128x128xbf16>
    %cst_49 = arith.constant dense<0.000000e+00> : vector<104x128xf32>
    %78 = tpu.matmul %75, %77, %cst_49 {dimension_numbers = #tpu.dot_dimension_numbers<[1], [0], [0], [1], [0, 0, 1, 1], [], []>} : vector<104x128xbf16>, vector<128x128xbf16>, vector<104x128xf32> -> vector<104x128xf32>
    %79 = arith.addf %73, %78 : vector<104x128xf32>
    %c9_i32_50 = arith.constant 9 : i32
    %80 = tpu.dynamic_rotate %68 by %c9_i32_50 dim 0 : vector<104x128xf32>, i32 -> vector<104x128xf32>
    %81 = arith.truncf %80 : vector<104x128xf32> to vector<104x128xbf16>
    %c2_51 = arith.constant 2 : index
    %c0_52 = arith.constant 0 : index
    %c0_53 = arith.constant 0 : index
    %82 = vector.load %arg7[%c2_51, %c0_52, %c0_53] : memref<9x128x128xbf16, #tpu.memory_space<vmem>>, vector<1x128x128xbf16>
    %83 = vector.shape_cast %82 : vector<1x128x128xbf16> to vector<128x128xbf16>
    %cst_54 = arith.constant dense<0.000000e+00> : vector<104x128xf32>
    %84 = tpu.matmul %81, %83, %cst_54 {dimension_numbers = #tpu.dot_dimension_numbers<[1], [0], [0], [1], [0, 0, 1, 1], [], []>} : vector<104x128xbf16>, vector<128x128xbf16>, vector<104x128xf32> -> vector<104x128xf32>
    %85 = arith.addf %79, %84 : vector<104x128xf32>
    %c1_i32_55 = arith.constant 1 : i32
    %86 = tpu.dynamic_rotate %68 by %c1_i32_55 dim 0 : vector<104x128xf32>, i32 -> vector<104x128xf32>
    %87 = arith.truncf %86 : vector<104x128xf32> to vector<104x128xbf16>
    %c3_56 = arith.constant 3 : index
    %c0_57 = arith.constant 0 : index
    %c0_58 = arith.constant 0 : index
    %88 = vector.load %arg7[%c3_56, %c0_57, %c0_58] : memref<9x128x128xbf16, #tpu.memory_space<vmem>>, vector<1x128x128xbf16>
    %89 = vector.shape_cast %88 : vector<1x128x128xbf16> to vector<128x128xbf16>
    %cst_59 = arith.constant dense<0.000000e+00> : vector<104x128xf32>
    %90 = tpu.matmul %87, %89, %cst_59 {dimension_numbers = #tpu.dot_dimension_numbers<[1], [0], [0], [1], [0, 0, 1, 1], [], []>} : vector<104x128xbf16>, vector<128x128xbf16>, vector<104x128xf32> -> vector<104x128xf32>
    %91 = arith.addf %85, %90 : vector<104x128xf32>
    %92 = arith.truncf %68 : vector<104x128xf32> to vector<104x128xbf16>
    %c4_60 = arith.constant 4 : index
    %c0_61 = arith.constant 0 : index
    %c0_62 = arith.constant 0 : index
    %93 = vector.load %arg7[%c4_60, %c0_61, %c0_62] : memref<9x128x128xbf16, #tpu.memory_space<vmem>>, vector<1x128x128xbf16>
    %94 = vector.shape_cast %93 : vector<1x128x128xbf16> to vector<128x128xbf16>
    %cst_63 = arith.constant dense<0.000000e+00> : vector<104x128xf32>
    %95 = tpu.matmul %92, %94, %cst_63 {dimension_numbers = #tpu.dot_dimension_numbers<[1], [0], [0], [1], [0, 0, 1, 1], [], []>} : vector<104x128xbf16>, vector<128x128xbf16>, vector<104x128xf32> -> vector<104x128xf32>
    %96 = arith.addf %91, %95 : vector<104x128xf32>
    %c103_i32_64 = arith.constant 103 : i32
    %97 = tpu.dynamic_rotate %68 by %c103_i32_64 dim 0 : vector<104x128xf32>, i32 -> vector<104x128xf32>
    %98 = arith.truncf %97 : vector<104x128xf32> to vector<104x128xbf16>
    %c5_65 = arith.constant 5 : index
    %c0_66 = arith.constant 0 : index
    %c0_67 = arith.constant 0 : index
    %99 = vector.load %arg7[%c5_65, %c0_66, %c0_67] : memref<9x128x128xbf16, #tpu.memory_space<vmem>>, vector<1x128x128xbf16>
    %100 = vector.shape_cast %99 : vector<1x128x128xbf16> to vector<128x128xbf16>
    %cst_68 = arith.constant dense<0.000000e+00> : vector<104x128xf32>
    %101 = tpu.matmul %98, %100, %cst_68 {dimension_numbers = #tpu.dot_dimension_numbers<[1], [0], [0], [1], [0, 0, 1, 1], [], []>} : vector<104x128xbf16>, vector<128x128xbf16>, vector<104x128xf32> -> vector<104x128xf32>
    %102 = arith.addf %96, %101 : vector<104x128xf32>
    %c95_i32_69 = arith.constant 95 : i32
    %103 = tpu.dynamic_rotate %68 by %c95_i32_69 dim 0 : vector<104x128xf32>, i32 -> vector<104x128xf32>
    %104 = arith.truncf %103 : vector<104x128xf32> to vector<104x128xbf16>
    %c6_70 = arith.constant 6 : index
    %c0_71 = arith.constant 0 : index
    %c0_72 = arith.constant 0 : index
    %105 = vector.load %arg7[%c6_70, %c0_71, %c0_72] : memref<9x128x128xbf16, #tpu.memory_space<vmem>>, vector<1x128x128xbf16>
    %106 = vector.shape_cast %105 : vector<1x128x128xbf16> to vector<128x128xbf16>
    %cst_73 = arith.constant dense<0.000000e+00> : vector<104x128xf32>
    %107 = tpu.matmul %104, %106, %cst_73 {dimension_numbers = #tpu.dot_dimension_numbers<[1], [0], [0], [1], [0, 0, 1, 1], [], []>} : vector<104x128xbf16>, vector<128x128xbf16>, vector<104x128xf32> -> vector<104x128xf32>
    %108 = arith.addf %102, %107 : vector<104x128xf32>
    %c94_i32_74 = arith.constant 94 : i32
    %109 = tpu.dynamic_rotate %68 by %c94_i32_74 dim 0 : vector<104x128xf32>, i32 -> vector<104x128xf32>
    %110 = arith.truncf %109 : vector<104x128xf32> to vector<104x128xbf16>
    %c7_75 = arith.constant 7 : index
    %c0_76 = arith.constant 0 : index
    %c0_77 = arith.constant 0 : index
    %111 = vector.load %arg7[%c7_75, %c0_76, %c0_77] : memref<9x128x128xbf16, #tpu.memory_space<vmem>>, vector<1x128x128xbf16>
    %112 = vector.shape_cast %111 : vector<1x128x128xbf16> to vector<128x128xbf16>
    %cst_78 = arith.constant dense<0.000000e+00> : vector<104x128xf32>
    %113 = tpu.matmul %110, %112, %cst_78 {dimension_numbers = #tpu.dot_dimension_numbers<[1], [0], [0], [1], [0, 0, 1, 1], [], []>} : vector<104x128xbf16>, vector<128x128xbf16>, vector<104x128xf32> -> vector<104x128xf32>
    %114 = arith.addf %108, %113 : vector<104x128xf32>
    %c93_i32_79 = arith.constant 93 : i32
    %115 = tpu.dynamic_rotate %68 by %c93_i32_79 dim 0 : vector<104x128xf32>, i32 -> vector<104x128xf32>
    %116 = arith.truncf %115 : vector<104x128xf32> to vector<104x128xbf16>
    %c8_80 = arith.constant 8 : index
    %c0_81 = arith.constant 0 : index
    %c0_82 = arith.constant 0 : index
    %117 = vector.load %arg7[%c8_80, %c0_81, %c0_82] : memref<9x128x128xbf16, #tpu.memory_space<vmem>>, vector<1x128x128xbf16>
    %118 = vector.shape_cast %117 : vector<1x128x128xbf16> to vector<128x128xbf16>
    %cst_83 = arith.constant dense<0.000000e+00> : vector<104x128xf32>
    %119 = tpu.matmul %116, %118, %cst_83 {dimension_numbers = #tpu.dot_dimension_numbers<[1], [0], [0], [1], [0, 0, 1, 1], [], []>} : vector<104x128xbf16>, vector<128x128xbf16>, vector<104x128xf32> -> vector<104x128xf32>
    %120 = arith.addf %114, %119 : vector<104x128xf32>
    %c0_84 = arith.constant 0 : index
    %c0_85 = arith.constant 0 : index
    %121 = vector.load %arg8[%c0_84, %c0_85] : memref<1x128xf32, #tpu.memory_space<vmem>>, vector<1x128xf32>
    %122 = vector.broadcast %121 : vector<1x128xf32> to vector<104x128xf32>
    %123 = arith.addf %120, %122 : vector<104x128xf32>
    %cst_86 = arith.constant 0.000000e+00 : f32
    %124 = vector.broadcast %cst_86 : f32 to vector<104x128xf32>
    %125 = arith.maximumf %123, %124 : vector<104x128xf32>
    %126 = arith.mulf %125, %0 : vector<104x128xf32>
    %c11_i32_87 = arith.constant 11 : i32
    %127 = tpu.dynamic_rotate %126 by %c11_i32_87 dim 0 : vector<104x128xf32>, i32 -> vector<104x128xf32>
    %128 = arith.truncf %127 : vector<104x128xf32> to vector<104x128xbf16>
    %c0_88 = arith.constant 0 : index
    %c0_89 = arith.constant 0 : index
    %c0_90 = arith.constant 0 : index
    %129 = vector.load %arg9[%c0_88, %c0_89, %c0_90] : memref<9x128x128xbf16, #tpu.memory_space<vmem>>, vector<1x128x128xbf16>
    %130 = vector.shape_cast %129 : vector<1x128x128xbf16> to vector<128x128xbf16>
    %cst_91 = arith.constant dense<0.000000e+00> : vector<104x128xf32>
    %131 = tpu.matmul %128, %130, %cst_91 {dimension_numbers = #tpu.dot_dimension_numbers<[1], [0], [0], [1], [0, 0, 1, 1], [], []>} : vector<104x128xbf16>, vector<128x128xbf16>, vector<104x128xf32> -> vector<104x128xf32>
    %c10_i32_92 = arith.constant 10 : i32
    %132 = tpu.dynamic_rotate %126 by %c10_i32_92 dim 0 : vector<104x128xf32>, i32 -> vector<104x128xf32>
    %133 = arith.truncf %132 : vector<104x128xf32> to vector<104x128xbf16>
    %c1_93 = arith.constant 1 : index
    %c0_94 = arith.constant 0 : index
    %c0_95 = arith.constant 0 : index
    %134 = vector.load %arg9[%c1_93, %c0_94, %c0_95] : memref<9x128x128xbf16, #tpu.memory_space<vmem>>, vector<1x128x128xbf16>
    %135 = vector.shape_cast %134 : vector<1x128x128xbf16> to vector<128x128xbf16>
    %cst_96 = arith.constant dense<0.000000e+00> : vector<104x128xf32>
    %136 = tpu.matmul %133, %135, %cst_96 {dimension_numbers = #tpu.dot_dimension_numbers<[1], [0], [0], [1], [0, 0, 1, 1], [], []>} : vector<104x128xbf16>, vector<128x128xbf16>, vector<104x128xf32> -> vector<104x128xf32>
    %137 = arith.addf %131, %136 : vector<104x128xf32>
    %c9_i32_97 = arith.constant 9 : i32
    %138 = tpu.dynamic_rotate %126 by %c9_i32_97 dim 0 : vector<104x128xf32>, i32 -> vector<104x128xf32>
    %139 = arith.truncf %138 : vector<104x128xf32> to vector<104x128xbf16>
    %c2_98 = arith.constant 2 : index
    %c0_99 = arith.constant 0 : index
    %c0_100 = arith.constant 0 : index
    %140 = vector.load %arg9[%c2_98, %c0_99, %c0_100] : memref<9x128x128xbf16, #tpu.memory_space<vmem>>, vector<1x128x128xbf16>
    %141 = vector.shape_cast %140 : vector<1x128x128xbf16> to vector<128x128xbf16>
    %cst_101 = arith.constant dense<0.000000e+00> : vector<104x128xf32>
    %142 = tpu.matmul %139, %141, %cst_101 {dimension_numbers = #tpu.dot_dimension_numbers<[1], [0], [0], [1], [0, 0, 1, 1], [], []>} : vector<104x128xbf16>, vector<128x128xbf16>, vector<104x128xf32> -> vector<104x128xf32>
    %143 = arith.addf %137, %142 : vector<104x128xf32>
    %c1_i32_102 = arith.constant 1 : i32
    %144 = tpu.dynamic_rotate %126 by %c1_i32_102 dim 0 : vector<104x128xf32>, i32 -> vector<104x128xf32>
    %145 = arith.truncf %144 : vector<104x128xf32> to vector<104x128xbf16>
    %c3_103 = arith.constant 3 : index
    %c0_104 = arith.constant 0 : index
    %c0_105 = arith.constant 0 : index
    %146 = vector.load %arg9[%c3_103, %c0_104, %c0_105] : memref<9x128x128xbf16, #tpu.memory_space<vmem>>, vector<1x128x128xbf16>
    %147 = vector.shape_cast %146 : vector<1x128x128xbf16> to vector<128x128xbf16>
    %cst_106 = arith.constant dense<0.000000e+00> : vector<104x128xf32>
    %148 = tpu.matmul %145, %147, %cst_106 {dimension_numbers = #tpu.dot_dimension_numbers<[1], [0], [0], [1], [0, 0, 1, 1], [], []>} : vector<104x128xbf16>, vector<128x128xbf16>, vector<104x128xf32> -> vector<104x128xf32>
    %149 = arith.addf %143, %148 : vector<104x128xf32>
    %150 = arith.truncf %126 : vector<104x128xf32> to vector<104x128xbf16>
    %c4_107 = arith.constant 4 : index
    %c0_108 = arith.constant 0 : index
    %c0_109 = arith.constant 0 : index
    %151 = vector.load %arg9[%c4_107, %c0_108, %c0_109] : memref<9x128x128xbf16, #tpu.memory_space<vmem>>, vector<1x128x128xbf16>
    %152 = vector.shape_cast %151 : vector<1x128x128xbf16> to vector<128x128xbf16>
    %cst_110 = arith.constant dense<0.000000e+00> : vector<104x128xf32>
    %153 = tpu.matmul %150, %152, %cst_110 {dimension_numbers = #tpu.dot_dimension_numbers<[1], [0], [0], [1], [0, 0, 1, 1], [], []>} : vector<104x128xbf16>, vector<128x128xbf16>, vector<104x128xf32> -> vector<104x128xf32>
    %154 = arith.addf %149, %153 : vector<104x128xf32>
    %c103_i32_111 = arith.constant 103 : i32
    %155 = tpu.dynamic_rotate %126 by %c103_i32_111 dim 0 : vector<104x128xf32>, i32 -> vector<104x128xf32>
    %156 = arith.truncf %155 : vector<104x128xf32> to vector<104x128xbf16>
    %c5_112 = arith.constant 5 : index
    %c0_113 = arith.constant 0 : index
    %c0_114 = arith.constant 0 : index
    %157 = vector.load %arg9[%c5_112, %c0_113, %c0_114] : memref<9x128x128xbf16, #tpu.memory_space<vmem>>, vector<1x128x128xbf16>
    %158 = vector.shape_cast %157 : vector<1x128x128xbf16> to vector<128x128xbf16>
    %cst_115 = arith.constant dense<0.000000e+00> : vector<104x128xf32>
    %159 = tpu.matmul %156, %158, %cst_115 {dimension_numbers = #tpu.dot_dimension_numbers<[1], [0], [0], [1], [0, 0, 1, 1], [], []>} : vector<104x128xbf16>, vector<128x128xbf16>, vector<104x128xf32> -> vector<104x128xf32>
    %160 = arith.addf %154, %159 : vector<104x128xf32>
    %c95_i32_116 = arith.constant 95 : i32
    %161 = tpu.dynamic_rotate %126 by %c95_i32_116 dim 0 : vector<104x128xf32>, i32 -> vector<104x128xf32>
    %162 = arith.truncf %161 : vector<104x128xf32> to vector<104x128xbf16>
    %c6_117 = arith.constant 6 : index
    %c0_118 = arith.constant 0 : index
    %c0_119 = arith.constant 0 : index
    %163 = vector.load %arg9[%c6_117, %c0_118, %c0_119] : memref<9x128x128xbf16, #tpu.memory_space<vmem>>, vector<1x128x128xbf16>
    %164 = vector.shape_cast %163 : vector<1x128x128xbf16> to vector<128x128xbf16>
    %cst_120 = arith.constant dense<0.000000e+00> : vector<104x128xf32>
    %165 = tpu.matmul %162, %164, %cst_120 {dimension_numbers = #tpu.dot_dimension_numbers<[1], [0], [0], [1], [0, 0, 1, 1], [], []>} : vector<104x128xbf16>, vector<128x128xbf16>, vector<104x128xf32> -> vector<104x128xf32>
    %166 = arith.addf %160, %165 : vector<104x128xf32>
    %c94_i32_121 = arith.constant 94 : i32
    %167 = tpu.dynamic_rotate %126 by %c94_i32_121 dim 0 : vector<104x128xf32>, i32 -> vector<104x128xf32>
    %168 = arith.truncf %167 : vector<104x128xf32> to vector<104x128xbf16>
    %c7_122 = arith.constant 7 : index
    %c0_123 = arith.constant 0 : index
    %c0_124 = arith.constant 0 : index
    %169 = vector.load %arg9[%c7_122, %c0_123, %c0_124] : memref<9x128x128xbf16, #tpu.memory_space<vmem>>, vector<1x128x128xbf16>
    %170 = vector.shape_cast %169 : vector<1x128x128xbf16> to vector<128x128xbf16>
    %cst_125 = arith.constant dense<0.000000e+00> : vector<104x128xf32>
    %171 = tpu.matmul %168, %170, %cst_125 {dimension_numbers = #tpu.dot_dimension_numbers<[1], [0], [0], [1], [0, 0, 1, 1], [], []>} : vector<104x128xbf16>, vector<128x128xbf16>, vector<104x128xf32> -> vector<104x128xf32>
    %172 = arith.addf %166, %171 : vector<104x128xf32>
    %c93_i32_126 = arith.constant 93 : i32
    %173 = tpu.dynamic_rotate %126 by %c93_i32_126 dim 0 : vector<104x128xf32>, i32 -> vector<104x128xf32>
    %174 = arith.truncf %173 : vector<104x128xf32> to vector<104x128xbf16>
    %c8_127 = arith.constant 8 : index
    %c0_128 = arith.constant 0 : index
    %c0_129 = arith.constant 0 : index
    %175 = vector.load %arg9[%c8_127, %c0_128, %c0_129] : memref<9x128x128xbf16, #tpu.memory_space<vmem>>, vector<1x128x128xbf16>
    %176 = vector.shape_cast %175 : vector<1x128x128xbf16> to vector<128x128xbf16>
    %cst_130 = arith.constant dense<0.000000e+00> : vector<104x128xf32>
    %177 = tpu.matmul %174, %176, %cst_130 {dimension_numbers = #tpu.dot_dimension_numbers<[1], [0], [0], [1], [0, 0, 1, 1], [], []>} : vector<104x128xbf16>, vector<128x128xbf16>, vector<104x128xf32> -> vector<104x128xf32>
    %178 = arith.addf %172, %177 : vector<104x128xf32>
    %c0_131 = arith.constant 0 : index
    %c0_132 = arith.constant 0 : index
    %179 = vector.load %arg10[%c0_131, %c0_132] : memref<1x128xf32, #tpu.memory_space<vmem>>, vector<1x128xf32>
    %180 = vector.broadcast %179 : vector<1x128xf32> to vector<104x128xf32>
    %181 = arith.addf %178, %180 : vector<104x128xf32>
    %cst_133 = arith.constant 0.000000e+00 : f32
    %182 = vector.broadcast %cst_133 : f32 to vector<104x128xf32>
    %183 = arith.maximumf %181, %182 : vector<104x128xf32>
    %184 = arith.mulf %183, %0 : vector<104x128xf32>
    %c11_i32_134 = arith.constant 11 : i32
    %185 = tpu.dynamic_rotate %184 by %c11_i32_134 dim 0 : vector<104x128xf32>, i32 -> vector<104x128xf32>
    %186 = arith.truncf %185 : vector<104x128xf32> to vector<104x128xbf16>
    %c0_135 = arith.constant 0 : index
    %c0_136 = arith.constant 0 : index
    %c0_137 = arith.constant 0 : index
    %187 = vector.load %arg11[%c0_135, %c0_136, %c0_137] : memref<9x128x128xbf16, #tpu.memory_space<vmem>>, vector<1x128x128xbf16>
    %188 = vector.shape_cast %187 : vector<1x128x128xbf16> to vector<128x128xbf16>
    %cst_138 = arith.constant dense<0.000000e+00> : vector<104x128xf32>
    %189 = tpu.matmul %186, %188, %cst_138 {dimension_numbers = #tpu.dot_dimension_numbers<[1], [0], [0], [1], [0, 0, 1, 1], [], []>} : vector<104x128xbf16>, vector<128x128xbf16>, vector<104x128xf32> -> vector<104x128xf32>
    %c10_i32_139 = arith.constant 10 : i32
    %190 = tpu.dynamic_rotate %184 by %c10_i32_139 dim 0 : vector<104x128xf32>, i32 -> vector<104x128xf32>
    %191 = arith.truncf %190 : vector<104x128xf32> to vector<104x128xbf16>
    %c1_140 = arith.constant 1 : index
    %c0_141 = arith.constant 0 : index
    %c0_142 = arith.constant 0 : index
    %192 = vector.load %arg11[%c1_140, %c0_141, %c0_142] : memref<9x128x128xbf16, #tpu.memory_space<vmem>>, vector<1x128x128xbf16>
    %193 = vector.shape_cast %192 : vector<1x128x128xbf16> to vector<128x128xbf16>
    %cst_143 = arith.constant dense<0.000000e+00> : vector<104x128xf32>
    %194 = tpu.matmul %191, %193, %cst_143 {dimension_numbers = #tpu.dot_dimension_numbers<[1], [0], [0], [1], [0, 0, 1, 1], [], []>} : vector<104x128xbf16>, vector<128x128xbf16>, vector<104x128xf32> -> vector<104x128xf32>
    %195 = arith.addf %189, %194 : vector<104x128xf32>
    %c9_i32_144 = arith.constant 9 : i32
    %196 = tpu.dynamic_rotate %184 by %c9_i32_144 dim 0 : vector<104x128xf32>, i32 -> vector<104x128xf32>
    %197 = arith.truncf %196 : vector<104x128xf32> to vector<104x128xbf16>
    %c2_145 = arith.constant 2 : index
    %c0_146 = arith.constant 0 : index
    %c0_147 = arith.constant 0 : index
    %198 = vector.load %arg11[%c2_145, %c0_146, %c0_147] : memref<9x128x128xbf16, #tpu.memory_space<vmem>>, vector<1x128x128xbf16>
    %199 = vector.shape_cast %198 : vector<1x128x128xbf16> to vector<128x128xbf16>
    %cst_148 = arith.constant dense<0.000000e+00> : vector<104x128xf32>
    %200 = tpu.matmul %197, %199, %cst_148 {dimension_numbers = #tpu.dot_dimension_numbers<[1], [0], [0], [1], [0, 0, 1, 1], [], []>} : vector<104x128xbf16>, vector<128x128xbf16>, vector<104x128xf32> -> vector<104x128xf32>
    %201 = arith.addf %195, %200 : vector<104x128xf32>
    %c1_i32_149 = arith.constant 1 : i32
    %202 = tpu.dynamic_rotate %184 by %c1_i32_149 dim 0 : vector<104x128xf32>, i32 -> vector<104x128xf32>
    %203 = arith.truncf %202 : vector<104x128xf32> to vector<104x128xbf16>
    %c3_150 = arith.constant 3 : index
    %c0_151 = arith.constant 0 : index
    %c0_152 = arith.constant 0 : index
    %204 = vector.load %arg11[%c3_150, %c0_151, %c0_152] : memref<9x128x128xbf16, #tpu.memory_space<vmem>>, vector<1x128x128xbf16>
    %205 = vector.shape_cast %204 : vector<1x128x128xbf16> to vector<128x128xbf16>
    %cst_153 = arith.constant dense<0.000000e+00> : vector<104x128xf32>
    %206 = tpu.matmul %203, %205, %cst_153 {dimension_numbers = #tpu.dot_dimension_numbers<[1], [0], [0], [1], [0, 0, 1, 1], [], []>} : vector<104x128xbf16>, vector<128x128xbf16>, vector<104x128xf32> -> vector<104x128xf32>
    %207 = arith.addf %201, %206 : vector<104x128xf32>
    %208 = arith.truncf %184 : vector<104x128xf32> to vector<104x128xbf16>
    %c4_154 = arith.constant 4 : index
    %c0_155 = arith.constant 0 : index
    %c0_156 = arith.constant 0 : index
    %209 = vector.load %arg11[%c4_154, %c0_155, %c0_156] : memref<9x128x128xbf16, #tpu.memory_space<vmem>>, vector<1x128x128xbf16>
    %210 = vector.shape_cast %209 : vector<1x128x128xbf16> to vector<128x128xbf16>
    %cst_157 = arith.constant dense<0.000000e+00> : vector<104x128xf32>
    %211 = tpu.matmul %208, %210, %cst_157 {dimension_numbers = #tpu.dot_dimension_numbers<[1], [0], [0], [1], [0, 0, 1, 1], [], []>} : vector<104x128xbf16>, vector<128x128xbf16>, vector<104x128xf32> -> vector<104x128xf32>
    %212 = arith.addf %207, %211 : vector<104x128xf32>
    %c103_i32_158 = arith.constant 103 : i32
    %213 = tpu.dynamic_rotate %184 by %c103_i32_158 dim 0 : vector<104x128xf32>, i32 -> vector<104x128xf32>
    %214 = arith.truncf %213 : vector<104x128xf32> to vector<104x128xbf16>
    %c5_159 = arith.constant 5 : index
    %c0_160 = arith.constant 0 : index
    %c0_161 = arith.constant 0 : index
    %215 = vector.load %arg11[%c5_159, %c0_160, %c0_161] : memref<9x128x128xbf16, #tpu.memory_space<vmem>>, vector<1x128x128xbf16>
    %216 = vector.shape_cast %215 : vector<1x128x128xbf16> to vector<128x128xbf16>
    %cst_162 = arith.constant dense<0.000000e+00> : vector<104x128xf32>
    %217 = tpu.matmul %214, %216, %cst_162 {dimension_numbers = #tpu.dot_dimension_numbers<[1], [0], [0], [1], [0, 0, 1, 1], [], []>} : vector<104x128xbf16>, vector<128x128xbf16>, vector<104x128xf32> -> vector<104x128xf32>
    %218 = arith.addf %212, %217 : vector<104x128xf32>
    %c95_i32_163 = arith.constant 95 : i32
    %219 = tpu.dynamic_rotate %184 by %c95_i32_163 dim 0 : vector<104x128xf32>, i32 -> vector<104x128xf32>
    %220 = arith.truncf %219 : vector<104x128xf32> to vector<104x128xbf16>
    %c6_164 = arith.constant 6 : index
    %c0_165 = arith.constant 0 : index
    %c0_166 = arith.constant 0 : index
    %221 = vector.load %arg11[%c6_164, %c0_165, %c0_166] : memref<9x128x128xbf16, #tpu.memory_space<vmem>>, vector<1x128x128xbf16>
    %222 = vector.shape_cast %221 : vector<1x128x128xbf16> to vector<128x128xbf16>
    %cst_167 = arith.constant dense<0.000000e+00> : vector<104x128xf32>
    %223 = tpu.matmul %220, %222, %cst_167 {dimension_numbers = #tpu.dot_dimension_numbers<[1], [0], [0], [1], [0, 0, 1, 1], [], []>} : vector<104x128xbf16>, vector<128x128xbf16>, vector<104x128xf32> -> vector<104x128xf32>
    %224 = arith.addf %218, %223 : vector<104x128xf32>
    %c94_i32_168 = arith.constant 94 : i32
    %225 = tpu.dynamic_rotate %184 by %c94_i32_168 dim 0 : vector<104x128xf32>, i32 -> vector<104x128xf32>
    %226 = arith.truncf %225 : vector<104x128xf32> to vector<104x128xbf16>
    %c7_169 = arith.constant 7 : index
    %c0_170 = arith.constant 0 : index
    %c0_171 = arith.constant 0 : index
    %227 = vector.load %arg11[%c7_169, %c0_170, %c0_171] : memref<9x128x128xbf16, #tpu.memory_space<vmem>>, vector<1x128x128xbf16>
    %228 = vector.shape_cast %227 : vector<1x128x128xbf16> to vector<128x128xbf16>
    %cst_172 = arith.constant dense<0.000000e+00> : vector<104x128xf32>
    %229 = tpu.matmul %226, %228, %cst_172 {dimension_numbers = #tpu.dot_dimension_numbers<[1], [0], [0], [1], [0, 0, 1, 1], [], []>} : vector<104x128xbf16>, vector<128x128xbf16>, vector<104x128xf32> -> vector<104x128xf32>
    %230 = arith.addf %224, %229 : vector<104x128xf32>
    %c93_i32_173 = arith.constant 93 : i32
    %231 = tpu.dynamic_rotate %184 by %c93_i32_173 dim 0 : vector<104x128xf32>, i32 -> vector<104x128xf32>
    %232 = arith.truncf %231 : vector<104x128xf32> to vector<104x128xbf16>
    %c8_174 = arith.constant 8 : index
    %c0_175 = arith.constant 0 : index
    %c0_176 = arith.constant 0 : index
    %233 = vector.load %arg11[%c8_174, %c0_175, %c0_176] : memref<9x128x128xbf16, #tpu.memory_space<vmem>>, vector<1x128x128xbf16>
    %234 = vector.shape_cast %233 : vector<1x128x128xbf16> to vector<128x128xbf16>
    %cst_177 = arith.constant dense<0.000000e+00> : vector<104x128xf32>
    %235 = tpu.matmul %232, %234, %cst_177 {dimension_numbers = #tpu.dot_dimension_numbers<[1], [0], [0], [1], [0, 0, 1, 1], [], []>} : vector<104x128xbf16>, vector<128x128xbf16>, vector<104x128xf32> -> vector<104x128xf32>
    %236 = arith.addf %230, %235 : vector<104x128xf32>
    %c0_178 = arith.constant 0 : index
    %c0_179 = arith.constant 0 : index
    %237 = vector.load %arg12[%c0_178, %c0_179] : memref<1x128xf32, #tpu.memory_space<vmem>>, vector<1x128xf32>
    %238 = vector.broadcast %237 : vector<1x128xf32> to vector<104x128xf32>
    %239 = arith.addf %236, %238 : vector<104x128xf32>
    %cst_180 = arith.constant 0.000000e+00 : f32
    %240 = vector.broadcast %cst_180 : f32 to vector<104x128xf32>
    %241 = arith.maximumf %239, %240 : vector<104x128xf32>
    %242 = arith.mulf %241, %0 : vector<104x128xf32>
    %243 = vector.extract_strided_slice %242 {offsets = [0, 0], sizes = [104, 1], strides = [1, 1]} : vector<104x128xf32> to vector<104x1xf32>
    %c0_181 = arith.constant 0 : index
    %c0_182 = arith.constant 0 : index
    %c0_183 = arith.constant 0 : index
    %244 = vector.load %arg13[%c0_181, %c0_182, %c0_183] : memref<4x104x64xf32, #tpu.memory_space<vmem>>, vector<1x104x64xf32>
    %245 = vector.shape_cast %244 : vector<1x104x64xf32> to vector<104x64xf32>
    %246 = vector.broadcast %243 : vector<104x1xf32> to vector<104x64xf32>
    %247 = arith.mulf %246, %245 : vector<104x64xf32>
    %248 = vector.extract_strided_slice %242 {offsets = [0, 1], sizes = [104, 1], strides = [1, 1]} : vector<104x128xf32> to vector<104x1xf32>
    %c1_184 = arith.constant 1 : index
    %c0_185 = arith.constant 0 : index
    %c0_186 = arith.constant 0 : index
    %249 = vector.load %arg13[%c1_184, %c0_185, %c0_186] : memref<4x104x64xf32, #tpu.memory_space<vmem>>, vector<1x104x64xf32>
    %250 = vector.shape_cast %249 : vector<1x104x64xf32> to vector<104x64xf32>
    %251 = vector.broadcast %248 : vector<104x1xf32> to vector<104x64xf32>
    %252 = arith.mulf %251, %250 : vector<104x64xf32>
    %253 = arith.addf %247, %252 : vector<104x64xf32>
    %254 = vector.extract_strided_slice %242 {offsets = [0, 2], sizes = [104, 1], strides = [1, 1]} : vector<104x128xf32> to vector<104x1xf32>
    %c2_187 = arith.constant 2 : index
    %c0_188 = arith.constant 0 : index
    %c0_189 = arith.constant 0 : index
    %255 = vector.load %arg13[%c2_187, %c0_188, %c0_189] : memref<4x104x64xf32, #tpu.memory_space<vmem>>, vector<1x104x64xf32>
    %256 = vector.shape_cast %255 : vector<1x104x64xf32> to vector<104x64xf32>
    %257 = vector.broadcast %254 : vector<104x1xf32> to vector<104x64xf32>
    %258 = arith.mulf %257, %256 : vector<104x64xf32>
    %259 = arith.addf %253, %258 : vector<104x64xf32>
    %260 = vector.extract_strided_slice %242 {offsets = [0, 3], sizes = [104, 1], strides = [1, 1]} : vector<104x128xf32> to vector<104x1xf32>
    %c3_190 = arith.constant 3 : index
    %c0_191 = arith.constant 0 : index
    %c0_192 = arith.constant 0 : index
    %261 = vector.load %arg13[%c3_190, %c0_191, %c0_192] : memref<4x104x64xf32, #tpu.memory_space<vmem>>, vector<1x104x64xf32>
    %262 = vector.shape_cast %261 : vector<1x104x64xf32> to vector<104x64xf32>
    %263 = vector.broadcast %260 : vector<104x1xf32> to vector<104x64xf32>
    %264 = arith.mulf %263, %262 : vector<104x64xf32>
    %265 = arith.addf %259, %264 : vector<104x64xf32>
    %cst_193 = arith.constant dense<0.000000e+00> : vector<64xf32>
    %266 = vector.multi_reduction <add>, %265, %cst_193 [0] : vector<104x64xf32> to vector<64xf32>
    %267 = vector.shape_cast %266 : vector<64xf32> to vector<1x64xf32>
    %c0_194 = arith.constant 0 : index
    %c0_195 = arith.constant 0 : index
    %268 = vector.load %arg14[%c0_194, %c0_195] : memref<1x64xf32, #tpu.memory_space<vmem>>, vector<1x64xf32>
    %269 = arith.addf %267, %268 : vector<1x64xf32>
    %cst_196 = arith.constant dense<0xFF800000> : vector<1xf32>
    %270 = vector.multi_reduction <maximumf>, %269, %cst_196 [1] : vector<1x64xf32> to vector<1xf32>
    %271 = vector.shape_cast %270 : vector<1xf32> to vector<1x1xf32>
    %272 = vector.broadcast %271 : vector<1x1xf32> to vector<1x64xf32>
    %273 = arith.subf %269, %272 : vector<1x64xf32>
    %274 = math.exp %273 : vector<1x64xf32>
    %cst_197 = arith.constant dense<0.000000e+00> : vector<1xf32>
    %275 = vector.multi_reduction <add>, %274, %cst_197 [1] : vector<1x64xf32> to vector<1xf32>
    %276 = vector.shape_cast %275 : vector<1xf32> to vector<1x1xf32>
    %277 = math.log %276 : vector<1x1xf32>
    %278 = vector.broadcast %277 : vector<1x1xf32> to vector<1x64xf32>
    %279 = arith.subf %273, %278 : vector<1x64xf32>
    %c0_198 = arith.constant 0 : index
    %c0_199 = arith.constant 0 : index
    %c0_200 = arith.constant 0 : index
    %280 = vector.load %arg19[%c0_198, %c0_199, %c0_200] : memref<1x1x64xf32, #tpu.memory_space<vmem>>, vector<1x1x64xf32>
    %281 = vector.shape_cast %280 : vector<1x1x64xf32> to vector<1x64xf32>
    %282 = vector.shape_cast %279 : vector<1x64xf32> to vector<1x1x64xf32>
    tpu.vector_store %arg19[%c0_198, %c0_199, %c0_200], %282 {strides = array<i32>} : memref<1x1x64xf32, #tpu.memory_space<vmem>>, vector<1x1x64xf32>,
    %283 = vector.extract_strided_slice %242 {offsets = [0, 4], sizes = [104, 1], strides = [1, 1]} : vector<104x128xf32> to vector<104x1xf32>
    %c0_201 = arith.constant 0 : index
    %c0_202 = arith.constant 0 : index
    %c0_203 = arith.constant 0 : index
    %284 = vector.load %arg15[%c0_201, %c0_202, %c0_203] : memref<2x104x64xf32, #tpu.memory_space<vmem>>, vector<1x104x64xf32>
    %285 = vector.shape_cast %284 : vector<1x104x64xf32> to vector<104x64xf32>
    %286 = vector.broadcast %283 : vector<104x1xf32> to vector<104x64xf32>
    %287 = arith.mulf %286, %285 : vector<104x64xf32>
    %288 = vector.extract_strided_slice %242 {offsets = [0, 5], sizes = [104, 1], strides = [1, 1]} : vector<104x128xf32> to vector<104x1xf32>
    %c1_204 = arith.constant 1 : index
    %c0_205 = arith.constant 0 : index
    %c0_206 = arith.constant 0 : index
    %289 = vector.load %arg15[%c1_204, %c0_205, %c0_206] : memref<2x104x64xf32, #tpu.memory_space<vmem>>, vector<1x104x64xf32>
    %290 = vector.shape_cast %289 : vector<1x104x64xf32> to vector<104x64xf32>
    %291 = vector.broadcast %288 : vector<104x1xf32> to vector<104x64xf32>
    %292 = arith.mulf %291, %290 : vector<104x64xf32>
    %293 = arith.addf %287, %292 : vector<104x64xf32>
    %cst_207 = arith.constant dense<0.000000e+00> : vector<64xf32>
    %294 = vector.multi_reduction <add>, %293, %cst_207 [0] : vector<104x64xf32> to vector<64xf32>
    %295 = vector.shape_cast %294 : vector<64xf32> to vector<1x64xf32>
    %c0_208 = arith.constant 0 : index
    %c0_209 = arith.constant 0 : index
    %296 = vector.load %arg16[%c0_208, %c0_209] : memref<1x64xf32, #tpu.memory_space<vmem>>, vector<1x64xf32>
    %297 = arith.addf %295, %296 : vector<1x64xf32>
    %cst_210 = arith.constant 0.000000e+00 : f32
    %298 = vector.broadcast %cst_210 : f32 to vector<1x64xf32>
    %299 = arith.maximumf %297, %298 : vector<1x64xf32>
    %c0_211 = arith.constant 0 : index
    %c0_212 = arith.constant 0 : index
    %300 = vector.load %arg17[%c0_211, %c0_212] : memref<1x64xf32, #tpu.memory_space<vmem>>, vector<1x64xf32>
    %301 = arith.mulf %299, %300 : vector<1x64xf32>
    %cst_213 = arith.constant dense<0.000000e+00> : vector<1xf32>
    %302 = vector.multi_reduction <add>, %301, %cst_213 [1] : vector<1x64xf32> to vector<1xf32>
    %303 = vector.shape_cast %302 : vector<1xf32> to vector<1x1xf32>
    %c0_214 = arith.constant 0 : index
    %c0_215 = arith.constant 0 : index
    %304 = vector.load %arg18[%c0_214, %c0_215] : memref<1x1xf32, #tpu.memory_space<vmem>>, vector<1x1xf32>
    %305 = arith.addf %303, %304 : vector<1x1xf32>
    %306 = math.tanh %305 : vector<1x1xf32>
    %c0_216 = arith.constant 0 : index
    %c0_217 = arith.constant 0 : index
    %c0_218 = arith.constant 0 : index
    %307 = vector.load %arg20[%c0_216, %c0_217, %c0_218] : memref<1x1x1xf32, #tpu.memory_space<vmem>>, vector<1x1x1xf32>
    %308 = vector.shape_cast %307 : vector<1x1x1xf32> to vector<1x1xf32>
    %309 = vector.shape_cast %306 : vector<1x1xf32> to vector<1x1x1xf32>
    tpu.vector_store %arg20[%c0_216, %c0_217, %c0_218], %309 {strides = array<i32>} : memref<1x1x1xf32, #tpu.memory_space<vmem>>, vector<1x1x1xf32>,
    return
  }
  func.func @transform_0(%arg0: i32) -> (i32, i32, i32) {
    %c0_i32 = arith.constant 0 : i32
    %c0_i32_0 = arith.constant 0 : i32
    %c0_i32_1 = arith.constant 0 : i32
    return %arg0, %c0_i32, %c0_i32_0 : i32, i32, i32
  }
  func.func @transform_1(%arg0: i32) -> (i32, i32) {
    %c0_i32 = arith.constant 0 : i32
    %c0_i32_0 = arith.constant 0 : i32
    %c0_i32_1 = arith.constant 0 : i32
    return %c0_i32, %c0_i32_0 : i32, i32
  }
  func.func @transform_2(%arg0: i32) -> (i32, i32) {
    %c0_i32 = arith.constant 0 : i32
    %c0_i32_0 = arith.constant 0 : i32
    %c0_i32_1 = arith.constant 0 : i32
    return %c0_i32, %c0_i32_0 : i32, i32
  }
  func.func @transform_3(%arg0: i32) -> (i32, i32) {
    %c0_i32 = arith.constant 0 : i32
    %c0_i32_0 = arith.constant 0 : i32
    %c0_i32_1 = arith.constant 0 : i32
    return %c0_i32, %c0_i32_0 : i32, i32
  }
  func.func @transform_4(%arg0: i32) -> (i32, i32, i32) {
    %c0_i32 = arith.constant 0 : i32
    %c0_i32_0 = arith.constant 0 : i32
    %c0_i32_1 = arith.constant 0 : i32
    %c0_i32_2 = arith.constant 0 : i32
    return %c0_i32, %c0_i32_0, %c0_i32_1 : i32, i32, i32
  }
  func.func @transform_5(%arg0: i32) -> (i32, i32) {
    %c0_i32 = arith.constant 0 : i32
    %c0_i32_0 = arith.constant 0 : i32
    %c0_i32_1 = arith.constant 0 : i32
    return %c0_i32, %c0_i32_0 : i32, i32
  }
  func.func @transform_6(%arg0: i32) -> (i32, i32, i32) {
    %c0_i32 = arith.constant 0 : i32
    %c0_i32_0 = arith.constant 0 : i32
    %c0_i32_1 = arith.constant 0 : i32
    %c0_i32_2 = arith.constant 0 : i32
    return %c0_i32, %c0_i32_0, %c0_i32_1 : i32, i32, i32
  }
  func.func @transform_7(%arg0: i32) -> (i32, i32) {
    %c0_i32 = arith.constant 0 : i32
    %c0_i32_0 = arith.constant 0 : i32
    %c0_i32_1 = arith.constant 0 : i32
    return %c0_i32, %c0_i32_0 : i32, i32
  }
  func.func @transform_8(%arg0: i32) -> (i32, i32, i32) {
    %c0_i32 = arith.constant 0 : i32
    %c0_i32_0 = arith.constant 0 : i32
    %c0_i32_1 = arith.constant 0 : i32
    %c0_i32_2 = arith.constant 0 : i32
    return %c0_i32, %c0_i32_0, %c0_i32_1 : i32, i32, i32
  }
  func.func @transform_9(%arg0: i32) -> (i32, i32) {
    %c0_i32 = arith.constant 0 : i32
    %c0_i32_0 = arith.constant 0 : i32
    %c0_i32_1 = arith.constant 0 : i32
    return %c0_i32, %c0_i32_0 : i32, i32
  }
  func.func @transform_10(%arg0: i32) -> (i32, i32, i32) {
    %c0_i32 = arith.constant 0 : i32
    %c0_i32_0 = arith.constant 0 : i32
    %c0_i32_1 = arith.constant 0 : i32
    %c0_i32_2 = arith.constant 0 : i32
    return %c0_i32, %c0_i32_0, %c0_i32_1 : i32, i32, i32
  }
  func.func @transform_11(%arg0: i32) -> (i32, i32) {
    %c0_i32 = arith.constant 0 : i32
    %c0_i32_0 = arith.constant 0 : i32
    %c0_i32_1 = arith.constant 0 : i32
    return %c0_i32, %c0_i32_0 : i32, i32
  }
  func.func @transform_12(%arg0: i32) -> (i32, i32, i32) {
    %c0_i32 = arith.constant 0 : i32
    %c0_i32_0 = arith.constant 0 : i32
    %c0_i32_1 = arith.constant 0 : i32
    %c0_i32_2 = arith.constant 0 : i32
    return %c0_i32, %c0_i32_0, %c0_i32_1 : i32, i32, i32
  }
  func.func @transform_13(%arg0: i32) -> (i32, i32) {
    %c0_i32 = arith.constant 0 : i32
    %c0_i32_0 = arith.constant 0 : i32
    %c0_i32_1 = arith.constant 0 : i32
    return %c0_i32, %c0_i32_0 : i32, i32
  }
  func.func @transform_14(%arg0: i32) -> (i32, i32, i32) {
    %c0_i32 = arith.constant 0 : i32
    %c0_i32_0 = arith.constant 0 : i32
    %c0_i32_1 = arith.constant 0 : i32
    %c0_i32_2 = arith.constant 0 : i32
    return %c0_i32, %c0_i32_0, %c0_i32_1 : i32, i32, i32
  }
  func.func @transform_15(%arg0: i32) -> (i32, i32) {
    %c0_i32 = arith.constant 0 : i32
    %c0_i32_0 = arith.constant 0 : i32
    %c0_i32_1 = arith.constant 0 : i32
    return %c0_i32, %c0_i32_0 : i32, i32
  }
  func.func @transform_16(%arg0: i32) -> (i32, i32) {
    %c0_i32 = arith.constant 0 : i32
    %c0_i32_0 = arith.constant 0 : i32
    %c0_i32_1 = arith.constant 0 : i32
    return %c0_i32, %c0_i32_0 : i32, i32
  }
  func.func @transform_17(%arg0: i32) -> (i32, i32) {
    %c0_i32 = arith.constant 0 : i32
    %c0_i32_0 = arith.constant 0 : i32
    %c0_i32_1 = arith.constant 0 : i32
    return %c0_i32, %c0_i32_0 : i32, i32
  }
  func.func @transform_18(%arg0: i32) -> (i32, i32, i32) {
    %c0_i32 = arith.constant 0 : i32
    %c0_i32_0 = arith.constant 0 : i32
    %c0_i32_1 = arith.constant 0 : i32
    return %arg0, %c0_i32, %c0_i32_0 : i32, i32, i32
  }
  func.func @transform_19(%arg0: i32) -> (i32, i32, i32) {
    %c0_i32 = arith.constant 0 : i32
    %c0_i32_0 = arith.constant 0 : i32
    %c0_i32_1 = arith.constant 0 : i32
    return %arg0, %c0_i32, %c0_i32_0 : i32, i32, i32
  }
}

</mosaic_0001>

<bundles_post_ra>
// kernel: chessnet_forward.1
= control target key start
LH: loop header
LB: loop body
LE: loop exit
PB: predicated region body
PF: predicated region fallthrough
CT: control target
= control target key end

     0   :  { %s14435_s0 = inlined_call_operand.vmem [shape: bf16[2,104,128], index: 0, kind: input, shape index: {}]   ;;  %s14436_s1 = inlined_call_operand.vmem [shape: f32[104,128], index: 1, kind: input, shape index: {}]   ;;  %s14437_s2 = inlined_call_operand.vmem [shape: bf16[128,128], index: 2, kind: input, shape index: {}]   ;;  %s14438_s3 = inlined_call_operand.vmem [shape: f32[1,128], index: 3, kind: input, shape index: {}]   ;;  %s14439_s4 = inlined_call_operand.vmem [shape: bf16[9,128,128], index: 4, kind: input, shape index: {}]   ;;  %s14440_s5 = inlined_call_operand.vmem [shape: f32[1,128], index: 5, kind: input, shape index: {}]   ;;  %s14441_s6 = inlined_call_operand.vmem [shape: bf16[9,128,128], index: 6, kind: input, shape index: {}]   ;;  %s14442_s7 = inlined_call_operand.vmem [shape: f32[1,128], index: 7, kind: input, shape index: {}]   ;;  %s14443_s8 = inlined_call_operand.vmem [shape: bf16[9,128,128], index: 8, kind: input, shape index: {}]   ;;  %s14444_s9 = inlined_call_operand.vmem [shape: f32[1,128], index: 9, kind: input, shape index: {}]   ;;  %s14445_s10 = inlined_call_operand.vmem [shape: bf16[9,128,128], index: 10, kind: input, shape index: {}]   ;;  %s14446_s11 = inlined_call_operand.vmem [shape: f32[1,128], index: 11, kind: input, shape index: {}]   ;;  %s14447_s12 = inlined_call_operand.vmem [shape: f32[4,104,64], index: 12, kind: input, shape index: {}]   ;;  %s14448_s13 = inlined_call_operand.vmem [shape: f32[1,64], index: 13, kind: input, shape index: {}]   ;;  %s14449_s14 = inlined_call_operand.vmem [shape: f32[2,104,64], index: 14, kind: input, shape index: {}]   ;;  %s14450_s15 = inlined_call_operand.vmem [shape: f32[1,64], index: 15, kind: input, shape index: {}]   ;;  %s14451_s16 = inlined_call_operand.vmem [shape: f32[1,64], index: 16, kind: input, shape index: {}]   ;;  %s14452_s17 = inlined_call_operand.<no memory space> [shape: f32[1,1], index: 17, kind: input, shape index: {}]   ;;  %s14453_s18 = inlined_call_operand.hbm [shape: f32[2,1,64], index: 18, kind: output, shape index: {0}]   ;;  %s14454_s19 = inlined_call_operand.vmem [shape: f32[2,1,1], index: 19, kind: output, shape index: {1}]  }
   0x1   :  { %14612 = sst [smem:[#allocation40_spill]] %s14435_s0  ;;  %v25_v0 = vstv %s14452_s17 }
   0x2   :  { %14613 = sst [smem:[#allocation41_spill]] %s14436_s1  ;;  %26 = vst [vmem:[#allocation2] sm:$0x1] %v25_v0 }
   0x3   :  { %14614 = sst [smem:[#allocation42_spill]] %s14437_s2 }
   0x4   :  { %14615 = sst [smem:[#allocation43_spill]] %s14438_s3 }
   0x5   :  { %14616 = sst [smem:[#allocation44_spill]] %s14439_s4 }
   0x6   :  { %27 = vsyncpa [#allocation4], 0 }
   0x7   :  { %29 = vsyncpa [#allocation4 + $0x1], 0  ;;  %s9296_s20 = smov 0   ;;  %s9298_s21 = smov 0  }
   0x8   :  { %s9300_s1 = smov 0   ;;  %s9302_s22 = smov 0  }
   0x9 LB: > { %14617 = sst [smem:[#allocation6_spill]] %s9173_s20  ;;  %s9317_s17 = sadd.s32 4294967295, %s9185_s22   ;;  %s9185_s22 = sphi %s9302_s22, %s15059_s22   ;;  %s9181_s1 = sphi %s9300_s1, %s15061_s1   ;;  %s9177_s21 = sphi %s9298_s21, %s15063_s21   ;;  %s9173_s20 = sphi %s9296_s20, %s15062_s20  }
   0xa   : > { %14618 = sst [smem:[#allocation7_spill]] %s9181_s1  ;;  %s6840_s2 = sadd.s32 4294967294, %s9185_s22  }
   0xb   : > { %s9321_s23 = sadd.s32 1, %s9185_s22   ;;  %s425_s24 = sadd.s32 1, %s9181_s1 }
   0xc   : > { %14619 = sst [smem:[#allocation8_spill]] %s9321_s23  ;;  %s422_s25 = ssub.s32 %s9185_s22, %s9321_s23 }
   0xd   : > { %p435_p0 = scmp.ne.s32.totalorder %s9181_s1, %s9177_s21  ;;  %p423_p1 = scmp.eq.s32.totalorder %s422_s25, 0 }
   0xe   : > { %p436_p2 = scmp.eq.s32.totalorder %s9317_s17, 1  ;;  %p441_p3 = scmp.ne.s32.totalorder %s9177_s21, %s9173_s20 }
   0xf   : > { %p442_p4 = scmp.eq.s32.totalorder %s6840_s2, 1  ;;  %p6843_p7 = scmp.ge.s32.totalorder %s9185_s22, 1 }
  0x10   : > { %s9332_s3 = scalar_select %p423_p1, %s9181_s1, %s425_s24  }
  0x11   : > { %p9334_p5 = por %p436_p2, %p435_p0  ;;  %p9338_p6 = por %p442_p4, %p441_p3 }
  0x12   : > { %14620 = sst [smem:[#allocation9_spill]] %s9332_s3  ;;  %p545_p8 = scmp.lt.s32.totalorder %s9185_s22, 3 }
  0x13   : > { %s14622_s27 = scalar_select %p9338_p6, 1, 0 }
  0x14   : > { %p546_p9 = pnand %p6843_p7, %p545_p8 }
  0x15   : > { %14623 = sst [smem:[#allocation10_spill]] %s14622_s27 }
  0x16   : > { %549 = sbr.rel (%p546_p9) target bundleno = 2716 (0xa9c), region = 92 }
  0x1b   : > { %s14624_s0 = sld [smem:[#allocation42_spill]]  ;;  %p603_p10 = scmp.lt.s32.totalorder %s9317_s17, 1  ;;  %v827_v55 = vlaneseq  ;;  %vm6485_vm6 = vcmask 523264   ;;  %vm6519_vm7 = vcmask 516096  }
  0x1c   : > { %s14625_s23 = sld [smem:[#allocation40_spill]]  ;;  %s6759_s29 = scalar_lea.hbm %s14453_s18, %s9317_s17 }
  0x1d   : > { %s9358_s30 = scalar_select %p603_p10, %s9317_s17, 1 }
  0x1e   : > { %s14626_s4 = sld [smem:[#allocation44_spill]]  ;;  %s15056_s1 = sand.u32 1, %s9177_s21  }
  0x1f   : > { %s8945_s24 = smul.u32 52, %s9358_s30  ;;  %s14627_s20 = sld [smem:[#allocation43_spill]] }
  0x20   : > { %s14628_s2 = sld [smem:[#allocation41_spill]]  ;;  %s6748_s25 = scalar_lea.sflag [#allocation4], %s15056_s1 }
  0x21   : > { %v8632_v1 = vld [vmem:[%s14624_s0 + $0x38] sm:$0xff]  ;;  %v8631_v2 = vld [vmem:[%s14624_s0 + $0x30] sm:$0xff]  ;;  %v8630_v3 = vld [vmem:[%s14624_s0 + $0x28] sm:$0xff]  ;;  %s9143_s17 = scalar_lea.hbm %s14453_s18, 2 }
  0x22   : > { %745 = vmatpush.bf16.msra.mxu0 %v8632_v1  ;;  %8921 = vmatpush.bf16.msra.mxu1 %v8632_v1  ;;  %v8629_v4 = vld [vmem:[%s14624_s0 + $0x20] sm:$0xff]  ;;  %v8628_v5 = vld [vmem:[%s14624_s0 + $0x18] sm:$0xff]  ;;  %v8627_v6 = vld [vmem:[%s14624_s0 + $0x10] sm:$0xff]  ;;  %s9370_s27 = scalar_lea.vmem %s14625_s23, %s8945_s24 }
  0x23   : > { %8922 = vmatpush.bf16.msra.mxu2 %v8632_v1  ;;  %8923 = vmatpush.bf16.msra.mxu3 %v8632_v1  ;;  %v8626_v7 = vld [vmem:[%s14624_s0 + $0x8] sm:$0xff]  ;;  %v636_v8 = vld [vmem:[%s9370_s27 + $0x30] sm:$0xf]  ;;  %v8625_v9 = vld [vmem:[%s14624_s0] sm:$0xff] }
  0x24   : > { %v682_v10 = vunpack.c.l.b16 %v636_v8  ;;  %v8664_v11 = vld [vmem:[%s14626_s4 + $0xf8] sm:$0xff]  ;;  %v8619_v12 = vld [vmem:[%s9370_s27] sm:$0xff]  ;;  %v8621_v13 = vld [vmem:[%s9370_s27 + $0x10] sm:$0xff] }
  0x25   : > { %v8623_v14 = vld [vmem:[%s9370_s27 + $0x20] sm:$0xff]  ;;  %v8663_v16 = vld [vmem:[%s14626_s4 + $0xf0] sm:$0xff]  ;;  %v8662_v17 = vld [vmem:[%s14626_s4 + $0xe8] sm:$0xff] }
  0x26   : > { %746 = vmatpush.bf16.msra.mxu0 %v8631_v2  ;;  %8924 = vmatpush.bf16.msra.mxu1 %v8631_v2  ;;  %v689_v15 = vpack.c.b16 %v682_v10, %v682_v10  ;;  %v8620_v18 = vld [vmem:[%s9370_s27 + $0x8] sm:$0xff]  ;;  %v8622_v19 = vld [vmem:[%s9370_s27 + $0x18] sm:$0xff]  ;;  %v8661_v21 = vld [vmem:[%s14626_s4 + $0xe0] sm:$0xff] }
  0x27   : > { %8925 = vmatpush.bf16.msra.mxu2 %v8631_v2  ;;  %8926 = vmatpush.bf16.msra.mxu3 %v8631_v2  ;;  %v8624_v20 = vld [vmem:[%s9370_s27 + $0x28] sm:$0xff]  ;;  %v8660_v22 = vld [vmem:[%s14626_s4 + $0xd8] sm:$0xff]  ;;  %v8659_v23 = vld [vmem:[%s14626_s4 + $0xd0] sm:$0xff]  ;;  %v9498_v2 = vshrl.u32 %v827_v55, 7  ;;  %s14610_s27 = sand.u32 1, %s9177_s21  }
  0x28   : > { %v8648_v24 = vld [vmem:[%s14626_s4 + $0x78] sm:$0xff]  ;;  %v8658_v27 = vld [vmem:[%s14626_s4 + $0xc8] sm:$0xff]  ;;  %v8647_v28 = vld [vmem:[%s14626_s4 + $0x70] sm:$0xff]  ;;  %s597_s0 = scalar_lea.vmem [#allocation3], %s14610_s27  ;;  %s6763_s27 = sshll.u32 %s6759_s29, 4  ;;  %s6764_s27 = int_to_ptr.hbm [resolvable:$true] %s6763_s27 }
  0x29   : > { %v8640_v25 = vld [vmem:[%s14626_s4 + $0x38] sm:$0xff]  ;;  %v8639_v29 = vld [vmem:[%s14626_s4 + $0x30] sm:$0xff]  ;;  %v8657_v31 = vld [vmem:[%s14626_s4 + $0xc0] sm:$0xff]  ;;  %vm1112_vm0 = vcmp.lt.s32.totalorder %v9498_v2, 1  ;;  %vm879_vm1 = vcmp.lt.s32.totalorder %v9498_v2, 2  ;;  %vm829_vm2 = vcmp.lt.s32.totalorder %v9498_v2, 3 }
  0x2a   : > { %747 = vmatpush.bf16.msra.mxu0 %v8630_v3  ;;  %8927 = vmatpush.bf16.msra.mxu1 %v8630_v3  ;;  %v8656_v26 = vld [vmem:[%s14626_s4 + $0xb8] sm:$0xff]  ;;  %v8655_v30 = vld [vmem:[%s14626_s4 + $0xb0] sm:$0xff]  ;;  %v8646_v32 = vld [vmem:[%s14626_s4 + $0x68] sm:$0xff]  ;;  %vm1806_vm3 = vcmp.lt.s32.totalorder %v9498_v2, 6  ;;  %vm1523_vm4 = vcmp.lt.s32.totalorder %v9498_v2, 7  ;;  %vm1961_vm5 = vcmp.lt.s32.totalorder %v9498_v2, 5 }
  0x2b   : > { %8928 = vmatpush.bf16.msra.mxu2 %v8630_v3  ;;  %8929 = vmatpush.bf16.msra.mxu3 %v8630_v3  ;;  %v8638_v33 = vld [vmem:[%s14626_s4 + $0x28] sm:$0xff]  ;;  %v8645_v35 = vld [vmem:[%s14626_s4 + $0x60] sm:$0xff]  ;;  %v8644_v38 = vld [vmem:[%s14626_s4 + $0x58] sm:$0xff]  ;;  %s6761_s3 = sshll.u32 %s597_s0, 4  ;;  %s6762_s3 = int_to_ptr.vmem [resolvable:$true] %s6761_s3 }
  0x2c   : > { %v8654_v34 = vld [vmem:[%s14626_s4 + $0xa8] sm:$0xff]  ;;  %v8637_v36 = vld [vmem:[%s14626_s4 + $0x20] sm:$0xff]  ;;  %v8636_v39 = vld [vmem:[%s14626_s4 + $0x18] sm:$0xff] }
  0x2d   : > { %v8653_v37 = vld [vmem:[%s14626_s4 + $0xa0] sm:$0xff]  ;;  %v8652_v40 = vld [vmem:[%s14626_s4 + $0x98] sm:$0xff]  ;;  %v8643_v41 = vld [vmem:[%s14626_s4 + $0x50] sm:$0xff] }
  0x2e   : > { %748 = vmatpush.bf16.msra.mxu0 %v8629_v4  ;;  %8930 = vmatpush.bf16.msra.mxu1 %v8629_v4  ;;  %v8635_v42 = vld [vmem:[%s14626_s4 + $0x10] sm:$0xff]  ;;  %v9466_v44 = vld [vmem:[%s14627_s20] ss:$0 sm:$0xff]  ;;  %v8642_v48 = vld [vmem:[%s14626_s4 + $0x48] sm:$0xff] }
  0x2f   : > { %8931 = vmatpush.bf16.msra.mxu2 %v8629_v4  ;;  %8932 = vmatpush.bf16.msra.mxu3 %v8629_v4  ;;  %v8651_v43 = vld [vmem:[%s14626_s4 + $0x90] sm:$0xff]  ;;  %v8634_v49 = vld [vmem:[%s14626_s4 + $0x8] sm:$0xff]  ;;  %v8641_v52 = vld [vmem:[%s14626_s4 + $0x40] sm:$0xff] }
  0x30   : > { %v8650_v50 = vld [vmem:[%s14626_s4 + $0x88] sm:$0xff]  ;;  %v8633_v53 = vld [vmem:[%s14626_s4] sm:$0xff]  ;;  %v8672_v8 = vld [vmem:[%s14626_s4 + $0x138] sm:$0xff] }
  0x31   : > { %v611_v54 = vld [vmem:[%s14628_s2] sm:$0xff]  ;;  %v612_v3 = vld [vmem:[%s14628_s2 + $0x8] sm:$0xff]  ;;  %v618_v55 = vld [vmem:[%s14628_s2 + $0x38] sm:$0xff] }
  0x32   : > { %749 = vmatpush.bf16.msra.mxu0 %v8628_v5  ;;  %8933 = vmatpush.bf16.msra.mxu1 %v8628_v5  ;;  %v8649_v56 = vld [vmem:[%s14626_s4 + $0x80] sm:$0xff] }
  0x33   : > { %8934 = vmatpush.bf16.msra.mxu2 %v8628_v5  ;;  %8935 = vmatpush.bf16.msra.mxu3 %v8628_v5  ;;  %v623_v1 = vld [vmem:[%s14628_s2 + $0x60] sm:$0xff] }
  0x36   : > { %750 = vmatpush.bf16.msra.mxu0 %v8627_v6  ;;  %8936 = vmatpush.bf16.msra.mxu1 %v8627_v6 }
  0x37   : > { %8937 = vmatpush.bf16.msra.mxu2 %v8627_v6  ;;  %8938 = vmatpush.bf16.msra.mxu3 %v8627_v6 }
  0x3a   : > { %751 = vmatpush.bf16.msra.mxu0 %v8626_v7  ;;  %8939 = vmatpush.bf16.msra.mxu1 %v8626_v7 }
  0x3b   : > { %8940 = vmatpush.bf16.msra.mxu2 %v8626_v7  ;;  %8941 = vmatpush.bf16.msra.mxu3 %v8626_v7 }
  0x3e   : > { %752 = vmatpush.bf16.msra.mxu0 %v8625_v9  ;;  %8942 = vmatpush.bf16.msra.mxu1 %v8625_v9 }
  0x3f   : > { %8943 = vmatpush.bf16.msra.mxu2 %v8625_v9  ;;  %8944 = vmatpush.bf16.msra.mxu3 %v8625_v9 }
  0x41   : > { %753 = vmatmul.bf16.vlgmr.msra.gmra.mxu0 %v8619_v12  ;;  %763 = vmatmul.bf16.vlgmr.msra.gmra.mxu1 %v8621_v13  ;;  %v619_v12 = vld [vmem:[%s14628_s2 + $0x40] sm:$0xff] }
  0x42   : > { %1326 = vmatpush.bf16.msrb.mxu0 %v8664_v11  ;;  %773 = vmatmul.bf16.vlgmr.msra.gmra.mxu2 %v8623_v14 }
  0x43   : > { %783 = vmatmul.bf16.vlgmr.msra.gmra.mxu3 %v689_v15  ;;  %965 = vmatpush.bf16.msrb.mxu1 %v8648_v24 }
  0x44   : > { %1056 = vmatpush.bf16.msrb.mxu2 %v8640_v25  ;;  %1198 = vmatpush.bf16.msrb.mxu3 %v8656_v26 }
  0x46   : > { %1327 = vmatpush.bf16.msrb.mxu0 %v8663_v16 }
  0x47   : > { %966 = vmatpush.bf16.msrb.mxu1 %v8647_v28 }
  0x48   : > { %1057 = vmatpush.bf16.msrb.mxu2 %v8639_v29  ;;  %1199 = vmatpush.bf16.msrb.mxu3 %v8655_v30  ;;  %v613_v30 = vld [vmem:[%s14628_s2 + $0x10] sm:$0xff] }
  0x4a   : > { %1328 = vmatpush.bf16.msrb.mxu0 %v8662_v17 }
  0x4b   : > { %967 = vmatpush.bf16.msrb.mxu1 %v8646_v32 }
  0x4c   : > { %1058 = vmatpush.bf16.msrb.mxu2 %v8638_v33  ;;  %1200 = vmatpush.bf16.msrb.mxu3 %v8654_v34  ;;  %v615_v34 = vld [vmem:[%s14628_s2 + $0x20] sm:$0xff] }
  0x4e   : > { %1329 = vmatpush.bf16.msrb.mxu0 %v8661_v21  ;;  %v620_v21 = vld [vmem:[%s14628_s2 + $0x48] sm:$0xff] }
  0x4f   : > { %968 = vmatpush.bf16.msrb.mxu1 %v8645_v35 }
  0x50   : > { %1059 = vmatpush.bf16.msrb.mxu2 %v8637_v36  ;;  %1201 = vmatpush.bf16.msrb.mxu3 %v8653_v37 }
  0x51   : > { %758 = vmatmul.bf16.gmra.mxu0 %v8620_v18  ;;  %768 = vmatmul.bf16.gmra.mxu1 %v8622_v19 }
  0x52   : > { %778 = vmatmul.bf16.gmra.mxu2 %v8624_v20  ;;  %1330 = vmatpush.bf16.msrb.mxu0 %v8660_v22 }
  0x53   : > { %969 = vmatpush.bf16.msrb.mxu1 %v8644_v38  ;;  %v616_v38 = vld [vmem:[%s14628_s2 + $0x28] sm:$0xff] }
  0x54   : > { %1060 = vmatpush.bf16.msrb.mxu2 %v8636_v39  ;;  %1202 = vmatpush.bf16.msrb.mxu3 %v8652_v40 }
  0x56   : > { %1331 = vmatpush.bf16.msrb.mxu0 %v8659_v23 }
  0x57   : > { %970 = vmatpush.bf16.msrb.mxu1 %v8643_v41 }
  0x58   : > { %1061 = vmatpush.bf16.msrb.mxu2 %v8635_v42  ;;  %1203 = vmatpush.bf16.msrb.mxu3 %v8651_v43 }
  0x5a   : > { %1332 = vmatpush.bf16.msrb.mxu0 %v8658_v27 }
  0x5b   : > { %971 = vmatpush.bf16.msrb.mxu1 %v8642_v48  ;;  %v621_v48 = vld [vmem:[%s14628_s2 + $0x50] sm:$0xff] }
  0x5c   : > { %1062 = vmatpush.bf16.msrb.mxu2 %v8634_v49  ;;  %1204 = vmatpush.bf16.msrb.mxu3 %v8650_v50 }
  0x5e   : > { %1333 = vmatpush.bf16.msrb.mxu0 %v8657_v31  ;;  %v8671_v31 = vld [vmem:[%s14626_s4 + $0x130] sm:$0xff] }
  0x5f   : > { %972 = vmatpush.bf16.msrb.mxu1 %v8641_v52 }
  0x60   : > { %1063 = vmatpush.bf16.msrb.mxu2 %v8633_v53  ;;  %1205 = vmatpush.bf16.msrb.mxu3 %v8649_v56 }
  0x63   : > { %1454 = vmatpush.bf16.msra.mxu1 %v8672_v8 }
  0x67   : > { %1455 = vmatpush.bf16.msra.mxu1 %v8671_v31 }
  0xbe   : > { %v754_v45 = vpop.f32.mrf.mxu0  ;;  %v764_v46 = vpop.f32.mrf.mxu1 }
  0xbf   : > { %v755_v47 = vadd.f32 %v9466_v44, %v754_v45  ;;  %v765_v20 = vadd.f32 %v9466_v44, %v764_v46 }
  0xc1   : > { %v788_v51 = vmax.f32 %v755_v47, 0.0  ;;  %v792_v33 = vmax.f32 %v765_v20, 0.0 }
  0xc3   : > { %v9490_v59 = vmul.f32 %v788_v51, %v611_v54  ;;  %v9570_v47 = vmul.f32 %v792_v33, %v615_v34  ;;  %v614_v54 = vld [vmem:[%s14628_s2 + $0x18] sm:$0xff] }
  0xc5   : > { %v774_v57 = vpop.f32.mrf.mxu2  ;;  %v1099_v7 = vrot.slane %v9490_v59, 7  ;;  %v866_v56 = vrot.slane %v9490_v59, 6 }
  0xc6   : > { %v784_v58 = vpop.f32.mrf.mxu3  ;;  %v775_v60 = vadd.f32 %v9466_v44, %v774_v57  ;;  %v756_v61 = vpop.f32.mrf.mxu0 }
  0xc7   : > { %v766_v62 = vpop.f32.mrf.mxu1  ;;  %v785_v63 = vadd.f32 %v9466_v44, %v784_v58  ;;  %v757_v0 = vadd.f32 %v9466_v44, %v756_v61 }
  0xc8   : > { %v796_v10 = vmax.f32 %v775_v60, 0.0  ;;  %v767_v25 = vadd.f32 %v9466_v44, %v766_v62 }
  0xc9   : > { %v800_v4 = vmax.f32 %v785_v63, 0.0  ;;  %v789_v5 = vmax.f32 %v757_v0, 0.0 }
  0xca   : > { %v9535_v24 = vmul.f32 %v796_v10, %v619_v12  ;;  %v793_v35 = vmax.f32 %v767_v25, 0.0  ;;  %v1103_v12 = vrot.slane %v9570_v47, 7 }
  0xcb   : > { %v9503_v6 = vmul.f32 %v800_v4, %v623_v1  ;;  %v9509_v9 = vmul.f32 %v789_v5, %v612_v3  ;;  %v814_v1 = vrot.slane %v9490_v59, 5 }
  0xcc   : > { %v1107_v36 = vrot.slane %v9535_v24, 7  ;;  %v9578_v52 = vmul.f32 %v793_v35, %v616_v38  ;;  %v14464_v57 = vrot.slane %v9535_v24, 6  ;;  %v14463_v62 = vrot.slane %v9535_v24, 5 }
  0xcd   : > { %v1111_v11 = vrot.slane %v9503_v6, 7  ;;  %v776_v13 = vpop.f32.mrf.mxu2  ;;  %v1100_v14 = vrot.slane %v9509_v9, 7  ;;  %v878_v0 = vrot.slane %v9503_v6, 6  ;;  %v826_v10 = vrot.slane %v9503_v6, 5 }
  0xce   : > { %v786_v15 = vpop.f32.mrf.mxu3  ;;  %v777_v16 = vadd.f32 %v9466_v44, %v776_v13  ;;  %v759_v17 = vpop.f32.mrf.mxu0  ;;  %v1104_v13 = vrot.slane %v9578_v52, 7  ;;  %v867_v20 = vrot.slane %v9509_v9, 6 }
  0xcf   : > { %v769_v18 = vpop.f32.mrf.mxu1  ;;  %v9522_v19 = vsel %vm1112_vm0, %v1111_v11, %v1099_v7  ;;  %v760_v22 = vadd.f32 %v9466_v44, %v759_v17  ;;  %v9533_v23 = vsel %vm1112_vm0, %v1099_v7, %v1100_v14  ;;  %v842_v34 = vsel %vm829_vm2, %v826_v10, %v814_v1 }
  0xd0   : > { %v797_v26 = vmax.f32 %v777_v16, 0.0  ;;  %v1254_v27 = vpack.c.bf16 %v9533_v23, %v9522_v19  ;;  %v770_v4 = vadd.f32 %v9466_v44, %v769_v18  ;;  %v9656_v35 = vsel %vm1112_vm0, %v1103_v12, %v1104_v13 }
  0xd1   : > { %v790_v28 = vmax.f32 %v760_v22, 0.0  ;;  %v815_v22 = vrot.slane %v9509_v9, 5  ;;  %v9661_v38 = vsel %vm879_vm1, %v866_v56, %v867_v20 }
  0xd2   : > { %v9540_v29 = vmul.f32 %v797_v26, %v620_v21  ;;  %1334 = vmatmul.bf16.vlgmr.msrb.gmra.mxu0 %v1254_v27  ;;  %v794_v27 = vmax.f32 %v770_v4, 0.0 }
  0xd3   : > { %v9558_v39 = vmul.f32 %v790_v28, %v613_v30  ;;  %v622_v28 = vld [vmem:[%s14628_s2 + $0x58] sm:$0xff]  ;;  %v617_v30 = vld [vmem:[%s14628_s2 + $0x30] sm:$0xff] }
  0xd4   : > { %14629 = vst [vmem:[#allocation11_spill] sm:$0xff] %v9540_v29  ;;  %v1108_v37 = vrot.slane %v9540_v29, 7  ;;  %v875_v46 = vrot.slane %v9540_v29, 6  ;;  %v823_v51 = vrot.slane %v9540_v29, 5 }
  0xd5   : > { %v779_v40 = vpop.f32.mrf.mxu2  ;;  %v1101_v61 = vrot.slane %v9558_v39, 7 }
  0xd6   : > { %v780_v41 = vadd.f32 %v9466_v44, %v779_v40  ;;  %v761_v42 = vpop.f32.mrf.mxu0  ;;  %v9567_v45 = vsel %vm1112_vm0, %v1107_v36, %v1108_v37  ;;  %v9600_v3 = vsel %vm879_vm1, %v14464_v57, %v875_v46  ;;  %v9613_v8 = vsel %vm829_vm2, %v14463_v62, %v823_v51 }
  0xd7   : > { %v771_v43 = vpop.f32.mrf.mxu1  ;;  %v762_v49 = vadd.f32 %v9466_v44, %v761_v42  ;;  %v9624_v18 = vsel %vm1112_vm0, %v1100_v14, %v1101_v61  ;;  %v1797_v57 = vrot.slane %v9570_v47, 2 }
  0xd8   : > { %v772_v50 = vadd.f32 %v9466_v44, %v771_v43  ;;  %v798_v53 = vmax.f32 %v780_v41, 0.0  ;;  %v14465_v43 = vrot.slane %v9558_v39, 5 }
  0xd9   : > { %v791_v58 = vmax.f32 %v762_v49, 0.0  ;;  %v8670_v49 = vld [vmem:[%s14626_s4 + $0x128] sm:$0xff] }
  0xda   : > { %v795_v60 = vmax.f32 %v772_v50, 0.0  ;;  %v9590_v63 = vmul.f32 %v798_v53, %v621_v48  ;;  %v9670_v48 = vsel %vm829_vm2, %v814_v1, %v815_v22  ;;  %v9684_v53 = vmul.f32 %v794_v27, %v617_v30  ;;  %1456 = vmatpush.bf16.msra.mxu1 %v8670_v49 }
  0xdb   : > { %v9603_v5 = vmul.f32 %v791_v58, %v614_v54  ;;  %v1802_v49 = vrot.slane %v9540_v29, 2  ;;  %v14470_v54 = vrot.slane %v9578_v52, 1 }
  0xdc   : > { %14630 = vst [vmem:[#allocation12_spill] sm:$0xff] %v9590_v63  ;;  %v9605_v7 = vmul.f32 %v795_v60, %v618_v55  ;;  %v1109_v15 = vrot.slane %v9590_v63, 7  ;;  %v876_v40 = vrot.slane %v9590_v63, 6  ;;  %v824_v41 = vrot.slane %v9590_v63, 5 }
  0xdd   : > { %v781_v16 = vpop.f32.mrf.mxu2  ;;  %v1102_v17 = vrot.slane %v9603_v5, 7  ;;  %v14471_v55 = vrot.slane %v9509_v9, 2 }
  0xde   : > { %v782_v21 = vadd.f32 %v9466_v44, %v781_v16  ;;  %v14469_v25 = vrot.slane %v9605_v7, 7  ;;  %v9632_v26 = vsel %vm1112_vm0, %v1108_v37, %v1109_v15  ;;  %v892_v44 = vsel %vm879_vm1, %v878_v0, %v866_v56 }
  0xdf   : > { %v9639_v14 = vsel %vm1112_vm0, %v1101_v61, %v1102_v17  ;;  %v14466_v37 = vrot.slane %v9558_v39, 6  ;;  %v14467_v56 = vrot.slane %v9490_v59, 1  ;;  %v9704_v4 = vsel %vm879_vm1, %v875_v46, %v876_v40 }
  0xe0   : > { %v799_v31 = vmax.f32 %v782_v21, 0.0  ;;  %v1255_v33 = vpack.c.bf16 %v9639_v14, %v9624_v18  ;;  %v9681_v50 = vsel %vm1112_vm0, %v14469_v25, %v1107_v36  ;;  %v1511_v36 = vrot.slane %v9509_v9, 1 }
  0xe1   : > { %v9698_v1 = vsel %vm879_vm1, %v867_v20, %v14466_v37  ;;  %v9710_v16 = vsel %vm829_vm2, %v823_v51, %v824_v41  ;;  %v1801_v21 = vrot.slane %v9535_v24, 2  ;;  %v9728_v51 = vsel %vm829_vm2, %v815_v22, %v14465_v43 }
  0xe2   : > { %v9665_v42 = vmul.f32 %v799_v31, %v622_v28  ;;  %1339 = vmatmul.bf16.gmra.mxu0 %v1255_v33  ;;  %v1795_v31 = vrot.slane %v9558_v39, 2  ;;  %v14472_v37 = vrot.slane %v9684_v53, 1  ;;  %v1803_v25 = vrot.slane %v9590_v63, 2 }
  0xe4   : > { %14631 = vst [vmem:[#allocation13_spill] sm:$0xff] %v9665_v42  ;;  %v877_v58 = vrot.slane %v9665_v42, 6  ;;  %v825_v60 = vrot.slane %v9665_v42, 5  ;;  %v1110_v61 = vrot.slane %v9665_v42, 7  ;;  %v9779_v32 = vsel %vm1806_vm3, %v14471_v55, %v1795_v31 }
  0xe5   : > { %v14639_v55 = vpack.c.bf16 %v9728_v51, %v9670_v48  ;;  %v14646_v48 = vrot.slane %v9603_v5, 6 }
  0xe6   : > { %v880_v20 = vsel %vm879_vm1, %v877_v58, %v878_v0  ;;  %v830_v27 = vsel %vm829_vm2, %v825_v60, %v826_v10  ;;  %v9722_v46 = vsel %vm1112_vm0, %v1110_v61, %v1111_v11  ;;  %v14468_v10 = vrot.slane %v9684_v53, 7 }
  0xe7   : > { %v893_v28 = vpack.c.bf16 %v892_v44, %v880_v20  ;;  %v843_v30 = vpack.c.bf16 %v842_v34, %v830_v27  ;;  %v1126_v0 = vpack.c.bf16 %v9522_v19, %v9722_v46  ;;  %v9737_v11 = vsel %vm1112_vm0, %v1109_v15, %v1110_v61 }
  0xe8   : > { %v1796_v34 = vrot.slane %v9603_v5, 2  ;;  %v9750_v15 = vsel %vm1112_vm0, %v1102_v17, %v1103_v12  ;;  %v1512_v27 = vrot.slane %v9558_v39, 1  ;;  %v9773_v17 = vsel %vm1112_vm0, %v1104_v13, %v14468_v10 }
  0xe9   : > { %973 = vmatmul.bf16.vlgmr.msrb.gmra.mxu1 %v893_v28  ;;  %1064 = vmatmul.bf16.vlgmr.msrb.gmra.mxu2 %v843_v30  ;;  %v9787_v30 = vsel %vm829_vm2, %v824_v41, %v825_v60  ;;  %v1256_v28 = vpack.c.bf16 %v9656_v35, %v9750_v15  ;;  %v9804_v41 = vsel %vm1523_vm4, %v14467_v56, %v1511_v36  ;;  %v1800_v20 = vrot.slane %v9605_v7, 2 }
  0xea   : > { %1206 = vmatmul.bf16.vlgmr.msrb.gmra.mxu3 %v1126_v0  ;;  %v9765_v12 = vsel %vm1806_vm3, %v1795_v31, %v1796_v34  ;;  %v9783_v0 = vsel %vm879_vm1, %v876_v40, %v877_v58  ;;  %v1798_v31 = vrot.slane %v9578_v52, 2  ;;  %v9798_v40 = vsel %vm1523_vm4, %v1511_v36, %v1512_v27 }
  0xeb   : > { %v1513_v58 = vrot.slane %v9603_v5, 1  ;;  %v9809_v60 = vsel %vm1806_vm3, %v1796_v34, %v1797_v57  ;;  %v1799_v44 = vrot.slane %v9684_v53, 2  ;;  %v1514_v34 = vrot.slane %v9570_v47, 1 }
  0xec   : > { %v9818_v43 = vsel %vm1806_vm3, %v1797_v57, %v1798_v31  ;;  %v9833_v57 = vsel %vm1806_vm3, %v1801_v21, %v1802_v49  ;;  %v9844_v62 = vsel %vm1806_vm3, %v1800_v20, %v1801_v21  ;;  %v1517_v13 = vrot.slane %v9605_v7, 1 }
  0xed   : > { %v9822_v36 = vsel %vm1523_vm4, %v1512_v27, %v1513_v58  ;;  %v8669_v27 = vld [vmem:[%s14626_s4 + $0x120] sm:$0xff]  ;;  %v9840_v56 = vsel %vm1523_vm4, %v1513_v58, %v1514_v34  ;;  %14632 = vst [vmem:[#allocation14_spill] sm:$0xff] %v9844_v62  ;;  %v1518_v10 = vrot.slane %v9535_v24, 1  ;;  %v1519_v58 = vrot.slane %v9540_v29, 1 }
  0xee   : > { %1457 = vmatpush.bf16.msra.mxu1 %v8669_v27  ;;  %v9865_v33 = vsel %vm1523_vm4, %v14472_v37, %v1517_v13  ;;  %v1520_v27 = vrot.slane %v9590_v63, 1  ;;  %v1793_v21 = vrot.slane %v9490_v59, 2  ;;  %v9884_v19 = vsel %vm1806_vm3, %v1802_v49, %v1803_v25 }
  0xef   : > { %v9889_v61 = vsel %vm1806_vm3, %v1799_v44, %v1800_v20  ;;  %v9893_v22 = vsel %vm1806_vm3, %v1798_v31, %v1799_v44  ;;  %v9905_v49 = vsel %vm1523_vm4, %v1518_v10, %v1519_v58  ;;  %v14638_v31 = vpack.c.bf16 %v9698_v1, %v9661_v38  ;;  %v8668_v38 = vld [vmem:[%s14626_s4 + $0x118] sm:$0xff] }
  0xf0   : > { %v9899_v62 = vsel %vm1523_vm4, %v1519_v58, %v1520_v27  ;;  %14635 = vst [vmem:[#allocation17_spill] sm:$0xff] %v9905_v49 }
  0xf1   : > { %14634 = vst [vmem:[#allocation16_spill] sm:$0xff] %v9899_v62 }
  0xf2   : > { %1344 = vmatmul.bf16.gmra.mxu0 %v1256_v28  ;;  %v9854_v28 = vsel %vm1523_vm4, %v1514_v34, %v14470_v54  ;;  %v1804_v34 = vrot.slane %v9665_v42, 2  ;;  %v9871_v54 = vsel %vm1523_vm4, %v1517_v13, %v1518_v10  ;;  %v1805_v13 = vrot.slane %v9503_v6, 2  ;;  %1458 = vmatpush.bf16.msra.mxu1 %v8668_v38 }
  0xf3   : > { %14633 = vst [vmem:[#allocation15_spill] sm:$0xff] %v9871_v54  ;;  %v14645_v10 = vrot.slane %v9570_v47, 6  ;;  %v1955_v38 = vrot.slane %v9605_v7, 3  ;;  %v1959_v54 = vrot.slane %v9665_v42, 3 }
  0xf4   : > { %v9880_v37 = vsel %vm1806_vm3, %v1803_v25, %v1804_v34  ;;  %v9909_v20 = vsel %vm1806_vm3, %v1804_v34, %v1805_v13  ;;  %v9913_v44 = vsel %vm1806_vm3, %v1805_v13, %v1793_v21  ;;  %v1521_v13 = vrot.slane %v9665_v42, 1 }
  0xf5   : > { %14636 = vst [vmem:[#allocation18_spill] sm:$0xff] %v9909_v20  ;;  %v14640_v25 = vpack.c.bf16 %v9624_v18, %v9533_v23  ;;  %v14643_v23 = vrot.slane %v9605_v7, 7  ;;  %v14644_v18 = vrot.slane %v9684_v53, 7  ;;  %v1951_v34 = vrot.slane %v9603_v5, 3 }
  0xf6   : > { %14637 = vst [vmem:[#allocation19_spill] sm:$0xff] %v9913_v44  ;;  %v9962_v51 = vsel %vm1523_vm4, %v1520_v27, %v1521_v13  ;;  %v14655_v20 = vrot.slane %v9684_v53, 1  ;;  %v14656_v44 = vrot.slane %v9578_v52, 1 }
  0xf7   : > { %14647 = vst [vmem:[#allocation21_spill] sm:$0xff] %v9962_v51 }
  0xf8   : > { %v10015_v49 = vsel %vm1523_vm4, %v14656_v44, %v14655_v20  ;;  %v1958_v44 = vrot.slane %v9590_v63, 3  ;;  %v14661_v63 = vrot.slane %v9558_v39, 5 }
  0xf9   : > { %978 = vmatmul.bf16.gmra.mxu1 %v14638_v31  ;;  %1069 = vmatmul.bf16.gmra.mxu2 %v14639_v55  ;;  %v14641_v55 = vrot.slane %v9509_v9, 2  ;;  %v1522_v31 = vrot.slane %v9503_v6, 1 }
  0xfa   : > { %1211 = vmatmul.bf16.gmra.mxu3 %v14640_v25  ;;  %v9951_v25 = vsel %vm1112_vm0, %v14644_v18, %v14643_v23  ;;  %v14649_v18 = vrot.slane %v9490_v59, 1 }
  0xfb   : > { %v9940_v1 = vsel %vm1806_vm3, %v1793_v21, %v14641_v55  ;;  %v888_v21 = vsel %vm879_vm1, %v14646_v48, %v14645_v10  ;;  %v817_v55 = vrot.slane %v9603_v5, 5  ;;  %v9968_v23 = vsel %vm1523_vm4, %v1521_v13, %v1522_v31 }
  0xfc   : > { %14642 = vst [vmem:[#allocation20_spill] sm:$0xff] %v9940_v1  ;;  %v9974_v58 = vsel %vm1523_vm4, %v1522_v31, %v14649_v18  ;;  %v1949_v10 = vrot.slane %v9509_v9, 3  ;;  %v1257_v27 = vpack.c.bf16 %v9951_v25, %v9773_v17  ;;  %v1950_v13 = vrot.slane %v9558_v39, 3 }
  0xfd   : > { %14648 = vst [vmem:[#allocation22_spill] sm:$0xff] %v9968_v23  ;;  %v1952_v31 = vrot.slane %v9570_v47, 3  ;;  %v1953_v18 = vrot.slane %v9578_v52, 3  ;;  %v1956_v48 = vrot.slane %v9535_v24, 3  ;;  %v1957_v1 = vrot.slane %v9540_v29, 3 }
  0xfe   : > { %14650 = vst [vmem:[#allocation23_spill] sm:$0xff] %v9974_v58  ;;  %v9992_v62 = vsel %vm1961_vm5, %v1949_v10, %v1950_v13  ;;  %v9998_v58 = vsel %vm1961_vm5, %v1950_v13, %v1951_v34  ;;  %v14658_v13 = vrot.slane %v9603_v5, 6  ;;  %v1948_v29 = vrot.slane %v9490_v59, 3 }
  0xff   : > { %14651 = vst [vmem:[#allocation24_spill] sm:$0xff] %v9992_v62  ;;  %v10002_v23 = vsel %vm1961_vm5, %v1952_v31, %v1953_v18  ;;  %v10006_v51 = vsel %vm1961_vm5, %v1951_v34, %v1952_v31  ;;  %v10023_v34 = vsel %vm1961_vm5, %v1955_v38, %v1956_v48  ;;  %v8696_v31 = vld [vmem:[%s14626_s4 + $0x1f8] sm:$0xff]  ;;  %v10032_v20 = vsel %vm1961_vm5, %v1956_v48, %v1957_v1 }
 0x100   : > { %14652 = vst [vmem:[#allocation25_spill] sm:$0xff] %v9998_v58  ;;  %v1960_v62 = vrot.slane %v9503_v6, 3  ;;  %v14660_v48 = vrot.slane %v9570_v47, 5  ;;  %v839_v42 = vsel %vm829_vm2, %v14661_v63, %v817_v55  ;;  %1892 = vmatpush.bf16.msra.mxu0 %v8696_v31 }
 0x101   : > { %14653 = vst [vmem:[#allocation26_spill] sm:$0xff] %v10002_v23  ;;  %v10063_v23 = vsel %vm1961_vm5, %v1957_v1, %v1958_v44 }
 0x102   : > { %14654 = vst [vmem:[#allocation27_spill] sm:$0xff] %v10006_v51  ;;  %1349 = vmatmul.bf16.gmra.mxu0 %v1257_v27  ;;  %v14659_v51 = vrot.slane %v9558_v39, 6  ;;  %v838_v58 = vsel %vm829_vm2, %v817_v55, %v14660_v48  ;;  %v10073_v63 = vsel %vm1961_vm5, %v1960_v62, %v1948_v29  ;;  %v10077_v55 = vsel %vm1961_vm5, %v1948_v29, %v1949_v10  ;;  %v8667_v29 = vld [vmem:[%s14626_s4 + $0x110] sm:$0xff] }
 0x103   : > { %14657 = vst [vmem:[#allocation28_spill] sm:$0xff] %v10023_v34  ;;  %v10069_v34 = vsel %vm1961_vm5, %v1959_v54, %v1960_v62  ;;  %v1128_v48 = vpack.c.bf16 %v9750_v15, %v9639_v14  ;;  %v8694_v62 = vld [vmem:[%s14626_s4 + $0x1e8] sm:$0xff]  ;;  %1459 = vmatpush.bf16.msra.mxu1 %v8667_v29  ;;  %v1954_v14 = vrot.slane %v9684_v53, 3  ;;  %v819_v10 = vrot.slane %v9578_v52, 5 }
 0x104   : > { %v889_v27 = vsel %vm879_vm1, %v14659_v51, %v14658_v13  ;;  %v8695_v51 = vld [vmem:[%s14626_s4 + $0x1f0] sm:$0xff]  ;;  %v10059_v13 = vsel %vm1961_vm5, %v1958_v44, %v1959_v54  ;;  %v845_v44 = vpack.c.bf16 %v838_v58, %v839_v42  ;;  %v8693_v42 = vld [vmem:[%s14626_s4 + $0x1e0] sm:$0xff]  ;;  %v1129_v54 = vpack.c.bf16 %v9773_v17, %v9656_v35  ;;  %v8666_v35 = vld [vmem:[%s14626_s4 + $0x108] sm:$0xff] }
 0x105   : > { %v895_v1 = vpack.c.bf16 %v888_v21, %v889_v27  ;;  %1893 = vmatpush.bf16.msra.mxu0 %v8695_v51  ;;  %v10097_v15 = vsel %vm1961_vm5, %v1954_v14, %v1955_v38  ;;  %v10101_v58 = vsel %vm1961_vm5, %v1953_v18, %v1954_v14  ;;  %v871_v21 = vrot.slane %v9578_v52, 6  ;;  %v8692_v18 = vld [vmem:[%s14626_s4 + $0x1d8] sm:$0xff]  ;;  %v8679_v17 = vld [vmem:[%s14626_s4 + $0x170] sm:$0xff] }
 0x106   : > { %v14662_v51 = vpack.c.bf16 %v9567_v45, %v9681_v50  ;;  %v820_v38 = vrot.slane %v9684_v53, 5 }
 0x107   : > { %1460 = vmatpush.bf16.msra.mxu1 %v8666_v35  ;;  %v8677_v35 = vld [vmem:[%s14626_s4 + $0x160] sm:$0xff] }
 0x108   : > { %v836_v29 = vsel %vm829_vm2, %v819_v10, %v820_v38 }
 0x109   : > { %983 = vmatmul.bf16.gmra.mxu1 %v895_v1  ;;  %1074 = vmatmul.bf16.gmra.mxu2 %v845_v44  ;;  %v14663_v44 = vrot.slane %v9570_v47, 6 }
 0x10a   : > { %1216 = vmatmul.bf16.gmra.mxu3 %v1128_v48  ;;  %1894 = vmatpush.bf16.msra.mxu0 %v8694_v62  ;;  %v872_v48 = vrot.slane %v9684_v53, 6 }
 0x10b   : > { %v887_v62 = vsel %vm879_vm1, %v14663_v44, %v871_v21  ;;  %v8678_v44 = vld [vmem:[%s14626_s4 + $0x168] sm:$0xff] }
 0x10c   : > { %v886_v1 = vsel %vm879_vm1, %v871_v21, %v872_v48  ;;  %v8680_v21 = vld [vmem:[%s14626_s4 + $0x178] sm:$0xff] }
 0x10d   : > { %v896_v31 = vpack.c.bf16 %v886_v1, %v887_v62  ;;  %1609 = vmatpush.bf16.msra.mxu2 %v8680_v21  ;;  %v821_v1 = vrot.slane %v9605_v7, 5  ;;  %v8686_v62 = vld [vmem:[%s14626_s4 + $0x1a8] sm:$0xff]  ;;  %v14667_v21 = vrot.slane %v9535_v24, 5 }
 0x10e   : > { %1895 = vmatpush.bf16.msra.mxu0 %v8693_v42  ;;  %v14664_v42 = vrot.slane %v9570_v47, 5 }
 0x110   : > { %v837_v14 = vsel %vm829_vm2, %v14664_v42, %v819_v10  ;;  %v8688_v10 = vld [vmem:[%s14626_s4 + $0x1b8] sm:$0xff]  ;;  %v14666_v42 = vrot.slane %v9535_v24, 6 }
 0x111   : > { %v846_v27 = vpack.c.bf16 %v836_v29, %v837_v14  ;;  %1737 = vmatpush.bf16.msra.mxu3 %v8688_v10  ;;  %1610 = vmatpush.bf16.msra.mxu2 %v8679_v17  ;;  %v14665_v29 = vpack.c.bf16 %v9737_v11, %v9632_v26  ;;  %v834_v10 = vsel %vm829_vm2, %v821_v1, %v14667_v21  ;;  %v8685_v17 = vld [vmem:[%s14626_s4 + $0x1a0] sm:$0xff] }
 0x112   : > { %1354 = vmatmul.bf16.gmra.mxu0 %v14662_v51  ;;  %v8691_v51 = vld [vmem:[%s14626_s4 + $0x1d0] sm:$0xff]  ;;  %v14670_v21 = vpack.c.bf16 %v9632_v26, %v9567_v45  ;;  %v849_v45 = vpack.c.bf16 %v9787_v30, %v9787_v30  ;;  %v1132_v26 = vpack.c.bf16 %v9737_v11, %v9737_v11  ;;  %v14673_v30 = vpack.c.bf16 %v9509_v9, %v9490_v59 }
 0x113   : > { %1896 = vmatpush.bf16.msra.mxu0 %v8692_v18  ;;  %v8690_v18 = vld [vmem:[%s14626_s4 + $0x1c8] sm:$0xff]  ;;  %v14674_v11 = vpack.c.bf16 %v9798_v40, %v9804_v41 }
 0x115   : > { %1611 = vmatpush.bf16.msra.mxu2 %v8678_v44  ;;  %v1260_v44 = vpack.c.bf16 %v9722_v46, %v9722_v46  ;;  %v8681_v46 = vld [vmem:[%s14626_s4 + $0x180] sm:$0xff] }
 0x117   : > { %1897 = vmatpush.bf16.msra.mxu0 %v8691_v51 }
 0x119   : > { %988 = vmatmul.bf16.gmra.mxu1 %v896_v31  ;;  %1079 = vmatmul.bf16.gmra.mxu2 %v846_v27  ;;  %v8687_v31 = vld [vmem:[%s14626_s4 + $0x1b0] sm:$0xff]  ;;  %v873_v27 = vrot.slane %v9605_v7, 6 }
 0x11a   : > { %1221 = vmatmul.bf16.gmra.mxu3 %v1129_v54  ;;  %v8689_v54 = vld [vmem:[%s14626_s4 + $0x1c0] sm:$0xff]  ;;  %1612 = vmatpush.bf16.msra.mxu2 %v8677_v35 }
 0x11b   : > { %1898 = vmatpush.bf16.msra.mxu0 %v8690_v18  ;;  %1738 = vmatpush.bf16.msra.mxu3 %v8687_v31  ;;  %v884_v14 = vsel %vm879_vm1, %v873_v27, %v14666_v42  ;;  %v885_v51 = vsel %vm879_vm1, %v872_v48, %v873_v27  ;;  %v835_v18 = vsel %vm829_vm2, %v820_v38, %v821_v1  ;;  %v8676_v38 = vld [vmem:[%s14626_s4 + $0x158] sm:$0xff]  ;;  %v8665_v1 = vld [vmem:[%s14626_s4 + $0x100] sm:$0xff] }
 0x11c   : > { %v897_v31 = vpack.c.bf16 %v884_v14, %v885_v51  ;;  %v847_v48 = vpack.c.bf16 %v834_v10, %v835_v18  ;;  %v8684_v27 = vld [vmem:[%s14626_s4 + $0x198] sm:$0xff]  ;;  %1461 = vmatpush.bf16.msra.mxu1 %v8665_v1  ;;  %v8673_v42 = vld [vmem:[%s14626_s4 + $0x140] sm:$0xff]  ;;  %v14668_v14 = vpack.c.bf16 %v9704_v4, %v9600_v3  ;;  %v14669_v51 = vpack.c.bf16 %v9710_v16, %v9613_v8  ;;  %v8703_v3 = vld [vmem:[%s14626_s4 + $0x230] sm:$0xff] }
 0x11d   : > { %v8704_v10 = vld [vmem:[%s14626_s4 + $0x238] sm:$0xff]  ;;  %v14671_v18 = vpack.c.bf16 %v9765_v12, %v9779_v32  ;;  %v899_v8 = vpack.c.bf16 %v9783_v0, %v9783_v0  ;;  %v14672_v32 = vpack.c.bf16 %v9818_v43, %v9809_v60  ;;  %v8702_v0 = vld [vmem:[%s14626_s4 + $0x228] sm:$0xff]  ;;  %v14675_v12 = vpack.c.bf16 %v9822_v36, %v9798_v40  ;;  %v8701_v35 = vld [vmem:[%s14626_s4 + $0x220] sm:$0xff] }
 0x11e   : > { %1613 = vmatpush.bf16.msra.mxu2 %v8676_v38  ;;  %v14676_v60 = vpack.c.bf16 %v9889_v61, %v9893_v22  ;;  %v14678_v40 = vpack.c.bf16 %v9840_v56, %v9822_v36  ;;  %v8700_v1 = vld [vmem:[%s14626_s4 + $0x218] sm:$0xff] }
 0x11f   : > { %1899 = vmatpush.bf16.msra.mxu0 %v8689_v54  ;;  %1739 = vmatpush.bf16.msra.mxu3 %v8686_v62  ;;  %v1130_v54 = vpack.c.bf16 %v9681_v50, %v9951_v25  ;;  %v8675_v50 = vld [vmem:[%s14626_s4 + $0x150] sm:$0xff]  ;;  %v8674_v62 = vld [vmem:[%s14626_s4 + $0x148] sm:$0xff] }
 0x120   : > { %v8683_v25 = vld [vmem:[%s14626_s4 + $0x190] sm:$0xff]  ;;  %2047 = vmatpush.bf16.msrb.mxu1 %v8704_v10 }
 0x122   : > { %1359 = vmatmul.bf16.gmra.mxu0 %v14665_v29  ;;  %1614 = vmatpush.bf16.msra.mxu2 %v8675_v50  ;;  %v8682_v29 = vld [vmem:[%s14626_s4 + $0x188] sm:$0xff] }
 0x123   : > { %1740 = vmatpush.bf16.msra.mxu3 %v8685_v17  ;;  %v14677_v17 = vpack.c.bf16 %v9603_v5, %v9558_v39  ;;  %v14680_v39 = vld [vmem:[#allocation14_spill] sm:$0xff] }
 0x124   : > { %2048 = vmatpush.bf16.msrb.mxu1 %v8703_v3  ;;  %v14681_v5 = vpack.c.bf16 %v9833_v57, %v14680_v39  ;;  %v14695_v39 = vld [vmem:[#allocation16_spill] sm:$0xff] }
 0x126   : > { %1615 = vmatpush.bf16.msra.mxu2 %v8674_v62 }
 0x127   : > { %1741 = vmatpush.bf16.msra.mxu3 %v8684_v27 }
 0x128   : > { %2049 = vmatpush.bf16.msrb.mxu1 %v8702_v0  ;;  %v1385_v0 = vpack.c.bf16 %v9605_v7, %v9684_v53  ;;  %v8698_v7 = vld [vmem:[%s14626_s4 + $0x208] sm:$0xff] }
 0x129   : > { %993 = vmatmul.bf16.gmra.mxu1 %v897_v31  ;;  %1084 = vmatmul.bf16.gmra.mxu2 %v847_v48  ;;  %v14679_v31 = vpack.c.bf16 %v9854_v28, %v9840_v56  ;;  %v14690_v53 = vld [vmem:[#allocation19_spill] sm:$0xff] }
 0x12a   : > { %1226 = vmatmul.bf16.gmra.mxu3 %v1130_v54  ;;  %1616 = vmatpush.bf16.msra.mxu2 %v8673_v42  ;;  %v14683_v42 = vpack.c.bf16 %v10015_v49, %v9854_v28 }
 0x12b   : > { %1742 = vmatpush.bf16.msra.mxu3 %v8683_v25 }
 0x12c   : > { %2050 = vmatpush.bf16.msrb.mxu1 %v8701_v35 }
 0x12f   : > { %1743 = vmatpush.bf16.msra.mxu3 %v8682_v29  ;;  %v14682_v29 = vpack.c.bf16 %v9578_v52, %v9570_v47  ;;  %v8699_v47 = vld [vmem:[%s14626_s4 + $0x210] sm:$0xff]  ;;  %v14685_v52 = vpack.c.bf16 %v9880_v37, %v9884_v19 }
 0x130   : > { %2051 = vmatpush.bf16.msrb.mxu1 %v8700_v1 }
 0x132   : > { %1364 = vmatmul.bf16.gmra.mxu0 %v1260_v44 }
 0x133   : > { %1744 = vmatpush.bf16.msra.mxu3 %v8681_v46  ;;  %v14684_v46 = vpack.c.bf16 %v9865_v33, %v10015_v49 }
 0x134   : > { %2052 = vmatpush.bf16.msrb.mxu1 %v8699_v47 }
 0x138   : > { %2053 = vmatpush.bf16.msrb.mxu1 %v8698_v7 }
 0x139   : > { %998 = vmatmul.bf16.gmra.mxu1 %v14668_v14  ;;  %1089 = vmatmul.bf16.gmra.mxu2 %v14669_v51 }
 0x13a   : > { %1231 = vmatmul.bf16.gmra.mxu3 %v14670_v21 }
 0x142   : > { %1900 = vmatmul.bf16.vlgmr.msra.gmra.mxu0 %v14671_v18 }
 0x149   : > { %1003 = vmatmul.bf16.gmra.mxu1 %v899_v8  ;;  %1094 = vmatmul.bf16.gmra.mxu2 %v849_v45 }
 0x14a   : > { %1236 = vmatmul.bf16.gmra.mxu3 %v1132_v26 }
 0x14f   : > { %v1335_v4 = vpop.f32.mrf.mxu0 }
 0x152   : > { %1905 = vmatmul.bf16.gmra.mxu0 %v14672_v32 }
 0x157   : > { %v1337_v16 = vpop.f32.mrf.mxu0 }
 0x159   : > { %1462 = vmatmul.bf16.vlgmr.msra.gmra.mxu1 %v14673_v30  ;;  %1617 = vmatmul.bf16.vlgmr.msra.gmra.mxu2 %v14674_v11  ;;  %v14686_v30 = vld [vmem:[#allocation15_spill] sm:$0xff] }
 0x15a   : > { %1745 = vmatmul.bf16.vlgmr.msra.gmra.mxu3 %v14675_v12  ;;  %v14687_v11 = vpack.c.bf16 %v14686_v30, %v9865_v33  ;;  %v14688_v12 = vld [vmem:[#allocation17_spill] sm:$0xff]  ;;  %v14691_v33 = vld [vmem:[#allocation18_spill] sm:$0xff] }
 0x15b   : > { %v14689_v37 = vpack.c.bf16 %v14688_v12, %v14686_v30 }
 0x15f   : > { %v1340_v43 = vpop.f32.mrf.mxu0 }
 0x162   : > { %1910 = vmatmul.bf16.gmra.mxu0 %v14676_v60 }
 0x166   : > { %v974_v59 = vpop.f32.mrf.mxu1 }
 0x167   : > { %v1342_v9 = vpop.f32.mrf.mxu0 }
 0x169   : > { %1467 = vmatmul.bf16.gmra.mxu1 %v14677_v17  ;;  %1622 = vmatmul.bf16.gmra.mxu2 %v14678_v40 }
 0x16a   : > { %1750 = vmatmul.bf16.gmra.mxu3 %v14679_v31  ;;  %v14692_v31 = vpack.c.bf16 %v14690_v53, %v14691_v33  ;;  %v1388_v33 = vpack.c.bf16 %v9503_v6, %v9503_v6 }
 0x16c   : > { %v1065_v22 = vpop.f32.mrf.mxu2 }
 0x16d   : > { %v1066_v61 = vadd.f32 %v1065_v22, %v974_v59  ;;  %v1207_v48 = vpop.f32.mrf.mxu3 }
 0x16e   : > { %v976_v54 = vpop.f32.mrf.mxu1 }
 0x16f   : > { %v1241_v38 = vadd.f32 %v1207_v48, %v1066_v61  ;;  %v1345_v27 = vpop.f32.mrf.mxu0 }
 0x171   : > { %v10284_v57 = vadd.f32 %v1335_v4, %v1241_v38  ;;  %v14693_v38 = vld [vmem:[#allocation11_spill] sm:$0xff] }
 0x172   : > { %1915 = vmatmul.bf16.gmra.mxu0 %v14681_v5  ;;  %v14694_v1 = vpack.c.bf16 %v14693_v38, %v9535_v24  ;;  %v14696_v5 = vpack.c.bf16 %v14695_v39, %v14688_v12 }
 0x174   : > { %v1067_v36 = vpop.f32.mrf.mxu2 }
 0x175   : > { %v1068_v50 = vadd.f32 %v1067_v36, %v976_v54  ;;  %v1209_v25 = vpop.f32.mrf.mxu3  ;;  %v14697_v36 = vld [vmem:[#allocation21_spill] sm:$0xff] }
 0x176   : > { %v979_v56 = vpop.f32.mrf.mxu1 }
 0x177   : > { %v1242_v44 = vadd.f32 %v1209_v25, %v1068_v50  ;;  %v10273_v62 = vpop.f32.mrf.mxu0  ;;  %v14698_v50 = vpack.c.bf16 %v14697_v36, %v14695_v39 }
 0x179   : > { %1472 = vmatmul.bf16.gmra.mxu1 %v14682_v29  ;;  %1627 = vmatmul.bf16.gmra.mxu2 %v14683_v42  ;;  %v10292_v28 = vadd.f32 %v1337_v16, %v1242_v44 }
 0x17a   : > { %1755 = vmatmul.bf16.gmra.mxu3 %v14684_v46 }
 0x17c   : > { %v1070_v14 = vpop.f32.mrf.mxu2 }
 0x17d   : > { %v1071_v51 = vadd.f32 %v1070_v14, %v979_v56  ;;  %v1212_v21 = vpop.f32.mrf.mxu3  ;;  %v14699_v14 = vld [vmem:[#allocation20_spill] sm:$0xff] }
 0x17e   : > { %v981_v10 = vpop.f32.mrf.mxu1 }
 0x17f   : > { %v1243_v18 = vadd.f32 %v1212_v21, %v1071_v51  ;;  %v1350_v3 = vpop.f32.mrf.mxu0  ;;  %v1826_v51 = vpack.c.bf16 %v14699_v14, %v14699_v14 }
 0x181   : > { %v10304_v19 = vadd.f32 %v1340_v43, %v1243_v18 }
 0x182   : > { %1920 = vmatmul.bf16.gmra.mxu0 %v14685_v52  ;;  %v14701_v52 = vld [vmem:[#allocation12_spill] sm:$0xff] }
 0x184   : > { %v1072_v49 = vpop.f32.mrf.mxu2 }
 0x185   : > { %v1073_v8 = vadd.f32 %v1072_v49, %v981_v10  ;;  %v1214_v45 = vpop.f32.mrf.mxu3 }
 0x186   : > { %v984_v26 = vpop.f32.mrf.mxu1 }
 0x187   : > { %v1244_v4 = vadd.f32 %v1214_v45, %v1073_v8  ;;  %v10294_v32 = vpop.f32.mrf.mxu0  ;;  %v14703_v8 = vld [vmem:[#allocation22_spill] sm:$0xff] }
 0x188   : > { %v14704_v45 = vpack.c.bf16 %v14703_v8, %v14697_v36 }
 0x189   : > { %1477 = vmatmul.bf16.gmra.mxu1 %v1385_v0  ;;  %1632 = vmatmul.bf16.gmra.mxu2 %v14687_v11  ;;  %v10314_v22 = vadd.f32 %v1342_v9, %v1244_v4  ;;  %v8697_v9 = vld [vmem:[%s14626_s4 + $0x200] sm:$0xff] }
 0x18a   : > { %1760 = vmatmul.bf16.gmra.mxu3 %v14689_v37  ;;  %2054 = vmatpush.bf16.msrb.mxu1 %v8697_v9 }
 0x18c   : > { %v1075_v16 = vpop.f32.mrf.mxu2 }
 0x18d   : > { %v1076_v60 = vadd.f32 %v1075_v16, %v984_v26  ;;  %v1217_v35 = vpop.f32.mrf.mxu3  ;;  %v14705_v26 = vld [vmem:[#allocation23_spill] sm:$0xff] }
 0x18e   : > { %v10306_v59 = vpop.f32.mrf.mxu1  ;;  %v14706_v4 = vpack.c.bf16 %v14705_v26, %v14703_v8 }
 0x18f   : > { %v1245_v17 = vadd.f32 %v1217_v35, %v1076_v60  ;;  %v1355_v40 = vpop.f32.mrf.mxu0 }
 0x191   : > { %v10334_v25 = vadd.f32 %v1345_v27, %v1245_v17  ;;  %v14700_v27 = vld [vmem:[#allocation13_spill] sm:$0xff] }
 0x192   : > { %1925 = vmatmul.bf16.gmra.mxu0 %v14692_v31  ;;  %v14702_v49 = vpack.c.bf16 %v14700_v27, %v14701_v52  ;;  %v1543_v31 = vpack.c.bf16 %v14705_v26, %v14705_v26 }
 0x194   : > { %v10316_v43 = vpop.f32.mrf.mxu2 }
 0x195   : > { %v10318_v61 = vpop.f32.mrf.mxu3 }
 0x196   : > { %v989_v48 = vpop.f32.mrf.mxu1 }
 0x197   : > { %v10320_v54 = vpop.f32.mrf.mxu0 }
 0x199   : > { %1482 = vmatmul.bf16.gmra.mxu1 %v14694_v1  ;;  %1637 = vmatmul.bf16.gmra.mxu2 %v14696_v5 }
 0x19a   : > { %1765 = vmatmul.bf16.gmra.mxu3 %v14698_v50 }
 0x19c   : > { %v1080_v56 = vpop.f32.mrf.mxu2 }
 0x19d   : > { %v1081_v44 = vadd.f32 %v1080_v56, %v989_v48  ;;  %v1222_v29 = vpop.f32.mrf.mxu3  ;;  %v1671_v48 = vpack.c.bf16 %v9804_v41, %v9804_v41  ;;  %v14707_v41 = vld [vmem:[#allocation25_spill] sm:$0xff] }
 0x19e   : > { %v10336_v24 = vpop.f32.mrf.mxu1 }
 0x19f   : > { %v1247_v42 = vadd.f32 %v1222_v29, %v1081_v44  ;;  %v1360_v46 = vpop.f32.mrf.mxu0  ;;  %v14708_v29 = vld [vmem:[#allocation24_spill] sm:$0xff] }
 0x1a1   : > { %v10359_v35 = vadd.f32 %v1350_v3, %v1247_v42  ;;  %v14709_v42 = vpack.c.bf16 %v14707_v41, %v14708_v29  ;;  %v14713_v29 = vpack.c.bf16 %v10097_v15, %v10101_v58  ;;  %v14714_v58 = vld [vmem:[#allocation28_spill] sm:$0xff] }
 0x1a2   : > { %1930 = vmatmul.bf16.gmra.mxu0 %v1826_v51 }
 0x1a4   : > { %v10340_v21 = vpop.f32.mrf.mxu2 }
 0x1a5   : > { %v10342_v10 = vpop.f32.mrf.mxu3 }
 0x1a6   : > { %v994_v18 = vpop.f32.mrf.mxu1 }
 0x1a7   : > { %v10344_v47 = vpop.f32.mrf.mxu0 }
 0x1a9   : > { %1487 = vmatmul.bf16.gmra.mxu1 %v14702_v49  ;;  %1642 = vmatmul.bf16.gmra.mxu2 %v14704_v45 }
 0x1aa   : > { %1770 = vmatmul.bf16.gmra.mxu3 %v14706_v4 }
 0x1ac   : > { %v1085_v0 = vpop.f32.mrf.mxu2 }
 0x1ad   : > { %v1086_v30 = vadd.f32 %v1085_v0, %v994_v18  ;;  %v1227_v11 = vpop.f32.mrf.mxu3 }
 0x1ae   : > { %v10355_v12 = vpop.f32.mrf.mxu1 }
 0x1af   : > { %v1249_v37 = vadd.f32 %v1227_v11, %v1086_v30  ;;  %v1365_v16 = vpop.f32.mrf.mxu0  ;;  %v14710_v30 = vld [vmem:[#allocation26_spill] sm:$0xff]  ;;  %v14711_v11 = vld [vmem:[#allocation27_spill] sm:$0xff] }
 0x1b1   : > { %v10373_v9 = vadd.f32 %v1355_v40, %v1249_v37  ;;  %v14712_v37 = vpack.c.bf16 %v14710_v30, %v14711_v11 }
 0x1b4   : > { %v10357_v60 = vpop.f32.mrf.mxu2 }
 0x1b5   : > { %v10361_v17 = vpop.f32.mrf.mxu3 }
 0x1b6   : > { %v999_v7 = vpop.f32.mrf.mxu1 }
 0x1b7   : > { %v1367_v53 = vpop.f32.mrf.mxu0 }
 0x1b9   : > { %1492 = vmatmul.bf16.gmra.mxu1 %v1388_v33  ;;  %1647 = vmatmul.bf16.gmra.mxu2 %v1543_v31 }
 0x1ba   : > { %1775 = vmatmul.bf16.gmra.mxu3 %v1671_v48 }
 0x1bc   : > { %v1090_v38 = vpop.f32.mrf.mxu2 }
 0x1bd   : > { %v1091_v1 = vadd.f32 %v1090_v38, %v999_v7  ;;  %v1232_v3 = vpop.f32.mrf.mxu3 }
 0x1be   : > { %v10369_v39 = vpop.f32.mrf.mxu1 }
 0x1bf   : > { %v1251_v5 = vadd.f32 %v1232_v3, %v1091_v1  ;;  %v1901_v36 = vpop.f32.mrf.mxu0 }
 0x1c1   : > { %v10382_v45 = vadd.f32 %v1360_v46, %v1251_v5 }
 0x1c4   : > { %v10371_v50 = vpop.f32.mrf.mxu2 }
 0x1c5   : > { %v10375_v6 = vpop.f32.mrf.mxu3 }
 0x1c6   : > { %v1004_v56 = vpop.f32.mrf.mxu1 }
 0x1c7   : > { %v10377_v44 = vpop.f32.mrf.mxu0 }
 0x1c9   : > { %2055 = vmatmul.bf16.vlgmr.msrb.gmra.mxu1 %v14709_v42 }
 0x1cc   : > { %v1095_v14 = vpop.f32.mrf.mxu2 }
 0x1cd   : > { %v1096_v51 = vadd.f32 %v1095_v14, %v1004_v56  ;;  %v1237_v18 = vpop.f32.mrf.mxu3 }
 0x1ce   : > { %v1006_v27 = vpop.f32.mrf.mxu1 }
 0x1cf   : > { %v1253_v52 = vadd.f32 %v1237_v18, %v1096_v51  ;;  %v1906_v49 = vpop.f32.mrf.mxu0 }
 0x1d1   : > { %v10395_v3 = vadd.f32 %v1365_v16, %v1253_v52 }
 0x1d4   : > { %v1097_v8 = vpop.f32.mrf.mxu2 }
 0x1d5   : > { %v1239_v40 = vpop.f32.mrf.mxu3 }
 0x1d6   : > { %v1463_v26 = vpop.f32.mrf.mxu1 }
 0x1d7   : > { %v1497_v4 = vadd.f32 %v1463_v26, %v10284_v57  ;;  %v10385_v0 = vpop.f32.mrf.mxu0 }
 0x1d9   : > { %2060 = vmatmul.bf16.gmra.mxu1 %v14712_v37 }
 0x1dc   : > { %v1618_v7 = vpop.f32.mrf.mxu2 }
 0x1dd   : > { %v1652_v53 = vadd.f32 %v1618_v7, %v1497_v4  ;;  %v1746_v33 = vpop.f32.mrf.mxu3  ;;  %v14715_v4 = vpack.c.bf16 %v10032_v20, %v14714_v58  ;;  %v14716_v20 = vpack.c.bf16 %v10059_v13, %v10063_v23  ;;  %v14718_v23 = vpack.c.bf16 %v10073_v63, %v10069_v34 }
 0x1de   : > { %v1465_v31 = vpop.f32.mrf.mxu1 }
 0x1df   : > { %v1780_v48 = vadd.f32 %v1746_v33, %v1652_v53  ;;  %v10391_v38 = vadd.f32 %v1465_v31, %v10292_v28  ;;  %v1911_v46 = vpop.f32.mrf.mxu0 }
 0x1e1   : > { %v10410_v8 = vadd.f32 %v1901_v36, %v1780_v48 }
 0x1e4   : > { %v10393_v1 = vpop.f32.mrf.mxu2 }
 0x1e5   : > { %v10397_v57 = vpop.f32.mrf.mxu3 }
 0x1e6   : > { %v1468_v5 = vpop.f32.mrf.mxu1 }
 0x1e7   : > { %v1499_v56 = vadd.f32 %v1468_v5, %v10304_v19  ;;  %v10400_v41 = vpop.f32.mrf.mxu0 }
 0x1e9   : > { %2065 = vmatmul.bf16.gmra.mxu1 %v14713_v29 }
 0x1ec   : > { %v1623_v42 = vpop.f32.mrf.mxu2 }
 0x1ed   : > { %v1654_v14 = vadd.f32 %v1623_v42, %v1499_v56  ;;  %v1751_v28 = vpop.f32.mrf.mxu3 }
 0x1ee   : > { %v1470_v51 = vpop.f32.mrf.mxu1 }
 0x1ef   : > { %v1782_v18 = vadd.f32 %v1751_v28, %v1654_v14  ;;  %v10406_v27 = vadd.f32 %v1470_v51, %v10314_v22  ;;  %v1916_v16 = vpop.f32.mrf.mxu0 }
 0x1f1   : > { %v10424_v33 = vadd.f32 %v1906_v49, %v1782_v18 }
 0x1f4   : > { %v10408_v52 = vpop.f32.mrf.mxu2 }
 0x1f5   : > { %v10412_v19 = vpop.f32.mrf.mxu3 }
 0x1f6   : > { %v1473_v40 = vpop.f32.mrf.mxu1 }
 0x1f7   : > { %v1501_v26 = vadd.f32 %v1473_v40, %v10334_v25  ;;  %v10415_v15 = vpop.f32.mrf.mxu0 }
 0x1f9   : > { %2070 = vmatmul.bf16.gmra.mxu1 %v14715_v4 }
 0x1fc   : > { %v1628_v30 = vpop.f32.mrf.mxu2 }
 0x1fd   : > { %v1656_v11 = vadd.f32 %v1628_v30, %v1501_v26  ;;  %v1756_v22 = vpop.f32.mrf.mxu3 }
 0x1fe   : > { %v10420_v37 = vpop.f32.mrf.mxu1 }
 0x1ff   : > { %v1784_v7 = vadd.f32 %v1756_v22, %v1656_v11  ;;  %v1921_v53 = vpop.f32.mrf.mxu0 }
 0x201   : > { %v10438_v18 = vadd.f32 %v1911_v46, %v1784_v7 }
 0x204   : > { %v10422_v36 = vpop.f32.mrf.mxu2 }
 0x205   : > { %v10426_v31 = vpop.f32.mrf.mxu3 }
 0x206   : > { %v1478_v25 = vpop.f32.mrf.mxu1 }
 0x207   : > { %v1503_v48 = vadd.f32 %v1478_v25, %v10359_v35  ;;  %v10429_v5 = vpop.f32.mrf.mxu0 }
 0x209   : > { %2075 = vmatmul.bf16.gmra.mxu1 %v14716_v20 }
 0x20c   : > { %v1633_v56 = vpop.f32.mrf.mxu2 }
 0x20d   : > { %v1658_v29 = vadd.f32 %v1633_v56, %v1503_v48  ;;  %v1761_v42 = vpop.f32.mrf.mxu3  ;;  %v1981_v56 = vpack.c.bf16 %v10077_v55, %v10077_v55 }
 0x20e   : > { %v10434_v14 = vpop.f32.mrf.mxu1 }
 0x20f   : > { %v1786_v28 = vadd.f32 %v1761_v42, %v1658_v29  ;;  %v1926_v51 = vpop.f32.mrf.mxu0 }
 0x211   : > { %v10452_v7 = vadd.f32 %v1916_v16, %v1786_v28 }
 0x214   : > { %v10436_v49 = vpop.f32.mrf.mxu2 }
 0x215   : > { %v10440_v40 = vpop.f32.mrf.mxu3 }
 0x216   : > { %v1483_v35 = vpop.f32.mrf.mxu1 }
 0x217   : > { %v1505_v26 = vadd.f32 %v1483_v35, %v10373_v9  ;;  %v10443_v58 = vpop.f32.mrf.mxu0  ;;  %v8720_v9 = vld [vmem:[%s14441_s6 + $0x78] sm:$0xff] }
 0x218   : > { %14717 = vst [vmem:[#allocation14_spill] sm:$0xff] %v10443_v58  ;;  %2293 = vmatpush.bf16.msrb.mxu2 %v8720_v9 }
 0x219   : > { %2080 = vmatmul.bf16.gmra.mxu1 %v14718_v23 }
 0x21c   : > { %v1638_v13 = vpop.f32.mrf.mxu2 }
 0x21d   : > { %v1660_v4 = vadd.f32 %v1638_v13, %v1505_v26  ;;  %v1766_v30 = vpop.f32.mrf.mxu3 }
 0x21e   : > { %v10448_v11 = vpop.f32.mrf.mxu1 }
 0x21f   : > { %v1788_v22 = vadd.f32 %v1766_v30, %v1660_v4  ;;  %v1931_v25 = vpop.f32.mrf.mxu0 }
 0x221   : > { %v10466_v23 = vadd.f32 %v1921_v53, %v1788_v22  ;;  %v8718_v22 = vld [vmem:[%s14441_s6 + $0x68] sm:$0xff] }
 0x224   : > { %v10450_v46 = vpop.f32.mrf.mxu2 }
 0x225   : > { %v10454_v48 = vpop.f32.mrf.mxu3 }
 0x226   : > { %v1488_v20 = vpop.f32.mrf.mxu1 }
 0x227   : > { %v1507_v34 = vadd.f32 %v1488_v20, %v10382_v45  ;;  %v1933_v63 = vpop.f32.mrf.mxu0  ;;  %v8719_v45 = vld [vmem:[%s14441_s6 + $0x70] sm:$0xff] }
 0x228   : > { %2294 = vmatpush.bf16.msrb.mxu2 %v8719_v45 }
 0x229   : > { %2085 = vmatmul.bf16.gmra.mxu1 %v1981_v56 }
 0x22c   : > { %v1643_v29 = vpop.f32.mrf.mxu2  ;;  %2295 = vmatpush.bf16.msrb.mxu2 %v8718_v22 }
 0x22d   : > { %v1662_v42 = vadd.f32 %v1643_v29, %v1507_v34  ;;  %v1771_v35 = vpop.f32.mrf.mxu3 }
 0x22e   : > { %v10462_v16 = vpop.f32.mrf.mxu1 }
 0x22f   : > { %v1790_v28 = vadd.f32 %v1771_v35, %v1662_v42 }
 0x231   : > { %v10474_v29 = vadd.f32 %v1926_v51, %v1790_v28  ;;  %v8717_v51 = vld [vmem:[%s14441_s6 + $0x60] sm:$0xff] }
 0x232   : > { %2296 = vmatpush.bf16.msrb.mxu2 %v8717_v51 }
 0x234   : > { %v10464_v26 = vpop.f32.mrf.mxu2 }
 0x235   : > { %v10468_v13 = vpop.f32.mrf.mxu3 }
 0x236   : > { %v1493_v4 = vpop.f32.mrf.mxu1 }
 0x237   : > { %v1509_v55 = vadd.f32 %v1493_v4, %v10395_v3  ;;  %v1653_v3 = vadd.f32 %v10393_v1, %v10391_v38 }
 0x239   : > { %v1781_v45 = vadd.f32 %v10397_v57, %v1653_v3  ;;  %v8716_v57 = vld [vmem:[%s14441_s6 + $0x58] sm:$0xff] }
 0x23a   : > { %2297 = vmatpush.bf16.msrb.mxu2 %v8716_v57  ;;  %v1083_v57 = vadd.f32 %v10340_v21, %v10336_v24 }
 0x23c   : > { %v1648_v30 = vpop.f32.mrf.mxu2 }
 0x23d   : > { %v1664_v9 = vadd.f32 %v1648_v30, %v1509_v55  ;;  %v1776_v20 = vpop.f32.mrf.mxu3  ;;  %v1936_v30 = vadd.f32 %v10377_v44, %v1781_v45  ;;  %v1655_v44 = vadd.f32 %v10408_v52, %v10406_v27  ;;  %v9072_v27 = vld [vmem:[%s14628_s2 + $0x8] sm:$0xff] }
 0x23e   : > { %v1495_v34 = vpop.f32.mrf.mxu1 }
 0x23f   : > { %v1792_v63 = vadd.f32 %v1776_v20, %v1664_v9 }
 0x241   : > { %v10483_v4 = vadd.f32 %v1931_v25, %v1792_v63  ;;  %v1078_v25 = vadd.f32 %v10316_v43, %v10306_v59  ;;  %v1783_v63 = vadd.f32 %v10412_v19, %v1655_v44  ;;  %v8715_v44 = vld [vmem:[%s14441_s6 + $0x50] sm:$0xff] }
 0x242   : > { %2298 = vmatpush.bf16.msrb.mxu2 %v8715_v44 }
 0x243   : > { %v1246_v34 = vadd.f32 %v10318_v61, %v1078_v25  ;;  %v1938_v22 = vadd.f32 %v10385_v0, %v1783_v63 }
 0x244   : > { %v1650_v56 = vpop.f32.mrf.mxu2 }
 0x245   : > { %v1778_v53 = vpop.f32.mrf.mxu3  ;;  %v1374_v43 = vadd.f32 %v10273_v62, %v1246_v34 }
 0x246   : > { %v2056_v42 = vpop.f32.mrf.mxu1  ;;  %v9071_v53 = vld [vmem:[%s14628_s2] sm:$0xff] }
 0x247   : > { %v2090_v35 = vadd.f32 %v2056_v42, %v10410_v8  ;;  %v10493_v8 = vld [vmem:[%s14440_s5] ss:$0 sm:$0xff]  ;;  %v1502_v42 = vadd.f32 %v10420_v37, %v1374_v43 }
 0x249   : > { %v2107_v1 = vadd.f32 %v10493_v8, %v2090_v35  ;;  %v1657_v24 = vadd.f32 %v10422_v36, %v1502_v42  ;;  %v9073_v36 = vld [vmem:[%s14628_s2 + $0x10] sm:$0xff] }
 0x24b   : > { %v2120_v20 = vmax.f32 %v2107_v1, 0.0 }
 0x24d   : > { %v10510_v59 = vmul.f32 %v9071_v53, %v2120_v20  ;;  %v1785_v53 = vadd.f32 %v10426_v31, %v1657_v24 }
 0x24e   : > { %v2058_v58 = vpop.f32.mrf.mxu1 }
 0x24f   : > { %v2091_v38 = vadd.f32 %v2058_v58, %v1936_v30  ;;  %v14500_v45 = vrot.slane %v10510_v59, 6  ;;  %v14499_v51 = vrot.slane %v10510_v59, 5  ;;  %v14498_v62 = vrot.slane %v10510_v59, 7 }
 0x250   : > { %v14497_v37 = vrot.slane %v10510_v59, 2  ;;  %v14496_v1 = vrot.slane %v10510_v59, 3 }
 0x256   : > { %v2061_v28 = vpop.f32.mrf.mxu1 }
 0x257   : > { %v2092_v55 = vadd.f32 %v2061_v28, %v10424_v33  ;;  %v2108_v33 = vadd.f32 %v10493_v8, %v2091_v38 }
 0x259   : > { %v2121_v58 = vmax.f32 %v2108_v33, 0.0  ;;  %v2109_v56 = vadd.f32 %v10493_v8, %v2092_v55 }
 0x25b   : > { %v10516_v52 = vmul.f32 %v9072_v27, %v2121_v58  ;;  %v2122_v35 = vmax.f32 %v2109_v56, 0.0  ;;  %v1248_v56 = vadd.f32 %v10342_v10, %v1083_v57 }
 0x25d   : > { %v2428_v28 = vrot.slane %v10516_v52, 7  ;;  %v2196_v55 = vrot.slane %v10516_v52, 6  ;;  %v2147_v30 = vrot.slane %v10516_v52, 5  ;;  %v3274_v38 = vrot.slane %v10516_v52, 3 }
 0x25e   : > { %v2063_v9 = vpop.f32.mrf.mxu1  ;;  %v10573_v58 = vmul.f32 %v9073_v36, %v2122_v35  ;;  %v2838_v27 = vrot.slane %v10516_v52, 1  ;;  %v14501_v36 = vrot.slane %v10510_v59, 1 }
 0x25f   : > { %v2093_v3 = vadd.f32 %v2063_v9, %v1938_v22  ;;  %v10539_v25 = vsel %vm1112_vm0, %v14498_v62, %v2428_v28  ;;  %v10545_v33 = vsel %vm879_vm1, %v14500_v45, %v2196_v55  ;;  %v10551_v9 = vsel %vm829_vm2, %v14499_v51, %v2147_v30  ;;  %v9074_v62 = vld [vmem:[%s14628_s2 + $0x18] sm:$0xff] }
 0x260   : > { %v10568_v34 = vsel %vm1961_vm5, %v14496_v1, %v3274_v38  ;;  %14721 = vst [vmem:[#allocation19_spill] sm:$0xff] %v10573_v58  ;;  %v2148_v22 = vrot.slane %v10573_v58, 5  ;;  %v2429_v42 = vrot.slane %v10573_v58, 7  ;;  %v3121_v44 = vrot.slane %v10573_v58, 2 }
 0x261   : > { %v2110_v21 = vadd.f32 %v10493_v8, %v2093_v3  ;;  %14720 = vst [vmem:[#allocation17_spill] sm:$0xff] %v10568_v34  ;;  %v2839_v3 = vrot.slane %v10573_v58, 1  ;;  %v3275_v10 = vrot.slane %v10573_v58, 3 }
 0x262   : > { %v10592_v57 = vsel %vm829_vm2, %v2147_v30, %v2148_v22  ;;  %v10596_v24 = vsel %vm1112_vm0, %v2428_v28, %v2429_v42  ;;  %v8736_v30 = vld [vmem:[%s14441_s6 + $0xf8] sm:$0xff] }
 0x263   : > { %v2123_v43 = vmax.f32 %v2110_v21, 0.0  ;;  %v8712_v21 = vld [vmem:[%s14441_s6 + $0x38] sm:$0xff]  ;;  %v10636_v1 = vsel %vm1961_vm5, %v3274_v38, %v3275_v10  ;;  %2653 = vmatpush.bf16.msra.mxu1 %v8736_v30 }
 0x264   : > { %14723 = vst [vmem:[#allocation11_spill] sm:$0xff] %v10636_v1  ;;  %2384 = vmatpush.bf16.msrb.mxu3 %v8712_v21  ;;  %v9075_v21 = vld [vmem:[%s14628_s2 + $0x20] sm:$0xff] }
 0x265   : > { %v10626_v51 = vmul.f32 %v9074_v62, %v2123_v43  ;;  %v1088_v62 = vadd.f32 %v10357_v60, %v10355_v12  ;;  %v1376_v43 = vadd.f32 %v10294_v32, %v1248_v56 }
 0x266   : > { %v2066_v61 = vpop.f32.mrf.mxu1 }
 0x267   : > { %v2094_v19 = vadd.f32 %v2066_v61, %v10438_v18  ;;  %v3120_v18 = vrot.slane %v10516_v52, 2  ;;  %v2197_v61 = vrot.slane %v10573_v58, 6  ;;  %14722 = vst [vmem:[#allocation18_spill] sm:$0xff] %v10626_v51  ;;  %v2149_v38 = vrot.slane %v10626_v51, 5 }
 0x268   : > { %v3276_v12 = vrot.slane %v10626_v51, 3 }
 0x269   : > { %v10562_v20 = vsel %vm1806_vm3, %v14497_v37, %v3120_v18  ;;  %v2111_v35 = vadd.f32 %v10493_v8, %v2094_v19  ;;  %v10588_v31 = vsel %vm879_vm1, %v2196_v55, %v2197_v61  ;;  %v10600_v19 = vsel %vm1523_vm4, %v2838_v27, %v2839_v3  ;;  %v8728_v55 = vld [vmem:[%s14441_s6 + $0xb8] sm:$0xff] }
 0x26a   : > { %14719 = vst [vmem:[#allocation15_spill] sm:$0xff] %v10562_v20  ;;  %v10621_v37 = vsel %vm1523_vm4, %v14501_v36, %v2838_v27  ;;  %v10632_v0 = vsel %vm1806_vm3, %v3120_v18, %v3121_v44  ;;  %v1940_v27 = vadd.f32 %v10400_v41, %v1785_v53  ;;  %2525 = vmatpush.bf16.msrb.mxu0 %v8728_v55  ;;  %v2430_v18 = vrot.slane %v10626_v51, 7 }
 0x26b   : > { %v2124_v28 = vmax.f32 %v2111_v35, 0.0  ;;  %v2198_v20 = vrot.slane %v10626_v51, 6  ;;  %v2840_v41 = vrot.slane %v10626_v51, 1  ;;  %v8714_v35 = vld [vmem:[%s14441_s6 + $0x48] sm:$0xff]  ;;  %v10698_v53 = vsel %vm1961_vm5, %v3275_v10, %v3276_v12 }
 0x26c   : > { %v10654_v32 = vsel %vm1112_vm0, %v2429_v42, %v2430_v18  ;;  %v8711_v42 = vld [vmem:[%s14441_s6 + $0x30] sm:$0xff]  ;;  %14725 = vst [vmem:[#allocation21_spill] sm:$0xff] %v10698_v53  ;;  %2299 = vmatpush.bf16.msrb.mxu2 %v8714_v35  ;;  %v8726_v10 = vld [vmem:[%s14441_s6 + $0xa8] sm:$0xff] }
 0x26d   : > { %v10658_v60 = vsel %vm879_vm1, %v2197_v61, %v2198_v20  ;;  %v8727_v61 = vld [vmem:[%s14441_s6 + $0xb0] sm:$0xff]  ;;  %v10689_v55 = vmul.f32 %v9075_v21, %v2124_v28  ;;  %2385 = vmatpush.bf16.msrb.mxu3 %v8711_v42  ;;  %v8710_v28 = vld [vmem:[%s14441_s6 + $0x28] sm:$0xff] }
 0x26e   : > { %v2068_v63 = vpop.f32.mrf.mxu1  ;;  %2526 = vmatpush.bf16.msrb.mxu0 %v8727_v61 }
 0x26f   : > { %v2095_v34 = vadd.f32 %v2068_v63, %v1940_v27  ;;  %v10662_v63 = vsel %vm829_vm2, %v2148_v22, %v2149_v38  ;;  %14724 = vst [vmem:[#allocation16_spill] sm:$0xff] %v10689_v55  ;;  %v8735_v27 = vld [vmem:[%s14441_s6 + $0xf0] sm:$0xff]  ;;  %v2150_v35 = vrot.slane %v10689_v55, 5  ;;  %v2431_v42 = vrot.slane %v10689_v55, 7 }
 0x270   : > { %2654 = vmatpush.bf16.msra.mxu1 %v8735_v27  ;;  %v2841_v61 = vrot.slane %v10689_v55, 1  ;;  %v3277_v22 = vrot.slane %v10689_v55, 3 }
 0x271   : > { %v2112_v56 = vadd.f32 %v10493_v8, %v2095_v34  ;;  %2386 = vmatpush.bf16.msrb.mxu3 %v8710_v28 }
 0x272   : > { %2527 = vmatpush.bf16.msrb.mxu0 %v8726_v10 }
 0x276   : > { %v2071_v45 = vpop.f32.mrf.mxu1 }
 0x277   : > { %v2096_v36 = vadd.f32 %v2071_v45, %v10452_v7  ;;  %v1504_v7 = vadd.f32 %v10434_v14, %v1376_v43  ;;  %v3122_v45 = vrot.slane %v10626_v51, 2  ;;  %v10666_v14 = vsel %vm1523_vm4, %v2839_v3, %v2840_v41 }
 0x278   : > { %v3123_v43 = vrot.slane %v10689_v55, 2 }
 0x279   : > { %v10684_v34 = vsel %vm1806_vm3, %v3121_v44, %v3122_v45  ;;  %v1093_v44 = vadd.f32 %v10371_v50, %v10369_v39  ;;  %v1659_v3 = vadd.f32 %v10436_v49, %v1504_v7  ;;  %v8734_v39 = vld [vmem:[%s14441_s6 + $0xe8] sm:$0xff]  ;;  %v1250_v50 = vadd.f32 %v10361_v17, %v1088_v62 }
 0x27a   : > { %v2125_v49 = vmax.f32 %v2112_v56, 0.0  ;;  %v2199_v7 = vrot.slane %v10689_v55, 6  ;;  %2655 = vmatpush.bf16.msra.mxu1 %v8734_v39  ;;  %v10729_v62 = vsel %vm829_vm2, %v2149_v38, %v2150_v35  ;;  %v8709_v56 = vld [vmem:[%s14441_s6 + $0x20] sm:$0xff]  ;;  %v10758_v39 = vsel %vm1523_vm4, %v2840_v41, %v2841_v61  ;;  %v8708_v41 = vld [vmem:[%s14441_s6 + $0x18] sm:$0xff] }
 0x27b   : > { %v1252_v27 = vadd.f32 %v10375_v6, %v1093_v44  ;;  %v1787_v21 = vadd.f32 %v10440_v40, %v1659_v3  ;;  %v10733_v6 = vsel %vm1112_vm0, %v2430_v18, %v2431_v42  ;;  %v2113_v40 = vadd.f32 %v10493_v8, %v2096_v36  ;;  %v8725_v3 = vld [vmem:[%s14441_s6 + $0xa0] sm:$0xff]  ;;  %v9076_v44 = vld [vmem:[%s14628_s2 + $0x28] sm:$0xff]  ;;  %14727 = vst [vmem:[#allocation13_spill] sm:$0xff] %v10758_v39 }
 0x27c   : > { %v10725_v17 = vsel %vm879_vm1, %v2198_v20, %v2199_v7  ;;  %v8733_v20 = vld [vmem:[%s14441_s6 + $0xe0] sm:$0xff]  ;;  %v10754_v28 = vmul.f32 %v9076_v44, %v2125_v49  ;;  %v10762_v38 = vsel %vm1806_vm3, %v3122_v45, %v3123_v43  ;;  %v10766_v18 = vsel %vm1961_vm5, %v3276_v12, %v3277_v22  ;;  %2387 = vmatpush.bf16.msrb.mxu3 %v8709_v56  ;;  %v8724_v12 = vld [vmem:[%s14441_s6 + $0x98] sm:$0xff] }
 0x27d   : > { %14728 = vst [vmem:[#allocation12_spill] sm:$0xff] %v10762_v38  ;;  %v1378_v36 = vadd.f32 %v10320_v54, %v1250_v50  ;;  %v1942_v1 = vadd.f32 %v10415_v15, %v1787_v21  ;;  %2528 = vmatpush.bf16.msrb.mxu0 %v8725_v3  ;;  %v8732_v54 = vld [vmem:[%s14441_s6 + $0xd8] sm:$0xff]  ;;  %v2126_v21 = vmax.f32 %v2113_v40, 0.0  ;;  %v8713_v40 = vld [vmem:[%s14441_s6 + $0x40] sm:$0xff]  ;;  %v14749_v38 = vrot.slane %v10510_v59, 6 }
 0x27e   : > { %v2073_v30 = vpop.f32.mrf.mxu1  ;;  %14726 = vst [vmem:[#allocation20_spill] sm:$0xff] %v10754_v28  ;;  %2656 = vmatpush.bf16.msra.mxu1 %v8733_v20  ;;  %v2432_v56 = vrot.slane %v10754_v28, 7  ;;  %v2200_v44 = vrot.slane %v10754_v28, 6  ;;  %v2151_v3 = vrot.slane %v10754_v28, 5  ;;  %v2842_v20 = vrot.slane %v10754_v28, 1  ;;  %2300 = vmatpush.bf16.msrb.mxu2 %v8713_v40 }
 0x27f   : > { %14729 = vst [vmem:[#allocation22_spill] sm:$0xff] %v10766_v18  ;;  %v1506_v15 = vadd.f32 %v10448_v11, %v1378_v36  ;;  %v2097_v50 = vadd.f32 %v2073_v30, %v1942_v1  ;;  %v3124_v45 = vrot.slane %v10754_v28, 2  ;;  %v8707_v36 = vld [vmem:[%s14441_s6 + $0x10] sm:$0xff]  ;;  %v8705_v11 = vld [vmem:[%s14441_s6] sm:$0xff] }
 0x280   : > { %2388 = vmatpush.bf16.msrb.mxu3 %v8708_v41  ;;  %v10797_v1 = vsel %vm1112_vm0, %v2431_v42, %v2432_v56  ;;  %v10801_v30 = vsel %vm879_vm1, %v2199_v7, %v2200_v44  ;;  %v8723_v42 = vld [vmem:[%s14441_s6 + $0x90] sm:$0xff]  ;;  %v8721_v18 = vld [vmem:[%s14441_s6 + $0x80] sm:$0xff] }
 0x281   : > { %2529 = vmatpush.bf16.msrb.mxu0 %v8724_v12  ;;  %v10825_v41 = vsel %vm1806_vm3, %v3123_v43, %v3124_v45  ;;  %v9077_v12 = vld [vmem:[%s14628_s2 + $0x30] sm:$0xff]  ;;  %v1661_v7 = vadd.f32 %v10450_v46, %v1506_v15  ;;  %v8730_v46 = vld [vmem:[%s14441_s6 + $0xc8] sm:$0xff] }
 0x282   : > { %2657 = vmatpush.bf16.msra.mxu1 %v8732_v54  ;;  %14731 = vst [vmem:[#allocation25_spill] sm:$0xff] %v10825_v41  ;;  %v10830_v54 = vmul.f32 %v9077_v12, %v2126_v21  ;;  %v8706_v12 = vld [vmem:[%s14441_s6 + $0x8] sm:$0xff] }
 0x284   : > { %14732 = vst [vmem:[#allocation24_spill] sm:$0xff] %v10830_v54  ;;  %2389 = vmatpush.bf16.msrb.mxu3 %v8707_v36  ;;  %v2201_v15 = vrot.slane %v10830_v54, 6  ;;  %v2433_v40 = vrot.slane %v10830_v54, 7  ;;  %v2843_v36 = vrot.slane %v10830_v54, 1 }
 0x285   : > { %2530 = vmatpush.bf16.msrb.mxu0 %v8723_v42  ;;  %v1789_v42 = vadd.f32 %v10454_v48, %v1661_v7  ;;  %v8729_v48 = vld [vmem:[%s14441_s6 + $0xc0] sm:$0xff] }
 0x286   : > { %v2076_v10 = vpop.f32.mrf.mxu1  ;;  %v10903_v53 = vsel %vm1523_vm4, %v2842_v20, %v2843_v36 }
 0x287   : > { %v10771_v49 = vadd.f32 %v2076_v10, %v10466_v23  ;;  %v1380_v23 = vadd.f32 %v10344_v47, %v1252_v27  ;;  %v3278_v47 = vrot.slane %v10754_v28, 3  ;;  %v2114_v27 = vadd.f32 %v10493_v8, %v2097_v50  ;;  %v8731_v50 = vld [vmem:[%s14441_s6 + $0xd0] sm:$0xff]  ;;  %14735 = vst [vmem:[#allocation28_spill] sm:$0xff] %v10903_v53 }
 0x288   : > { %2658 = vmatpush.bf16.msra.mxu1 %v8731_v50  ;;  %2390 = vmatpush.bf16.msrb.mxu3 %v8706_v12 }
 0x289   : > { %v1508_v10 = vadd.f32 %v10462_v16, %v1380_v23  ;;  %v10805_v16 = vsel %vm829_vm2, %v2150_v35, %v2151_v3  ;;  %v10821_v35 = vsel %vm1523_vm4, %v2841_v61, %v2842_v20  ;;  %v10841_v43 = vsel %vm1961_vm5, %v3277_v22, %v3278_v47  ;;  %v8722_v22 = vld [vmem:[%s14441_s6 + $0x88] sm:$0xff] }
 0x28a   : > { %14730 = vst [vmem:[#allocation23_spill] sm:$0xff] %v10821_v35  ;;  %v3125_v61 = vrot.slane %v10830_v54, 2  ;;  %2531 = vmatpush.bf16.msrb.mxu0 %v8722_v22  ;;  %v2115_v12 = vadd.f32 %v10493_v8, %v10771_v49  ;;  %v8744_v22 = vld [vmem:[%s14441_s6 + $0x138] sm:$0xff] }
 0x28b   : > { %14733 = vst [vmem:[#allocation26_spill] sm:$0xff] %v10841_v43  ;;  %v1663_v21 = vadd.f32 %v10464_v26, %v1508_v10  ;;  %v2127_v26 = vmax.f32 %v2114_v27, 0.0  ;;  %v2152_v10 = vrot.slane %v10830_v54, 5  ;;  %v3279_v27 = vrot.slane %v10830_v54, 3  ;;  %2781 = vmatpush.bf16.msra.mxu2 %v8744_v22 }
 0x28c   : > { %2659 = vmatpush.bf16.msra.mxu1 %v8730_v46  ;;  %v10907_v46 = vsel %vm1806_vm3, %v3124_v45, %v3125_v61  ;;  %2391 = vmatpush.bf16.msrb.mxu3 %v8705_v11  ;;  %v2128_v45 = vmax.f32 %v2115_v12, 0.0  ;;  %v14738_v11 = vld [vmem:[#allocation14_spill] sm:$0xff] }
 0x28d   : > { %v1791_v50 = vadd.f32 %v10468_v13, %v1663_v21  ;;  %v10875_v13 = vsel %vm879_vm1, %v2200_v44, %v2201_v15  ;;  %v10879_v7 = vsel %vm829_vm2, %v2151_v3, %v2152_v10  ;;  %v10883_v21 = vsel %vm1112_vm0, %v2432_v56, %v2433_v40  ;;  %v9078_v56 = vld [vmem:[%s14628_s2 + $0x38] sm:$0xff]  ;;  %14736 = vst [vmem:[#allocation29_spill] sm:$0xff] %v10907_v46 }
 0x28e   : > { %v2078_v23 = vpop.f32.mrf.mxu1  ;;  %v10899_v43 = vmul.f32 %v9078_v56, %v2127_v26  ;;  %v10911_v44 = vsel %vm1961_vm5, %v3278_v47, %v3279_v27  ;;  %v1944_v3 = vadd.f32 %v10429_v5, %v1789_v42  ;;  %v8743_v26 = vld [vmem:[%s14441_s6 + $0x130] sm:$0xff]  ;;  %2532 = vmatpush.bf16.msrb.mxu0 %v8721_v18 }
 0x28f   : > { %14737 = vst [vmem:[#allocation30_spill] sm:$0xff] %v10911_v44  ;;  %v1946_v42 = vadd.f32 %v14738_v11, %v1791_v50  ;;  %2782 = vmatpush.bf16.msra.mxu2 %v8743_v26 }
 0x290   : > { %14734 = vst [vmem:[#allocation27_spill] sm:$0xff] %v10899_v43  ;;  %2660 = vmatpush.bf16.msra.mxu1 %v8729_v48  ;;  %v2099_v56 = vadd.f32 %v2078_v23, %v1944_v3  ;;  %v2434_v47 = vrot.slane %v10899_v43, 7  ;;  %v2202_v28 = vrot.slane %v10899_v43, 6  ;;  %v2153_v5 = vrot.slane %v10899_v43, 5 }
 0x291   : > { %v3126_v22 = vrot.slane %v10899_v43, 2  ;;  %v3280_v18 = vrot.slane %v10899_v43, 3 }
 0x292   : > { %v10931_v23 = vsel %vm1112_vm0, %v2433_v40, %v2434_v47  ;;  %v10935_v48 = vsel %vm879_vm1, %v2201_v15, %v2202_v28  ;;  %v10939_v12 = vsel %vm829_vm2, %v2152_v10, %v2153_v5  ;;  %v2116_v3 = vadd.f32 %v10493_v8, %v2099_v56  ;;  %v9079_v10 = vld [vmem:[%s14628_s2 + $0x40] sm:$0xff] }
 0x293   : > { %v10952_v15 = vsel %vm1806_vm3, %v3125_v61, %v3126_v22  ;;  %v10957_v11 = vmul.f32 %v9079_v10, %v2128_v45  ;;  %v8742_v61 = vld [vmem:[%s14441_s6 + $0x128] sm:$0xff] }
 0x294   : > { %14740 = vst [vmem:[#allocation31_spill] sm:$0xff] %v10952_v15  ;;  %v2129_v26 = vmax.f32 %v2116_v3, 0.0  ;;  %2783 = vmatpush.bf16.msra.mxu2 %v8742_v61 }
 0x295   : > { %14741 = vst [vmem:[#allocation32_spill] sm:$0xff] %v10957_v11  ;;  %v2203_v45 = vrot.slane %v10957_v11, 6  ;;  %v2154_v10 = vrot.slane %v10957_v11, 5  ;;  %v2845_v56 = vrot.slane %v10957_v11, 1 }
 0x296   : > { %v2081_v49 = vpop.f32.mrf.mxu1 }
 0x297   : > { %v2100_v55 = vadd.f32 %v2081_v49, %v10474_v29  ;;  %v2844_v29 = vrot.slane %v10899_v43, 1  ;;  %v10963_v49 = vsel %vm1961_vm5, %v3279_v27, %v3280_v18  ;;  %v2435_v43 = vrot.slane %v10957_v11, 7 }
 0x298   : > { %14742 = vst [vmem:[#allocation33_spill] sm:$0xff] %v10963_v49  ;;  %v3127_v27 = vrot.slane %v10957_v11, 2  ;;  %v9082_v49 = vld [vmem:[%s14628_s2 + $0x58] sm:$0xff] }
 0x299   : > { %v10943_v50 = vsel %vm1523_vm4, %v2843_v36, %v2844_v29  ;;  %v2117_v40 = vadd.f32 %v10493_v8, %v2100_v55  ;;  %v3281_v55 = vrot.slane %v10957_v11, 3  ;;  %v10985_v3 = vsel %vm1112_vm0, %v2434_v47, %v2435_v43  ;;  %v9080_v47 = vld [vmem:[%s14628_s2 + $0x48] sm:$0xff] }
 0x29a   : > { %14739 = vst [vmem:[#allocation14_spill] sm:$0xff] %v10943_v50  ;;  %v11009_v15 = vsel %vm1806_vm3, %v3126_v22, %v3127_v27 }
 0x29b   : > { %v2130_v46 = vmax.f32 %v2117_v40, 0.0  ;;  %14745 = vst [vmem:[#allocation36_spill] sm:$0xff] %v11009_v15 }
 0x29e   : > { %v2083_v36 = vpop.f32.mrf.mxu1 }
 0x29f   : > { %v2101_v20 = vadd.f32 %v2083_v36, %v1946_v42  ;;  %v10977_v42 = vsel %vm879_vm1, %v2202_v28, %v2203_v45  ;;  %v10989_v36 = vsel %vm1523_vm4, %v2844_v29, %v2845_v56  ;;  %v11003_v29 = vmul.f32 %v9080_v47, %v2129_v26  ;;  %v9081_v26 = vld [vmem:[%s14628_s2 + $0x50] sm:$0xff] }
 0x2a0   : > { %14743 = vst [vmem:[#allocation34_spill] sm:$0xff] %v10989_v36  ;;  %v11019_v47 = vmul.f32 %v9081_v26, %v2130_v46 }
 0x2a1   : > { %v2118_v54 = vadd.f32 %v10493_v8, %v2101_v20  ;;  %v10981_v20 = vsel %vm829_vm2, %v2153_v5, %v2154_v10  ;;  %14744 = vst [vmem:[#allocation35_spill] sm:$0xff] %v11003_v29  ;;  %v11013_v5 = vsel %vm1961_vm5, %v3280_v18, %v3281_v55  ;;  %v2436_v18 = vrot.slane %v11003_v29, 7 }
 0x2a2   : > { %14746 = vst [vmem:[#allocation37_spill] sm:$0xff] %v11013_v5  ;;  %v2204_v50 = vrot.slane %v11003_v29, 6  ;;  %v2846_v61 = vrot.slane %v11003_v29, 1  ;;  %v3128_v46 = vrot.slane %v11003_v29, 2  ;;  %v3282_v53 = vrot.slane %v11003_v29, 3 }
 0x2a3   : > { %v2131_v40 = vmax.f32 %v2118_v54, 0.0  ;;  %v2205_v58 = vrot.slane %v11019_v47, 6  ;;  %v2156_v51 = vrot.slane %v11019_v47, 5 }
 0x2a5   : > { %v11024_v28 = vmul.f32 %v9082_v49, %v2131_v40  ;;  %v11037_v49 = vsel %vm1112_vm0, %v2435_v43, %v2436_v18  ;;  %v11049_v40 = vsel %vm1523_vm4, %v2845_v56, %v2846_v61 }
 0x2a6   : > { %v2086_v54 = vpop.f32.mrf.mxu1 }
 0x2a7   : > { %v2102_v44 = vadd.f32 %v2086_v54, %v10483_v4  ;;  %v2155_v4 = vrot.slane %v11003_v29, 5  ;;  %v2206_v56 = vrot.slane %v11024_v28, 6  ;;  %v2157_v29 = vrot.slane %v11024_v28, 5 }
 0x2a9   : > { %v2119_v22 = vadd.f32 %v10493_v8, %v2102_v44  ;;  %v11041_v8 = vsel %vm879_vm1, %v2203_v45, %v2204_v50  ;;  %v11045_v44 = vsel %vm829_vm2, %v2154_v10, %v2155_v4  ;;  %v11062_v10 = vsel %vm1806_vm3, %v3127_v27, %v3128_v46 }
 0x2aa   : > { %14747 = vst [vmem:[#allocation38_spill] sm:$0xff] %v11062_v10  ;;  %v2438_v27 = vrot.slane %v11024_v28, 7  ;;  %v14750_v10 = vrot.slane %v10510_v59, 5 }
 0x2ab   : > { %v2132_v54 = vmax.f32 %v2119_v22, 0.0  ;;  %v9083_v22 = vld [vmem:[%s14628_s2 + $0x60] sm:$0xff] }
 0x2ad   : > { %v11054_v26 = vmul.f32 %v9083_v22, %v2132_v54  ;;  %v11070_v54 = vsel %vm1961_vm5, %v3281_v55, %v3282_v53 }
 0x2ae   : > { %v2088_v11 = vpop.f32.mrf.mxu1  ;;  %14748 = vst [vmem:[#allocation39_spill] sm:$0xff] %v11070_v54  ;;  %v14751_v54 = vrot.slane %v10510_v59, 7 }
 0x2af   : > { %v2207_v22 = vrot.slane %v11054_v26, 6  ;;  %v2158_v45 = vrot.slane %v11054_v26, 5  ;;  %v2439_v43 = vrot.slane %v11054_v26, 7 }
 0x2b1   : > { %v2208_v36 = vsel %vm879_vm1, %v2206_v56, %v2207_v22  ;;  %v2220_v55 = vsel %vm879_vm1, %v2207_v22, %v14749_v38  ;;  %v2159_v15 = vsel %vm829_vm2, %v2157_v29, %v2158_v45  ;;  %v2171_v41 = vsel %vm829_vm2, %v2158_v45, %v14750_v10 }
 0x2b2   : > { %v2221_v35 = vpack.c.bf16 %v2220_v55, %v2208_v36  ;;  %v2172_v11 = vpack.c.bf16 %v2171_v41, %v2159_v15  ;;  %v11092_v5 = vsel %vm1112_vm0, %v2438_v27, %v2439_v43  ;;  %v2452_v39 = vsel %vm1112_vm0, %v2439_v43, %v14751_v54 }
 0x2b3   : > { %v2453_v38 = vpack.c.bf16 %v2452_v39, %v11092_v5  ;;  %v2581_v22 = vpack.c.bf16 %v10539_v25, %v2452_v39  ;;  %v2437_v41 = vrot.slane %v11019_v47, 7  ;;  %v2847_v15 = vrot.slane %v11019_v47, 1  ;;  %v8741_v39 = vld [vmem:[%s14441_s6 + $0x120] sm:$0xff] }
 0x2b4   : > { %2301 = vmatmul.bf16.vlgmr.msrb.gmra.mxu2 %v2221_v35  ;;  %2392 = vmatmul.bf16.vlgmr.msrb.gmra.mxu3 %v2172_v11  ;;  %v3129_v36 = vrot.slane %v11019_v47, 2  ;;  %v3283_v45 = vrot.slane %v11019_v47, 3  ;;  %v11111_v43 = vsel %vm879_vm1, %v2204_v50, %v2205_v58  ;;  %v11115_v35 = vsel %vm829_vm2, %v2155_v4, %v2156_v51 }
 0x2b5   : > { %2533 = vmatmul.bf16.vlgmr.msrb.gmra.mxu0 %v2453_v38  ;;  %2661 = vmatmul.bf16.vlgmr.msra.gmra.mxu1 %v2581_v22  ;;  %v11123_v11 = vsel %vm1112_vm0, %v2436_v18, %v2437_v41  ;;  %v11127_v55 = vsel %vm1523_vm4, %v2846_v61, %v2847_v15  ;;  %v2848_v18 = vrot.slane %v11024_v28, 1  ;;  %v3130_v61 = vrot.slane %v11024_v28, 2 }
 0x2b6   : > { %2784 = vmatpush.bf16.msra.mxu2 %v8741_v39  ;;  %v11135_v38 = vsel %vm1806_vm3, %v3128_v46, %v3129_v36  ;;  %v11139_v22 = vsel %vm1961_vm5, %v3282_v53, %v3283_v45  ;;  %v3284_v50 = vrot.slane %v11024_v28, 3  ;;  %v11148_v4 = vsel %vm1112_vm0, %v2437_v41, %v2438_v27 }
 0x2b7   : > { %v11152_v46 = vsel %vm879_vm1, %v2205_v58, %v2206_v56  ;;  %v11156_v53 = vsel %vm829_vm2, %v2156_v51, %v2157_v29  ;;  %v11160_v54 = vsel %vm1523_vm4, %v2847_v15, %v2848_v18  ;;  %v11168_v27 = vsel %vm1806_vm3, %v3129_v36, %v3130_v61 }
 0x2b8   : > { %v11172_v58 = vsel %vm1961_vm5, %v3283_v45, %v3284_v50  ;;  %v2849_v56 = vrot.slane %v11054_v26, 1  ;;  %v3131_v41 = vrot.slane %v11054_v26, 2  ;;  %v3285_v15 = vrot.slane %v11054_v26, 3 }
 0x2b9   : > { %v14752_v36 = vpack.c.bf16 %v10588_v31, %v10545_v33  ;;  %v14753_v45 = vpack.c.bf16 %v10592_v57, %v10551_v9  ;;  %v14754_v29 = vrot.slane %v10510_v59, 1  ;;  %v14755_v33 = vpack.c.bf16 %v10596_v24, %v10539_v25  ;;  %v8740_v31 = vld [vmem:[%s14441_s6 + $0x118] sm:$0xff] }
 0x2ba   : > { %v11189_v51 = vsel %vm1523_vm4, %v2848_v18, %v2849_v56  ;;  %v11199_v39 = vsel %vm1806_vm3, %v3130_v61, %v3131_v41  ;;  %v14756_v9 = vpack.c.bf16 %v10654_v32, %v10596_v24  ;;  %v14757_v61 = vrot.slane %v10510_v59, 2  ;;  %2785 = vmatpush.bf16.msra.mxu2 %v8740_v31  ;;  %v8758_v31 = vld [vmem:[%s14441_s6 + $0x1a8] sm:$0xff] }
 0x2bb   : > { %v11195_v10 = vsel %vm1523_vm4, %v2849_v56, %v14754_v29  ;;  %v2868_v57 = vpack.c.bf16 %v11189_v51, %v11160_v54  ;;  %v11222_v24 = vsel %vm1961_vm5, %v3284_v50, %v3285_v15  ;;  %v14758_v29 = vrot.slane %v10510_v59, 3 }
 0x2bc   : > { %v2996_v18 = vpack.c.bf16 %v11195_v10, %v11189_v51  ;;  %v11218_v25 = vsel %vm1806_vm3, %v3131_v41, %v14757_v61  ;;  %v14759_v41 = vpack.c.bf16 %v10725_v17, %v10658_v60  ;;  %v14760_v50 = vpack.c.bf16 %v10729_v62, %v10662_v63  ;;  %v8752_v62 = vld [vmem:[%s14441_s6 + $0x178] sm:$0xff]  ;;  %v8766_v61 = vld [vmem:[%s14441_s6 + $0x1e8] sm:$0xff] }
 0x2bd   : > { %v11228_v56 = vsel %vm1961_vm5, %v3285_v15, %v14758_v29  ;;  %v14762_v15 = vpack.c.bf16 %v10797_v1, %v10733_v6  ;;  %v14763_v60 = vpack.c.bf16 %v10875_v13, %v10801_v30  ;;  %v14764_v63 = vpack.c.bf16 %v10879_v7, %v10805_v16  ;;  %v8768_v30 = vld [vmem:[%s14441_s6 + $0x1f8] sm:$0xff]  ;;  %2935 = vmatpush.bf16.msra.mxu3 %v8752_v62  ;;  %v8751_v16 = vld [vmem:[%s14441_s6 + $0x170] sm:$0xff]  ;;  %v8749_v29 = vld [vmem:[%s14441_s6 + $0x160] sm:$0xff] }
 0x2be   : > { %v14766_v17 = vpack.c.bf16 %v10931_v23, %v10883_v21  ;;  %v8759_v13 = vld [vmem:[%s14441_s6 + $0x1b0] sm:$0xff]  ;;  %3217 = vmatpush.bf16.msrb.mxu1 %v8768_v30  ;;  %v8762_v62 = vld [vmem:[%s14441_s6 + $0x1c8] sm:$0xff]  ;;  %v8753_v30 = vld [vmem:[%s14441_s6 + $0x180] sm:$0xff] }
 0x2bf   : > { %v8767_v7 = vld [vmem:[%s14441_s6 + $0x1f0] sm:$0xff] }
 0x2c1   : > { %2936 = vmatpush.bf16.msra.mxu3 %v8751_v16  ;;  %v14771_v16 = vpack.c.bf16 %v11111_v43, %v11041_v8  ;;  %v2227_v8 = vpack.c.bf16 %v11152_v46, %v11152_v46  ;;  %v2459_v43 = vpack.c.bf16 %v11148_v4, %v11148_v4  ;;  %v14775_v46 = vpack.c.bf16 %v10516_v52, %v10510_v59 }
 0x2c2   : > { %3218 = vmatpush.bf16.msrb.mxu1 %v8767_v7  ;;  %v14773_v7 = vpack.c.bf16 %v11123_v11, %v11037_v49 }
 0x2c4   : > { %2306 = vmatmul.bf16.gmra.mxu2 %v14752_v36  ;;  %2397 = vmatmul.bf16.gmra.mxu3 %v14753_v45  ;;  %v3150_v36 = vpack.c.bf16 %v11218_v25, %v11199_v39  ;;  %v3304_v45 = vpack.c.bf16 %v11228_v56, %v11222_v24  ;;  %v2715_v39 = vpack.c.bf16 %v11054_v26, %v11054_v26 }
 0x2c5   : > { %2538 = vmatmul.bf16.gmra.mxu0 %v14755_v33  ;;  %2666 = vmatmul.bf16.gmra.mxu1 %v14756_v9  ;;  %v14761_v33 = vpack.c.bf16 %v10733_v6, %v10654_v32  ;;  %v8739_v9 = vld [vmem:[%s14441_s6 + $0x110] sm:$0xff]  ;;  %v14765_v32 = vpack.c.bf16 %v10883_v21, %v10797_v1  ;;  %v8760_v6 = vld [vmem:[%s14441_s6 + $0x1b8] sm:$0xff]  ;;  %v8738_v1 = vld [vmem:[%s14441_s6 + $0x108] sm:$0xff]  ;;  %v2869_v25 = vpack.c.bf16 %v11195_v10, %v11195_v10 }
 0x2c6   : > { %2786 = vmatpush.bf16.msra.mxu2 %v8739_v9  ;;  %3063 = vmatpush.bf16.msra.mxu0 %v8760_v6  ;;  %v8750_v21 = vld [vmem:[%s14441_s6 + $0x168] sm:$0xff]  ;;  %v14769_v9 = vpack.c.bf16 %v10985_v3, %v10931_v23  ;;  %v8737_v23 = vld [vmem:[%s14441_s6 + $0x100] sm:$0xff] }
 0x2c7   : > { %2937 = vmatpush.bf16.msra.mxu3 %v8750_v21  ;;  %3219 = vmatpush.bf16.msrb.mxu1 %v8766_v61  ;;  %v8745_v6 = vld [vmem:[%s14441_s6 + $0x140] sm:$0xff]  ;;  %v14774_v21 = vpack.c.bf16 %v11148_v4, %v11123_v11  ;;  %v8774_v11 = vld [vmem:[%s14441_s6 + $0x228] sm:$0xff]  ;;  %v14778_v4 = vpack.c.bf16 %v10684_v34, %v10632_v0  ;;  %v14786_v34 = vld [vmem:[#allocation25_spill] sm:$0xff] }
 0x2c8   : > { %v8773_v61 = vld [vmem:[%s14441_s6 + $0x220] sm:$0xff] }
 0x2ca   : > { %2787 = vmatpush.bf16.msra.mxu2 %v8738_v1  ;;  %3064 = vmatpush.bf16.msra.mxu0 %v8759_v13  ;;  %v8761_v1 = vld [vmem:[%s14441_s6 + $0x1c0] sm:$0xff]  ;;  %v14772_v13 = vpack.c.bf16 %v11115_v35, %v11045_v44  ;;  %v2178_v44 = vpack.c.bf16 %v11156_v53, %v11156_v53  ;;  %v2587_v35 = vpack.c.bf16 %v11092_v5, %v11092_v5 }
 0x2cb   : > { %2938 = vmatpush.bf16.msra.mxu3 %v8749_v29  ;;  %v14776_v53 = vpack.c.bf16 %v10600_v19, %v10621_v37  ;;  %v14777_v5 = vpack.c.bf16 %v10666_v14, %v10600_v19  ;;  %v14779_v29 = vld [vmem:[#allocation18_spill] sm:$0xff] }
 0x2ce   : > { %3065 = vmatpush.bf16.msra.mxu0 %v8758_v31  ;;  %2788 = vmatpush.bf16.msra.mxu2 %v8737_v23  ;;  %v8776_v31 = vld [vmem:[%s14441_s6 + $0x238] sm:$0xff] }
 0x2d2   : > { %3371 = vmatpush.bf16.msrb.mxu2 %v8776_v31  ;;  %v14794_v31 = vld [vmem:[#allocation14_spill] sm:$0xff] }
 0x2d4   : > { %2311 = vmatmul.bf16.gmra.mxu2 %v14759_v41  ;;  %2402 = vmatmul.bf16.gmra.mxu3 %v14760_v50  ;;  %v8757_v41 = vld [vmem:[%s14441_s6 + $0x1a0] sm:$0xff] }
 0x2d5   : > { %2543 = vmatmul.bf16.gmra.mxu0 %v14761_v33  ;;  %2671 = vmatmul.bf16.gmra.mxu1 %v14762_v15  ;;  %v8765_v50 = vld [vmem:[%s14441_s6 + $0x1e0] sm:$0xff]  ;;  %v14767_v33 = vpack.c.bf16 %v10977_v42, %v10935_v48  ;;  %v14768_v15 = vpack.c.bf16 %v10981_v20, %v10939_v12  ;;  %v8756_v48 = vld [vmem:[%s14441_s6 + $0x198] sm:$0xff]  ;;  %v8747_v42 = vld [vmem:[%s14441_s6 + $0x150] sm:$0xff] }
 0x2d6   : > { %3066 = vmatpush.bf16.msra.mxu0 %v8757_v41  ;;  %3220 = vmatpush.bf16.msrb.mxu1 %v8765_v50  ;;  %v8764_v12 = vld [vmem:[%s14441_s6 + $0x1d8] sm:$0xff]  ;;  %v8755_v20 = vld [vmem:[%s14441_s6 + $0x190] sm:$0xff]  ;;  %v14780_v41 = vld [vmem:[#allocation19_spill] sm:$0xff] }
 0x2d7   : > { %v14781_v50 = vpack.c.bf16 %v14779_v29, %v14780_v41 }
 0x2da   : > { %3067 = vmatpush.bf16.msra.mxu0 %v8756_v48  ;;  %3221 = vmatpush.bf16.msrb.mxu1 %v8764_v12 }
 0x2de   : > { %3068 = vmatpush.bf16.msra.mxu0 %v8755_v20 }
 0x2e4   : > { %2316 = vmatmul.bf16.gmra.mxu2 %v14763_v60  ;;  %2407 = vmatmul.bf16.gmra.mxu3 %v14764_v63  ;;  %v14770_v60 = vpack.c.bf16 %v11037_v49, %v10985_v3  ;;  %v8748_v63 = vld [vmem:[%s14441_s6 + $0x158] sm:$0xff]  ;;  %v8763_v3 = vld [vmem:[%s14441_s6 + $0x1d0] sm:$0xff] }
 0x2e5   : > { %2548 = vmatmul.bf16.gmra.mxu0 %v14765_v32  ;;  %2676 = vmatmul.bf16.gmra.mxu1 %v14766_v17  ;;  %v8746_v32 = vld [vmem:[%s14441_s6 + $0x148] sm:$0xff]  ;;  %v8775_v49 = vld [vmem:[%s14441_s6 + $0x230] sm:$0xff] }
 0x2e6   : > { %2939 = vmatpush.bf16.msra.mxu3 %v8748_v63  ;;  %v8754_v17 = vld [vmem:[%s14441_s6 + $0x188] sm:$0xff]  ;;  %3222 = vmatpush.bf16.msrb.mxu1 %v8763_v3  ;;  %v8772_v3 = vld [vmem:[%s14441_s6 + $0x218] sm:$0xff] }
 0x2e7   : > { %3069 = vmatpush.bf16.msra.mxu0 %v8754_v17  ;;  %3372 = vmatpush.bf16.msrb.mxu2 %v8775_v49  ;;  %v14797_v49 = vld [vmem:[#allocation29_spill] sm:$0xff] }
 0x2ea   : > { %2940 = vmatpush.bf16.msra.mxu3 %v8747_v42  ;;  %3223 = vmatpush.bf16.msrb.mxu1 %v8762_v62 }
 0x2eb   : > { %3070 = vmatpush.bf16.msra.mxu0 %v8753_v30  ;;  %3373 = vmatpush.bf16.msrb.mxu2 %v8774_v11 }
 0x2ee   : > { %2941 = vmatpush.bf16.msra.mxu3 %v8746_v32  ;;  %3224 = vmatpush.bf16.msrb.mxu1 %v8761_v1  ;;  %v14789_v1 = vld [vmem:[#allocation20_spill] sm:$0xff] }
 0x2ef   : > { %3374 = vmatpush.bf16.msrb.mxu2 %v8773_v61  ;;  %v8771_v61 = vld [vmem:[%s14441_s6 + $0x210] sm:$0xff] }
 0x2f2   : > { %2942 = vmatpush.bf16.msra.mxu3 %v8745_v6 }
 0x2f3   : > { %3375 = vmatpush.bf16.msrb.mxu2 %v8772_v3 }
 0x2f4   : > { %2321 = vmatmul.bf16.gmra.mxu2 %v14767_v33  ;;  %2412 = vmatmul.bf16.gmra.mxu3 %v14768_v15  ;;  %v14782_v33 = vld [vmem:[#allocation13_spill] sm:$0xff]  ;;  %v14784_v15 = vld [vmem:[#allocation23_spill] sm:$0xff] }
 0x2f5   : > { %2553 = vmatmul.bf16.gmra.mxu0 %v14769_v9  ;;  %2681 = vmatmul.bf16.gmra.mxu1 %v14770_v60  ;;  %v14783_v19 = vpack.c.bf16 %v14782_v33, %v10666_v14  ;;  %v14785_v0 = vpack.c.bf16 %v14784_v15, %v14782_v33  ;;  %v14787_v9 = vld [vmem:[#allocation12_spill] sm:$0xff] }
 0x2f6   : > { %v14788_v60 = vpack.c.bf16 %v14786_v34, %v14787_v9  ;;  %v14800_v34 = vld [vmem:[#allocation24_spill] sm:$0xff] }
 0x2f7   : > { %3376 = vmatpush.bf16.msrb.mxu2 %v8771_v61 }
 0x304   : > { %2326 = vmatmul.bf16.gmra.mxu2 %v14771_v16  ;;  %2417 = vmatmul.bf16.gmra.mxu3 %v14772_v13  ;;  %v14790_v16 = vld [vmem:[#allocation16_spill] sm:$0xff] }
 0x305   : > { %2558 = vmatmul.bf16.gmra.mxu0 %v14773_v7  ;;  %2686 = vmatmul.bf16.gmra.mxu1 %v14774_v21  ;;  %v14791_v13 = vpack.c.bf16 %v14789_v1, %v14790_v16  ;;  %v14792_v7 = vld [vmem:[#allocation28_spill] sm:$0xff] }
 0x306   : > { %v14793_v21 = vpack.c.bf16 %v14792_v7, %v14784_v15  ;;  %v8770_v16 = vld [vmem:[%s14441_s6 + $0x208] sm:$0xff] }
 0x307   : > { %3377 = vmatpush.bf16.msrb.mxu2 %v8770_v16  ;;  %v14817_v16 = vld [vmem:[#allocation11_spill] sm:$0xff] }
 0x314   : > { %2331 = vmatmul.bf16.gmra.mxu2 %v2227_v8  ;;  %2422 = vmatmul.bf16.gmra.mxu3 %v2178_v44  ;;  %v14795_v8 = vpack.c.bf16 %v14794_v31, %v14792_v7  ;;  %v14796_v44 = vld [vmem:[#allocation31_spill] sm:$0xff] }
 0x315   : > { %2563 = vmatmul.bf16.gmra.mxu0 %v2459_v43  ;;  %2691 = vmatmul.bf16.gmra.mxu1 %v2587_v35  ;;  %v14798_v43 = vpack.c.bf16 %v14796_v44, %v14797_v49  ;;  %v14811_v49 = vpack.c.bf16 %v11127_v55, %v11049_v40 }
 0x324   : > { %2789 = vmatmul.bf16.vlgmr.msra.gmra.mxu2 %v14775_v46  ;;  %2943 = vmatmul.bf16.vlgmr.msra.gmra.mxu3 %v14776_v53 }
 0x325   : > { %3071 = vmatmul.bf16.vlgmr.msra.gmra.mxu0 %v14777_v5  ;;  %3225 = vmatmul.bf16.vlgmr.msrb.gmra.mxu1 %v14778_v4 }
 0x332   : > { %v2534_v59 = vpop.f32.mrf.mxu0  ;;  %v2662_v52 = vpop.f32.mrf.mxu1 }
 0x334   : > { %2794 = vmatmul.bf16.gmra.mxu2 %v14781_v50  ;;  %2948 = vmatmul.bf16.gmra.mxu3 %v14783_v19 }
 0x335   : > { %3076 = vmatmul.bf16.gmra.mxu0 %v14785_v0  ;;  %3230 = vmatmul.bf16.gmra.mxu1 %v14788_v60  ;;  %v14799_v0 = vld [vmem:[#allocation27_spill] sm:$0xff]  ;;  %v14802_v60 = vld [vmem:[#allocation34_spill] sm:$0xff] }
 0x336   : > { %v14801_v9 = vpack.c.bf16 %v14799_v0, %v14800_v34 }
 0x337   : > { %v2302_v63 = vpop.f32.mrf.mxu2  ;;  %v2393_v48 = vpop.f32.mrf.mxu3 }
 0x338   : > { %v2394_v12 = vadd.f32 %v2393_v48, %v2302_v63  ;;  %v14803_v63 = vpack.c.bf16 %v14802_v60, %v14794_v31  ;;  %v14804_v48 = vpack.c.bf16 %v11049_v40, %v14802_v60 }
 0x33a   : > { %v2568_v23 = vadd.f32 %v2534_v59, %v2394_v12  ;;  %v2536_v42 = vpop.f32.mrf.mxu0  ;;  %v2664_v20 = vpop.f32.mrf.mxu1  ;;  %v14805_v12 = vld [vmem:[#allocation38_spill] sm:$0xff] }
 0x33c   : > { %v11425_v41 = vadd.f32 %v2662_v52, %v2568_v23 }
 0x33f   : > { %v2304_v14 = vpop.f32.mrf.mxu2  ;;  %v2395_v32 = vpop.f32.mrf.mxu3 }
 0x340   : > { %v2396_v17 = vadd.f32 %v2395_v32, %v2304_v14 }
 0x342   : > { %v2569_v62 = vadd.f32 %v2536_v42, %v2396_v17  ;;  %v2539_v6 = vpop.f32.mrf.mxu0  ;;  %v2667_v30 = vpop.f32.mrf.mxu1  ;;  %v14806_v42 = vld [vmem:[#allocation36_spill] sm:$0xff] }
 0x343   : > { %v14807_v52 = vpack.c.bf16 %v14805_v12, %v14806_v42 }
 0x344   : > { %2799 = vmatmul.bf16.gmra.mxu2 %v14791_v13  ;;  %2953 = vmatmul.bf16.gmra.mxu3 %v14793_v21  ;;  %v11439_v14 = vadd.f32 %v2664_v20, %v2569_v62  ;;  %v14808_v62 = vld [vmem:[#allocation35_spill] sm:$0xff] }
 0x345   : > { %3081 = vmatmul.bf16.gmra.mxu0 %v14795_v8  ;;  %3235 = vmatmul.bf16.gmra.mxu1 %v14798_v43  ;;  %v14809_v8 = vld [vmem:[#allocation32_spill] sm:$0xff]  ;;  %v14812_v43 = vpack.c.bf16 %v11160_v54, %v11127_v55 }
 0x346   : > { %v14810_v44 = vpack.c.bf16 %v14808_v62, %v14809_v8 }
 0x347   : > { %v2307_v35 = vpop.f32.mrf.mxu2  ;;  %v2398_v11 = vpop.f32.mrf.mxu3 }
 0x348   : > { %v2399_v46 = vadd.f32 %v2398_v11, %v2307_v35  ;;  %v14813_v35 = vpack.c.bf16 %v11168_v27, %v11135_v38 }
 0x34a   : > { %v2570_v53 = vadd.f32 %v2539_v6, %v2399_v46  ;;  %v2541_v5 = vpop.f32.mrf.mxu0  ;;  %v2669_v4 = vpop.f32.mrf.mxu1 }
 0x34c   : > { %v11452_v21 = vadd.f32 %v2667_v30, %v2570_v53  ;;  %v8769_v30 = vld [vmem:[%s14441_s6 + $0x200] sm:$0xff] }
 0x34d   : > { %3378 = vmatpush.bf16.msrb.mxu2 %v8769_v30 }
 0x34f   : > { %v2309_v59 = vpop.f32.mrf.mxu2  ;;  %v2400_v29 = vpop.f32.mrf.mxu3 }
 0x350   : > { %v2401_v50 = vadd.f32 %v2400_v29, %v2309_v59 }
 0x352   : > { %v2571_v33 = vadd.f32 %v2541_v5, %v2401_v50  ;;  %v2544_v19 = vpop.f32.mrf.mxu0  ;;  %v2672_v15 = vpop.f32.mrf.mxu1 }
 0x354   : > { %2804 = vmatmul.bf16.gmra.mxu2 %v14801_v9  ;;  %2958 = vmatmul.bf16.gmra.mxu3 %v14803_v63  ;;  %v11469_v53 = vadd.f32 %v2669_v4, %v2571_v33  ;;  %v14815_v9 = vld [vmem:[#allocation15_spill] sm:$0xff] }
 0x355   : > { %3086 = vmatmul.bf16.gmra.mxu0 %v14804_v48  ;;  %3240 = vmatmul.bf16.gmra.mxu1 %v14807_v52  ;;  %v3151_v60 = vpack.c.bf16 %v14815_v9, %v14815_v9 }
 0x357   : > { %v2312_v23 = vpop.f32.mrf.mxu2  ;;  %v2403_v3 = vpop.f32.mrf.mxu3 }
 0x358   : > { %v2404_v32 = vadd.f32 %v2403_v3, %v2312_v23 }
 0x35a   : > { %v2572_v17 = vadd.f32 %v2544_v19, %v2404_v32  ;;  %v11441_v6 = vpop.f32.mrf.mxu0  ;;  %v11443_v1 = vpop.f32.mrf.mxu1  ;;  %v14814_v19 = vpack.c.bf16 %v11024_v28, %v11019_v47 }
 0x35c   : > { %v11479_v38 = vadd.f32 %v2672_v15, %v2572_v17  ;;  %v14816_v17 = vld [vmem:[#allocation21_spill] sm:$0xff] }
 0x35f   : > { %v11448_v13 = vpop.f32.mrf.mxu2  ;;  %v11450_v7 = vpop.f32.mrf.mxu3 }
 0x362   : > { %v2549_v31 = vpop.f32.mrf.mxu0  ;;  %v2677_v20 = vpop.f32.mrf.mxu1 }
 0x364   : > { %2809 = vmatmul.bf16.gmra.mxu2 %v14810_v44  ;;  %2963 = vmatmul.bf16.gmra.mxu3 %v14811_v49 }
 0x365   : > { %3091 = vmatmul.bf16.gmra.mxu0 %v14812_v43  ;;  %3245 = vmatmul.bf16.gmra.mxu1 %v14813_v35 }
 0x367   : > { %v2317_v11 = vpop.f32.mrf.mxu2  ;;  %v2408_v46 = vpop.f32.mrf.mxu3 }
 0x368   : > { %v2409_v5 = vadd.f32 %v2408_v46, %v2317_v11 }
 0x36a   : > { %v2574_v40 = vadd.f32 %v2549_v31, %v2409_v5  ;;  %v11471_v61 = vpop.f32.mrf.mxu0  ;;  %v11473_v59 = vpop.f32.mrf.mxu1  ;;  %v14818_v31 = vpack.c.bf16 %v14816_v17, %v14817_v16 }
 0x36f   : > { %v11475_v55 = vpop.f32.mrf.mxu2  ;;  %v11477_v29 = vpop.f32.mrf.mxu3 }
 0x372   : > { %v2554_v27 = vpop.f32.mrf.mxu0  ;;  %v2682_v50 = vpop.f32.mrf.mxu1 }
 0x374   : > { %2814 = vmatmul.bf16.gmra.mxu2 %v14814_v19  ;;  %2968 = vmatmul.bf16.gmra.mxu3 %v2868_v57  ;;  %v11501_v57 = vadd.f32 %v2677_v20, %v2574_v40  ;;  %v14819_v40 = vld [vmem:[#allocation26_spill] sm:$0xff] }
 0x375   : > { %3096 = vmatmul.bf16.gmra.mxu0 %v2996_v18  ;;  %3250 = vmatmul.bf16.gmra.mxu1 %v3150_v36  ;;  %v2997_v36 = vpack.c.bf16 %v10621_v37, %v10621_v37 }
 0x377   : > { %v2322_v4 = vpop.f32.mrf.mxu2  ;;  %v2413_v33 = vpop.f32.mrf.mxu3 }
 0x378   : > { %v2414_v15 = vadd.f32 %v2413_v33, %v2322_v4 }
 0x37a   : > { %v2576_v0 = vadd.f32 %v2554_v27, %v2414_v15  ;;  %v11493_v34 = vpop.f32.mrf.mxu0  ;;  %v11495_v28 = vpop.f32.mrf.mxu1  ;;  %v14820_v27 = vld [vmem:[#allocation22_spill] sm:$0xff] }
 0x37c   : > { %v11519_v37 = vadd.f32 %v2682_v50, %v2576_v0  ;;  %v14821_v50 = vpack.c.bf16 %v14819_v40, %v14820_v27 }
 0x37f   : > { %v11497_v47 = vpop.f32.mrf.mxu2  ;;  %v11499_v54 = vpop.f32.mrf.mxu3 }
 0x382   : > { %v2559_v51 = vpop.f32.mrf.mxu0  ;;  %v2687_v18 = vpop.f32.mrf.mxu1 }
 0x384   : > { %2819 = vmatmul.bf16.gmra.mxu2 %v2715_v39  ;;  %2973 = vmatmul.bf16.gmra.mxu3 %v2869_v25 }
 0x385   : > { %3101 = vmatmul.bf16.gmra.mxu0 %v2997_v36  ;;  %3255 = vmatmul.bf16.gmra.mxu1 %v3151_v60 }
 0x387   : > { %v2327_v63 = vpop.f32.mrf.mxu2  ;;  %v2418_v48 = vpop.f32.mrf.mxu3 }
 0x388   : > { %v2419_v12 = vadd.f32 %v2418_v48, %v2327_v63  ;;  %v14822_v48 = vld [vmem:[#allocation33_spill] sm:$0xff] }
 0x38a   : > { %v2578_v42 = vadd.f32 %v2559_v51, %v2419_v12  ;;  %v11511_v52 = vpop.f32.mrf.mxu0  ;;  %v11513_v26 = vpop.f32.mrf.mxu1  ;;  %v14823_v12 = vld [vmem:[#allocation30_spill] sm:$0xff] }
 0x38c   : > { %v11524_v11 = vadd.f32 %v2687_v18, %v2578_v42  ;;  %v14824_v42 = vpack.c.bf16 %v14822_v48, %v14823_v12 }
 0x38f   : > { %v11515_v23 = vpop.f32.mrf.mxu2  ;;  %v11517_v10 = vpop.f32.mrf.mxu3 }
 0x392   : > { %v2564_v3 = vpop.f32.mrf.mxu0  ;;  %v2692_v32 = vpop.f32.mrf.mxu1 }
 0x394   : > { %3379 = vmatmul.bf16.vlgmr.msrb.gmra.mxu2 %v14818_v31 }
 0x397   : > { %v2332_v20 = vpop.f32.mrf.mxu2  ;;  %v2423_v62 = vpop.f32.mrf.mxu3 }
 0x398   : > { %v2424_v8 = vadd.f32 %v2423_v62, %v2332_v20 }
 0x39a   : > { %v2580_v44 = vadd.f32 %v2564_v3, %v2424_v8  ;;  %v2566_v49 = vpop.f32.mrf.mxu0  ;;  %v2694_v43 = vpop.f32.mrf.mxu1 }
 0x39c   : > { %v11536_v18 = vadd.f32 %v2692_v32, %v2580_v44 }
 0x39f   : > { %v2334_v35 = vpop.f32.mrf.mxu2  ;;  %v2425_v30 = vpop.f32.mrf.mxu3 }
 0x3a0   : > { %v14825_v35 = vld [vmem:[#allocation39_spill] sm:$0xff]  ;;  %v14826_v30 = vld [vmem:[#allocation37_spill] sm:$0xff] }
 0x3a2   : > { %v3072_v46 = vpop.f32.mrf.mxu0  ;;  %v3226_v5 = vpop.f32.mrf.mxu1 }
 0x3a4   : > { %3384 = vmatmul.bf16.gmra.mxu2 %v14821_v50 }
 0x3a7   : > { %v2790_v19 = vpop.f32.mrf.mxu2  ;;  %v2944_v4 = vpop.f32.mrf.mxu3 }
 0x3a8   : > { %v2824_v33 = vadd.f32 %v2790_v19, %v11425_v41 }
 0x3aa   : > { %v2978_v15 = vadd.f32 %v2944_v4, %v2824_v33  ;;  %v11530_v0 = vpop.f32.mrf.mxu0  ;;  %v11532_v51 = vpop.f32.mrf.mxu1 }
 0x3ac   : > { %v3106_v39 = vadd.f32 %v3072_v46, %v2978_v15  ;;  %v14827_v46 = vpack.c.bf16 %v14825_v35, %v14826_v30 }
 0x3ae   : > { %v11554_v44 = vadd.f32 %v3226_v5, %v3106_v39 }
 0x3af   : > { %v2792_v25 = vpop.f32.mrf.mxu2  ;;  %v11534_v36 = vpop.f32.mrf.mxu3 }
 0x3b0   : > { %v11539_v9 = vadd.f32 %v2792_v25, %v11439_v14 }
 0x3b2   : > { %v3077_v60 = vpop.f32.mrf.mxu0  ;;  %v3231_v63 = vpop.f32.mrf.mxu1 }
 0x3b4   : > { %3389 = vmatmul.bf16.gmra.mxu2 %v14824_v42 }
 0x3b7   : > { %v2795_v41 = vpop.f32.mrf.mxu2  ;;  %v2949_v3 = vpop.f32.mrf.mxu3 }
 0x3b8   : > { %v2826_v17 = vadd.f32 %v2795_v41, %v11452_v21 }
 0x3ba   : > { %v2980_v16 = vadd.f32 %v2949_v3, %v2826_v17  ;;  %v11545_v31 = vpop.f32.mrf.mxu0  ;;  %v11547_v20 = vpop.f32.mrf.mxu1 }
 0x3bc   : > { %v3108_v32 = vadd.f32 %v3077_v60, %v2980_v16  ;;  %v14828_v60 = vpack.c.bf16 %v11172_v58, %v11139_v22 }
 0x3be   : > { %v11568_v15 = vadd.f32 %v3231_v63, %v3108_v32 }
 0x3bf   : > { %v2797_v62 = vpop.f32.mrf.mxu2  ;;  %v11549_v8 = vpop.f32.mrf.mxu3 }
 0x3c0   : > { %v11552_v14 = vadd.f32 %v2797_v62, %v11469_v53 }
 0x3c2   : > { %v3082_v49 = vpop.f32.mrf.mxu0  ;;  %v3236_v43 = vpop.f32.mrf.mxu1 }
 0x3c4   : > { %3394 = vmatmul.bf16.gmra.mxu2 %v14827_v46 }
 0x3c7   : > { %v2800_v21 = vpop.f32.mrf.mxu2  ;;  %v2954_v40 = vpop.f32.mrf.mxu3 }
 0x3c8   : > { %v2828_v27 = vadd.f32 %v2800_v21, %v11479_v38 }
 0x3ca   : > { %v2982_v50 = vadd.f32 %v2954_v40, %v2828_v27  ;;  %v11560_v19 = vpop.f32.mrf.mxu0  ;;  %v11562_v4 = vpop.f32.mrf.mxu1  ;;  %v8792_v27 = vld [vmem:[%s14443_s8 + $0x78] sm:$0xff] }
 0x3cb   : > { %3617 = vmatpush.bf16.msrb.mxu3 %v8792_v27 }
 0x3cc   : > { %v3110_v33 = vadd.f32 %v3082_v49, %v2982_v50 }
 0x3ce   : > { %v11582_v32 = vadd.f32 %v3236_v43, %v3110_v33 }
 0x3cf   : > { %v11564_v53 = vpop.f32.mrf.mxu2  ;;  %v11566_v5 = vpop.f32.mrf.mxu3 }
 0x3d2   : > { %v3087_v39 = vpop.f32.mrf.mxu0  ;;  %v3241_v25 = vpop.f32.mrf.mxu1 }
 0x3d4   : > { %3399 = vmatmul.bf16.gmra.mxu2 %v14828_v60 }
 0x3d7   : > { %v2805_v48 = vpop.f32.mrf.mxu2  ;;  %v2959_v38 = vpop.f32.mrf.mxu3 }
 0x3d8   : > { %v2830_v12 = vadd.f32 %v2805_v48, %v11501_v57 }
 0x3da   : > { %v2984_v42 = vadd.f32 %v2959_v38, %v2830_v12  ;;  %v11574_v41 = vpop.f32.mrf.mxu0  ;;  %v11576_v3 = vpop.f32.mrf.mxu1 }
 0x3dc   : > { %v3112_v17 = vadd.f32 %v3087_v39, %v2984_v42 }
 0x3de   : > { %v11599_v24 = vadd.f32 %v3241_v25, %v3112_v17 }
 0x3df   : > { %v11578_v16 = vpop.f32.mrf.mxu2  ;;  %v11580_v63 = vpop.f32.mrf.mxu3 }
 0x3e2   : > { %v3092_v62 = vpop.f32.mrf.mxu0  ;;  %v3246_v49 = vpop.f32.mrf.mxu1 }
 0x3e4   : > { %3404 = vmatmul.bf16.gmra.mxu2 %v3304_v45 }
 0x3e7   : > { %v2810_v22 = vpop.f32.mrf.mxu2  ;;  %v2964_v58 = vpop.f32.mrf.mxu3 }
 0x3e8   : > { %v2832_v57 = vadd.f32 %v2810_v22, %v11519_v37  ;;  %v14830_v37 = vld [vmem:[#allocation17_spill] sm:$0xff] }
 0x3e9   : > { %v3305_v50 = vpack.c.bf16 %v14830_v37, %v14830_v37 }
 0x3ea   : > { %v2986_v35 = vadd.f32 %v2964_v58, %v2832_v57  ;;  %v11588_v30 = vpop.f32.mrf.mxu0  ;;  %v11590_v46 = vpop.f32.mrf.mxu1  ;;  %v8791_v57 = vld [vmem:[%s14443_s8 + $0x70] sm:$0xff] }
 0x3eb   : > { %14829 = vst [vmem:[#allocation18_spill] sm:$0xff] %v11590_v46  ;;  %3618 = vmatpush.bf16.msrb.mxu3 %v8791_v57 }
 0x3ec   : > { %v3114_v21 = vadd.f32 %v3092_v62, %v2986_v35 }
 0x3ee   : > { %v11612_v17 = vadd.f32 %v3246_v49, %v3114_v21  ;;  %v8790_v49 = vld [vmem:[%s14443_s8 + $0x68] sm:$0xff] }
 0x3ef   : > { %v11592_v40 = vpop.f32.mrf.mxu2  ;;  %v11594_v43 = vpop.f32.mrf.mxu3  ;;  %3619 = vmatpush.bf16.msrb.mxu3 %v8790_v49 }
 0x3f2   : > { %v3097_v56 = vpop.f32.mrf.mxu0  ;;  %v3251_v45 = vpop.f32.mrf.mxu1 }
 0x3f4   : > { %3409 = vmatmul.bf16.gmra.mxu2 %v3305_v50 }
 0x3f7   : > { %v2815_v33 = vpop.f32.mrf.mxu2  ;;  %v2969_v39 = vpop.f32.mrf.mxu3 }
 0x3f8   : > { %v2834_v60 = vadd.f32 %v2815_v33, %v11524_v11 }
 0x3fa   : > { %v2988_v48 = vadd.f32 %v2969_v39, %v2834_v60  ;;  %v11604_v38 = vpop.f32.mrf.mxu0  ;;  %v11606_v12 = vpop.f32.mrf.mxu1 }
 0x3fb   : > { %14831 = vst [vmem:[#allocation19_spill] sm:$0xff] %v11606_v12 }
 0x3fc   : > { %v3116_v42 = vadd.f32 %v3097_v56, %v2988_v48 }
 0x3fe   : > { %v11618_v48 = vadd.f32 %v3251_v45, %v3116_v42  ;;  %v8789_v45 = vld [vmem:[%s14443_s8 + $0x60] sm:$0xff] }
 0x3ff   : > { %v11608_v62 = vpop.f32.mrf.mxu2  ;;  %v11610_v25 = vpop.f32.mrf.mxu3  ;;  %3620 = vmatpush.bf16.msrb.mxu3 %v8789_v45 }
 0x402   : > { %v3102_v22 = vpop.f32.mrf.mxu0  ;;  %v3256_v58 = vpop.f32.mrf.mxu1 }
 0x407   : > { %v2820_v35 = vpop.f32.mrf.mxu2  ;;  %v2974_v11 = vpop.f32.mrf.mxu3 }
 0x408   : > { %v2836_v27 = vadd.f32 %v2820_v35, %v11536_v18  ;;  %v2979_v18 = vadd.f32 %v11534_v36, %v11539_v9 }
 0x40a   : > { %v2990_v37 = vadd.f32 %v2974_v11, %v2836_v27  ;;  %v3104_v50 = vpop.f32.mrf.mxu0  ;;  %v3258_v56 = vpop.f32.mrf.mxu1 }
 0x40c   : > { %v3118_v33 = vadd.f32 %v3102_v22, %v2990_v37  ;;  %v3107_v22 = vadd.f32 %v11530_v0, %v2979_v18  ;;  %v8788_v0 = vld [vmem:[%s14443_s8 + $0x58] sm:$0xff] }
 0x40d   : > { %3621 = vmatpush.bf16.msrb.mxu3 %v8788_v0 }
 0x40e   : > { %v11626_v57 = vadd.f32 %v3256_v58, %v3118_v33  ;;  %v3261_v11 = vadd.f32 %v11532_v51, %v3107_v22  ;;  %v2406_v58 = vadd.f32 %v11450_v7, %v11448_v13  ;;  %v2981_v51 = vadd.f32 %v11549_v8, %v11552_v14  ;;  %v9084_v33 = vld [vmem:[%s14628_s2] sm:$0xff]  ;;  %v9085_v8 = vld [vmem:[%s14628_s2 + $0x8] sm:$0xff] }
 0x40f   : > { %v2822_v39 = vpop.f32.mrf.mxu2  ;;  %v2976_v60 = vpop.f32.mrf.mxu3 }
 0x410   : > { %v2573_v50 = vadd.f32 %v11441_v6, %v2406_v58 }
 0x412   : > { %v2701_v7 = vadd.f32 %v11443_v1, %v2573_v50 }
 0x414   : > { %v2829_v60 = vadd.f32 %v11564_v53, %v2701_v7 }
 0x417   : > { %v3380_v21 = vpop.f32.mrf.mxu2 }
 0x418   : > { %v3414_v12 = vadd.f32 %v3380_v21, %v11554_v44  ;;  %v11637_v44 = vld [vmem:[%s14442_s7] ss:$0 sm:$0xff] }
 0x41a   : > { %v3431_v9 = vadd.f32 %v11637_v44, %v3414_v12  ;;  %v3109_v12 = vadd.f32 %v11545_v31, %v2981_v51 }
 0x41c   : > { %v3444_v37 = vmax.f32 %v3431_v9, 0.0  ;;  %v3263_v39 = vadd.f32 %v11547_v20, %v3109_v12  ;;  %v2411_v9 = vadd.f32 %v11477_v29, %v11475_v55  ;;  %v2983_v55 = vadd.f32 %v11566_v5, %v2829_v60  ;;  %v9086_v5 = vld [vmem:[%s14628_s2 + $0x10] sm:$0xff] }
 0x41e   : > { %v11654_v13 = vmul.f32 %v9084_v33, %v3444_v37  ;;  %v2575_v12 = vadd.f32 %v11471_v61, %v2411_v9 }
 0x41f   : > { %v3382_v46 = vpop.f32.mrf.mxu2 }
 0x420   : > { %v3415_v36 = vadd.f32 %v3382_v46, %v3261_v11  ;;  %v14539_v18 = vrot.slane %v11654_v13, 6  ;;  %v14537_v22 = vrot.slane %v11654_v13, 5  ;;  %v14536_v1 = vrot.slane %v11654_v13, 7 }
 0x421   : > { %v14535_v53 = vrot.slane %v11654_v13, 2 }
 0x427   : > { %v3385_v42 = vpop.f32.mrf.mxu2 }
 0x428   : > { %v3416_v35 = vadd.f32 %v3385_v42, %v11568_v15  ;;  %v3432_v15 = vadd.f32 %v11637_v44, %v3415_v36  ;;  %v14534_v36 = vrot.slane %v11654_v13, 3 }
 0x42a   : > { %v3445_v46 = vmax.f32 %v3432_v15, 0.0  ;;  %v3433_v56 = vadd.f32 %v11637_v44, %v3416_v35 }
 0x42c   : > { %v11660_v14 = vmul.f32 %v9085_v8, %v3445_v46  ;;  %v3446_v49 = vmax.f32 %v3433_v56, 0.0  ;;  %v3111_v56 = vadd.f32 %v11560_v19, %v2983_v55 }
 0x42e   : > { %v3752_v45 = vrot.slane %v11660_v14, 7  ;;  %v3520_v42 = vrot.slane %v11660_v14, 6  ;;  %v3471_v35 = vrot.slane %v11660_v14, 5  ;;  %v4598_v11 = vrot.slane %v11660_v14, 3 }
 0x42f   : > { %v3387_v27 = vpop.f32.mrf.mxu2  ;;  %v11717_v50 = vmul.f32 %v9086_v5, %v3446_v49  ;;  %v4162_v7 = vrot.slane %v11660_v14, 1 }
 0x430   : > { %v3417_v21 = vadd.f32 %v3387_v27, %v3263_v39  ;;  %v11683_v0 = vsel %vm1112_vm0, %v14536_v1, %v3752_v45  ;;  %v11689_v58 = vsel %vm879_vm1, %v14539_v18, %v3520_v42  ;;  %v11695_v15 = vsel %vm829_vm2, %v14537_v22, %v3471_v35  ;;  %v8787_v27 = vld [vmem:[%s14443_s8 + $0x50] sm:$0xff] }
 0x431   : > { %v11712_v37 = vsel %vm1961_vm5, %v14534_v36, %v4598_v11  ;;  %14834 = vst [vmem:[#allocation25_spill] sm:$0xff] %v11717_v50  ;;  %3622 = vmatpush.bf16.msrb.mxu3 %v8787_v27  ;;  %v3521_v8 = vrot.slane %v11717_v50, 6  ;;  %v3753_v39 = vrot.slane %v11717_v50, 7  ;;  %v4163_v60 = vrot.slane %v11717_v50, 1 }
 0x432   : > { %v3434_v29 = vadd.f32 %v11637_v44, %v3417_v21  ;;  %14833 = vst [vmem:[#allocation23_spill] sm:$0xff] %v11712_v37  ;;  %v14538_v21 = vrot.slane %v11654_v13, 1  ;;  %v4445_v27 = vrot.slane %v11717_v50, 2  ;;  %v4599_v61 = vrot.slane %v11717_v50, 3 }
 0x433   : > { %v11732_v19 = vsel %vm879_vm1, %v3520_v42, %v3521_v8  ;;  %v11740_v55 = vsel %vm1112_vm0, %v3752_v45, %v3753_v39  ;;  %v8800_v42 = vld [vmem:[%s14443_s8 + $0xb8] sm:$0xff] }
 0x434   : > { %v3447_v33 = vmax.f32 %v3434_v29, 0.0  ;;  %v8784_v29 = vld [vmem:[%s14443_s8 + $0x38] sm:$0xff]  ;;  %v11765_v36 = vsel %vm1523_vm4, %v14538_v21, %v4162_v7  ;;  %v11780_v20 = vsel %vm1961_vm5, %v4598_v11, %v4599_v61  ;;  %3849 = vmatpush.bf16.msra.mxu1 %v8800_v42 }
 0x435   : > { %14836 = vst [vmem:[#allocation20_spill] sm:$0xff] %v11780_v20  ;;  %3708 = vmatpush.bf16.msrb.mxu0 %v8784_v29  ;;  %v9088_v29 = vld [vmem:[%s14628_s2 + $0x20] sm:$0xff] }
 0x437   : > { %v3390_v6 = vpop.f32.mrf.mxu2 }
 0x438   : > { %v3418_v31 = vadd.f32 %v3390_v6, %v11582_v32  ;;  %v4444_v32 = vrot.slane %v11660_v14, 2  ;;  %v3472_v6 = vrot.slane %v11717_v50, 5 }
 0x43a   : > { %v11706_v51 = vsel %vm1806_vm3, %v14535_v53, %v4444_v32  ;;  %v3435_v49 = vadd.f32 %v11637_v44, %v3418_v31  ;;  %v11736_v9 = vsel %vm829_vm2, %v3471_v35, %v3472_v6  ;;  %v11744_v31 = vsel %vm1523_vm4, %v4162_v7, %v4163_v60  ;;  %v8808_v35 = vld [vmem:[%s14443_s8 + $0xf8] sm:$0xff] }
 0x43b   : > { %14832 = vst [vmem:[#allocation13_spill] sm:$0xff] %v11706_v51  ;;  %v9087_v53 = vld [vmem:[%s14628_s2 + $0x18] sm:$0xff]  ;;  %v11776_v5 = vsel %vm1806_vm3, %v4444_v32, %v4445_v27  ;;  %v3265_v7 = vadd.f32 %v11562_v4, %v3111_v56  ;;  %3977 = vmatpush.bf16.msra.mxu2 %v8808_v35 }
 0x43c   : > { %v11770_v1 = vmul.f32 %v9087_v53, %v3447_v33  ;;  %v2416_v53 = vadd.f32 %v11499_v54, %v11497_v47  ;;  %v2703_v33 = vadd.f32 %v11473_v59, %v2575_v12  ;;  %v3448_v45 = vmax.f32 %v3435_v49, 0.0  ;;  %v8786_v49 = vld [vmem:[%s14443_s8 + $0x48] sm:$0xff] }
 0x43d   : > { %3623 = vmatpush.bf16.msrb.mxu3 %v8786_v49 }
 0x43e   : > { %14835 = vst [vmem:[#allocation12_spill] sm:$0xff] %v11770_v1  ;;  %v3754_v32 = vrot.slane %v11770_v1, 7  ;;  %v3522_v37 = vrot.slane %v11770_v1, 6  ;;  %v3473_v11 = vrot.slane %v11770_v1, 5  ;;  %v4164_v4 = vrot.slane %v11770_v1, 1 }
 0x43f   : > { %v3392_v46 = vpop.f32.mrf.mxu2  ;;  %v4600_v47 = vrot.slane %v11770_v1, 3  ;;  %v11833_v42 = vmul.f32 %v9088_v29, %v3448_v45  ;;  %v8782_v45 = vld [vmem:[%s14443_s8 + $0x28] sm:$0xff] }
 0x440   : > { %v3419_v18 = vadd.f32 %v3392_v46, %v3265_v7  ;;  %v11798_v59 = vsel %vm1112_vm0, %v3753_v39, %v3754_v32  ;;  %v11802_v54 = vsel %vm879_vm1, %v3521_v8, %v3522_v37  ;;  %v11806_v46 = vsel %vm829_vm2, %v3472_v6, %v3473_v11  ;;  %v8783_v39 = vld [vmem:[%s14443_s8 + $0x30] sm:$0xff] }
 0x441   : > { %v8799_v8 = vld [vmem:[%s14443_s8 + $0xb0] sm:$0xff]  ;;  %14837 = vst [vmem:[#allocation16_spill] sm:$0xff] %v11833_v42  ;;  %v11842_v56 = vsel %vm1961_vm5, %v4599_v61, %v4600_v47  ;;  %3709 = vmatpush.bf16.msrb.mxu0 %v8783_v39  ;;  %v8798_v61 = vld [vmem:[%s14443_s8 + $0xa8] sm:$0xff]  ;;  %v3474_v49 = vrot.slane %v11833_v42, 5  ;;  %v3755_v39 = vrot.slane %v11833_v42, 7  ;;  %v4601_v6 = vrot.slane %v11833_v42, 3 }
 0x442   : > { %v3436_v12 = vadd.f32 %v11637_v44, %v3419_v18  ;;  %v8807_v7 = vld [vmem:[%s14443_s8 + $0xf0] sm:$0xff]  ;;  %14838 = vst [vmem:[#allocation28_spill] sm:$0xff] %v11842_v56  ;;  %3850 = vmatpush.bf16.msra.mxu1 %v8799_v8  ;;  %v4165_v8 = vrot.slane %v11833_v42, 1 }
 0x443   : > { %3978 = vmatpush.bf16.msra.mxu2 %v8807_v7 }
 0x445   : > { %3710 = vmatpush.bf16.msrb.mxu0 %v8782_v45 }
 0x446   : > { %3851 = vmatpush.bf16.msra.mxu1 %v8798_v61 }
 0x447   : > { %v3395_v22 = vpop.f32.mrf.mxu2 }
 0x448   : > { %v3420_v21 = vadd.f32 %v3395_v22, %v11599_v24  ;;  %v2831_v24 = vadd.f32 %v11578_v16, %v2703_v33  ;;  %v4446_v22 = vrot.slane %v11770_v1, 2  ;;  %v11810_v16 = vsel %vm1523_vm4, %v4163_v60, %v4164_v4 }
 0x449   : > { %v4447_v33 = vrot.slane %v11833_v42, 2 }
 0x44a   : > { %v11828_v18 = vsel %vm1806_vm3, %v4445_v27, %v4446_v22  ;;  %v2421_v27 = vadd.f32 %v11517_v10, %v11515_v23  ;;  %v2985_v60 = vadd.f32 %v11580_v63, %v2831_v24  ;;  %v8806_v23 = vld [vmem:[%s14443_s8 + $0xe8] sm:$0xff]  ;;  %v2577_v10 = vadd.f32 %v11493_v34, %v2416_v53 }
 0x44b   : > { %v3449_v63 = vmax.f32 %v3436_v12, 0.0  ;;  %v3523_v24 = vrot.slane %v11833_v42, 6  ;;  %3979 = vmatpush.bf16.msra.mxu2 %v8806_v23  ;;  %v11873_v53 = vsel %vm829_vm2, %v3473_v11, %v3474_v49  ;;  %v8781_v12 = vld [vmem:[%s14443_s8 + $0x20] sm:$0xff]  ;;  %v11902_v23 = vsel %vm1523_vm4, %v4164_v4, %v4165_v8  ;;  %v8780_v4 = vld [vmem:[%s14443_s8 + $0x18] sm:$0xff] }
 0x44c   : > { %v2579_v7 = vadd.f32 %v11511_v52, %v2421_v27  ;;  %v3113_v29 = vadd.f32 %v11574_v41, %v2985_v60  ;;  %v11877_v52 = vsel %vm1112_vm0, %v3754_v32, %v3755_v39  ;;  %v3437_v41 = vadd.f32 %v11637_v44, %v3420_v21  ;;  %v8797_v60 = vld [vmem:[%s14443_s8 + $0xa0] sm:$0xff]  ;;  %v9089_v27 = vld [vmem:[%s14628_s2 + $0x28] sm:$0xff]  ;;  %14840 = vst [vmem:[#allocation31_spill] sm:$0xff] %v11902_v23 }
 0x44d   : > { %v11869_v34 = vsel %vm879_vm1, %v3522_v37, %v3523_v24  ;;  %v8805_v37 = vld [vmem:[%s14443_s8 + $0xe0] sm:$0xff]  ;;  %v11898_v45 = vmul.f32 %v9089_v27, %v3449_v63  ;;  %v11906_v11 = vsel %vm1806_vm3, %v4446_v22, %v4447_v33  ;;  %v11910_v32 = vsel %vm1961_vm5, %v4600_v47, %v4601_v6  ;;  %3711 = vmatpush.bf16.msrb.mxu0 %v8781_v12  ;;  %v8796_v47 = vld [vmem:[%s14443_s8 + $0x98] sm:$0xff] }
 0x44e   : > { %14841 = vst [vmem:[#allocation29_spill] sm:$0xff] %v11906_v11  ;;  %v2705_v21 = vadd.f32 %v11495_v28, %v2577_v10  ;;  %v3267_v20 = vadd.f32 %v11576_v3, %v3113_v29  ;;  %3852 = vmatpush.bf16.msra.mxu1 %v8797_v60  ;;  %v8804_v28 = vld [vmem:[%s14443_s8 + $0xd8] sm:$0xff]  ;;  %v3450_v29 = vmax.f32 %v3437_v41, 0.0  ;;  %v8785_v41 = vld [vmem:[%s14443_s8 + $0x40] sm:$0xff]  ;;  %v14863_v11 = vrot.slane %v11654_v13, 6 }
 0x44f   : > { %v3397_v35 = vpop.f32.mrf.mxu2  ;;  %14839 = vst [vmem:[#allocation14_spill] sm:$0xff] %v11898_v45  ;;  %3980 = vmatpush.bf16.msra.mxu2 %v8805_v37  ;;  %v3756_v12 = vrot.slane %v11898_v45, 7  ;;  %v3524_v27 = vrot.slane %v11898_v45, 6  ;;  %v3475_v60 = vrot.slane %v11898_v45, 5  ;;  %v4166_v37 = vrot.slane %v11898_v45, 1  ;;  %3624 = vmatpush.bf16.msrb.mxu3 %v8785_v41 }
 0x450   : > { %14842 = vst [vmem:[#allocation27_spill] sm:$0xff] %v11910_v32  ;;  %v2833_v3 = vadd.f32 %v11592_v40, %v2705_v21  ;;  %v3421_v10 = vadd.f32 %v3397_v35, %v3267_v20  ;;  %v4448_v22 = vrot.slane %v11898_v45, 2  ;;  %v8779_v21 = vld [vmem:[%s14443_s8 + $0x10] sm:$0xff]  ;;  %v8777_v40 = vld [vmem:[%s14443_s8] sm:$0xff] }
 0x451   : > { %3712 = vmatpush.bf16.msrb.mxu0 %v8780_v4  ;;  %v11941_v20 = vsel %vm1112_vm0, %v3755_v39, %v3756_v12  ;;  %v11945_v35 = vsel %vm879_vm1, %v3523_v24, %v3524_v27  ;;  %v8795_v39 = vld [vmem:[%s14443_s8 + $0x90] sm:$0xff]  ;;  %v8793_v32 = vld [vmem:[%s14443_s8 + $0x80] sm:$0xff] }
 0x452   : > { %3853 = vmatpush.bf16.msra.mxu1 %v8796_v47  ;;  %v11969_v4 = vsel %vm1806_vm3, %v4447_v33, %v4448_v22  ;;  %v9090_v47 = vld [vmem:[%s14628_s2 + $0x30] sm:$0xff]  ;;  %v2987_v24 = vadd.f32 %v11594_v43, %v2833_v3  ;;  %v8802_v43 = vld [vmem:[%s14443_s8 + $0xc8] sm:$0xff] }
 0x453   : > { %3981 = vmatpush.bf16.msra.mxu2 %v8804_v28  ;;  %14844 = vst [vmem:[#allocation34_spill] sm:$0xff] %v11969_v4  ;;  %v11974_v28 = vmul.f32 %v9090_v47, %v3450_v29  ;;  %v8778_v47 = vld [vmem:[%s14443_s8 + $0x8] sm:$0xff] }
 0x455   : > { %14845 = vst [vmem:[#allocation38_spill] sm:$0xff] %v11974_v28  ;;  %3713 = vmatpush.bf16.msrb.mxu0 %v8779_v21  ;;  %v3525_v3 = vrot.slane %v11974_v28, 6  ;;  %v3757_v41 = vrot.slane %v11974_v28, 7  ;;  %v4167_v21 = vrot.slane %v11974_v28, 1 }
 0x456   : > { %3854 = vmatpush.bf16.msra.mxu1 %v8795_v39  ;;  %v3115_v39 = vadd.f32 %v11588_v30, %v2987_v24  ;;  %v8801_v30 = vld [vmem:[%s14443_s8 + $0xc0] sm:$0xff] }
 0x457   : > { %v3400_v61 = vpop.f32.mrf.mxu2  ;;  %v12047_v56 = vsel %vm1523_vm4, %v4166_v37, %v4167_v21 }
 0x458   : > { %v11915_v63 = vadd.f32 %v3400_v61, %v11612_v17  ;;  %v2707_v17 = vadd.f32 %v11513_v26, %v2579_v7  ;;  %v4602_v26 = vrot.slane %v11898_v45, 3  ;;  %v3438_v7 = vadd.f32 %v11637_v44, %v3421_v10  ;;  %v8803_v10 = vld [vmem:[%s14443_s8 + $0xd0] sm:$0xff]  ;;  %14848 = vst [vmem:[#allocation32_spill] sm:$0xff] %v12047_v56 }
 0x459   : > { %3982 = vmatpush.bf16.msra.mxu2 %v8803_v10  ;;  %3714 = vmatpush.bf16.msrb.mxu0 %v8778_v47 }
 0x45a   : > { %v2835_v61 = vadd.f32 %v11608_v62, %v2707_v17  ;;  %v11949_v62 = vsel %vm829_vm2, %v3474_v49, %v3475_v60  ;;  %v11965_v49 = vsel %vm1523_vm4, %v4165_v8, %v4166_v37  ;;  %v11985_v33 = vsel %vm1961_vm5, %v4601_v6, %v4602_v26  ;;  %v8794_v6 = vld [vmem:[%s14443_s8 + $0x88] sm:$0xff] }
 0x45b   : > { %14843 = vst [vmem:[#allocation24_spill] sm:$0xff] %v11965_v49  ;;  %v4449_v8 = vrot.slane %v11974_v28, 2  ;;  %3855 = vmatpush.bf16.msra.mxu1 %v8794_v6  ;;  %v3439_v47 = vadd.f32 %v11637_v44, %v11915_v63  ;;  %v8816_v6 = vld [vmem:[%s14443_s8 + $0x138] sm:$0xff] }
 0x45c   : > { %14846 = vst [vmem:[#allocation36_spill] sm:$0xff] %v11985_v33  ;;  %v2989_v29 = vadd.f32 %v11610_v25, %v2835_v61  ;;  %v3451_v25 = vmax.f32 %v3438_v7, 0.0  ;;  %v3476_v61 = vrot.slane %v11974_v28, 5  ;;  %v4603_v7 = vrot.slane %v11974_v28, 3  ;;  %4105 = vmatpush.bf16.msra.mxu3 %v8816_v6 }
 0x45d   : > { %3983 = vmatpush.bf16.msra.mxu2 %v8802_v43  ;;  %v12051_v43 = vsel %vm1806_vm3, %v4448_v22, %v4449_v8  ;;  %3715 = vmatpush.bf16.msrb.mxu0 %v8777_v40  ;;  %v3452_v22 = vmax.f32 %v3439_v47, 0.0  ;;  %v14852_v40 = vld [vmem:[#allocation19_spill] sm:$0xff] }
 0x45e   : > { %v3117_v10 = vadd.f32 %v11604_v38, %v2989_v29  ;;  %v12019_v38 = vsel %vm879_vm1, %v3524_v27, %v3525_v3  ;;  %v12023_v24 = vsel %vm829_vm2, %v3475_v60, %v3476_v61  ;;  %v12027_v29 = vsel %vm1112_vm0, %v3756_v12, %v3757_v41  ;;  %v9091_v12 = vld [vmem:[%s14628_s2 + $0x38] sm:$0xff]  ;;  %14849 = vst [vmem:[#allocation15_spill] sm:$0xff] %v12051_v43 }
 0x45f   : > { %v3402_v17 = vpop.f32.mrf.mxu2  ;;  %v12043_v33 = vmul.f32 %v9091_v12, %v3451_v25  ;;  %v12055_v27 = vsel %vm1961_vm5, %v4602_v26, %v4603_v7  ;;  %v14851_v60 = vld [vmem:[#allocation18_spill] sm:$0xff]  ;;  %v8815_v25 = vld [vmem:[%s14443_s8 + $0x130] sm:$0xff]  ;;  %3856 = vmatpush.bf16.msra.mxu1 %v8793_v32 }
 0x460   : > { %14850 = vst [vmem:[#allocation21_spill] sm:$0xff] %v12055_v27  ;;  %v3269_v51 = vadd.f32 %v14851_v60, %v3115_v39  ;;  %v3271_v6 = vadd.f32 %v14852_v40, %v3117_v10  ;;  %4106 = vmatpush.bf16.msra.mxu3 %v8815_v25 }
 0x461   : > { %14847 = vst [vmem:[#allocation35_spill] sm:$0xff] %v12043_v33  ;;  %3984 = vmatpush.bf16.msra.mxu2 %v8801_v30  ;;  %v3758_v26 = vrot.slane %v12043_v33, 7  ;;  %v3526_v45 = vrot.slane %v12043_v33, 6  ;;  %v3477_v39 = vrot.slane %v12043_v33, 5  ;;  %v4450_v60 = vrot.slane %v12043_v33, 2 }
 0x462   : > { %v3423_v12 = vadd.f32 %v3402_v17, %v3269_v51  ;;  %v4604_v32 = vrot.slane %v12043_v33, 3 }
 0x463   : > { %v12075_v51 = vsel %vm1112_vm0, %v3757_v41, %v3758_v26  ;;  %v12079_v17 = vsel %vm879_vm1, %v3525_v3, %v3526_v45  ;;  %v12083_v30 = vsel %vm829_vm2, %v3476_v61, %v3477_v39  ;;  %v12096_v3 = vsel %vm1806_vm3, %v4449_v8, %v4450_v60  ;;  %v9092_v61 = vld [vmem:[%s14628_s2 + $0x40] sm:$0xff]  ;;  %v8814_v8 = vld [vmem:[%s14443_s8 + $0x128] sm:$0xff] }
 0x464   : > { %v3440_v47 = vadd.f32 %v11637_v44, %v3423_v12  ;;  %14854 = vst [vmem:[#allocation26_spill] sm:$0xff] %v12096_v3  ;;  %v12101_v40 = vmul.f32 %v9092_v61, %v3452_v22  ;;  %4107 = vmatpush.bf16.msra.mxu3 %v8814_v8 }
 0x466   : > { %14855 = vst [vmem:[#allocation22_spill] sm:$0xff] %v12101_v40  ;;  %v3453_v25 = vmax.f32 %v3440_v47, 0.0  ;;  %v3527_v22 = vrot.slane %v12101_v40, 6  ;;  %v3478_v61 = vrot.slane %v12101_v40, 5  ;;  %v4169_v12 = vrot.slane %v12101_v40, 1 }
 0x467   : > { %v3405_v63 = vpop.f32.mrf.mxu2 }
 0x468   : > { %v3424_v42 = vadd.f32 %v3405_v63, %v11618_v48  ;;  %v4168_v48 = vrot.slane %v12043_v33, 1  ;;  %v12107_v63 = vsel %vm1961_vm5, %v4603_v7, %v4604_v32  ;;  %v3759_v33 = vrot.slane %v12101_v40, 7 }
 0x469   : > { %14856 = vst [vmem:[#allocation33_spill] sm:$0xff] %v12107_v63  ;;  %v4451_v7 = vrot.slane %v12101_v40, 2  ;;  %v9095_v63 = vld [vmem:[%s14628_s2 + $0x58] sm:$0xff] }
 0x46a   : > { %v12087_v10 = vsel %vm1523_vm4, %v4167_v21, %v4168_v48  ;;  %v3441_v41 = vadd.f32 %v11637_v44, %v3424_v42  ;;  %v4605_v42 = vrot.slane %v12101_v40, 3  ;;  %v12129_v47 = vsel %vm1112_vm0, %v3758_v26, %v3759_v33  ;;  %v9093_v26 = vld [vmem:[%s14628_s2 + $0x48] sm:$0xff] }
 0x46b   : > { %14853 = vst [vmem:[#allocation11_spill] sm:$0xff] %v12087_v10  ;;  %v12153_v3 = vsel %vm1806_vm3, %v4450_v60, %v4451_v7 }
 0x46c   : > { %v3454_v43 = vmax.f32 %v3441_v41, 0.0  ;;  %14859 = vst [vmem:[#allocation37_spill] sm:$0xff] %v12153_v3 }
 0x46f   : > { %v3407_v21 = vpop.f32.mrf.mxu2 }
 0x470   : > { %v3425_v37 = vadd.f32 %v3407_v21, %v3271_v6  ;;  %v12121_v6 = vsel %vm879_vm1, %v3526_v45, %v3527_v22  ;;  %v12133_v21 = vsel %vm1523_vm4, %v4168_v48, %v4169_v12  ;;  %v12147_v48 = vmul.f32 %v9093_v26, %v3453_v25  ;;  %v9094_v25 = vld [vmem:[%s14628_s2 + $0x50] sm:$0xff] }
 0x471   : > { %14857 = vst [vmem:[#allocation30_spill] sm:$0xff] %v12133_v21  ;;  %v12163_v26 = vmul.f32 %v9094_v25, %v3454_v43 }
 0x472   : > { %v3442_v28 = vadd.f32 %v11637_v44, %v3425_v37  ;;  %v12125_v37 = vsel %vm829_vm2, %v3477_v39, %v3478_v61  ;;  %14858 = vst [vmem:[#allocation39_spill] sm:$0xff] %v12147_v48  ;;  %v12157_v39 = vsel %vm1961_vm5, %v4604_v32, %v4605_v42  ;;  %v3760_v32 = vrot.slane %v12147_v48, 7 }
 0x473   : > { %14860 = vst [vmem:[#allocation17_spill] sm:$0xff] %v12157_v39  ;;  %v3528_v10 = vrot.slane %v12147_v48, 6  ;;  %v4170_v8 = vrot.slane %v12147_v48, 1  ;;  %v4452_v43 = vrot.slane %v12147_v48, 2  ;;  %v4606_v56 = vrot.slane %v12147_v48, 3 }
 0x474   : > { %v3455_v41 = vmax.f32 %v3442_v28, 0.0  ;;  %v3529_v50 = vrot.slane %v12163_v26, 6  ;;  %v3480_v1 = vrot.slane %v12163_v26, 5 }
 0x476   : > { %v12168_v45 = vmul.f32 %v9095_v63, %v3455_v41  ;;  %v12181_v63 = vsel %vm1112_vm0, %v3759_v33, %v3760_v32  ;;  %v12193_v41 = vsel %vm1523_vm4, %v4169_v12, %v4170_v8 }
 0x477   : > { %v3410_v28 = vpop.f32.mrf.mxu2 }
 0x478   : > { %v3426_v27 = vadd.f32 %v3410_v28, %v11626_v57  ;;  %v3479_v57 = vrot.slane %v12147_v48, 5  ;;  %v3530_v12 = vrot.slane %v12168_v45, 6  ;;  %v3481_v48 = vrot.slane %v12168_v45, 5 }
 0x47a   : > { %v3443_v60 = vadd.f32 %v11637_v44, %v3426_v27  ;;  %v12185_v44 = vsel %vm879_vm1, %v3527_v22, %v3528_v10  ;;  %v12189_v27 = vsel %vm829_vm2, %v3478_v61, %v3479_v57  ;;  %v12206_v61 = vsel %vm1806_vm3, %v4451_v7, %v4452_v43 }
 0x47b   : > { %14861 = vst [vmem:[#allocation18_spill] sm:$0xff] %v12206_v61  ;;  %v3762_v7 = vrot.slane %v12168_v45, 7  ;;  %v14864_v61 = vrot.slane %v11654_v13, 5 }
 0x47c   : > { %v3456_v28 = vmax.f32 %v3443_v60, 0.0  ;;  %v9096_v60 = vld [vmem:[%s14628_s2 + $0x60] sm:$0xff] }
 0x47e   : > { %v12198_v25 = vmul.f32 %v9096_v60, %v3456_v28  ;;  %v12214_v28 = vsel %vm1961_vm5, %v4605_v42, %v4606_v56 }
 0x47f   : > { %v3412_v40 = vpop.f32.mrf.mxu2  ;;  %14862 = vst [vmem:[#allocation19_spill] sm:$0xff] %v12214_v28  ;;  %v14865_v28 = vrot.slane %v11654_v13, 7 }
 0x480   : > { %v3531_v60 = vrot.slane %v12198_v25, 6  ;;  %v3482_v22 = vrot.slane %v12198_v25, 5  ;;  %v3763_v33 = vrot.slane %v12198_v25, 7 }
 0x482   : > { %v3532_v21 = vsel %vm879_vm1, %v3530_v12, %v3531_v60  ;;  %v3544_v42 = vsel %vm879_vm1, %v3531_v60, %v14863_v11  ;;  %v3483_v3 = vsel %vm829_vm2, %v3481_v48, %v3482_v22  ;;  %v3495_v4 = vsel %vm829_vm2, %v3482_v22, %v14864_v61 }
 0x483   : > { %v3545_v49 = vpack.c.bf16 %v3544_v42, %v3532_v21  ;;  %v3496_v40 = vpack.c.bf16 %v3495_v4, %v3483_v3  ;;  %v12236_v39 = vsel %vm1112_vm0, %v3762_v7, %v3763_v33  ;;  %v3776_v23 = vsel %vm1112_vm0, %v3763_v33, %v14865_v28 }
 0x484   : > { %v3777_v11 = vpack.c.bf16 %v3776_v23, %v12236_v39  ;;  %v3905_v60 = vpack.c.bf16 %v11683_v0, %v3776_v23  ;;  %v3761_v4 = vrot.slane %v12163_v26, 7  ;;  %v4171_v3 = vrot.slane %v12163_v26, 1  ;;  %v8813_v23 = vld [vmem:[%s14443_s8 + $0x120] sm:$0xff] }
 0x485   : > { %3625 = vmatmul.bf16.vlgmr.msrb.gmra.mxu3 %v3545_v49  ;;  %3716 = vmatmul.bf16.vlgmr.msrb.gmra.mxu0 %v3496_v40  ;;  %v4453_v21 = vrot.slane %v12163_v26, 2  ;;  %v4607_v22 = vrot.slane %v12163_v26, 3  ;;  %v12255_v33 = vsel %vm879_vm1, %v3528_v10, %v3529_v50  ;;  %v12259_v49 = vsel %vm829_vm2, %v3479_v57, %v3480_v1 }
 0x486   : > { %3857 = vmatmul.bf16.vlgmr.msra.gmra.mxu1 %v3777_v11  ;;  %3985 = vmatmul.bf16.vlgmr.msra.gmra.mxu2 %v3905_v60  ;;  %v12267_v40 = vsel %vm1112_vm0, %v3760_v32, %v3761_v4  ;;  %v12271_v42 = vsel %vm1523_vm4, %v4170_v8, %v4171_v3  ;;  %v4172_v32 = vrot.slane %v12168_v45, 1  ;;  %v4454_v8 = vrot.slane %v12168_v45, 2 }
 0x487   : > { %4108 = vmatpush.bf16.msra.mxu3 %v8813_v23  ;;  %v12279_v11 = vsel %vm1806_vm3, %v4452_v43, %v4453_v21  ;;  %v12283_v60 = vsel %vm1961_vm5, %v4606_v56, %v4607_v22  ;;  %v4608_v10 = vrot.slane %v12168_v45, 3  ;;  %v12292_v57 = vsel %vm1112_vm0, %v3761_v4, %v3762_v7 }
 0x488   : > { %v12296_v43 = vsel %vm879_vm1, %v3529_v50, %v3530_v12  ;;  %v12300_v56 = vsel %vm829_vm2, %v3480_v1, %v3481_v48  ;;  %v12304_v28 = vsel %vm1523_vm4, %v4171_v3, %v4172_v32  ;;  %v12312_v7 = vsel %vm1806_vm3, %v4453_v21, %v4454_v8 }
 0x489   : > { %v12316_v50 = vsel %vm1961_vm5, %v4607_v22, %v4608_v10  ;;  %v4173_v12 = vrot.slane %v12198_v25, 1  ;;  %v4455_v4 = vrot.slane %v12198_v25, 2  ;;  %v4609_v3 = vrot.slane %v12198_v25, 3 }
 0x48a   : > { %v14866_v21 = vpack.c.bf16 %v11732_v19, %v11689_v58  ;;  %v14867_v22 = vpack.c.bf16 %v11736_v9, %v11695_v15  ;;  %v14868_v48 = vrot.slane %v11654_v13, 1  ;;  %v14869_v58 = vpack.c.bf16 %v11740_v55, %v11683_v0  ;;  %v8812_v19 = vld [vmem:[%s14443_s8 + $0x118] sm:$0xff] }
 0x48b   : > { %v12333_v1 = vsel %vm1523_vm4, %v4172_v32, %v4173_v12  ;;  %v12343_v23 = vsel %vm1806_vm3, %v4454_v8, %v4455_v4  ;;  %v14870_v15 = vpack.c.bf16 %v11798_v59, %v11740_v55  ;;  %v14871_v8 = vrot.slane %v11654_v13, 2  ;;  %4109 = vmatpush.bf16.msra.mxu3 %v8812_v19  ;;  %v8830_v19 = vld [vmem:[%s14443_s8 + $0x1a8] sm:$0xff] }
 0x48c   : > { %v12339_v61 = vsel %vm1523_vm4, %v4173_v12, %v14868_v48  ;;  %v4192_v9 = vpack.c.bf16 %v12333_v1, %v12304_v28  ;;  %v12366_v55 = vsel %vm1961_vm5, %v4608_v10, %v4609_v3  ;;  %v14872_v48 = vrot.slane %v11654_v13, 3 }
 0x48d   : > { %v4320_v32 = vpack.c.bf16 %v12339_v61, %v12333_v1  ;;  %v12362_v0 = vsel %vm1806_vm3, %v4455_v4, %v14871_v8  ;;  %v14873_v4 = vpack.c.bf16 %v11869_v34, %v11802_v54  ;;  %v14874_v10 = vpack.c.bf16 %v11873_v53, %v11806_v46  ;;  %v8824_v53 = vld [vmem:[%s14443_s8 + $0x178] sm:$0xff]  ;;  %v8838_v8 = vld [vmem:[%s14443_s8 + $0x1e8] sm:$0xff] }
 0x48e   : > { %v12372_v12 = vsel %vm1961_vm5, %v4609_v3, %v14872_v48  ;;  %v14876_v3 = vpack.c.bf16 %v11941_v20, %v11877_v52  ;;  %v14877_v54 = vpack.c.bf16 %v12019_v38, %v11945_v35  ;;  %v14878_v46 = vpack.c.bf16 %v12023_v24, %v11949_v62  ;;  %v8840_v35 = vld [vmem:[%s14443_s8 + $0x1f8] sm:$0xff]  ;;  %4259 = vmatpush.bf16.msra.mxu0 %v8824_v53  ;;  %v8823_v62 = vld [vmem:[%s14443_s8 + $0x170] sm:$0xff]  ;;  %v8821_v48 = vld [vmem:[%s14443_s8 + $0x160] sm:$0xff] }
 0x48f   : > { %v14880_v34 = vpack.c.bf16 %v12075_v51, %v12027_v29  ;;  %v8831_v38 = vld [vmem:[%s14443_s8 + $0x1b0] sm:$0xff]  ;;  %4541 = vmatpush.bf16.msrb.mxu2 %v8840_v35  ;;  %v8834_v53 = vld [vmem:[%s14443_s8 + $0x1c8] sm:$0xff]  ;;  %v8825_v35 = vld [vmem:[%s14443_s8 + $0x180] sm:$0xff] }
 0x490   : > { %v8839_v24 = vld [vmem:[%s14443_s8 + $0x1f0] sm:$0xff] }
 0x492   : > { %4260 = vmatpush.bf16.msra.mxu0 %v8823_v62  ;;  %v14885_v62 = vpack.c.bf16 %v12255_v33, %v12185_v44  ;;  %v3551_v44 = vpack.c.bf16 %v12296_v43, %v12296_v43  ;;  %v3783_v33 = vpack.c.bf16 %v12292_v57, %v12292_v57  ;;  %v14890_v43 = vpack.c.bf16 %v11744_v31, %v11765_v36 }
 0x493   : > { %4542 = vmatpush.bf16.msrb.mxu2 %v8839_v24  ;;  %v14887_v24 = vpack.c.bf16 %v12267_v40, %v12181_v63 }
 0x495   : > { %3630 = vmatmul.bf16.gmra.mxu3 %v14866_v21  ;;  %3721 = vmatmul.bf16.gmra.mxu0 %v14867_v22  ;;  %v4474_v21 = vpack.c.bf16 %v12362_v0, %v12343_v23  ;;  %v4628_v22 = vpack.c.bf16 %v12372_v12, %v12366_v55  ;;  %v4039_v23 = vpack.c.bf16 %v12198_v25, %v12198_v25  ;;  %v8864_v55 = vld [vmem:[%s14445_s10 + $0x78] sm:$0xff] }
 0x496   : > { %3862 = vmatmul.bf16.gmra.mxu1 %v14869_v58  ;;  %3990 = vmatmul.bf16.gmra.mxu2 %v14870_v15  ;;  %v14875_v58 = vpack.c.bf16 %v11877_v52, %v11798_v59  ;;  %v8811_v15 = vld [vmem:[%s14443_s8 + $0x110] sm:$0xff]  ;;  %v14879_v59 = vpack.c.bf16 %v12027_v29, %v11941_v20  ;;  %v8832_v52 = vld [vmem:[%s14443_s8 + $0x1b8] sm:$0xff]  ;;  %v8810_v20 = vld [vmem:[%s14443_s8 + $0x108] sm:$0xff]  ;;  %v4193_v0 = vpack.c.bf16 %v12339_v61, %v12339_v61 }
 0x497   : > { %4110 = vmatpush.bf16.msra.mxu3 %v8811_v15  ;;  %4387 = vmatpush.bf16.msrb.mxu1 %v8832_v52  ;;  %v8822_v29 = vld [vmem:[%s14443_s8 + $0x168] sm:$0xff]  ;;  %v14883_v15 = vpack.c.bf16 %v12129_v47, %v12075_v51  ;;  %v8809_v51 = vld [vmem:[%s14443_s8 + $0x100] sm:$0xff] }
 0x498   : > { %4261 = vmatpush.bf16.msra.mxu0 %v8822_v29  ;;  %4543 = vmatpush.bf16.msrb.mxu2 %v8838_v8  ;;  %v8817_v52 = vld [vmem:[%s14443_s8 + $0x140] sm:$0xff]  ;;  %v14888_v29 = vpack.c.bf16 %v12292_v57, %v12267_v40  ;;  %v14889_v40 = vpack.c.bf16 %v11660_v14, %v11654_v13  ;;  %v8846_v57 = vld [vmem:[%s14443_s8 + $0x228] sm:$0xff] }
 0x499   : > { %v8845_v13 = vld [vmem:[%s14443_s8 + $0x220] sm:$0xff] }
 0x49b   : > { %4111 = vmatpush.bf16.msra.mxu3 %v8810_v20  ;;  %4388 = vmatpush.bf16.msrb.mxu1 %v8831_v38  ;;  %v8833_v20 = vld [vmem:[%s14443_s8 + $0x1c0] sm:$0xff]  ;;  %v14886_v38 = vpack.c.bf16 %v12259_v49, %v12189_v27  ;;  %v3502_v27 = vpack.c.bf16 %v12300_v56, %v12300_v56  ;;  %v3911_v49 = vpack.c.bf16 %v12236_v39, %v12236_v39 }
 0x49c   : > { %4262 = vmatpush.bf16.msra.mxu0 %v8821_v48  ;;  %v14891_v39 = vpack.c.bf16 %v11810_v16, %v11744_v31  ;;  %v14892_v56 = vpack.c.bf16 %v11828_v18, %v11776_v5  ;;  %v14893_v48 = vld [vmem:[#allocation12_spill] sm:$0xff]  ;;  %v14900_v18 = vld [vmem:[#allocation34_spill] sm:$0xff] }
 0x49f   : > { %4389 = vmatpush.bf16.msrb.mxu1 %v8830_v19  ;;  %4112 = vmatpush.bf16.msra.mxu3 %v8809_v51  ;;  %v8848_v19 = vld [vmem:[%s14443_s8 + $0x238] sm:$0xff] }
 0x4a3   : > { %4695 = vmatpush.bf16.msrb.mxu3 %v8848_v19  ;;  %v14906_v19 = vld [vmem:[#allocation32_spill] sm:$0xff] }
 0x4a5   : > { %3635 = vmatmul.bf16.gmra.mxu3 %v14873_v4  ;;  %3726 = vmatmul.bf16.gmra.mxu0 %v14874_v10  ;;  %v8829_v4 = vld [vmem:[%s14443_s8 + $0x1a0] sm:$0xff] }
 0x4a6   : > { %3867 = vmatmul.bf16.gmra.mxu1 %v14875_v58  ;;  %3995 = vmatmul.bf16.gmra.mxu2 %v14876_v3  ;;  %v8837_v10 = vld [vmem:[%s14443_s8 + $0x1e0] sm:$0xff]  ;;  %v14881_v58 = vpack.c.bf16 %v12121_v6, %v12079_v17  ;;  %v14882_v3 = vpack.c.bf16 %v12125_v37, %v12083_v30  ;;  %v8828_v17 = vld [vmem:[%s14443_s8 + $0x198] sm:$0xff]  ;;  %v8819_v6 = vld [vmem:[%s14443_s8 + $0x150] sm:$0xff] }
 0x4a7   : > { %4390 = vmatpush.bf16.msrb.mxu1 %v8829_v4  ;;  %4544 = vmatpush.bf16.msrb.mxu2 %v8837_v10  ;;  %v8836_v30 = vld [vmem:[%s14443_s8 + $0x1d8] sm:$0xff]  ;;  %v8827_v37 = vld [vmem:[%s14443_s8 + $0x190] sm:$0xff] }
 0x4a8   : > { %v14894_v4 = vld [vmem:[#allocation25_spill] sm:$0xff] }
 0x4a9   : > { %v14895_v10 = vpack.c.bf16 %v14893_v48, %v14894_v4  ;;  %v8843_v48 = vld [vmem:[%s14443_s8 + $0x210] sm:$0xff] }
 0x4ab   : > { %4391 = vmatpush.bf16.msrb.mxu1 %v8828_v17  ;;  %4545 = vmatpush.bf16.msrb.mxu2 %v8836_v30 }
 0x4af   : > { %4392 = vmatpush.bf16.msrb.mxu1 %v8827_v37 }
 0x4b5   : > { %3640 = vmatmul.bf16.gmra.mxu3 %v14877_v54  ;;  %3731 = vmatmul.bf16.gmra.mxu0 %v14878_v46  ;;  %v14884_v54 = vpack.c.bf16 %v12181_v63, %v12129_v47  ;;  %v8820_v46 = vld [vmem:[%s14443_s8 + $0x158] sm:$0xff]  ;;  %v8835_v47 = vld [vmem:[%s14443_s8 + $0x1d0] sm:$0xff] }
 0x4b6   : > { %3872 = vmatmul.bf16.gmra.mxu1 %v14879_v59  ;;  %4000 = vmatmul.bf16.gmra.mxu2 %v14880_v34  ;;  %v8818_v59 = vld [vmem:[%s14443_s8 + $0x148] sm:$0xff]  ;;  %v8847_v63 = vld [vmem:[%s14443_s8 + $0x230] sm:$0xff] }
 0x4b7   : > { %4263 = vmatpush.bf16.msra.mxu0 %v8820_v46  ;;  %v8826_v34 = vld [vmem:[%s14443_s8 + $0x188] sm:$0xff]  ;;  %4546 = vmatpush.bf16.msrb.mxu2 %v8835_v47 }
 0x4b8   : > { %4393 = vmatpush.bf16.msrb.mxu1 %v8826_v34  ;;  %4696 = vmatpush.bf16.msrb.mxu3 %v8847_v63 }
 0x4bb   : > { %4264 = vmatpush.bf16.msra.mxu0 %v8819_v6  ;;  %4547 = vmatpush.bf16.msrb.mxu2 %v8834_v53 }
 0x4bc   : > { %4394 = vmatpush.bf16.msrb.mxu1 %v8825_v35  ;;  %4697 = vmatpush.bf16.msrb.mxu3 %v8846_v57 }
 0x4bf   : > { %4265 = vmatpush.bf16.msra.mxu0 %v8818_v59  ;;  %4548 = vmatpush.bf16.msrb.mxu2 %v8833_v20 }
 0x4c0   : > { %4698 = vmatpush.bf16.msrb.mxu3 %v8845_v13 }
 0x4c3   : > { %4266 = vmatpush.bf16.msra.mxu0 %v8817_v52 }
 0x4c5   : > { %3645 = vmatmul.bf16.gmra.mxu3 %v14881_v58  ;;  %3736 = vmatmul.bf16.gmra.mxu0 %v14882_v3  ;;  %v14896_v58 = vld [vmem:[#allocation31_spill] sm:$0xff]  ;;  %v14898_v3 = vld [vmem:[#allocation24_spill] sm:$0xff] }
 0x4c6   : > { %3877 = vmatmul.bf16.gmra.mxu1 %v14883_v15  ;;  %4005 = vmatmul.bf16.gmra.mxu2 %v14884_v54  ;;  %v14897_v31 = vpack.c.bf16 %v14896_v58, %v11810_v16  ;;  %v14899_v5 = vpack.c.bf16 %v14898_v3, %v14896_v58  ;;  %v14901_v15 = vld [vmem:[#allocation29_spill] sm:$0xff] }
 0x4c7   : > { %v14902_v54 = vpack.c.bf16 %v14900_v18, %v14901_v15  ;;  %v8844_v16 = vld [vmem:[%s14443_s8 + $0x218] sm:$0xff]  ;;  %v14913_v15 = vld [vmem:[#allocation35_spill] sm:$0xff]  ;;  %4941 = vmatpush.bf16.msrb.mxu0 %v8864_v55 }
 0x4c8   : > { %4699 = vmatpush.bf16.msrb.mxu3 %v8844_v16 }
 0x4cc   : > { %4700 = vmatpush.bf16.msrb.mxu3 %v8843_v48 }
 0x4d5   : > { %3650 = vmatmul.bf16.gmra.mxu3 %v14885_v62  ;;  %3741 = vmatmul.bf16.gmra.mxu0 %v14886_v38  ;;  %v14903_v38 = vld [vmem:[#allocation14_spill] sm:$0xff] }
 0x4d6   : > { %3882 = vmatmul.bf16.gmra.mxu1 %v14887_v24  ;;  %4010 = vmatmul.bf16.gmra.mxu2 %v14888_v29  ;;  %v14904_v24 = vld [vmem:[#allocation16_spill] sm:$0xff] }
 0x4d7   : > { %v14905_v29 = vpack.c.bf16 %v14903_v38, %v14904_v24  ;;  %v8842_v24 = vld [vmem:[%s14443_s8 + $0x208] sm:$0xff] }
 0x4d8   : > { %4701 = vmatpush.bf16.msrb.mxu3 %v8842_v24  ;;  %v14930_v24 = vld [vmem:[#allocation28_spill] sm:$0xff] }
 0x4e5   : > { %3655 = vmatmul.bf16.gmra.mxu3 %v3551_v44  ;;  %3746 = vmatmul.bf16.gmra.mxu0 %v3502_v27  ;;  %v14907_v44 = vpack.c.bf16 %v14906_v19, %v14898_v3  ;;  %v14908_v27 = vld [vmem:[#allocation11_spill] sm:$0xff] }
 0x4e6   : > { %3887 = vmatmul.bf16.gmra.mxu1 %v3783_v33  ;;  %4015 = vmatmul.bf16.gmra.mxu2 %v3911_v49  ;;  %v14909_v63 = vpack.c.bf16 %v14908_v27, %v14906_v19  ;;  %v14910_v33 = vld [vmem:[#allocation26_spill] sm:$0xff]  ;;  %v14911_v49 = vld [vmem:[#allocation15_spill] sm:$0xff] }
 0x4f5   : > { %4113 = vmatmul.bf16.vlgmr.msra.gmra.mxu3 %v14889_v40  ;;  %4267 = vmatmul.bf16.vlgmr.msra.gmra.mxu0 %v14890_v43  ;;  %v14912_v40 = vpack.c.bf16 %v14910_v33, %v14911_v49  ;;  %v14923_v33 = vld [vmem:[#allocation22_spill] sm:$0xff] }
 0x4f6   : > { %4395 = vmatmul.bf16.vlgmr.msrb.gmra.mxu1 %v14891_v39  ;;  %4549 = vmatmul.bf16.vlgmr.msrb.gmra.mxu2 %v14892_v56 }
 0x502   : > { %v3717_v14 = vpop.f32.mrf.mxu0 }
 0x503   : > { %v3858_v8 = vpop.f32.mrf.mxu1 }
 0x505   : > { %4118 = vmatmul.bf16.gmra.mxu3 %v14895_v10  ;;  %4272 = vmatmul.bf16.gmra.mxu0 %v14897_v31 }
 0x506   : > { %4400 = vmatmul.bf16.gmra.mxu1 %v14899_v5  ;;  %4554 = vmatmul.bf16.gmra.mxu2 %v14902_v54  ;;  %v14914_v54 = vld [vmem:[#allocation38_spill] sm:$0xff] }
 0x508   : > { %v3626_v46 = vpop.f32.mrf.mxu3 }
 0x509   : > { %v3718_v17 = vadd.f32 %v3717_v14, %v3626_v46  ;;  %v3986_v30 = vpop.f32.mrf.mxu2  ;;  %v14915_v46 = vpack.c.bf16 %v14913_v15, %v14914_v54 }
 0x50a   : > { %v3719_v51 = vpop.f32.mrf.mxu0 }
 0x50b   : > { %v3892_v6 = vadd.f32 %v3858_v8, %v3718_v17  ;;  %v3860_v37 = vpop.f32.mrf.mxu1  ;;  %v14916_v17 = vld [vmem:[#allocation30_spill] sm:$0xff] }
 0x50d   : > { %v12551_v47 = vadd.f32 %v3986_v30, %v3892_v6  ;;  %v14917_v30 = vpack.c.bf16 %v14916_v17, %v14908_v27  ;;  %v14919_v6 = vld [vmem:[#allocation18_spill] sm:$0xff] }
 0x510   : > { %v3628_v59 = vpop.f32.mrf.mxu3 }
 0x511   : > { %v3720_v34 = vadd.f32 %v3719_v51, %v3628_v59  ;;  %v3988_v53 = vpop.f32.mrf.mxu2  ;;  %v14918_v51 = vpack.c.bf16 %v12193_v41, %v14916_v17  ;;  %v14929_v17 = vld [vmem:[#allocation13_spill] sm:$0xff] }
 0x512   : > { %v3722_v52 = vpop.f32.mrf.mxu0 }
 0x513   : > { %v3893_v35 = vadd.f32 %v3860_v37, %v3720_v34  ;;  %v3863_v20 = vpop.f32.mrf.mxu1  ;;  %v14920_v37 = vld [vmem:[#allocation37_spill] sm:$0xff] }
 0x514   : > { %v14921_v16 = vpack.c.bf16 %v14919_v6, %v14920_v37 }
 0x515   : > { %v12556_v62 = vadd.f32 %v3988_v53, %v3893_v35  ;;  %4123 = vmatmul.bf16.gmra.mxu3 %v14905_v29  ;;  %4277 = vmatmul.bf16.gmra.mxu0 %v14907_v44 }
 0x516   : > { %4405 = vmatmul.bf16.gmra.mxu1 %v14909_v63  ;;  %4559 = vmatmul.bf16.gmra.mxu2 %v14912_v40  ;;  %v14922_v63 = vld [vmem:[#allocation39_spill] sm:$0xff]  ;;  %v14925_v40 = vpack.c.bf16 %v12271_v42, %v12193_v41 }
 0x517   : > { %v14924_v49 = vpack.c.bf16 %v14922_v63, %v14923_v33 }
 0x518   : > { %v3631_v43 = vpop.f32.mrf.mxu3 }
 0x519   : > { %v3723_v57 = vadd.f32 %v3722_v52, %v3631_v43  ;;  %v3991_v39 = vpop.f32.mrf.mxu2  ;;  %v14926_v43 = vpack.c.bf16 %v12304_v28, %v12271_v42 }
 0x51a   : > { %v3724_v56 = vpop.f32.mrf.mxu0 }
 0x51b   : > { %v3894_v13 = vadd.f32 %v3863_v20, %v3723_v57  ;;  %v3865_v14 = vpop.f32.mrf.mxu1  ;;  %v14927_v57 = vpack.c.bf16 %v12312_v7, %v12279_v11 }
 0x51d   : > { %v12570_v8 = vadd.f32 %v3991_v39, %v3894_v13  ;;  %v8841_v39 = vld [vmem:[%s14443_s8 + $0x200] sm:$0xff] }
 0x51e   : > { %4702 = vmatpush.bf16.msrb.mxu3 %v8841_v39 }
 0x520   : > { %v3633_v4 = vpop.f32.mrf.mxu3 }
 0x521   : > { %v3725_v10 = vadd.f32 %v3724_v56, %v3633_v4  ;;  %v3993_v58 = vpop.f32.mrf.mxu2 }
 0x522   : > { %v3727_v31 = vpop.f32.mrf.mxu0 }
 0x523   : > { %v3895_v3 = vadd.f32 %v3865_v14, %v3725_v10  ;;  %v3868_v5 = vpop.f32.mrf.mxu1 }
 0x525   : > { %v12575_v18 = vadd.f32 %v3993_v58, %v3895_v3  ;;  %4128 = vmatmul.bf16.gmra.mxu3 %v14915_v46  ;;  %4282 = vmatmul.bf16.gmra.mxu0 %v14917_v30  ;;  %v4475_v30 = vpack.c.bf16 %v14929_v17, %v14929_v17 }
 0x526   : > { %4410 = vmatmul.bf16.gmra.mxu1 %v14918_v51  ;;  %4564 = vmatmul.bf16.gmra.mxu2 %v14921_v16 }
 0x528   : > { %v3636_v59 = vpop.f32.mrf.mxu3 }
 0x529   : > { %v3728_v34 = vadd.f32 %v3727_v31, %v3636_v59  ;;  %v3996_v53 = vpop.f32.mrf.mxu2  ;;  %v14928_v31 = vpack.c.bf16 %v12168_v45, %v12163_v26 }
 0x52a   : > { %v12589_v52 = vpop.f32.mrf.mxu0 }
 0x52b   : > { %v3896_v35 = vadd.f32 %v3868_v5, %v3728_v34  ;;  %v12591_v20 = vpop.f32.mrf.mxu1 }
 0x52d   : > { %v12593_v38 = vadd.f32 %v3996_v53, %v3896_v35 }
 0x530   : > { %v12598_v29 = vpop.f32.mrf.mxu3 }
 0x531   : > { %v12600_v19 = vpop.f32.mrf.mxu2 }
 0x532   : > { %v3732_v44 = vpop.f32.mrf.mxu0 }
 0x533   : > { %v3873_v27 = vpop.f32.mrf.mxu1 }
 0x535   : > { %4133 = vmatmul.bf16.gmra.mxu3 %v14924_v49  ;;  %4287 = vmatmul.bf16.gmra.mxu0 %v14925_v40 }
 0x536   : > { %4415 = vmatmul.bf16.gmra.mxu1 %v14926_v43  ;;  %4569 = vmatmul.bf16.gmra.mxu2 %v14927_v57 }
 0x538   : > { %v3641_v56 = vpop.f32.mrf.mxu3 }
 0x539   : > { %v3733_v13 = vadd.f32 %v3732_v44, %v3641_v56  ;;  %v4001_v14 = vpop.f32.mrf.mxu2  ;;  %v14931_v44 = vld [vmem:[#allocation20_spill] sm:$0xff] }
 0x53a   : > { %v12617_v48 = vpop.f32.mrf.mxu0 }
 0x53b   : > { %v3898_v41 = vadd.f32 %v3873_v27, %v3733_v13  ;;  %v12619_v4 = vpop.f32.mrf.mxu1  ;;  %v14932_v27 = vpack.c.bf16 %v14930_v24, %v14931_v44 }
 0x53d   : > { %v12621_v10 = vadd.f32 %v4001_v14, %v3898_v41 }
 0x540   : > { %v12623_v42 = vpop.f32.mrf.mxu3 }
 0x541   : > { %v12625_v58 = vpop.f32.mrf.mxu2 }
 0x542   : > { %v3737_v11 = vpop.f32.mrf.mxu0 }
 0x543   : > { %v3878_v7 = vpop.f32.mrf.mxu1 }
 0x545   : > { %4138 = vmatmul.bf16.gmra.mxu3 %v14928_v31  ;;  %4292 = vmatmul.bf16.gmra.mxu0 %v4192_v9 }
 0x546   : > { %4420 = vmatmul.bf16.gmra.mxu1 %v4320_v32  ;;  %4574 = vmatmul.bf16.gmra.mxu2 %v4474_v21  ;;  %v4321_v21 = vpack.c.bf16 %v11765_v36, %v11765_v36 }
 0x548   : > { %v3646_v3 = vpop.f32.mrf.mxu3 }
 0x549   : > { %v3738_v5 = vadd.f32 %v3737_v11, %v3646_v3  ;;  %v4006_v15 = vpop.f32.mrf.mxu2  ;;  %v14933_v11 = vld [vmem:[#allocation36_spill] sm:$0xff] }
 0x54a   : > { %v12639_v54 = vpop.f32.mrf.mxu0 }
 0x54b   : > { %v3900_v46 = vadd.f32 %v3878_v7, %v3738_v5  ;;  %v12641_v45 = vpop.f32.mrf.mxu1  ;;  %v14934_v7 = vld [vmem:[#allocation27_spill] sm:$0xff] }
 0x54c   : > { %v14935_v31 = vpack.c.bf16 %v14933_v11, %v14934_v7 }
 0x54d   : > { %v12643_v26 = vadd.f32 %v4006_v15, %v3900_v46 }
 0x550   : > { %v12645_v28 = vpop.f32.mrf.mxu3 }
 0x551   : > { %v12647_v9 = vpop.f32.mrf.mxu2 }
 0x552   : > { %v3742_v1 = vpop.f32.mrf.mxu0 }
 0x553   : > { %v3883_v32 = vpop.f32.mrf.mxu1 }
 0x555   : > { %4143 = vmatmul.bf16.gmra.mxu3 %v4039_v23  ;;  %4297 = vmatmul.bf16.gmra.mxu0 %v4193_v0 }
 0x556   : > { %4425 = vmatmul.bf16.gmra.mxu1 %v4321_v21  ;;  %4579 = vmatmul.bf16.gmra.mxu2 %v4475_v30 }
 0x558   : > { %v3651_v51 = vpop.f32.mrf.mxu3 }
 0x559   : > { %v3743_v6 = vadd.f32 %v3742_v1, %v3651_v51  ;;  %v4011_v37 = vpop.f32.mrf.mxu2 }
 0x55a   : > { %v12657_v16 = vpop.f32.mrf.mxu0 }
 0x55b   : > { %v3902_v59 = vadd.f32 %v3883_v32, %v3743_v6  ;;  %v12659_v25 = vpop.f32.mrf.mxu1 }
 0x55d   : > { %v12661_v34 = vadd.f32 %v4011_v37, %v3902_v59  ;;  %v14936_v37 = vld [vmem:[#allocation33_spill] sm:$0xff] }
 0x55e   : > { %v14937_v59 = vld [vmem:[#allocation21_spill] sm:$0xff] }
 0x560   : > { %v12663_v61 = vpop.f32.mrf.mxu3 }
 0x561   : > { %v12665_v36 = vpop.f32.mrf.mxu2 }
 0x562   : > { %v3747_v53 = vpop.f32.mrf.mxu0 }
 0x563   : > { %v3888_v35 = vpop.f32.mrf.mxu1 }
 0x565   : > { %4703 = vmatmul.bf16.vlgmr.msrb.gmra.mxu3 %v14932_v27 }
 0x568   : > { %v3656_v63 = vpop.f32.mrf.mxu3 }
 0x569   : > { %v3748_v33 = vadd.f32 %v3747_v53, %v3656_v63  ;;  %v4016_v49 = vpop.f32.mrf.mxu2 }
 0x56a   : > { %v3749_v40 = vpop.f32.mrf.mxu0 }
 0x56b   : > { %v3904_v43 = vadd.f32 %v3888_v35, %v3748_v33  ;;  %v3890_v57 = vpop.f32.mrf.mxu1 }
 0x56d   : > { %v12670_v39 = vadd.f32 %v4016_v49, %v3904_v43 }
 0x570   : > { %v3658_v56 = vpop.f32.mrf.mxu3 }
 0x571   : > { %v4018_v13 = vpop.f32.mrf.mxu2 }
 0x572   : > { %v4268_v14 = vpop.f32.mrf.mxu0  ;;  %v14939_v13 = vld [vmem:[#allocation19_spill] sm:$0xff] }
 0x573   : > { %v4396_v41 = vpop.f32.mrf.mxu1 }
 0x575   : > { %4708 = vmatmul.bf16.gmra.mxu3 %v14935_v31 }
 0x578   : > { %v4114_v3 = vpop.f32.mrf.mxu3 }
 0x579   : > { %v4148_v5 = vadd.f32 %v4114_v3, %v12551_v47  ;;  %v4550_v15 = vpop.f32.mrf.mxu2  ;;  %v14938_v47 = vpack.c.bf16 %v14936_v37, %v14937_v59 }
 0x57a   : > { %v12676_v46 = vpop.f32.mrf.mxu0 }
 0x57b   : > { %v4302_v1 = vadd.f32 %v4268_v14, %v4148_v5  ;;  %v12678_v32 = vpop.f32.mrf.mxu1  ;;  %v14940_v14 = vld [vmem:[#allocation17_spill] sm:$0xff] }
 0x57d   : > { %v4430_v23 = vadd.f32 %v4396_v41, %v4302_v1 }
 0x57f   : > { %v12680_v0 = vadd.f32 %v4550_v15, %v4430_v23 }
 0x580   : > { %v4116_v21 = vpop.f32.mrf.mxu3 }
 0x581   : > { %v12683_v17 = vadd.f32 %v4116_v21, %v12556_v62  ;;  %v12685_v30 = vpop.f32.mrf.mxu2 }
 0x582   : > { %v4273_v51 = vpop.f32.mrf.mxu0 }
 0x583   : > { %v4401_v6 = vpop.f32.mrf.mxu1 }
 0x585   : > { %4713 = vmatmul.bf16.gmra.mxu3 %v14938_v47 }
 0x588   : > { %v4119_v53 = vpop.f32.mrf.mxu3 }
 0x589   : > { %v4150_v35 = vadd.f32 %v4119_v53, %v12570_v8  ;;  %v4555_v24 = vpop.f32.mrf.mxu2  ;;  %v14941_v8 = vpack.c.bf16 %v14939_v13, %v14940_v14 }
 0x58a   : > { %v12691_v44 = vpop.f32.mrf.mxu0 }
 0x58b   : > { %v4304_v27 = vadd.f32 %v4273_v51, %v4150_v35  ;;  %v12693_v63 = vpop.f32.mrf.mxu1 }
 0x58d   : > { %v4432_v33 = vadd.f32 %v4401_v6, %v4304_v27  ;;  %v14942_v6 = vpack.c.bf16 %v12316_v50, %v12283_v60 }
 0x58f   : > { %v12695_v62 = vadd.f32 %v4555_v24, %v4432_v33 }
 0x590   : > { %v4121_v49 = vpop.f32.mrf.mxu3 }
 0x591   : > { %v12698_v40 = vadd.f32 %v4121_v49, %v12575_v18  ;;  %v12700_v43 = vpop.f32.mrf.mxu2 }
 0x592   : > { %v4278_v57 = vpop.f32.mrf.mxu0 }
 0x593   : > { %v4406_v56 = vpop.f32.mrf.mxu1 }
 0x595   : > { %4718 = vmatmul.bf16.gmra.mxu3 %v14941_v8 }
 0x598   : > { %v4124_v41 = vpop.f32.mrf.mxu3 }
 0x599   : > { %v4152_v11 = vadd.f32 %v4124_v41, %v12593_v38  ;;  %v4560_v7 = vpop.f32.mrf.mxu2 }
 0x59a   : > { %v12706_v31 = vpop.f32.mrf.mxu0 }
 0x59b   : > { %v4306_v3 = vadd.f32 %v4278_v57, %v4152_v11  ;;  %v12708_v5 = vpop.f32.mrf.mxu1 }
 0x59d   : > { %v4434_v15 = vadd.f32 %v4406_v56, %v4306_v3 }
 0x59f   : > { %v12710_v18 = vadd.f32 %v4560_v7, %v4434_v15 }
 0x5a0   : > { %v12712_v1 = vpop.f32.mrf.mxu3 }
 0x5a1   : > { %v12714_v23 = vpop.f32.mrf.mxu2 }
 0x5a2   : > { %v4283_v21 = vpop.f32.mrf.mxu0 }
 0x5a3   : > { %v4411_v51 = vpop.f32.mrf.mxu1 }
 0x5a5   : > { %4723 = vmatmul.bf16.gmra.mxu3 %v14942_v6 }
 0x5a8   : > { %v4129_v38 = vpop.f32.mrf.mxu3 }
 0x5a9   : > { %v4154_v37 = vadd.f32 %v4129_v38, %v12621_v10  ;;  %v4565_v59 = vpop.f32.mrf.mxu2 }
 0x5aa   : > { %v12720_v47 = vpop.f32.mrf.mxu0 }
 0x5ab   : > { %v4308_v53 = vadd.f32 %v4283_v21, %v4154_v37  ;;  %v12722_v35 = vpop.f32.mrf.mxu1 }
 0x5ad   : > { %v4436_v24 = vadd.f32 %v4411_v51, %v4308_v53 }
 0x5af   : > { %v12724_v27 = vadd.f32 %v4565_v59, %v4436_v24 }
 0x5b0   : > { %v12726_v33 = vpop.f32.mrf.mxu3 }
 0x5b1   : > { %v12728_v49 = vpop.f32.mrf.mxu2 }
 0x5b2   : > { %v4288_v57 = vpop.f32.mrf.mxu0 }
 0x5b3   : > { %v4416_v56 = vpop.f32.mrf.mxu1 }
 0x5b5   : > { %4728 = vmatmul.bf16.gmra.mxu3 %v4628_v22 }
 0x5b8   : > { %v4134_v60 = vpop.f32.mrf.mxu3 }
 0x5b9   : > { %v4156_v50 = vadd.f32 %v4134_v60, %v12643_v26  ;;  %v4570_v10 = vpop.f32.mrf.mxu2  ;;  %v14943_v26 = vld [vmem:[#allocation23_spill] sm:$0xff] }
 0x5ba   : > { %v12734_v13 = vpop.f32.mrf.mxu0  ;;  %v4629_v15 = vpack.c.bf16 %v14943_v26, %v14943_v26 }
 0x5bb   : > { %v4310_v14 = vadd.f32 %v4288_v57, %v4156_v50  ;;  %v12736_v8 = vpop.f32.mrf.mxu1 }
 0x5bd   : > { %v4438_v41 = vadd.f32 %v4416_v56, %v4310_v14 }
 0x5bf   : > { %v12738_v11 = vadd.f32 %v4570_v10, %v4438_v41  ;;  %v8863_v10 = vld [vmem:[%s14445_s10 + $0x70] sm:$0xff] }
 0x5c0   : > { %v12740_v7 = vpop.f32.mrf.mxu3  ;;  %4942 = vmatpush.bf16.msrb.mxu0 %v8863_v10 }
 0x5c1   : > { %v12742_v3 = vpop.f32.mrf.mxu2 }
 0x5c2   : > { %v4293_v12 = vpop.f32.mrf.mxu0 }
 0x5c3   : > { %v4421_v22 = vpop.f32.mrf.mxu1 }
 0x5c5   : > { %4733 = vmatmul.bf16.gmra.mxu3 %v4629_v15 }
 0x5c8   : > { %v4139_v21 = vpop.f32.mrf.mxu3 }
 0x5c9   : > { %v4158_v51 = vadd.f32 %v4139_v21, %v12661_v34  ;;  %v4575_v6 = vpop.f32.mrf.mxu2 }
 0x5ca   : > { %v12750_v38 = vpop.f32.mrf.mxu0 }
 0x5cb   : > { %v4312_v37 = vadd.f32 %v4293_v12, %v4158_v51  ;;  %v12752_v59 = vpop.f32.mrf.mxu1 }
 0x5cd   : > { %v4440_v53 = vadd.f32 %v4421_v22, %v4312_v37 }
 0x5cf   : > { %v12754_v24 = vadd.f32 %v4575_v6, %v4440_v53  ;;  %v8862_v6 = vld [vmem:[%s14445_s10 + $0x68] sm:$0xff] }
 0x5d0   : > { %v12756_v57 = vpop.f32.mrf.mxu3  ;;  %4943 = vmatpush.bf16.msrb.mxu0 %v8862_v6 }
 0x5d1   : > { %v12758_v56 = vpop.f32.mrf.mxu2 }
 0x5d2   : > { %14944 = vst [vmem:[#allocation12_spill] sm:$0xff] %v12758_v56  ;;  %v4298_v60 = vpop.f32.mrf.mxu0 }
 0x5d3   : > { %v4426_v50 = vpop.f32.mrf.mxu1 }
 0x5d8   : > { %v4144_v34 = vpop.f32.mrf.mxu3 }
 0x5d9   : > { %v4160_v14 = vadd.f32 %v4144_v34, %v12670_v39  ;;  %v4580_v41 = vpop.f32.mrf.mxu2  ;;  %v4303_v39 = vadd.f32 %v12676_v46, %v12683_v17  ;;  %v3730_v17 = vadd.f32 %v12589_v52, %v12598_v29 }
 0x5da   : > { %v4300_v55 = vpop.f32.mrf.mxu0 }
 0x5db   : > { %v4314_v12 = vadd.f32 %v4298_v60, %v4160_v14  ;;  %v4428_v22 = vpop.f32.mrf.mxu1  ;;  %v4431_v60 = vadd.f32 %v12678_v32, %v4303_v39  ;;  %v8860_v32 = vld [vmem:[%s14445_s10 + $0x58] sm:$0xff] }
 0x5dc   : > { %v3897_v22 = vadd.f32 %v12591_v20, %v3730_v17 }
 0x5dd   : > { %v4442_v26 = vadd.f32 %v4426_v50, %v4314_v12  ;;  %v8861_v50 = vld [vmem:[%s14445_s10 + $0x60] sm:$0xff]  ;;  %v4585_v14 = vadd.f32 %v12685_v30, %v4431_v60  ;;  %v4305_v30 = vadd.f32 %v12691_v44, %v12698_v40  ;;  %v9098_v44 = vld [vmem:[%s14628_s2 + $0x8] sm:$0xff] }
 0x5de   : > { %4944 = vmatpush.bf16.msrb.mxu0 %v8861_v50  ;;  %v4025_v29 = vadd.f32 %v12600_v19, %v3897_v22 }
 0x5df   : > { %v12764_v15 = vadd.f32 %v4580_v41, %v4442_v26  ;;  %v4433_v26 = vadd.f32 %v12693_v63, %v4305_v30  ;;  %v8859_v30 = vld [vmem:[%s14445_s10 + $0x50] sm:$0xff] }
 0x5e0   : > { %v4146_v21 = vpop.f32.mrf.mxu3 }
 0x5e1   : > { %v4582_v51 = vpop.f32.mrf.mxu2  ;;  %v4587_v6 = vadd.f32 %v12700_v43, %v4433_v26 }
 0x5e2   : > { %4945 = vmatpush.bf16.msrb.mxu0 %v8860_v32  ;;  %v9097_v51 = vld [vmem:[%s14628_s2] sm:$0xff]  ;;  %v3735_v32 = vadd.f32 %v12617_v48, %v12623_v42 }
 0x5e6   : > { %4946 = vmatpush.bf16.msrb.mxu0 %v8859_v30 }
 0x5e8   : > { %v4704_v37 = vpop.f32.mrf.mxu3 }
 0x5e9   : > { %v4738_v53 = vadd.f32 %v4704_v37, %v12680_v0  ;;  %v12781_v0 = vld [vmem:[%s14444_s9] ss:$0 sm:$0xff]  ;;  %v4153_v37 = vadd.f32 %v12712_v1, %v4025_v29 }
 0x5eb   : > { %v4755_v46 = vadd.f32 %v12781_v0, %v4738_v53  ;;  %v4307_v48 = vadd.f32 %v12706_v31, %v4153_v37  ;;  %v9099_v31 = vld [vmem:[%s14628_s2 + $0x10] sm:$0xff] }
 0x5ed   : > { %v4768_v12 = vmax.f32 %v4755_v46, 0.0  ;;  %v4435_v29 = vadd.f32 %v12708_v5, %v4307_v48 }
 0x5ef   : > { %v12798_v52 = vmul.f32 %v9097_v51, %v4768_v12  ;;  %v3740_v51 = vadd.f32 %v12639_v54, %v12645_v28 }
 0x5f0   : > { %v4706_v56 = vpop.f32.mrf.mxu3 }
 0x5f1   : > { %v4739_v41 = vadd.f32 %v4706_v56, %v4585_v14  ;;  %v14577_v60 = vrot.slane %v12798_v52, 6  ;;  %v14575_v50 = vrot.slane %v12798_v52, 5  ;;  %v14574_v19 = vrot.slane %v12798_v52, 7 }
 0x5f2   : > { %v14573_v1 = vrot.slane %v12798_v52, 2  ;;  %v14572_v46 = vrot.slane %v12798_v52, 3 }
 0x5f8   : > { %v4709_v10 = vpop.f32.mrf.mxu3 }
 0x5f9   : > { %v4740_v34 = vadd.f32 %v4709_v10, %v12695_v62  ;;  %v4756_v62 = vadd.f32 %v12781_v0, %v4739_v41 }
 0x5fb   : > { %v4769_v56 = vmax.f32 %v4756_v62, 0.0  ;;  %v4757_v21 = vadd.f32 %v12781_v0, %v4740_v34 }
 0x5fd   : > { %v12804_v40 = vmul.f32 %v9098_v44, %v4769_v56  ;;  %v4770_v53 = vmax.f32 %v4757_v21, 0.0  ;;  %v3899_v21 = vadd.f32 %v12619_v4, %v3735_v32  ;;  %v14576_v4 = vrot.slane %v12798_v52, 1 }
 0x5ff   : > { %v5076_v10 = vrot.slane %v12804_v40, 7  ;;  %v4844_v34 = vrot.slane %v12804_v40, 6  ;;  %v4795_v14 = vrot.slane %v12804_v40, 5  ;;  %v5922_v41 = vrot.slane %v12804_v40, 3 }
 0x600   : > { %v4711_v55 = vpop.f32.mrf.mxu3  ;;  %v12861_v56 = vmul.f32 %v9099_v31, %v4770_v53 }
 0x601   : > { %v4741_v39 = vadd.f32 %v4711_v55, %v4587_v6  ;;  %v12827_v17 = vsel %vm1112_vm0, %v14574_v19, %v5076_v10  ;;  %v12833_v62 = vsel %vm879_vm1, %v14577_v60, %v4844_v34  ;;  %v12839_v55 = vsel %vm829_vm2, %v14575_v50, %v4795_v14 }
 0x602   : > { %v12856_v22 = vsel %vm1961_vm5, %v14572_v46, %v5922_v41  ;;  %14947 = vst [vmem:[#allocation24_spill] sm:$0xff] %v12861_v56  ;;  %v4845_v6 = vrot.slane %v12861_v56, 6  ;;  %v4796_v37 = vrot.slane %v12861_v56, 5  ;;  %v5487_v53 = vrot.slane %v12861_v56, 1 }
 0x603   : > { %v4758_v42 = vadd.f32 %v12781_v0, %v4741_v39  ;;  %14946 = vst [vmem:[#allocation31_spill] sm:$0xff] %v12856_v22  ;;  %v5077_v39 = vrot.slane %v12861_v56, 7  ;;  %v5769_v32 = vrot.slane %v12861_v56, 2  ;;  %v5923_v54 = vrot.slane %v12861_v56, 3 }
 0x604   : > { %v12878_v28 = vsel %vm879_vm1, %v4844_v34, %v4845_v6  ;;  %v12882_v5 = vsel %vm829_vm2, %v4795_v14, %v4796_v37  ;;  %v8872_v34 = vld [vmem:[%s14445_s10 + $0xb8] sm:$0xff] }
 0x605   : > { %v4771_v44 = vmax.f32 %v4758_v42, 0.0  ;;  %v12886_v48 = vsel %vm1112_vm0, %v5076_v10, %v5077_v39  ;;  %v8856_v42 = vld [vmem:[%s14445_s10 + $0x38] sm:$0xff]  ;;  %v12926_v43 = vsel %vm1961_vm5, %v5922_v41, %v5923_v54  ;;  %5173 = vmatpush.bf16.msra.mxu2 %v8872_v34 }
 0x606   : > { %v8880_v14 = vld [vmem:[%s14445_s10 + $0xf8] sm:$0xff]  ;;  %14949 = vst [vmem:[#allocation29_spill] sm:$0xff] %v12926_v43  ;;  %5032 = vmatpush.bf16.msra.mxu1 %v8856_v42 }
 0x607   : > { %5301 = vmatpush.bf16.msra.mxu3 %v8880_v14  ;;  %v8879_v14 = vld [vmem:[%s14445_s10 + $0xf0] sm:$0xff] }
 0x608   : > { %v4714_v20 = vpop.f32.mrf.mxu3 }
 0x609   : > { %v4742_v63 = vadd.f32 %v4714_v20, %v12710_v18  ;;  %v5768_v18 = vrot.slane %v12804_v40, 2  ;;  %v5486_v20 = vrot.slane %v12804_v40, 1 }
 0x60b   : > { %v12850_v12 = vsel %vm1806_vm3, %v14573_v1, %v5768_v18  ;;  %v4759_v30 = vadd.f32 %v12781_v0, %v4742_v63  ;;  %v12890_v63 = vsel %vm1523_vm4, %v5486_v20, %v5487_v53  ;;  %v12911_v46 = vsel %vm1523_vm4, %v14576_v4, %v5486_v20  ;;  %v9100_v1 = vld [vmem:[%s14628_s2 + $0x18] sm:$0xff]  ;;  %5302 = vmatpush.bf16.msra.mxu3 %v8879_v14 }
 0x60c   : > { %14945 = vst [vmem:[#allocation25_spill] sm:$0xff] %v12850_v12  ;;  %v12916_v19 = vmul.f32 %v9100_v1, %v4771_v44  ;;  %v12922_v31 = vsel %vm1806_vm3, %v5768_v18, %v5769_v32  ;;  %v4589_v20 = vadd.f32 %v12714_v23, %v4435_v29  ;;  %v4027_v1 = vadd.f32 %v12625_v58, %v3899_v21  ;;  %v8858_v29 = vld [vmem:[%s14445_s10 + $0x48] sm:$0xff] }
 0x60d   : > { %v3901_v44 = vadd.f32 %v12641_v45, %v3740_v51  ;;  %v4772_v10 = vmax.f32 %v4759_v30, 0.0  ;;  %v9101_v30 = vld [vmem:[%s14628_s2 + $0x20] sm:$0xff]  ;;  %4947 = vmatpush.bf16.msrb.mxu0 %v8858_v29 }
 0x60e   : > { %14948 = vst [vmem:[#allocation34_spill] sm:$0xff] %v12916_v19  ;;  %v5078_v18 = vrot.slane %v12916_v19, 7  ;;  %v4846_v22 = vrot.slane %v12916_v19, 6  ;;  %v4797_v41 = vrot.slane %v12916_v19, 5  ;;  %v5488_v12 = vrot.slane %v12916_v19, 1 }
 0x60f   : > { %v4155_v23 = vadd.f32 %v12726_v33, %v4027_v1  ;;  %v5924_v58 = vrot.slane %v12916_v19, 3  ;;  %v12978_v42 = vmul.f32 %v9101_v30, %v4772_v10  ;;  %v8854_v10 = vld [vmem:[%s14445_s10 + $0x28] sm:$0xff] }
 0x610   : > { %v4716_v26 = vpop.f32.mrf.mxu3  ;;  %v12943_v45 = vsel %vm1112_vm0, %v5077_v39, %v5078_v18  ;;  %v12951_v21 = vsel %vm829_vm2, %v4796_v37, %v4797_v41  ;;  %v12955_v33 = vsel %vm1523_vm4, %v5487_v53, %v5488_v12  ;;  %v8855_v39 = vld [vmem:[%s14445_s10 + $0x30] sm:$0xff] }
 0x611   : > { %v4743_v60 = vadd.f32 %v4716_v26, %v4589_v20  ;;  %v12947_v26 = vsel %vm879_vm1, %v4845_v6, %v4846_v22  ;;  %v8871_v6 = vld [vmem:[%s14445_s10 + $0xb0] sm:$0xff]  ;;  %14950 = vst [vmem:[#allocation14_spill] sm:$0xff] %v12978_v42  ;;  %v12987_v1 = vsel %vm1961_vm5, %v5923_v54, %v5924_v58  ;;  %5033 = vmatpush.bf16.msra.mxu1 %v8855_v39  ;;  %v8870_v54 = vld [vmem:[%s14445_s10 + $0xa8] sm:$0xff]  ;;  %v4798_v29 = vrot.slane %v12978_v42, 5 }
 0x612   : > { %14951 = vst [vmem:[#allocation16_spill] sm:$0xff] %v12987_v1  ;;  %5174 = vmatpush.bf16.msra.mxu2 %v8871_v6  ;;  %v5079_v39 = vrot.slane %v12978_v42, 7  ;;  %v5489_v6 = vrot.slane %v12978_v42, 1  ;;  %v5771_v20 = vrot.slane %v12978_v42, 2  ;;  %v5925_v53 = vrot.slane %v12978_v42, 3 }
 0x613   : > { %v4760_v51 = vadd.f32 %v12781_v0, %v4743_v60 }
 0x615   : > { %5034 = vmatpush.bf16.msra.mxu1 %v8854_v10 }
 0x616   : > { %5175 = vmatpush.bf16.msra.mxu2 %v8870_v54 }
 0x618   : > { %v4719_v50 = vpop.f32.mrf.mxu3 }
 0x619   : > { %v4744_v4 = vadd.f32 %v4719_v50, %v12724_v27  ;;  %v5770_v27 = vrot.slane %v12916_v19, 2  ;;  %v4309_v50 = vadd.f32 %v12720_v47, %v4155_v23  ;;  %v4773_v47 = vmax.f32 %v4760_v51, 0.0  ;;  %v8869_v51 = vld [vmem:[%s14445_s10 + $0xa0] sm:$0xff] }
 0x61a   : > { %v4847_v23 = vrot.slane %v12978_v42, 6  ;;  %5176 = vmatpush.bf16.msra.mxu2 %v8869_v51 }
 0x61b   : > { %v12973_v60 = vsel %vm1806_vm3, %v5769_v32, %v5770_v27  ;;  %v3745_v32 = vadd.f32 %v12657_v16, %v12663_v61  ;;  %v8878_v16 = vld [vmem:[%s14445_s10 + $0xe8] sm:$0xff]  ;;  %v4029_v61 = vadd.f32 %v12647_v9, %v3901_v44  ;;  %v4437_v30 = vadd.f32 %v12722_v35, %v4309_v50  ;;  %v8853_v50 = vld [vmem:[%s14445_s10 + $0x20] sm:$0xff] }
 0x61c   : > { %5303 = vmatpush.bf16.msra.mxu3 %v8878_v16  ;;  %v13014_v9 = vsel %vm879_vm1, %v4846_v22, %v4847_v23  ;;  %v13018_v44 = vsel %vm829_vm2, %v4797_v41, %v4798_v29  ;;  %v4761_v35 = vadd.f32 %v12781_v0, %v4744_v4  ;;  %v8877_v22 = vld [vmem:[%s14445_s10 + $0xe0] sm:$0xff]  ;;  %v13047_v16 = vsel %vm1523_vm4, %v5488_v12, %v5489_v6  ;;  %v8852_v12 = vld [vmem:[%s14445_s10 + $0x18] sm:$0xff] }
 0x61d   : > { %v3903_v14 = vadd.f32 %v12659_v25, %v3745_v32  ;;  %v13022_v25 = vsel %vm1112_vm0, %v5078_v18, %v5079_v39  ;;  %v9102_v32 = vld [vmem:[%s14628_s2 + $0x28] sm:$0xff]  ;;  %14953 = vst [vmem:[#allocation11_spill] sm:$0xff] %v13047_v16  ;;  %v13051_v41 = vsel %vm1806_vm3, %v5770_v27, %v5771_v20  ;;  %v13055_v18 = vsel %vm1961_vm5, %v5924_v58, %v5925_v53  ;;  %v8868_v58 = vld [vmem:[%s14445_s10 + $0x98] sm:$0xff]  ;;  %v8875_v27 = vld [vmem:[%s14445_s10 + $0xd0] sm:$0xff] }
 0x61e   : > { %v13043_v10 = vmul.f32 %v9102_v32, %v4773_v47  ;;  %14954 = vst [vmem:[#allocation26_spill] sm:$0xff] %v13051_v41  ;;  %v4591_v4 = vadd.f32 %v12728_v49, %v4437_v30  ;;  %v4157_v37 = vadd.f32 %v12740_v7, %v4029_v61  ;;  %5035 = vmatpush.bf16.msra.mxu1 %v8853_v50  ;;  %v8876_v49 = vld [vmem:[%s14445_s10 + $0xd8] sm:$0xff]  ;;  %v4774_v7 = vmax.f32 %v4761_v35, 0.0  ;;  %v8857_v35 = vld [vmem:[%s14445_s10 + $0x40] sm:$0xff] }
 0x61f   : > { %14955 = vst [vmem:[#allocation15_spill] sm:$0xff] %v13055_v18  ;;  %5177 = vmatpush.bf16.msra.mxu2 %v8868_v58  ;;  %v9103_v58 = vld [vmem:[%s14628_s2 + $0x30] sm:$0xff]  ;;  %4948 = vmatpush.bf16.msrb.mxu0 %v8857_v35  ;;  %v8865_v18 = vld [vmem:[%s14445_s10 + $0x80] sm:$0xff]  ;;  %v14975_v41 = vrot.slane %v12798_v52, 6  ;;  %v14987_v2 = vpack.c.bf16 %v13022_v25, %v12943_v45 }
 0x620   : > { %v4721_v34 = vpop.f32.mrf.mxu3  ;;  %14952 = vst [vmem:[#allocation32_spill] sm:$0xff] %v13043_v10  ;;  %5304 = vmatpush.bf16.msra.mxu3 %v8877_v22  ;;  %v5080_v61 = vrot.slane %v13043_v10, 7  ;;  %v4848_v50 = vrot.slane %v13043_v10, 6  ;;  %v4799_v32 = vrot.slane %v13043_v10, 5  ;;  %v5490_v51 = vrot.slane %v13043_v10, 1 }
 0x621   : > { %v4745_v30 = vadd.f32 %v4721_v34, %v4591_v4  ;;  %v4311_v22 = vadd.f32 %v12734_v13, %v4157_v37  ;;  %v8851_v4 = vld [vmem:[%s14445_s10 + $0x10] sm:$0xff] }
 0x622   : > { %5036 = vmatpush.bf16.msra.mxu1 %v8852_v12  ;;  %v13085_v34 = vsel %vm1112_vm0, %v5079_v39, %v5080_v61  ;;  %v13093_v13 = vsel %vm829_vm2, %v4798_v29, %v4799_v32  ;;  %v8867_v39 = vld [vmem:[%s14445_s10 + $0x90] sm:$0xff]  ;;  %v13109_v29 = vsel %vm1523_vm4, %v5489_v6, %v5490_v51 }
 0x623   : > { %v4762_v37 = vadd.f32 %v12781_v0, %v4745_v30  ;;  %14956 = vst [vmem:[#allocation35_spill] sm:$0xff] %v13109_v29  ;;  %v4439_v43 = vadd.f32 %v12736_v8, %v4311_v22  ;;  %5178 = vmatpush.bf16.msra.mxu2 %v8867_v39  ;;  %v8874_v8 = vld [vmem:[%s14445_s10 + $0xc8] sm:$0xff] }
 0x624   : > { %5305 = vmatpush.bf16.msra.mxu3 %v8876_v49  ;;  %v13118_v49 = vmul.f32 %v9103_v58, %v4774_v7  ;;  %v8850_v58 = vld [vmem:[%s14445_s10 + $0x8] sm:$0xff] }
 0x625   : > { %v4593_v39 = vadd.f32 %v12742_v3, %v4439_v43  ;;  %v8873_v3 = vld [vmem:[%s14445_s10 + $0xc0] sm:$0xff] }
 0x626   : > { %14958 = vst [vmem:[#allocation30_spill] sm:$0xff] %v13118_v49  ;;  %5037 = vmatpush.bf16.msra.mxu1 %v8851_v4  ;;  %v4800_v22 = vrot.slane %v13118_v49, 5  ;;  %v5081_v35 = vrot.slane %v13118_v49, 7  ;;  %v5491_v4 = vrot.slane %v13118_v49, 1  ;;  %v5773_v6 = vrot.slane %v13118_v49, 2 }
 0x628   : > { %v4724_v54 = vpop.f32.mrf.mxu3  ;;  %5306 = vmatpush.bf16.msra.mxu3 %v8875_v27  ;;  %v13167_v43 = vsel %vm829_vm2, %v4799_v32, %v4800_v22  ;;  %v13191_v1 = vsel %vm1523_vm4, %v5490_v51, %v5491_v4 }
 0x629   : > { %v13060_v47 = vadd.f32 %v4724_v54, %v12738_v11  ;;  %v4031_v11 = vadd.f32 %v12665_v36, %v3903_v14  ;;  %v5772_v54 = vrot.slane %v13043_v10, 2  ;;  %v5926_v36 = vrot.slane %v13043_v10, 3  ;;  %14961 = vst [vmem:[#allocation39_spill] sm:$0xff] %v13191_v1 }
 0x62a   : > { %v13089_v14 = vsel %vm879_vm1, %v4847_v23, %v4848_v50  ;;  %5038 = vmatpush.bf16.msra.mxu1 %v8850_v58  ;;  %v8849_v23 = vld [vmem:[%s14445_s10] sm:$0xff] }
 0x62b   : > { %v13113_v12 = vsel %vm1806_vm3, %v5771_v20, %v5772_v54  ;;  %v13129_v20 = vsel %vm1961_vm5, %v5925_v53, %v5926_v36  ;;  %v4159_v7 = vadd.f32 %v12756_v57, %v4031_v11  ;;  %v8866_v53 = vld [vmem:[%s14445_s10 + $0x88] sm:$0xff]  ;;  %v4775_v57 = vmax.f32 %v4762_v37, 0.0 }
 0x62c   : > { %14957 = vst [vmem:[#allocation38_spill] sm:$0xff] %v13113_v12  ;;  %v4849_v11 = vrot.slane %v13118_v49, 6  ;;  %v5927_v37 = vrot.slane %v13118_v49, 3  ;;  %5179 = vmatpush.bf16.msra.mxu2 %v8866_v53  ;;  %5307 = vmatpush.bf16.msra.mxu3 %v8874_v8  ;;  %v4763_v58 = vadd.f32 %v12781_v0, %v13060_v47  ;;  %v8888_v53 = vld [vmem:[%s14445_s10 + $0x138] sm:$0xff]  ;;  %v13195_v8 = vsel %vm1806_vm3, %v5772_v54, %v5773_v6 }
 0x62d   : > { %14959 = vst [vmem:[#allocation18_spill] sm:$0xff] %v13129_v20  ;;  %v4313_v27 = vadd.f32 %v12750_v38, %v4159_v7  ;;  %v13171_v7 = vsel %vm1112_vm0, %v5080_v61, %v5081_v35  ;;  %v9104_v61 = vld [vmem:[%s14628_s2 + $0x38] sm:$0xff]  ;;  %5429 = vmatpush.bf16.msra.mxu0 %v8888_v53 }
 0x62e   : > { %v13163_v38 = vsel %vm879_vm1, %v4848_v50, %v4849_v11  ;;  %v13187_v20 = vmul.f32 %v9104_v61, %v4775_v57  ;;  %14962 = vst [vmem:[#allocation22_spill] sm:$0xff] %v13195_v8  ;;  %v13199_v50 = vsel %vm1961_vm5, %v5926_v36, %v5927_v37  ;;  %5039 = vmatpush.bf16.msra.mxu1 %v8849_v23  ;;  %v8887_v57 = vld [vmem:[%s14445_s10 + $0x130] sm:$0xff]  ;;  %v4776_v54 = vmax.f32 %v4763_v58, 0.0 }
 0x62f   : > { %14963 = vst [vmem:[#allocation13_spill] sm:$0xff] %v13199_v50  ;;  %v4441_v32 = vadd.f32 %v12752_v59, %v4313_v27  ;;  %v14964_v23 = vld [vmem:[#allocation12_spill] sm:$0xff] }
 0x630   : > { %v4726_v30 = vpop.f32.mrf.mxu3  ;;  %14960 = vst [vmem:[#allocation37_spill] sm:$0xff] %v13187_v20  ;;  %5180 = vmatpush.bf16.msra.mxu2 %v8865_v18  ;;  %5308 = vmatpush.bf16.msra.mxu3 %v8873_v3  ;;  %v5082_v36 = vrot.slane %v13187_v20, 7  ;;  %v4850_v10 = vrot.slane %v13187_v20, 6  ;;  %v4801_v59 = vrot.slane %v13187_v20, 5  ;;  %v5774_v53 = vrot.slane %v13187_v20, 2 }
 0x631   : > { %v4747_v61 = vadd.f32 %v4726_v30, %v4593_v39  ;;  %v4595_v27 = vadd.f32 %v14964_v23, %v4441_v32  ;;  %5430 = vmatpush.bf16.msra.mxu0 %v8887_v57  ;;  %v5928_v18 = vrot.slane %v13187_v20, 3 }
 0x632   : > { %v13219_v30 = vsel %vm1112_vm0, %v5081_v35, %v5082_v36  ;;  %v13223_v39 = vsel %vm879_vm1, %v4849_v11, %v4850_v10  ;;  %v13227_v3 = vsel %vm829_vm2, %v4800_v22, %v4801_v59  ;;  %v13240_v11 = vsel %vm1806_vm3, %v5773_v6, %v5774_v53  ;;  %v9105_v22 = vld [vmem:[%s14628_s2 + $0x40] sm:$0xff]  ;;  %v8886_v6 = vld [vmem:[%s14445_s10 + $0x128] sm:$0xff] }
 0x633   : > { %v4764_v32 = vadd.f32 %v12781_v0, %v4747_v61  ;;  %14966 = vst [vmem:[#allocation20_spill] sm:$0xff] %v13240_v11  ;;  %v13245_v23 = vmul.f32 %v9105_v22, %v4776_v54 }
 0x635   : > { %14967 = vst [vmem:[#allocation36_spill] sm:$0xff] %v13245_v23  ;;  %v4777_v57 = vmax.f32 %v4764_v32, 0.0  ;;  %v4851_v54 = vrot.slane %v13245_v23, 6  ;;  %v4802_v22 = vrot.slane %v13245_v23, 5  ;;  %v5493_v61 = vrot.slane %v13245_v23, 1  ;;  %5431 = vmatpush.bf16.msra.mxu0 %v8886_v6 }
 0x638   : > { %v4729_v47 = vpop.f32.mrf.mxu3 }
 0x639   : > { %v4748_v42 = vadd.f32 %v4729_v47, %v12754_v24  ;;  %v5492_v24 = vrot.slane %v13187_v20, 1  ;;  %v13251_v47 = vsel %vm1961_vm5, %v5927_v37, %v5928_v18  ;;  %v5083_v20 = vrot.slane %v13245_v23, 7 }
 0x63a   : > { %14968 = vst [vmem:[#allocation27_spill] sm:$0xff] %v13251_v47  ;;  %v5775_v37 = vrot.slane %v13245_v23, 2  ;;  %v9108_v47 = vld [vmem:[%s14628_s2 + $0x58] sm:$0xff] }
 0x63b   : > { %v13231_v58 = vsel %vm1523_vm4, %v5491_v4, %v5492_v24  ;;  %v4765_v35 = vadd.f32 %v12781_v0, %v4748_v42  ;;  %v5929_v42 = vrot.slane %v13245_v23, 3  ;;  %v13273_v32 = vsel %vm1112_vm0, %v5082_v36, %v5083_v20  ;;  %v9106_v36 = vld [vmem:[%s14628_s2 + $0x48] sm:$0xff] }
 0x63c   : > { %14965 = vst [vmem:[#allocation28_spill] sm:$0xff] %v13231_v58  ;;  %v13297_v11 = vsel %vm1806_vm3, %v5774_v53, %v5775_v37 }
 0x63d   : > { %v4778_v8 = vmax.f32 %v4765_v35, 0.0  ;;  %14971 = vst [vmem:[#allocation19_spill] sm:$0xff] %v13297_v11 }
 0x640   : > { %v4731_v4 = vpop.f32.mrf.mxu3 }
 0x641   : > { %v4749_v51 = vadd.f32 %v4731_v4, %v4595_v27  ;;  %v13265_v27 = vsel %vm879_vm1, %v4850_v10, %v4851_v54  ;;  %v13277_v4 = vsel %vm1523_vm4, %v5492_v24, %v5493_v61  ;;  %v13291_v24 = vmul.f32 %v9106_v36, %v4777_v57  ;;  %v9107_v57 = vld [vmem:[%s14628_s2 + $0x50] sm:$0xff] }
 0x642   : > { %14969 = vst [vmem:[#allocation33_spill] sm:$0xff] %v13277_v4  ;;  %v13307_v36 = vmul.f32 %v9107_v57, %v4778_v8 }
 0x643   : > { %v4766_v49 = vadd.f32 %v12781_v0, %v4749_v51  ;;  %v13269_v51 = vsel %vm829_vm2, %v4801_v59, %v4802_v22  ;;  %14970 = vst [vmem:[#allocation21_spill] sm:$0xff] %v13291_v24  ;;  %v13301_v59 = vsel %vm1961_vm5, %v5928_v18, %v5929_v42  ;;  %v5084_v18 = vrot.slane %v13291_v24, 7 }
 0x644   : > { %14972 = vst [vmem:[#allocation17_spill] sm:$0xff] %v13301_v59  ;;  %v4852_v58 = vrot.slane %v13291_v24, 6  ;;  %v5494_v6 = vrot.slane %v13291_v24, 1  ;;  %v5776_v8 = vrot.slane %v13291_v24, 2  ;;  %v5930_v1 = vrot.slane %v13291_v24, 3 }
 0x645   : > { %v4779_v35 = vmax.f32 %v4766_v49, 0.0  ;;  %v4853_v56 = vrot.slane %v13307_v36, 6  ;;  %v4804_v19 = vrot.slane %v13307_v36, 5 }
 0x647   : > { %v13312_v10 = vmul.f32 %v9108_v47, %v4779_v35  ;;  %v13325_v47 = vsel %vm1112_vm0, %v5083_v20, %v5084_v18  ;;  %v13337_v35 = vsel %vm1523_vm4, %v5493_v61, %v5494_v6 }
 0x648   : > { %v4734_v49 = vpop.f32.mrf.mxu3 }
 0x649   : > { %v4750_v50 = vadd.f32 %v4734_v49, %v12764_v15  ;;  %v4803_v15 = vrot.slane %v13291_v24, 5  ;;  %v4854_v61 = vrot.slane %v13312_v10, 6  ;;  %v4805_v24 = vrot.slane %v13312_v10, 5 }
 0x64b   : > { %v4767_v53 = vadd.f32 %v12781_v0, %v4750_v50  ;;  %v13329_v0 = vsel %vm879_vm1, %v4851_v54, %v4852_v58  ;;  %v13333_v50 = vsel %vm829_vm2, %v4802_v22, %v4803_v15  ;;  %v13350_v22 = vsel %vm1806_vm3, %v5775_v37, %v5776_v8 }
 0x64c   : > { %14973 = vst [vmem:[#allocation23_spill] sm:$0xff] %v13350_v22  ;;  %v5086_v37 = vrot.slane %v13312_v10, 7  ;;  %v14976_v22 = vrot.slane %v12798_v52, 5 }
 0x64d   : > { %v4780_v49 = vmax.f32 %v4767_v53, 0.0  ;;  %v9109_v53 = vld [vmem:[%s14628_s2 + $0x60] sm:$0xff] }
 0x64f   : > { %v13342_v57 = vmul.f32 %v9109_v53, %v4780_v49  ;;  %v13358_v49 = vsel %vm1961_vm5, %v5929_v42, %v5930_v1 }
 0x650   : > { %v4736_v23 = vpop.f32.mrf.mxu3  ;;  %14974 = vst [vmem:[#allocation12_spill] sm:$0xff] %v13358_v49  ;;  %v14977_v49 = vrot.slane %v12798_v52, 7 }
 0x651   : > { %v4855_v53 = vrot.slane %v13342_v57, 6  ;;  %v4806_v54 = vrot.slane %v13342_v57, 5  ;;  %v5087_v20 = vrot.slane %v13342_v57, 7 }
 0x653   : > { %v4856_v4 = vsel %vm879_vm1, %v4854_v61, %v4855_v53  ;;  %v4868_v42 = vsel %vm879_vm1, %v4855_v53, %v14975_v41  ;;  %v4807_v11 = vsel %vm829_vm2, %v4805_v24, %v4806_v54  ;;  %v4819_v12 = vsel %vm829_vm2, %v4806_v54, %v14976_v22 }
 0x654   : > { %v4869_v29 = vpack.c.bf16 %v4868_v42, %v4856_v4  ;;  %v4820_v23 = vpack.c.bf16 %v4819_v12, %v4807_v11  ;;  %v13380_v59 = vsel %vm1112_vm0, %v5086_v37, %v5087_v20  ;;  %v5100_v16 = vsel %vm1112_vm0, %v5087_v20, %v14977_v49 }
 0x655   : > { %v5101_v41 = vpack.c.bf16 %v5100_v16, %v13380_v59  ;;  %v5229_v53 = vpack.c.bf16 %v12827_v17, %v5100_v16  ;;  %v5085_v12 = vrot.slane %v13307_v36, 7  ;;  %v5495_v11 = vrot.slane %v13307_v36, 1  ;;  %v8885_v16 = vld [vmem:[%s14445_s10 + $0x120] sm:$0xff] }
 0x656   : > { %4949 = vmatmul.bf16.vlgmr.msrb.gmra.mxu0 %v4869_v29  ;;  %5040 = vmatmul.bf16.vlgmr.msra.gmra.mxu1 %v4820_v23  ;;  %v5777_v4 = vrot.slane %v13307_v36, 2  ;;  %v5931_v54 = vrot.slane %v13307_v36, 3  ;;  %v13399_v20 = vsel %vm879_vm1, %v4852_v58, %v4853_v56  ;;  %v13403_v29 = vsel %vm829_vm2, %v4803_v15, %v4804_v19 }
 0x657   : > { %5181 = vmatmul.bf16.vlgmr.msra.gmra.mxu2 %v5101_v41  ;;  %5309 = vmatmul.bf16.vlgmr.msra.gmra.mxu3 %v5229_v53  ;;  %v13411_v23 = vsel %vm1112_vm0, %v5084_v18, %v5085_v12  ;;  %v13415_v42 = vsel %vm1523_vm4, %v5494_v6, %v5495_v11  ;;  %v5496_v18 = vrot.slane %v13312_v10, 1  ;;  %v5778_v6 = vrot.slane %v13312_v10, 2 }
 0x658   : > { %5432 = vmatpush.bf16.msra.mxu0 %v8885_v16  ;;  %v13423_v41 = vsel %vm1806_vm3, %v5776_v8, %v5777_v4  ;;  %v13427_v53 = vsel %vm1961_vm5, %v5930_v1, %v5931_v54  ;;  %v5932_v58 = vrot.slane %v13312_v10, 3  ;;  %v13436_v15 = vsel %vm1112_vm0, %v5085_v12, %v5086_v37 }
 0x659   : > { %v13440_v8 = vsel %vm879_vm1, %v4853_v56, %v4854_v61  ;;  %v13444_v1 = vsel %vm829_vm2, %v4804_v19, %v4805_v24  ;;  %v13448_v49 = vsel %vm1523_vm4, %v5495_v11, %v5496_v18  ;;  %v13456_v37 = vsel %vm1806_vm3, %v5777_v4, %v5778_v6 }
 0x65a   : > { %v13460_v56 = vsel %vm1961_vm5, %v5931_v54, %v5932_v58  ;;  %v5497_v61 = vrot.slane %v13342_v57, 1  ;;  %v5779_v12 = vrot.slane %v13342_v57, 2  ;;  %v5933_v11 = vrot.slane %v13342_v57, 3 }
 0x65b   : > { %v14978_v4 = vpack.c.bf16 %v12878_v28, %v12833_v62  ;;  %v14979_v54 = vpack.c.bf16 %v12882_v5, %v12839_v55  ;;  %v14980_v24 = vrot.slane %v12798_v52, 1  ;;  %v14981_v62 = vpack.c.bf16 %v12886_v48, %v12827_v17  ;;  %v8884_v28 = vld [vmem:[%s14445_s10 + $0x118] sm:$0xff] }
 0x65c   : > { %v13477_v19 = vsel %vm1523_vm4, %v5496_v18, %v5497_v61  ;;  %v13487_v16 = vsel %vm1806_vm3, %v5778_v6, %v5779_v12  ;;  %v14982_v55 = vpack.c.bf16 %v12943_v45, %v12886_v48  ;;  %v14983_v6 = vrot.slane %v12798_v52, 2  ;;  %5433 = vmatpush.bf16.msra.mxu0 %v8884_v28  ;;  %v8910_v28 = vld [vmem:[%s14445_s10 + $0x1e8] sm:$0xff] }
 0x65d   : > { %v13483_v22 = vsel %vm1523_vm4, %v5497_v61, %v14980_v24  ;;  %v5516_v5 = vpack.c.bf16 %v13477_v19, %v13448_v49  ;;  %v13510_v48 = vsel %vm1961_vm5, %v5932_v58, %v5933_v11  ;;  %v14984_v24 = vrot.slane %v12798_v52, 3 }
 0x65e   : > { %v5644_v18 = vpack.c.bf16 %v13483_v22, %v13477_v19  ;;  %v13506_v17 = vsel %vm1806_vm3, %v5779_v12, %v14983_v6  ;;  %v14985_v12 = vpack.c.bf16 %v13014_v9, %v12947_v26  ;;  %v14986_v58 = vpack.c.bf16 %v13018_v44, %v12951_v21  ;;  %v8896_v44 = vld [vmem:[%s14445_s10 + $0x178] sm:$0xff]  ;;  %v8893_v6 = vld [vmem:[%s14445_s10 + $0x160] sm:$0xff] }
 0x65f   : > { %v13516_v61 = vsel %vm1961_vm5, %v5933_v11, %v14984_v24  ;;  %v14988_v11 = vpack.c.bf16 %v13085_v34, %v13022_v25  ;;  %v14989_v26 = vpack.c.bf16 %v13163_v38, %v13089_v14  ;;  %v14990_v21 = vpack.c.bf16 %v13167_v43, %v13093_v13  ;;  %v8904_v25 = vld [vmem:[%s14445_s10 + $0x1b8] sm:$0xff]  ;;  %5583 = vmatpush.bf16.msrb.mxu1 %v8896_v44  ;;  %v8895_v13 = vld [vmem:[%s14445_s10 + $0x170] sm:$0xff]  ;;  %v8901_v24 = vld [vmem:[%s14445_s10 + $0x1a0] sm:$0xff] }
 0x660   : > { %v14991_v45 = vpack.c.bf16 %v13171_v7, %v13085_v34  ;;  %v14992_v9 = vpack.c.bf16 %v13219_v30, %v13171_v7  ;;  %v8912_v14 = vld [vmem:[%s14445_s10 + $0x1f8] sm:$0xff]  ;;  %v8882_v34 = vld [vmem:[%s14445_s10 + $0x108] sm:$0xff]  ;;  %5711 = vmatpush.bf16.msrb.mxu2 %v8904_v25  ;;  %v8903_v38 = vld [vmem:[%s14445_s10 + $0x1b0] sm:$0xff]  ;;  %v5363_v19 = vpack.c.bf16 %v13342_v57, %v13342_v57 }
 0x661   : > { %5865 = vmatpush.bf16.msrb.mxu3 %v8912_v14  ;;  %v8911_v43 = vld [vmem:[%s14445_s10 + $0x1f0] sm:$0xff]  ;;  %v8894_v7 = vld [vmem:[%s14445_s10 + $0x168] sm:$0xff]  ;;  %v8889_v44 = vld [vmem:[%s14445_s10 + $0x140] sm:$0xff] }
 0x662   : > { %v8897_v25 = vld [vmem:[%s14445_s10 + $0x180] sm:$0xff] }
 0x663   : > { %5584 = vmatpush.bf16.msrb.mxu1 %v8895_v13  ;;  %v8905_v14 = vld [vmem:[%s14445_s10 + $0x1c0] sm:$0xff]  ;;  %v14998_v13 = vpack.c.bf16 %v13403_v29, %v13333_v50  ;;  %v4826_v50 = vpack.c.bf16 %v13444_v1, %v13444_v1  ;;  %v5235_v29 = vpack.c.bf16 %v13380_v59, %v13380_v59  ;;  %v15002_v1 = vpack.c.bf16 %v12890_v63, %v12911_v46 }
 0x664   : > { %5712 = vmatpush.bf16.msrb.mxu2 %v8903_v38  ;;  %v14999_v38 = vpack.c.bf16 %v13411_v23, %v13325_v47  ;;  %v15003_v59 = vpack.c.bf16 %v12955_v33, %v12890_v63 }
 0x665   : > { %5866 = vmatpush.bf16.msrb.mxu3 %v8911_v43  ;;  %v15000_v43 = vpack.c.bf16 %v13436_v15, %v13411_v23  ;;  %v8918_v23 = vld [vmem:[%s14445_s10 + $0x228] sm:$0xff] }
 0x666   : > { %4954 = vmatmul.bf16.gmra.mxu0 %v14978_v4  ;;  %5045 = vmatmul.bf16.gmra.mxu1 %v14979_v54  ;;  %v5798_v4 = vpack.c.bf16 %v13506_v17, %v13487_v16  ;;  %v5952_v54 = vpack.c.bf16 %v13516_v61, %v13510_v48  ;;  %v5517_v16 = vpack.c.bf16 %v13483_v22, %v13483_v22 }
 0x667   : > { %5186 = vmatmul.bf16.gmra.mxu2 %v14981_v62  ;;  %5314 = vmatmul.bf16.gmra.mxu3 %v14982_v55  ;;  %v8883_v62 = vld [vmem:[%s14445_s10 + $0x110] sm:$0xff]  ;;  %v8902_v55 = vld [vmem:[%s14445_s10 + $0x1a8] sm:$0xff]  ;;  %v5645_v17 = vpack.c.bf16 %v12911_v46, %v12911_v46 }
 0x668   : > { %5434 = vmatpush.bf16.msra.mxu0 %v8883_v62  ;;  %5585 = vmatpush.bf16.msrb.mxu1 %v8894_v7  ;;  %v14996_v62 = vpack.c.bf16 %v13325_v47, %v13273_v32  ;;  %v8920_v7 = vld [vmem:[%s14445_s10 + $0x238] sm:$0xff]  ;;  %v8919_v47 = vld [vmem:[%s14445_s10 + $0x230] sm:$0xff] }
 0x669   : > { %5713 = vmatpush.bf16.msrb.mxu2 %v8902_v55  ;;  %5867 = vmatpush.bf16.msrb.mxu3 %v8910_v28  ;;  %v8917_v55 = vld [vmem:[%s14445_s10 + $0x220] sm:$0xff] }
 0x66c   : > { %5435 = vmatpush.bf16.msra.mxu0 %v8882_v34  ;;  %5586 = vmatpush.bf16.msrb.mxu1 %v8893_v6  ;;  %v14997_v34 = vpack.c.bf16 %v13399_v20, %v13329_v0  ;;  %v4875_v0 = vpack.c.bf16 %v13440_v8, %v13440_v8  ;;  %v5107_v20 = vpack.c.bf16 %v13436_v15, %v13436_v15  ;;  %v15005_v6 = vld [vmem:[#allocation34_spill] sm:$0xff] }
 0x66d   : > { %5714 = vmatpush.bf16.msrb.mxu2 %v8901_v24  ;;  %v15001_v8 = vpack.c.bf16 %v12804_v40, %v12798_v52  ;;  %v15004_v15 = vpack.c.bf16 %v12973_v60, %v12922_v31  ;;  %v15006_v24 = vld [vmem:[#allocation24_spill] sm:$0xff]  ;;  %v15012_v60 = vld [vmem:[#allocation38_spill] sm:$0xff] }
 0x676   : > { %4959 = vmatmul.bf16.gmra.mxu0 %v14985_v12  ;;  %5050 = vmatmul.bf16.gmra.mxu1 %v14986_v58  ;;  %v8909_v12 = vld [vmem:[%s14445_s10 + $0x1e0] sm:$0xff]  ;;  %v14993_v58 = vpack.c.bf16 %v13265_v27, %v13223_v39  ;;  %v8900_v39 = vld [vmem:[%s14445_s10 + $0x198] sm:$0xff]  ;;  %v8891_v27 = vld [vmem:[%s14445_s10 + $0x150] sm:$0xff] }
 0x677   : > { %5191 = vmatmul.bf16.gmra.mxu2 %v14987_v2  ;;  %5319 = vmatmul.bf16.gmra.mxu3 %v14988_v11  ;;  %v14994_v2 = vpack.c.bf16 %v13269_v51, %v13227_v3  ;;  %v14995_v11 = vpack.c.bf16 %v13273_v32, %v13219_v30  ;;  %v8908_v3 = vld [vmem:[%s14445_s10 + $0x1d8] sm:$0xff]  ;;  %v8881_v30 = vld [vmem:[%s14445_s10 + $0x100] sm:$0xff]  ;;  %v8899_v51 = vld [vmem:[%s14445_s10 + $0x190] sm:$0xff] }
 0x678   : > { %5868 = vmatpush.bf16.msrb.mxu3 %v8909_v12  ;;  %5715 = vmatpush.bf16.msrb.mxu2 %v8900_v39  ;;  %v8907_v32 = vld [vmem:[%s14445_s10 + $0x1d0] sm:$0xff]  ;;  %v15007_v12 = vpack.c.bf16 %v15005_v6, %v15006_v24 }
 0x679   : > { %5436 = vmatpush.bf16.msra.mxu0 %v8881_v30 }
 0x67c   : > { %5869 = vmatpush.bf16.msrb.mxu3 %v8908_v3  ;;  %5716 = vmatpush.bf16.msrb.mxu2 %v8899_v51 }
 0x67d   : > { %6019 = vmatpush.bf16.msrb.mxu0 %v8920_v7  ;;  %v15018_v7 = vld [vmem:[#allocation39_spill] sm:$0xff] }
 0x680   : > { %5870 = vmatpush.bf16.msrb.mxu3 %v8907_v32 }
 0x681   : > { %6020 = vmatpush.bf16.msrb.mxu0 %v8919_v47 }
 0x685   : > { %6021 = vmatpush.bf16.msrb.mxu0 %v8918_v23 }
 0x686   : > { %4964 = vmatmul.bf16.gmra.mxu0 %v14989_v26  ;;  %5055 = vmatmul.bf16.gmra.mxu1 %v14990_v21  ;;  %v8892_v26 = vld [vmem:[%s14445_s10 + $0x158] sm:$0xff]  ;;  %v8890_v21 = vld [vmem:[%s14445_s10 + $0x148] sm:$0xff] }
 0x687   : > { %5196 = vmatmul.bf16.gmra.mxu2 %v14991_v45  ;;  %5324 = vmatmul.bf16.gmra.mxu3 %v14992_v9  ;;  %v8898_v45 = vld [vmem:[%s14445_s10 + $0x188] sm:$0xff] }
 0x688   : > { %5587 = vmatpush.bf16.msrb.mxu1 %v8892_v26  ;;  %v8906_v9 = vld [vmem:[%s14445_s10 + $0x1c8] sm:$0xff]  ;;  %5717 = vmatpush.bf16.msrb.mxu2 %v8898_v45 }
 0x689   : > { %5871 = vmatpush.bf16.msrb.mxu3 %v8906_v9  ;;  %6022 = vmatpush.bf16.msrb.mxu0 %v8917_v55 }
 0x68c   : > { %5588 = vmatpush.bf16.msrb.mxu1 %v8891_v27  ;;  %5718 = vmatpush.bf16.msrb.mxu2 %v8897_v25 }
 0x68d   : > { %5872 = vmatpush.bf16.msrb.mxu3 %v8905_v14 }
 0x690   : > { %5589 = vmatpush.bf16.msrb.mxu1 %v8890_v21 }
 0x694   : > { %5590 = vmatpush.bf16.msrb.mxu1 %v8889_v44 }
 0x696   : > { %4969 = vmatmul.bf16.gmra.mxu0 %v14993_v58  ;;  %5060 = vmatmul.bf16.gmra.mxu1 %v14994_v2  ;;  %v15008_v58 = vld [vmem:[#allocation11_spill] sm:$0xff] }
 0x697   : > { %5201 = vmatmul.bf16.gmra.mxu2 %v14995_v11  ;;  %5329 = vmatmul.bf16.gmra.mxu3 %v14996_v62  ;;  %v15009_v63 = vpack.c.bf16 %v15008_v58, %v12955_v33  ;;  %v15010_v2 = vld [vmem:[#allocation35_spill] sm:$0xff]  ;;  %v15013_v11 = vld [vmem:[#allocation26_spill] sm:$0xff] }
 0x698   : > { %v15011_v31 = vpack.c.bf16 %v15010_v2, %v15008_v58  ;;  %v15014_v62 = vpack.c.bf16 %v15012_v60, %v15013_v11  ;;  %v8916_v33 = vld [vmem:[%s14445_s10 + $0x218] sm:$0xff] }
 0x699   : > { %6023 = vmatpush.bf16.msrb.mxu0 %v8916_v33  ;;  %v15025_v60 = vld [vmem:[#allocation37_spill] sm:$0xff]  ;;  %v15026_v11 = vld [vmem:[#allocation30_spill] sm:$0xff] }
 0x6a6   : > { %4974 = vmatmul.bf16.gmra.mxu0 %v14997_v34  ;;  %5065 = vmatmul.bf16.gmra.mxu1 %v14998_v13  ;;  %v15015_v13 = vld [vmem:[#allocation32_spill] sm:$0xff] }
 0x6a7   : > { %5206 = vmatmul.bf16.gmra.mxu2 %v14999_v38  ;;  %5334 = vmatmul.bf16.gmra.mxu3 %v15000_v43  ;;  %v15016_v38 = vld [vmem:[#allocation14_spill] sm:$0xff] }
 0x6a8   : > { %v15017_v43 = vpack.c.bf16 %v15015_v13, %v15016_v38  ;;  %v8914_v13 = vld [vmem:[%s14445_s10 + $0x208] sm:$0xff] }
 0x6b6   : > { %4979 = vmatmul.bf16.gmra.mxu0 %v4875_v0  ;;  %5070 = vmatmul.bf16.gmra.mxu1 %v4826_v50  ;;  %v15019_v0 = vpack.c.bf16 %v15018_v7, %v15010_v2  ;;  %v15020_v50 = vld [vmem:[#allocation28_spill] sm:$0xff] }
 0x6b7   : > { %5211 = vmatmul.bf16.gmra.mxu2 %v5107_v20  ;;  %5339 = vmatmul.bf16.gmra.mxu3 %v5235_v29  ;;  %v15021_v47 = vpack.c.bf16 %v15020_v50, %v15018_v7  ;;  %v15022_v20 = vld [vmem:[#allocation20_spill] sm:$0xff]  ;;  %v15023_v29 = vld [vmem:[#allocation22_spill] sm:$0xff] }
 0x6b8   : > { %v15024_v23 = vpack.c.bf16 %v15022_v20, %v15023_v29  ;;  %v15034_v29 = vld [vmem:[#allocation21_spill] sm:$0xff] }
 0x6c6   : > { %5437 = vmatmul.bf16.vlgmr.msra.gmra.mxu0 %v15001_v8  ;;  %5591 = vmatmul.bf16.vlgmr.msrb.gmra.mxu1 %v15002_v1 }
 0x6c7   : > { %5719 = vmatmul.bf16.vlgmr.msrb.gmra.mxu2 %v15003_v59  ;;  %5873 = vmatmul.bf16.vlgmr.msrb.gmra.mxu3 %v15004_v15 }
 0x6d3   : > { %v4950_v52 = vpop.f32.mrf.mxu0  ;;  %v5041_v40 = vpop.f32.mrf.mxu1 }
 0x6d4   : > { %v5042_v28 = vadd.f32 %v5041_v40, %v4950_v52 }
 0x6d6   : > { %5442 = vmatmul.bf16.gmra.mxu0 %v15007_v12  ;;  %5596 = vmatmul.bf16.gmra.mxu1 %v15009_v63 }
 0x6d7   : > { %5724 = vmatmul.bf16.gmra.mxu2 %v15011_v31  ;;  %5878 = vmatmul.bf16.gmra.mxu3 %v15014_v62  ;;  %v15027_v62 = vpack.c.bf16 %v15025_v60, %v15026_v11 }
 0x6da   : > { %v5182_v26 = vpop.f32.mrf.mxu2  ;;  %v5310_v39 = vpop.f32.mrf.mxu3 }
 0x6db   : > { %v5216_v3 = vadd.f32 %v5182_v26, %v5042_v28  ;;  %v4952_v30 = vpop.f32.mrf.mxu0  ;;  %v5043_v27 = vpop.f32.mrf.mxu1  ;;  %v8915_v28 = vld [vmem:[%s14445_s10 + $0x210] sm:$0xff] }
 0x6dc   : > { %v5044_v51 = vadd.f32 %v5043_v27, %v4952_v30  ;;  %6024 = vmatpush.bf16.msrb.mxu0 %v8915_v28  ;;  %v15028_v26 = vld [vmem:[#allocation33_spill] sm:$0xff]  ;;  %v15031_v30 = vld [vmem:[#allocation23_spill] sm:$0xff] }
 0x6dd   : > { %v13695_v32 = vadd.f32 %v5310_v39, %v5216_v3  ;;  %v15029_v39 = vpack.c.bf16 %v15028_v26, %v15020_v50  ;;  %v15030_v3 = vpack.c.bf16 %v13337_v35, %v15028_v26  ;;  %v15032_v27 = vld [vmem:[#allocation19_spill] sm:$0xff] }
 0x6e0   : > { %6025 = vmatpush.bf16.msrb.mxu0 %v8914_v13 }
 0x6e2   : > { %v5184_v21 = vpop.f32.mrf.mxu2  ;;  %v5312_v45 = vpop.f32.mrf.mxu3 }
 0x6e3   : > { %v5217_v9 = vadd.f32 %v5184_v21, %v5044_v51  ;;  %v4955_v44 = vpop.f32.mrf.mxu0  ;;  %v5046_v25 = vpop.f32.mrf.mxu1  ;;  %v15033_v51 = vpack.c.bf16 %v15031_v30, %v15032_v27 }
 0x6e4   : > { %v5047_v14 = vadd.f32 %v5046_v25, %v4955_v44 }
 0x6e5   : > { %v13700_v34 = vadd.f32 %v5312_v45, %v5217_v9 }
 0x6e6   : > { %5447 = vmatmul.bf16.gmra.mxu0 %v15017_v43  ;;  %5601 = vmatmul.bf16.gmra.mxu1 %v15019_v0 }
 0x6e7   : > { %5729 = vmatmul.bf16.gmra.mxu2 %v15021_v47  ;;  %5883 = vmatmul.bf16.gmra.mxu3 %v15024_v23  ;;  %v15035_v23 = vld [vmem:[#allocation36_spill] sm:$0xff] }
 0x6ea   : > { %v5187_v8 = vpop.f32.mrf.mxu2  ;;  %v5315_v1 = vpop.f32.mrf.mxu3 }
 0x6eb   : > { %v5218_v59 = vadd.f32 %v5187_v8, %v5047_v14  ;;  %v4957_v15 = vpop.f32.mrf.mxu0  ;;  %v5048_v55 = vpop.f32.mrf.mxu1  ;;  %v15036_v8 = vpack.c.bf16 %v15034_v29, %v15035_v23 }
 0x6ec   : > { %v5049_v52 = vadd.f32 %v5048_v55, %v4957_v15  ;;  %v15039_v15 = vpack.c.bf16 %v13456_v37, %v13423_v41  ;;  %v8913_v55 = vld [vmem:[%s14445_s10 + $0x200] sm:$0xff] }
 0x6ed   : > { %v13714_v40 = vadd.f32 %v5315_v1, %v5218_v59  ;;  %v15037_v1 = vpack.c.bf16 %v13415_v42, %v13337_v35  ;;  %v15038_v59 = vpack.c.bf16 %v13448_v49, %v13415_v42  ;;  %6026 = vmatpush.bf16.msrb.mxu0 %v8913_v55 }
 0x6f2   : > { %v5189_v6 = vpop.f32.mrf.mxu2  ;;  %v5317_v24 = vpop.f32.mrf.mxu3 }
 0x6f3   : > { %v5219_v12 = vadd.f32 %v5189_v6, %v5049_v52  ;;  %v4960_v58 = vpop.f32.mrf.mxu0  ;;  %v5051_v63 = vpop.f32.mrf.mxu1 }
 0x6f4   : > { %v5052_v2 = vadd.f32 %v5051_v63, %v4960_v58 }
 0x6f5   : > { %v13719_v31 = vadd.f32 %v5317_v24, %v5219_v12 }
 0x6f6   : > { %5452 = vmatmul.bf16.gmra.mxu0 %v15027_v62  ;;  %5606 = vmatmul.bf16.gmra.mxu1 %v15029_v39  ;;  %v15040_v62 = vpack.c.bf16 %v13312_v10, %v13307_v36 }
 0x6f7   : > { %5734 = vmatmul.bf16.gmra.mxu2 %v15030_v3  ;;  %5888 = vmatmul.bf16.gmra.mxu3 %v15033_v51 }
 0x6fa   : > { %v5192_v33 = vpop.f32.mrf.mxu2  ;;  %v5320_v21 = vpop.f32.mrf.mxu3 }
 0x6fb   : > { %v5220_v45 = vadd.f32 %v5192_v33, %v5052_v2  ;;  %v4962_v9 = vpop.f32.mrf.mxu0  ;;  %v5053_v44 = vpop.f32.mrf.mxu1 }
 0x6fc   : > { %v5054_v25 = vadd.f32 %v5053_v44, %v4962_v9 }
 0x6fd   : > { %v13733_v14 = vadd.f32 %v5320_v21, %v5220_v45 }
 0x702   : > { %v5194_v38 = vpop.f32.mrf.mxu2  ;;  %v5322_v43 = vpop.f32.mrf.mxu3 }
 0x703   : > { %v5221_v7 = vadd.f32 %v5194_v38, %v5054_v25  ;;  %v4965_v0 = vpop.f32.mrf.mxu0  ;;  %v5056_v50 = vpop.f32.mrf.mxu1 }
 0x704   : > { %v5057_v47 = vadd.f32 %v5056_v50, %v4965_v0 }
 0x705   : > { %v13738_v20 = vadd.f32 %v5322_v43, %v5221_v7 }
 0x706   : > { %5457 = vmatmul.bf16.gmra.mxu0 %v15036_v8  ;;  %5611 = vmatmul.bf16.gmra.mxu1 %v15037_v1  ;;  %v15042_v8 = vld [vmem:[#allocation16_spill] sm:$0xff]  ;;  %v15043_v1 = vld [vmem:[#allocation29_spill] sm:$0xff] }
 0x707   : > { %5739 = vmatmul.bf16.gmra.mxu2 %v15038_v59  ;;  %5893 = vmatmul.bf16.gmra.mxu3 %v15039_v15  ;;  %v15044_v59 = vpack.c.bf16 %v15042_v8, %v15043_v1 }
 0x70a   : > { %v5197_v52 = vpop.f32.mrf.mxu2  ;;  %v5325_v28 = vpop.f32.mrf.mxu3 }
 0x70b   : > { %v5222_v6 = vadd.f32 %v5197_v52, %v5057_v47  ;;  %v4967_v24 = vpop.f32.mrf.mxu0  ;;  %v5058_v12 = vpop.f32.mrf.mxu1 }
 0x70c   : > { %v5059_v35 = vadd.f32 %v5058_v12, %v4967_v24 }
 0x70d   : > { %v13755_v58 = vadd.f32 %v5325_v28, %v5222_v6 }
 0x712   : > { %v5199_v63 = vpop.f32.mrf.mxu2  ;;  %v5327_v42 = vpop.f32.mrf.mxu3 }
 0x713   : > { %v5223_v2 = vadd.f32 %v5199_v63, %v5059_v35  ;;  %v4970_v60 = vpop.f32.mrf.mxu0  ;;  %v5061_v11 = vpop.f32.mrf.mxu1 }
 0x714   : > { %v5062_v41 = vadd.f32 %v5061_v11, %v4970_v60  ;;  %v15045_v11 = vld [vmem:[#allocation18_spill] sm:$0xff] }
 0x715   : > { %v13757_v37 = vadd.f32 %v5327_v42, %v5223_v2 }
 0x716   : > { %5462 = vmatmul.bf16.gmra.mxu0 %v15040_v62  ;;  %5616 = vmatmul.bf16.gmra.mxu1 %v5516_v5 }
 0x717   : > { %5744 = vmatmul.bf16.gmra.mxu2 %v5644_v18  ;;  %5898 = vmatmul.bf16.gmra.mxu3 %v5798_v4  ;;  %v15041_v4 = vld [vmem:[#allocation25_spill] sm:$0xff] }
 0x718   : > { %v5799_v9 = vpack.c.bf16 %v15041_v4, %v15041_v4  ;;  %v15048_v4 = vld [vmem:[#allocation27_spill] sm:$0xff] }
 0x71a   : > { %v5202_v26 = vpop.f32.mrf.mxu2  ;;  %v5330_v39 = vpop.f32.mrf.mxu3 }
 0x71b   : > { %v5224_v3 = vadd.f32 %v5202_v26, %v5062_v41  ;;  %v4972_v30 = vpop.f32.mrf.mxu0  ;;  %v5063_v27 = vpop.f32.mrf.mxu1  ;;  %v15046_v41 = vld [vmem:[#allocation15_spill] sm:$0xff] }
 0x71c   : > { %v5064_v51 = vadd.f32 %v5063_v27, %v4972_v30  ;;  %v15047_v62 = vpack.c.bf16 %v15045_v11, %v15046_v41 }
 0x71d   : > { %v13771_v10 = vadd.f32 %v5330_v39, %v5224_v3 }
 0x722   : > { %v5204_v36 = vpop.f32.mrf.mxu2  ;;  %v5332_v33 = vpop.f32.mrf.mxu3 }
 0x723   : > { %v5225_v49 = vadd.f32 %v5204_v36, %v5064_v51  ;;  %v4975_v5 = vpop.f32.mrf.mxu0  ;;  %v5066_v21 = vpop.f32.mrf.mxu1 }
 0x724   : > { %v5067_v45 = vadd.f32 %v5066_v21, %v4975_v5 }
 0x725   : > { %v13777_v18 = vadd.f32 %v5332_v33, %v5225_v49 }
 0x726   : > { %5467 = vmatmul.bf16.gmra.mxu0 %v5363_v19  ;;  %5621 = vmatmul.bf16.gmra.mxu1 %v5517_v16 }
 0x727   : > { %5749 = vmatmul.bf16.gmra.mxu2 %v5645_v17  ;;  %5903 = vmatmul.bf16.gmra.mxu3 %v5799_v9  ;;  %v15049_v9 = vld [vmem:[#allocation13_spill] sm:$0xff] }
 0x72a   : > { %v5207_v44 = vpop.f32.mrf.mxu2  ;;  %v5335_v25 = vpop.f32.mrf.mxu3 }
 0x72b   : > { %v5226_v13 = vadd.f32 %v5207_v44, %v5067_v45  ;;  %v4977_v38 = vpop.f32.mrf.mxu0  ;;  %v5068_v57 = vpop.f32.mrf.mxu1  ;;  %v15050_v44 = vpack.c.bf16 %v15048_v4, %v15049_v9 }
 0x72c   : > { %v5069_v43 = vadd.f32 %v5068_v57, %v4977_v38 }
 0x72d   : > { %v13783_v7 = vadd.f32 %v5335_v25, %v5226_v13 }
 0x732   : > { %v5209_v22 = vpop.f32.mrf.mxu2  ;;  %v5337_v0 = vpop.f32.mrf.mxu3 }
 0x733   : > { %v5227_v50 = vadd.f32 %v5209_v22, %v5069_v43  ;;  %v4980_v47 = vpop.f32.mrf.mxu0  ;;  %v5071_v46 = vpop.f32.mrf.mxu1 }
 0x734   : > { %v5072_v29 = vadd.f32 %v5071_v46, %v4980_v47 }
 0x735   : > { %v13785_v23 = vadd.f32 %v5337_v0, %v5227_v50 }
 0x736   : > { %6027 = vmatmul.bf16.vlgmr.msrb.gmra.mxu0 %v15044_v59 }
 0x73a   : > { %v5212_v15 = vpop.f32.mrf.mxu2  ;;  %v5340_v55 = vpop.f32.mrf.mxu3 }
 0x73b   : > { %v5228_v52 = vadd.f32 %v5212_v15, %v5072_v29  ;;  %v4982_v28 = vpop.f32.mrf.mxu0  ;;  %v5073_v6 = vpop.f32.mrf.mxu1  ;;  %v15051_v15 = vld [vmem:[#allocation12_spill] sm:$0xff] }
 0x73d   : > { %v13790_v24 = vadd.f32 %v5340_v55, %v5228_v52  ;;  %v15052_v55 = vld [vmem:[#allocation17_spill] sm:$0xff] }
 0x73e   : > { %v15053_v52 = vpack.c.bf16 %v15051_v15, %v15052_v55 }
 0x742   : > { %v5214_v12 = vpop.f32.mrf.mxu2  ;;  %v5342_v35 = vpop.f32.mrf.mxu3 }
 0x743   : > { %v5438_v63 = vpop.f32.mrf.mxu0  ;;  %v5592_v42 = vpop.f32.mrf.mxu1 }
 0x744   : > { %v5472_v2 = vadd.f32 %v5438_v63, %v13695_v32 }
 0x746   : > { %v5626_v60 = vadd.f32 %v5592_v42, %v5472_v2  ;;  %6032 = vmatmul.bf16.gmra.mxu0 %v15047_v62 }
 0x74a   : > { %v5720_v26 = vpop.f32.mrf.mxu2  ;;  %v5874_v39 = vpop.f32.mrf.mxu3 }
 0x74b   : > { %v5754_v3 = vadd.f32 %v5720_v26, %v5626_v60  ;;  %v5440_v30 = vpop.f32.mrf.mxu0  ;;  %v5594_v27 = vpop.f32.mrf.mxu1 }
 0x74c   : > { %v5473_v51 = vadd.f32 %v5440_v30, %v13700_v34  ;;  %v15054_v30 = vpack.c.bf16 %v13460_v56, %v13427_v53 }
 0x74d   : > { %v13797_v36 = vadd.f32 %v5874_v39, %v5754_v3 }
 0x74e   : > { %v5627_v33 = vadd.f32 %v5594_v27, %v5473_v51 }
 0x752   : > { %v5722_v49 = vpop.f32.mrf.mxu2  ;;  %v5876_v5 = vpop.f32.mrf.mxu3 }
 0x753   : > { %v5755_v21 = vadd.f32 %v5722_v49, %v5627_v33  ;;  %v5443_v45 = vpop.f32.mrf.mxu0  ;;  %v5597_v32 = vpop.f32.mrf.mxu1 }
 0x754   : > { %v5474_v19 = vadd.f32 %v5443_v45, %v13714_v40 }
 0x755   : > { %v13800_v16 = vadd.f32 %v5876_v5, %v5755_v21 }
 0x756   : > { %v5628_v17 = vadd.f32 %v5597_v32, %v5474_v19  ;;  %6037 = vmatmul.bf16.gmra.mxu0 %v15050_v44 }
 0x75a   : > { %v5725_v25 = vpop.f32.mrf.mxu2  ;;  %v5879_v13 = vpop.f32.mrf.mxu3 }
 0x75b   : > { %v5756_v34 = vadd.f32 %v5725_v25, %v5628_v17  ;;  %v5445_v38 = vpop.f32.mrf.mxu0  ;;  %v5599_v57 = vpop.f32.mrf.mxu1 }
 0x75c   : > { %v5475_v43 = vadd.f32 %v5445_v38, %v13719_v31 }
 0x75d   : > { %v13806_v22 = vadd.f32 %v5879_v13, %v5756_v34 }
 0x75e   : > { %v5629_v0 = vadd.f32 %v5599_v57, %v5475_v43 }
 0x762   : > { %v5727_v50 = vpop.f32.mrf.mxu2  ;;  %v5881_v47 = vpop.f32.mrf.mxu3 }
 0x763   : > { %v5757_v40 = vadd.f32 %v5727_v50, %v5629_v0  ;;  %v5448_v46 = vpop.f32.mrf.mxu0  ;;  %v5602_v29 = vpop.f32.mrf.mxu1 }
 0x764   : > { %v5476_v8 = vadd.f32 %v5448_v46, %v13733_v14 }
 0x765   : > { %v13809_v1 = vadd.f32 %v5881_v47, %v5757_v40 }
 0x766   : > { %v5630_v59 = vadd.f32 %v5602_v29, %v5476_v8  ;;  %6042 = vmatmul.bf16.gmra.mxu0 %v15053_v52  ;;  %v15055_v29 = vld [vmem:[#allocation31_spill] sm:$0xff]  ;;  %v9187_v52 = vmov 3  }
 0x767   : > { %v5953_v48 = vpack.c.bf16 %v15055_v29, %v15055_v29  ;;  %8994 = vset.pattern.permute.xlu2 %v9187_v52 }
 0x76a   : > { %v5730_v28 = vpop.f32.mrf.mxu2  ;;  %v5884_v6 = vpop.f32.mrf.mxu3 }
 0x76b   : > { %v5758_v31 = vadd.f32 %v5730_v28, %v5630_v59  ;;  %v5450_v12 = vpop.f32.mrf.mxu0  ;;  %v5604_v35 = vpop.f32.mrf.mxu1  ;;  %v9188_v28 = vmov 1  }
 0x76c   : > { %v5477_v63 = vadd.f32 %v5450_v12, %v13738_v20  ;;  %8992 = vset.pattern.permute.xlu1 %v9188_v28 }
 0x76d   : > { %v13815_v42 = vadd.f32 %v5884_v6, %v5758_v31  ;;  %v9189_v6 = vmov 0  }
 0x76e   : > { %v5631_v2 = vadd.f32 %v5604_v35, %v5477_v63  ;;  %8991 = vset.pattern.permute.xlu0 %v9189_v6 }
 0x772   : > { %v5732_v60 = vpop.f32.mrf.mxu2  ;;  %v5886_v11 = vpop.f32.mrf.mxu3 }
 0x773   : > { %v5759_v14 = vadd.f32 %v5732_v60, %v5631_v2  ;;  %v5453_v41 = vpop.f32.mrf.mxu0  ;;  %v5607_v62 = vpop.f32.mrf.mxu1 }
 0x774   : > { %v5478_v26 = vadd.f32 %v5453_v41, %v13755_v58 }
 0x775   : > { %v13818_v39 = vadd.f32 %v5886_v11, %v5759_v14 }
 0x776   : > { %v5632_v3 = vadd.f32 %v5607_v62, %v5478_v26  ;;  %6047 = vmatmul.bf16.gmra.mxu0 %v15054_v30 }
 0x77a   : > { %v5735_v27 = vpop.f32.mrf.mxu2  ;;  %v5889_v51 = vpop.f32.mrf.mxu3 }
 0x77b   : > { %v5760_v20 = vadd.f32 %v5735_v27, %v5632_v3  ;;  %v5455_v33 = vpop.f32.mrf.mxu0  ;;  %v5609_v49 = vpop.f32.mrf.mxu1 }
 0x77c   : > { %v5479_v5 = vadd.f32 %v5455_v33, %v13757_v37 }
 0x77d   : > { %v13824_v21 = vadd.f32 %v5889_v51, %v5760_v20 }
 0x77e   : > { %v5633_v45 = vadd.f32 %v5609_v49, %v5479_v5  ;;  %v13854_v49 = vld [vmem:[%s14446_s11] ss:$0 sm:$0xff] }
 0x782   : > { %v5737_v32 = vpop.f32.mrf.mxu2  ;;  %v5891_v19 = vpop.f32.mrf.mxu3 }
 0x783   : > { %v5761_v58 = vadd.f32 %v5737_v32, %v5633_v45  ;;  %v5458_v17 = vpop.f32.mrf.mxu0  ;;  %v5612_v4 = vpop.f32.mrf.mxu1 }
 0x784   : > { %v5480_v9 = vadd.f32 %v5458_v17, %v13771_v10 }
 0x785   : > { %v13827_v44 = vadd.f32 %v5891_v19, %v5761_v58  ;;  %v9110_v19 = vld [vmem:[%s14628_s2] sm:$0xff] }
 0x786   : > { %v5634_v53 = vadd.f32 %v5612_v4, %v5480_v9  ;;  %6052 = vmatmul.bf16.gmra.mxu0 %v5952_v54 }
 0x78a   : > { %v5740_v56 = vpop.f32.mrf.mxu2  ;;  %v5894_v25 = vpop.f32.mrf.mxu3 }
 0x78b   : > { %v5762_v37 = vadd.f32 %v5740_v56, %v5634_v53  ;;  %v5460_v13 = vpop.f32.mrf.mxu0  ;;  %v5614_v34 = vpop.f32.mrf.mxu1  ;;  %v9111_v53 = vld [vmem:[%s14628_s2 + $0x8] sm:$0xff] }
 0x78c   : > { %v5481_v38 = vadd.f32 %v5460_v13, %v13777_v18 }
 0x78d   : > { %v13833_v57 = vadd.f32 %v5894_v25, %v5762_v37 }
 0x78e   : > { %v5635_v43 = vadd.f32 %v5614_v34, %v5481_v38 }
 0x792   : > { %v5742_v0 = vpop.f32.mrf.mxu2  ;;  %v5896_v50 = vpop.f32.mrf.mxu3 }
 0x793   : > { %v5763_v10 = vadd.f32 %v5742_v0, %v5635_v43  ;;  %v5463_v47 = vpop.f32.mrf.mxu0  ;;  %v5617_v40 = vpop.f32.mrf.mxu1  ;;  %v9191_v0 = vmov 4  }
 0x794   : > { %v5482_v46 = vadd.f32 %v5463_v47, %v13783_v7  ;;  %v9192_v47 = vmov 5  }
 0x795   : > { %v13838_v61 = vadd.f32 %v5896_v50, %v5763_v10 }
 0x796   : > { %v5636_v54 = vadd.f32 %v5617_v40, %v5482_v46  ;;  %6057 = vmatmul.bf16.gmra.mxu0 %v5953_v48 }
 0x79a   : > { %v5745_v8 = vpop.f32.mrf.mxu2  ;;  %v5899_v59 = vpop.f32.mrf.mxu3 }
 0x79b   : > { %v5764_v18 = vadd.f32 %v5745_v8, %v5636_v54  ;;  %v5465_v15 = vpop.f32.mrf.mxu0  ;;  %v5619_v55 = vpop.f32.mrf.mxu1 }
 0x79c   : > { %v5483_v7 = vadd.f32 %v5465_v15, %v13785_v23 }
 0x79d   : > { %v13844_v31 = vadd.f32 %v5899_v59, %v5764_v18 }
 0x79e   : > { %v5637_v12 = vadd.f32 %v5619_v55, %v5483_v7 }
 0x7a2   : > { %v5747_v35 = vpop.f32.mrf.mxu2  ;;  %v5901_v63 = vpop.f32.mrf.mxu3 }
 0x7a3   : > { %v5765_v2 = vadd.f32 %v5747_v35, %v5637_v12  ;;  %v5468_v60 = vpop.f32.mrf.mxu0  ;;  %v5622_v11 = vpop.f32.mrf.mxu1 }
 0x7a4   : > { %v5484_v14 = vadd.f32 %v5468_v60, %v13790_v24 }
 0x7a5   : > { %v13847_v41 = vadd.f32 %v5901_v63, %v5765_v2 }
 0x7a6   : > { %v5638_v62 = vadd.f32 %v5622_v11, %v5484_v14 }
 0x7aa   : > { %v5750_v26 = vpop.f32.mrf.mxu2  ;;  %v5904_v3 = vpop.f32.mrf.mxu3 }
 0x7ab   : > { %v5766_v30 = vadd.f32 %v5750_v26, %v5638_v62  ;;  %v5470_v23 = vpop.f32.mrf.mxu0  ;;  %v5624_v27 = vpop.f32.mrf.mxu1 }
 0x7ac   : > { %v9116_v23 = vld [vmem:[%s14628_s2 + $0x30] sm:$0xff] }
 0x7ad   : > { %v13849_v51 = vadd.f32 %v5904_v3, %v5766_v30 }
 0x7b2   : > { %v5752_v20 = vpop.f32.mrf.mxu2  ;;  %v5906_v33 = vpop.f32.mrf.mxu3 }
 0x7b3   : > { %v6028_v5 = vpop.f32.mrf.mxu0 }
 0x7b4   : > { %v6062_v24 = vadd.f32 %v6028_v5, %v13797_v36 }
 0x7b6   : > { %v6079_v45 = vadd.f32 %v13854_v49, %v6062_v24 }
 0x7b8   : > { %v6092_v32 = vmax.f32 %v6079_v45, 0.0 }
 0x7ba   : > { %v13861_v58 = vmul.f32 %v9110_v19, %v6092_v32 }
 0x7bb   : > { %v6030_v17 = vpop.f32.mrf.mxu0 }
 0x7bc   : > { %v6063_v4 = vadd.f32 %v6030_v17, %v13800_v16  ;;  %6408 = vperm.xlu2 %8994, %v13861_v58   ;;  %6224 = vperm.xlu1 %8992, %v13861_v58   ;;  %v9190_v16 = vmov 2  }
 0x7bd   : > { %6133 = vperm.xlu0 %8991, %v13861_v58  }
 0x7be   : > { %v6080_v36 = vadd.f32 %v13854_v49, %v6063_v4 }
 0x7c0   : > { %v6093_v9 = vmax.f32 %v6080_v36, 0.0 }
 0x7c2   : > { %v13871_v56 = vmul.f32 %v9111_v53, %v6093_v9  ;;  %v6118_v9 = vld [vmem:[%s14447_s12] sm:$0xff] }
 0x7c3   : > { %v6033_v25 = vpop.f32.mrf.mxu0 }
 0x7c4   : > { %v6064_v37 = vadd.f32 %v6033_v25, %v13806_v22  ;;  %8997 = vset.pattern.permute.xlu2 %v9188_v28  ;;  %8998 = vset.pattern.permute.xlu1 %v9190_v16  ;;  %v9112_v22 = vld [vmem:[%s14628_s2 + $0x10] sm:$0xff] }
 0x7c5   : > { %8993 = vset.pattern.permute.xlu0 %v9190_v16  ;;  %6320 = vperm.xlu1 %8998, %v13871_v56  }
 0x7c6   : > { %v6081_v13 = vadd.f32 %v13854_v49, %v6064_v37  ;;  %6316 = vperm.xlu0 %8993, %v13861_v58   ;;  %6228 = vperm.xlu2 %8997, %v13871_v56  }
 0x7c8   : > { %v6094_v34 = vmax.f32 %v6081_v13, 0.0 }
 0x7ca   : > { %v6107_v43 = vmul.f32 %v9112_v22, %v6094_v34  ;;  %v9118_v34 = vld [vmem:[%s14628_s2 + $0x40] sm:$0xff] }
 0x7cb   : > { %v6035_v38 = vpop.f32.mrf.mxu0 }
 0x7cc   : > { %v6065_v10 = vadd.f32 %v6035_v38, %v13809_v1  ;;  %v9113_v1 = vld [vmem:[%s14628_s2 + $0x18] sm:$0xff] }
 0x7cd   : > { %9001 = vset.pattern.permute.xlu1 %v9189_v6 }
 0x7ce   : > { %8995 = vset.pattern.permute.xlu0 %v9191_v0  ;;  %9003 = vset.pattern.permute.xlu2 %v9190_v16  ;;  %v6082_v40 = vadd.f32 %v13854_v49, %v6065_v10  ;;  %v8591_v10 = vld [vmem:[%s14447_s12 + $0x138] sm:$0xff] }
 0x7cf   : > { %6547 = vperm.xlu0 %8995, %v13861_v58   ;;  %6324 = vperm.xlu2 %9003, %v6107_v43  }
 0x7d0   : > { %6143 = vperm.xlu1 %9001, %v6107_v43   ;;  %v6095_v29 = vmax.f32 %v6082_v40, 0.0 }
 0x7d2   : > { %v6108_v54 = vmul.f32 %v9113_v1, %v6095_v29 }
 0x7d3   : > { %v6038_v50 = vpop.f32.mrf.mxu0 }
 0x7d4   : > { %v6066_v48 = vadd.f32 %v6038_v50, %v13815_v42  ;;  %v9114_v42 = vld [vmem:[%s14628_s2 + $0x20] sm:$0xff]  ;;  %v8578_v50 = vld [vmem:[%s14447_s12 + $0xd0] sm:$0xff] }
 0x7d6   : > { %v6083_v8 = vadd.f32 %v13854_v49, %v6066_v48 }
 0x7d7   : > { %8996 = vset.pattern.permute.xlu0 %v9189_v6  ;;  %9006 = vset.pattern.permute.xlu2 %v9192_v47 }
 0x7d8   : > { %9004 = vset.pattern.permute.xlu1 %v9187_v52  ;;  %6138 = vperm.xlu0 %8996, %v13871_v56   ;;  %v6096_v18 = vmax.f32 %v6083_v8, 0.0 }
 0x7d9   : > { %6634 = vperm.xlu2 %9006, %v6107_v43   ;;  %6416 = vperm.xlu1 %9004, %v6107_v43  }
 0x7da   : > { %v13906_v15 = vmul.f32 %v9114_v42, %v6096_v18 }
 0x7db   : > { %v6040_v46 = vpop.f32.mrf.mxu0 }
 0x7dc   : > { %v6067_v63 = vadd.f32 %v6040_v46, %v13818_v39 }
 0x7de   : > { %v6084_v11 = vadd.f32 %v13854_v49, %v6067_v63  ;;  %v8566_v63 = vld [vmem:[%s14447_s12 + $0x70] sm:$0xff] }
 0x7e0   : > { %8999 = vset.pattern.permute.xlu0 %v9187_v52 }
 0x7e1   : > { %9010 = vset.pattern.permute.xlu2 %v9187_v52  ;;  %9007 = vset.pattern.permute.xlu1 %v9189_v6 }
 0x7e2   : > { %6412 = vperm.xlu0 %8999, %v13871_v56   ;;  %6420 = vperm.xlu2 %9010, %v6108_v54  }
 0x7e3   : > { %6148 = vperm.xlu1 %9007, %v6108_v54   ;;  %v6043_v59 = vpop.f32.mrf.mxu0 }
 0x7e4   : > { %v6068_v14 = vadd.f32 %v6043_v59, %v13824_v21 }
 0x7e6   : > { %v6085_v3 = vadd.f32 %v13854_v49, %v6068_v14 }
 0x7e8   : > { %v6098_v21 = vmax.f32 %v6085_v3, 0.0 }
 0x7ea   : > { %9000 = vset.pattern.permute.xlu0 %v9191_v0  ;;  %9012 = vset.pattern.permute.xlu2 %v9189_v6  ;;  %v13950_v27 = vmul.f32 %v9116_v23, %v6098_v21  ;;  %v8569_v23 = vld [vmem:[%s14447_s12 + $0x88] sm:$0xff] }
 0x7eb   : > { %9008 = vset.pattern.permute.xlu1 %v9188_v28  ;;  %6551 = vperm.xlu0 %9000, %v13871_v56   ;;  %v6045_v55 = vpop.f32.mrf.mxu0 }
 0x7ec   : > { %6236 = vperm.xlu1 %9008, %v6108_v54   ;;  %6153 = vperm.xlu2 %9012, %v13906_v15  }
 0x7f3   : > { %9002 = vset.pattern.permute.xlu0 %v9188_v28  ;;  %v6048_v7 = vpop.f32.mrf.mxu0 }
 0x7f4   : > { %9009 = vset.pattern.permute.xlu1 %v9190_v16  ;;  %9013 = vset.pattern.permute.xlu2 %v9188_v28  ;;  %v6070_v32 = vadd.f32 %v6048_v7, %v13833_v57  ;;  %v8565_v57 = vld [vmem:[%s14447_s12 + $0x68] sm:$0xff] }
 0x7f5   : > { %6232 = vperm.xlu0 %9002, %v6107_v43   ;;  %6328 = vperm.xlu1 %9009, %v6108_v54   ;;  %v9119_v7 = vld [vmem:[%s14628_s2 + $0x48] sm:$0xff] }
 0x7f6   : > { %6240 = vperm.xlu2 %9013, %v13906_v15   ;;  %v6087_v17 = vadd.f32 %v13854_v49, %v6070_v32 }
 0x7f8   : > { %v6100_v36 = vmax.f32 %v6087_v17, 0.0 }
 0x7fa   : > { %v13986_v38 = vmul.f32 %v9118_v34, %v6100_v36 }
 0x7fb   : > { %v6050_v12 = vpop.f32.mrf.mxu0 }
 0x7fc   : > { %v13918_v35 = vadd.f32 %v6050_v12, %v13838_v61  ;;  %v6097_v61 = vmax.f32 %v6084_v11, 0.0  ;;  %v8579_v11 = vld [vmem:[%s14447_s12 + $0xd8] sm:$0xff] }
 0x7fd   : > { %9005 = vset.pattern.permute.xlu0 %v9191_v0  ;;  %9011 = vset.pattern.permute.xlu1 %v9192_v47 }
 0x7fe   : > { %9014 = vset.pattern.permute.xlu2 %v9190_v16  ;;  %6555 = vperm.xlu0 %9005, %v6107_v43   ;;  %v6088_v48 = vadd.f32 %v13854_v49, %v13918_v35 }
 0x7ff   : > { %6638 = vperm.xlu1 %9011, %v6108_v54   ;;  %6332 = vperm.xlu2 %9014, %v13906_v15  }
 0x800   : > { %v6101_v18 = vmax.f32 %v6088_v48, 0.0 }
 0x802   : > { %v14015_v12 = vmul.f32 %v9119_v7, %v6101_v18 }
 0x803   : > { %v6053_v2 = vpop.f32.mrf.mxu0 }
 0x804   : > { %v13926_v60 = vadd.f32 %v6053_v2, %v13844_v31  ;;  %v9115_v31 = vld [vmem:[%s14628_s2 + $0x28] sm:$0xff] }
 0x805   : > { %v6110_v26 = vmul.f32 %v9115_v31, %v6097_v61  ;;  %v6119_v2 = vld [vmem:[%s14447_s12 + $0x8] sm:$0xff] }
 0x806   : > { %6559 = vperm.xlu0 %9005, %v6108_v54  }
 0x807   : > { %9015 = vset.pattern.permute.xlu1 %v9187_v52  ;;  %9016 = vset.pattern.permute.xlu2 %v9191_v0 }
 0x808   : > { %6424 = vperm.xlu1 %9015, %v13906_v15   ;;  %6563 = vperm.xlu2 %9016, %v13906_v15  }
 0x80b   : > { %v6055_v62 = vpop.f32.mrf.mxu0 }
 0x80c   : > { %v13935_v39 = vadd.f32 %v6055_v62, %v13847_v41 }
 0x80e   : > { %9019 = vset.pattern.permute.xlu0 %v9190_v16  ;;  %v6090_v36 = vadd.f32 %v13854_v49, %v13935_v39 }
 0x80f   : > { %6336 = vperm.xlu0 %9019, %v6110_v26  }
 0x810   : > { %9018 = vset.pattern.permute.xlu1 %v9188_v28  ;;  %9017 = vset.pattern.permute.xlu2 %v9189_v6  ;;  %v6103_v39 = vmax.f32 %v6090_v36, 0.0 }
 0x811   : > { %6244 = vperm.xlu1 %9018, %v6110_v26   ;;  %6158 = vperm.xlu2 %9017, %v6110_v26  }
 0x813   : > { %v6058_v30 = vpop.f32.mrf.mxu0 }
 0x814   : > { %v13945_v41 = vadd.f32 %v6058_v30, %v13849_v51  ;;  %v6069_v51 = vadd.f32 %v6045_v55, %v13827_v44  ;;  %v9117_v44 = vld [vmem:[%s14628_s2 + $0x38] sm:$0xff]  ;;  %v6122_v30 = vld [vmem:[%s14447_s12 + $0x20] sm:$0xff] }
 0x816   : > { %v6409_v20 = vpop.permute.xlu2 %6408  ;;  %v6086_v5 = vadd.f32 %v13854_v49, %v6069_v51 }
 0x817   : > { %9023 = vset.pattern.permute.xlu0 %v9189_v6  ;;  %v6459_v1 = vmul.f32 %v8591_v10, %v6409_v20 }
 0x818   : > { %6163 = vperm.xlu0 %9023, %v13950_v27   ;;  %v6099_v45 = vmax.f32 %v6086_v5, 0.0 }
 0x819   : > { %9021 = vset.pattern.permute.xlu1 %v9191_v0  ;;  %9020 = vset.pattern.permute.xlu2 %v9187_v52 }
 0x81a   : > { %6567 = vperm.xlu1 %9021, %v6110_v26   ;;  %6428 = vperm.xlu2 %9020, %v6110_v26   ;;  %v6112_v19 = vmul.f32 %v9117_v44, %v6099_v45  ;;  %v9120_v44 = vld [vmem:[%s14628_s2 + $0x50] sm:$0xff] }
 0x81b   : > { %v6060_v33 = vpop.f32.mrf.mxu0 }
 0x820   : > { %9026 = vset.pattern.permute.xlu0 %v9187_v52  ;;  %v13959_v24 = vpop.permute.xlu2 %6228 }
 0x821   : > { %6432 = vperm.xlu0 %9026, %v13950_v27   ;;  %v6276_v14 = vmul.f32 %v8566_v63, %v13959_v24  ;;  %v8592_v24 = vld [vmem:[%s14447_s12 + $0x140] sm:$0xff]  ;;  %v8581_v63 = vld [vmem:[%s14447_s12 + $0xe8] sm:$0xff] }
 0x822   : > { %9025 = vset.pattern.permute.xlu1 %v9190_v16  ;;  %9022 = vset.pattern.permute.xlu2 %v9192_v47 }
 0x823   : > { %6646 = vperm.xlu2 %9022, %v6110_v26   ;;  %6340 = vperm.xlu1 %9025, %v13950_v27   ;;  %v6089_v26 = vadd.f32 %v13854_v49, %v13926_v60 }
 0x825   : > { %v6102_v33 = vmax.f32 %v6089_v26, 0.0 }
 0x829   : > { %9029 = vset.pattern.permute.xlu0 %v9188_v28  ;;  %v13971_v4 = vpop.permute.xlu2 %6324 }
 0x82a   : > { %6252 = vperm.xlu0 %9029, %v6112_v19  }
 0x82b   : > { %9024 = vset.pattern.permute.xlu2 %v9188_v28  ;;  %9027 = vset.pattern.permute.xlu1 %v9191_v0 }
 0x82c   : > { %6571 = vperm.xlu1 %9027, %v13950_v27   ;;  %6248 = vperm.xlu2 %9024, %v13950_v27  }
 0x82e   : > { %v6225_v53 = vpop.permute.xlu1 %6224 }
 0x82f   : > { %v6275_v25 = vmul.f32 %v8565_v57, %v6225_v53  ;;  %v6134_v37 = vpop.permute.xlu0 %6133  ;;  %v8582_v53 = vld [vmem:[%s14447_s12 + $0xf0] sm:$0xff] }
 0x830   : > { %v6196_v13 = vmul.f32 %v6134_v37, %v6118_v9 }
 0x832   : > { %v6288_v22 = vadd.f32 %v6275_v25, %v6196_v13  ;;  %9036 = vset.pattern.permute.xlu0 %v9190_v16 }
 0x833   : > { %6348 = vperm.xlu0 %9036, %v13986_v38   ;;  %v13990_v43 = vpop.permute.xlu2 %6634 }
 0x834   : > { %9028 = vset.pattern.permute.xlu1 %v9189_v6  ;;  %9030 = vset.pattern.permute.xlu2 %v9190_v16 }
 0x835   : > { %6344 = vperm.xlu2 %9030, %v6112_v19   ;;  %6168 = vperm.xlu1 %9028, %v6112_v19  }
 0x837   : > { %v6321_v46 = vpop.permute.xlu1 %6320 }
 0x838   : > { %v6317_v40 = vpop.permute.xlu0 %6316  ;;  %v6368_v3 = vmul.f32 %v8579_v11, %v6321_v46  ;;  %v9122_v11 = vld [vmem:[%s14628_s2 + $0x60] sm:$0xff] }
 0x839   : > { %v6367_v29 = vmul.f32 %v8578_v50, %v6317_v40  ;;  %v6121_v50 = vld [vmem:[%s14447_s12 + $0x18] sm:$0xff]  ;;  %v8568_v40 = vld [vmem:[%s14447_s12 + $0x80] sm:$0xff] }
 0x83b   : > { %v6380_v54 = vadd.f32 %v6367_v29, %v6288_v22  ;;  %9038 = vset.pattern.permute.xlu0 %v9191_v0  ;;  %v9121_v29 = vld [vmem:[%s14628_s2 + $0x58] sm:$0xff]  ;;  %s9137_s2 = sshra.s32 %s6764_s27, 4  ;;  %s9138_s2 = int_to_ptr.hbm [resolvable:$true] %s9137_s2 }
 0x83c   : > { %6579 = vperm.xlu0 %9038, %v13986_v38   ;;  %v14004_v8 = vpop.permute.xlu2 %6420  ;;  %v14082_v48 = vmul.f32 %v9121_v29, %v6103_v39  ;;  %s9139_s23 = scalar_lea.hbm %s9138_s2, 1  ;;  %p9144_p0 = scmp.lt.s32.totalorder %s9138_s2, %s14453_s18 }
 0x83d   : > { %v6472_v59 = vadd.f32 %v6459_v1, %v6380_v54  ;;  %9032 = vset.pattern.permute.xlu2 %v9191_v0  ;;  %9031 = vset.pattern.permute.xlu1 %v9187_v52  ;;  %v6091_v54 = vadd.f32 %v13854_v49, %v13945_v41  ;;  %v6120_v49 = vld [vmem:[%s14447_s12 + $0x10] sm:$0xff]  ;;  %v8567_v41 = vld [vmem:[%s14447_s12 + $0x78] sm:$0xff]  ;;  %p9140_p11 = scmp.ne.s32.totalorder %s9138_s2, %s9139_s23  ;;  %p9145_p1 = scmp.lt.s32.totalorder %s9143_s17, %s9139_s23 }
 0x83e   : > { %6575 = vperm.xlu2 %9032, %v6112_v19   ;;  %6436 = vperm.xlu1 %9031, %v6112_v19  }
 0x83f   : > { %v6486_v25 = vsel %vm6485_vm6, %v6472_v59, 0.0  ;;  %p9141_p12 = pnand %p9140_p11, %p9334_p5  ;;  %p9146_p2 = por %p9145_p1, %p9144_p0 }
 0x841   : > { %v14008_v42 = vpop.permute.xlu0 %6547  ;;  %p9142_p13 = pneg %p9141_p12 }
 0x842   : > { %v14010_v55 = vpop.permute.xlu1 %6143 }
 0x843   : > { %p9147_p3 = pnand %p9146_p2, %p9142_p13 }
 0x844   : > { %9039 = vset.pattern.permute.xlu0 %v9189_v6 }
 0x845   : > { %6178 = vperm.xlu0 %9039, %v14015_v12  }
 0x846   : > { %9034 = vset.pattern.permute.xlu2 %v9189_v6  ;;  %9033 = vset.pattern.permute.xlu1 %v9192_v47  ;;  %v6154_v35 = vpop.permute.xlu2 %6153 }
 0x847   : > { %6654 = vperm.xlu1 %9033, %v6112_v19   ;;  %6173 = vperm.xlu2 %9034, %v13986_v38   ;;  %v6200_v51 = vmul.f32 %v6154_v35, %v6122_v30  ;;  %v14054_v19 = vmul.f32 %v9120_v44, %v6102_v33  ;;  %v6104_v35 = vmax.f32 %v6091_v54, 0.0 }
 0x84a   : > { %v6139_v61 = vpop.permute.xlu0 %6138 }
 0x84b   : > { %v6197_v62 = vmul.f32 %v6139_v61, %v6119_v2  ;;  %v14032_v31 = vpop.permute.xlu1 %6416  ;;  %v8580_v2 = vld [vmem:[%s14447_s12 + $0xe0] sm:$0xff]  ;;  %v14107_v61 = vmul.f32 %v9122_v11, %v6104_v35 }
 0x84d   : > { %v6289_v21 = vadd.f32 %v6276_v14, %v6197_v62  ;;  %9042 = vset.pattern.permute.xlu0 %v9187_v52  ;;  %v8594_v14 = vld [vmem:[%s14447_s12 + $0x150] sm:$0xff] }
 0x84e   : > { %6444 = vperm.xlu0 %9042, %v14015_v12   ;;  %v6462_v33 = vmul.f32 %v8594_v14, %v14004_v8  ;;  %v6535_v8 = vld [vmem:[%s14449_s14 + $0x10] sm:$0xff] }
 0x84f   : > { %9035 = vset.pattern.permute.xlu1 %v9188_v28  ;;  %9037 = vset.pattern.permute.xlu2 %v9187_v52  ;;  %v6381_v20 = vadd.f32 %v6368_v3, %v6289_v21  ;;  %v6198_v3 = vmul.f32 %v14010_v55, %v6120_v49 }
 0x850   : > { %v6241_v60 = vpop.permute.xlu2 %6240  ;;  %6256 = vperm.xlu1 %9035, %v13986_v38   ;;  %6440 = vperm.xlu2 %9037, %v13986_v38  }
 0x851   : > { %v6279_v5 = vmul.f32 %v8569_v23, %v6241_v60  ;;  %v6369_v23 = vmul.f32 %v8580_v2, %v13971_v4 }
 0x853   : > { %v6292_v45 = vadd.f32 %v6279_v5, %v6200_v51 }
 0x854   : > { %v6413_v32 = vpop.permute.xlu0 %6412 }
 0x855   : > { %v6460_v17 = vmul.f32 %v8592_v24, %v6413_v32  ;;  %v6149_v57 = vpop.permute.xlu1 %6148 }
 0x856   : > { %9044 = vset.pattern.permute.xlu0 %v9188_v28  ;;  %v6199_v59 = vmul.f32 %v6149_v57, %v6121_v50 }
 0x857   : > { %v6473_v9 = vadd.f32 %v6460_v17, %v6381_v20  ;;  %6264 = vperm.xlu0 %9044, %v14054_v19   ;;  %v8593_v20 = vld [vmem:[%s14447_s12 + $0x148] sm:$0xff] }
 0x858   : > { %9041 = vset.pattern.permute.xlu1 %v9190_v16  ;;  %9040 = vset.pattern.permute.xlu2 %v9188_v28  ;;  %v6461_v4 = vmul.f32 %v8593_v20, %v14032_v31 }
 0x859   : > { %v6487_v37 = vsel %vm6485_vm6, %v6473_v9, 0.0  ;;  %v6333_v13 = vpop.permute.xlu2 %6332  ;;  %6352 = vperm.xlu1 %9041, %v14015_v12   ;;  %6260 = vperm.xlu2 %9040, %v14015_v12  }
 0x85a   : > { %v6488_v34 = vadd.f32 %v6487_v37, %v6486_v25  ;;  %v6371_v22 = vmul.f32 %v8582_v53, %v6333_v13  ;;  %v6536_v13 = vld [vmem:[%s14449_s14 + $0x18] sm:$0xff] }
 0x85c   : > { %v14072_v10 = vadd.f32 %v6371_v22, %v6292_v45  ;;  %v8606_v45 = vld [vmem:[%s14449_s14 + $0x78] sm:$0xff] }
 0x85d   : > { %v14077_v46 = vpop.permute.xlu0 %6551  ;;  %v6679_v17 = vmul.f32 %v8606_v45, %v13990_v43  ;;  %v8607_v43 = vld [vmem:[%s14449_s14 + $0x80] sm:$0xff] }
 0x85e   : > { %v6237_v1 = vpop.permute.xlu1 %6236 }
 0x85f   : > { %v6278_v18 = vmul.f32 %v8568_v40, %v6237_v1  ;;  %9049 = vset.pattern.permute.xlu0 %v9190_v16 }
 0x860   : > { %6360 = vperm.xlu0 %9049, %v14082_v48  }
 0x861   : > { %v6291_v7 = vadd.f32 %v6278_v18, %v6199_v59  ;;  %9043 = vset.pattern.permute.xlu1 %v9189_v6  ;;  %9045 = vset.pattern.permute.xlu2 %v9190_v16 }
 0x862   : > { %6183 = vperm.xlu1 %9043, %v14054_v19   ;;  %6356 = vperm.xlu2 %9045, %v14054_v19   ;;  %v14118_v60 = vpop.permute.xlu2 %6563 }
 0x867   : > { %v6233_v62 = vpop.permute.xlu0 %6232  ;;  %v6329_v26 = vpop.permute.xlu1 %6328 }
 0x868   : > { %v6277_v21 = vmul.f32 %v8567_v41, %v6233_v62  ;;  %v6370_v30 = vmul.f32 %v8581_v63, %v6329_v26  ;;  %9051 = vset.pattern.permute.xlu0 %v9189_v6  ;;  %v8596_v41 = vld [vmem:[%s14447_s12 + $0x160] sm:$0xff] }
 0x869   : > { %6193 = vperm.xlu0 %9051, %v14107_v61  }
 0x86a   : > { %v6290_v51 = vadd.f32 %v6277_v21, %v6198_v3  ;;  %v6383_v5 = vadd.f32 %v6370_v30, %v6291_v7  ;;  %9046 = vset.pattern.permute.xlu1 %v9187_v52  ;;  %9047 = vset.pattern.permute.xlu2 %v9189_v6  ;;  %v6123_v7 = vld [vmem:[%s14447_s12 + $0x28] sm:$0xff] }
 0x86b   : > { %6448 = vperm.xlu1 %9046, %v14054_v19   ;;  %6188 = vperm.xlu2 %9047, %v14082_v48   ;;  %v6159_v53 = vpop.permute.xlu2 %6158  ;;  %v6538_v21 = vld [vmem:[%s14449_s14 + $0x28] sm:$0xff] }
 0x86c   : > { %v6382_v55 = vadd.f32 %v6369_v23, %v6290_v51  ;;  %v6475_v24 = vadd.f32 %v6462_v33, %v6383_v5  ;;  %v6124_v33 = vld [vmem:[%s14447_s12 + $0x30] sm:$0xff] }
 0x86e   : > { %v6474_v32 = vadd.f32 %v6461_v4, %v6382_v55  ;;  %v6491_v9 = vsel %vm6485_vm6, %v6475_v24, 0.0 }
 0x870   : > { %v6489_v44 = vsel %vm6485_vm6, %v6474_v32, 0.0  ;;  %v6556_v6 = vpop.permute.xlu0 %6555  ;;  %v8597_v32 = vld [vmem:[%s14447_s12 + $0x168] sm:$0xff] }
 0x871   : > { %v6600_v57 = vmul.f32 %v6556_v6, %v6535_v8  ;;  %v6639_v36 = vpop.permute.xlu1 %6638  ;;  %9054 = vset.pattern.permute.xlu0 %v9187_v52  ;;  %v6490_v31 = vadd.f32 %v6489_v44, %v6488_v34  ;;  %v8595_v34 = vld [vmem:[%s14447_s12 + $0x158] sm:$0xff] }
 0x872   : > { %6456 = vperm.xlu0 %9054, %v14107_v61   ;;  %v6680_v22 = vmul.f32 %v8607_v43, %v6639_v36 }
 0x873   : > { %v14138_v25 = vadd.f32 %v6679_v17, %v6600_v57  ;;  %9048 = vset.pattern.permute.xlu1 %v9188_v28  ;;  %9050 = vset.pattern.permute.xlu2 %v9187_v52  ;;  %v6492_v37 = vadd.f32 %v6491_v9, %v6490_v31 }
 0x874   : > { %6268 = vperm.xlu1 %9048, %v14082_v48   ;;  %6452 = vperm.xlu2 %9050, %v14082_v48   ;;  %v6429_v1 = vpop.permute.xlu2 %6428 }
 0x875   : > { %v6464_v14 = vmul.f32 %v8596_v41, %v6429_v1  ;;  %v6125_v41 = vld [vmem:[%s14447_s12 + $0x38] sm:$0xff] }
 0x878   : > { %v6560_v39 = vpop.permute.xlu0 %6559 }
 0x879   : > { %v6601_v52 = vmul.f32 %v6560_v39, %v6536_v13 }
 0x87a   : > { %v6425_v50 = vpop.permute.xlu1 %6424  ;;  %9055 = vset.pattern.permute.xlu0 %v9192_v47 }
 0x87b   : > { %v14154_v40 = vadd.f32 %v6680_v22, %v6601_v52  ;;  %v6463_v29 = vmul.f32 %v8595_v34, %v6425_v50  ;;  %6626 = vperm.xlu0 %9055, %v13861_v58   ;;  %v8570_v58 = vld [vmem:[%s14447_s12 + $0x90] sm:$0xff]  ;;  %v6540_v34 = vld [vmem:[%s14449_s14 + $0x38] sm:$0xff] }
 0x87c   : > { %9053 = vset.pattern.permute.xlu1 %v9190_v16  ;;  %9052 = vset.pattern.permute.xlu2 %v9188_v28  ;;  %v8583_v28 = vld [vmem:[%s14447_s12 + $0xf8] sm:$0xff] }
 0x87d   : > { %v6476_v54 = vadd.f32 %v6463_v29, %v14072_v10  ;;  %6364 = vperm.xlu1 %9053, %v14107_v61   ;;  %6272 = vperm.xlu2 %9052, %v14107_v61   ;;  %v6201_v10 = vmul.f32 %v6159_v53, %v6123_v7  ;;  %v6647_v11 = vpop.permute.xlu2 %6646 }
 0x87f   : > { %v6493_v59 = vsel %vm6485_vm6, %v6476_v54, 0.0 }
 0x880   : > { %v6494_v18 = vadd.f32 %v6493_v59, %v6492_v37 }
 0x881   : > { %v6337_v35 = vpop.permute.xlu0 %6336 }
 0x882   : > { %v6372_v63 = vmul.f32 %v8583_v28, %v6337_v35 }
 0x883   : > { %v6245_v16 = vpop.permute.xlu1 %6244  ;;  %6630 = vperm.xlu0 %9055, %v13871_v56   ;;  %v8609_v56 = vld [vmem:[%s14449_s14 + $0x90] sm:$0xff] }
 0x884   : > { %v6280_v49 = vmul.f32 %v8570_v58, %v6245_v16  ;;  %v6682_v20 = vmul.f32 %v8609_v56, %v6647_v11  ;;  %v6126_v11 = vld [vmem:[%s14447_s12 + $0x40] sm:$0xff] }
 0x885   : > { %9057 = vset.pattern.permute.xlu1 %v9191_v0  ;;  %9056 = vset.pattern.permute.xlu2 %v9192_v47 }
 0x886   : > { %v6293_v2 = vadd.f32 %v6280_v49, %v6201_v10  ;;  %6583 = vperm.xlu1 %9057, %v14015_v12   ;;  %6658 = vperm.xlu2 %9056, %v13986_v38   ;;  %v6249_v4 = vpop.permute.xlu2 %6248 }
 0x888   : > { %v6385_v62 = vadd.f32 %v6372_v63, %v6293_v2  ;;  %v8573_v63 = vld [vmem:[%s14447_s12 + $0xa8] sm:$0xff]  ;;  %v8572_v2 = vld [vmem:[%s14447_s12 + $0xa0] sm:$0xff] }
 0x88a   : > { %v6477_v26 = vadd.f32 %v6464_v14, %v6385_v62  ;;  %v6164_v3 = vpop.permute.xlu0 %6163 }
 0x88b   : > { %6642 = vperm.xlu0 %9055, %v13906_v15   ;;  %v8571_v15 = vld [vmem:[%s14447_s12 + $0x98] sm:$0xff]  ;;  %v6202_v55 = vmul.f32 %v6164_v3, %v6124_v33  ;;  %v8574_v33 = vld [vmem:[%s14447_s12 + $0xb0] sm:$0xff] }
 0x88c   : > { %v6495_v30 = vsel %vm6485_vm6, %v6477_v26, 0.0  ;;  %v6568_v23 = vpop.permute.xlu1 %6567  ;;  %v6281_v45 = vmul.f32 %v8571_v15, %v6249_v4  ;;  %v6127_v26 = vld [vmem:[%s14447_s12 + $0x48] sm:$0xff]  ;;  %v6128_v15 = vld [vmem:[%s14447_s12 + $0x50] sm:$0xff] }
 0x88d   : > { %v6603_v38 = vmul.f32 %v6568_v23, %v6538_v21  ;;  %v6496_v5 = vadd.f32 %v6495_v30, %v6494_v18  ;;  %v8585_v21 = vld [vmem:[%s14447_s12 + $0x108] sm:$0xff] }
 0x88e   : > { %6587 = vperm.xlu1 %9057, %v14054_v19   ;;  %6662 = vperm.xlu2 %9056, %v14015_v12   ;;  %v8584_v12 = vld [vmem:[%s14447_s12 + $0x100] sm:$0xff]  ;;  %v6294_v44 = vadd.f32 %v6281_v45, %v6202_v55 }
 0x88f   : > { %v14193_v51 = vadd.f32 %v6682_v20, %v6603_v38  ;;  %v6345_v36 = vpop.permute.xlu2 %6344  ;;  %v8586_v20 = vld [vmem:[%s14447_s12 + $0x110] sm:$0xff] }
 0x890   : > { %v8598_v38 = vld [vmem:[%s14447_s12 + $0x170] sm:$0xff] }
 0x893   : > { %v6433_v24 = vpop.permute.xlu0 %6432  ;;  %6650 = vperm.xlu0 %9055, %v13950_v27  }
 0x894   : > { %v6465_v27 = vmul.f32 %v8597_v32, %v6433_v24  ;;  %v8575_v32 = vld [vmem:[%s14447_s12 + $0xb8] sm:$0xff] }
 0x895   : > { %v6341_v8 = vpop.permute.xlu1 %6340 }
 0x896   : > { %v6373_v6 = vmul.f32 %v8584_v12, %v6341_v8  ;;  %9059 = vset.pattern.permute.xlu1 %v9192_v47  ;;  %9058 = vset.pattern.permute.xlu2 %v9191_v0  ;;  %v6374_v12 = vmul.f32 %v8585_v21, %v6345_v36  ;;  %v6129_v36 = vld [vmem:[%s14447_s12 + $0x58] sm:$0xff] }
 0x897   : > { %6670 = vperm.xlu1 %9059, %v14082_v48   ;;  %6591 = vperm.xlu2 %9058, %v14082_v48  }
 0x898   : > { %v6386_v17 = vadd.f32 %v6373_v6, %v6294_v44  ;;  %v6576_v47 = vpop.permute.xlu2 %6575 }
 0x899   : > { %v6605_v29 = vmul.f32 %v6576_v47, %v6540_v34  ;;  %v8600_v34 = vld [vmem:[%s14447_s12 + $0x180] sm:$0xff] }
 0x89a   : > { %v6478_v57 = vadd.f32 %v6465_v27, %v6386_v17 }
 0x89b   : > { %6666 = vperm.xlu0 %9055, %v14054_v19   ;;  %v8611_v19 = vld [vmem:[%s14449_s14 + $0xa0] sm:$0xff] }
 0x89c   : > { %v6497_v31 = vsel %vm6485_vm6, %v6478_v57, 0.0  ;;  %v6253_v9 = vpop.permute.xlu0 %6252  ;;  %v8599_v57 = vld [vmem:[%s14447_s12 + $0x178] sm:$0xff] }
 0x89d   : > { %v14211_v53 = vadd.f32 %v6497_v31, %v6496_v5  ;;  %v6282_v30 = vmul.f32 %v8572_v2, %v6253_v9  ;;  %v8587_v5 = vld [vmem:[%s14447_s12 + $0x118] sm:$0xff] }
 0x89e   : > { %v14213_v37 = vpop.permute.xlu1 %6571 }
 0x8a1   : > { %v6174_v39 = vpop.permute.xlu2 %6173 }
 0x8a2   : > { %v6204_v23 = vmul.f32 %v6174_v39, %v6126_v11  ;;  %v8576_v39 = vld [vmem:[%s14447_s12 + $0xc0] sm:$0xff]  ;;  %v8602_v11 = vld [vmem:[%s14447_s12 + $0x190] sm:$0xff] }
 0x8a5   : > { %v6349_v43 = vpop.permute.xlu0 %6348 }
 0x8a6   : > { %v6375_v45 = vmul.f32 %v8586_v20, %v6349_v43 }
 0x8a7   : > { %v6169_v0 = vpop.permute.xlu1 %6168 }
 0x8a8   : > { %v6203_v62 = vmul.f32 %v6169_v0, %v6125_v41 }
 0x8aa   : > { %v6441_v52 = vpop.permute.xlu2 %6440  ;;  %v6295_v4 = vadd.f32 %v6282_v30, %v6203_v62 }
 0x8ac   : > { %v6387_v31 = vadd.f32 %v6374_v12, %v6295_v4  ;;  %v8603_v12 = vld [vmem:[%s14447_s12 + $0x198] sm:$0xff] }
 0x8ae   : > { %v14215_v13 = vpop.permute.xlu0 %6579 }
 0x8b0   : > { %v6437_v48 = vpop.permute.xlu1 %6436 }
 0x8b1   : > { %v6466_v44 = vmul.f32 %v8598_v38, %v6437_v48  ;;  %v8588_v48 = vld [vmem:[%s14447_s12 + $0x120] sm:$0xff] }
 0x8b3   : > { %v6261_v7 = vpop.permute.xlu2 %6260 }
 0x8b4   : > { %v6284_v6 = vmul.f32 %v8574_v33, %v6261_v7 }
 0x8b7   : > { %v6179_v22 = vpop.permute.xlu0 %6178 }
 0x8b8   : > { %v6205_v55 = vmul.f32 %v6179_v22, %v6127_v26  ;;  %v8601_v22 = vld [vmem:[%s14447_s12 + $0x188] sm:$0xff] }
 0x8b9   : > { %v6655_v50 = vpop.permute.xlu1 %6654 }
 0x8ba   : > { %v6684_v1 = vmul.f32 %v8611_v19, %v6655_v50  ;;  %v6297_v9 = vadd.f32 %v6284_v6, %v6205_v55  ;;  %v6467_v19 = vmul.f32 %v8599_v57, %v6441_v52  ;;  %v6479_v50 = vadd.f32 %v6466_v44, %v6387_v31  ;;  %v6130_v52 = vld [vmem:[%s14447_s12 + $0x60] sm:$0xff] }
 0x8bb   : > { %v6533_v44 = vld [vmem:[%s14449_s14] sm:$0xff] }
 0x8bc   : > { %v14223_v54 = vadd.f32 %v6684_v1, %v6605_v29  ;;  %v6357_v28 = vpop.permute.xlu2 %6356  ;;  %v8589_v1 = vld [vmem:[%s14447_s12 + $0x128] sm:$0xff]  ;;  %v6499_v26 = vsel %vm6485_vm6, %v6479_v50, 0.0 }
 0x8bd   : > { %v6500_v38 = vadd.f32 %v6499_v26, %v14211_v53 }
 0x8c0   : > { %v6445_v59 = vpop.permute.xlu0 %6444 }
 0x8c1   : > { %v6468_v41 = vmul.f32 %v8600_v34, %v6445_v59  ;;  %v8577_v59 = vld [vmem:[%s14447_s12 + $0xc8] sm:$0xff] }
 0x8c2   : > { %v6257_v18 = vpop.permute.xlu1 %6256 }
 0x8c3   : > { %v6283_v56 = vmul.f32 %v8573_v63, %v6257_v18 }
 0x8c5   : > { %v6189_v49 = vpop.permute.xlu2 %6188  ;;  %v6296_v24 = vadd.f32 %v6283_v56, %v6204_v23 }
 0x8c7   : > { %v6388_v47 = vadd.f32 %v6375_v45, %v6296_v24 }
 0x8c9   : > { %v6265_v35 = vpop.permute.xlu0 %6264  ;;  %v6480_v63 = vadd.f32 %v6467_v19, %v6388_v47 }
 0x8ca   : > { %v6285_v43 = vmul.f32 %v8575_v32, %v6265_v35  ;;  %v6207_v35 = vmul.f32 %v6189_v49, %v6129_v36  ;;  %v8605_v36 = vld [vmem:[%s14449_s14 + $0x70] sm:$0xff] }
 0x8cb   : > { %v6353_v58 = vpop.permute.xlu1 %6352 }
 0x8cc   : > { %v6376_v27 = vmul.f32 %v8587_v5, %v6353_v58  ;;  %v8590_v5 = vld [vmem:[%s14447_s12 + $0x130] sm:$0xff] }
 0x8ce   : > { %v6453_v8 = vpop.permute.xlu2 %6452  ;;  %v6389_v29 = vadd.f32 %v6376_v27, %v6297_v9  ;;  %v6534_v9 = vld [vmem:[%s14449_s14 + $0x8] sm:$0xff] }
 0x8cf   : > { %v6470_v23 = vmul.f32 %v8602_v11, %v6453_v8 }
 0x8d0   : > { %v6481_v21 = vadd.f32 %v6468_v41, %v6389_v29  ;;  %v6706_v41 = vsel %vm6485_vm6, %v14138_v25, 0.0  ;;  %v6517_v25 = vld [vmem:[%s14448_s13] sm:$0x1] }
 0x8d2   : > { %v6361_v16 = vpop.permute.xlu0 %6360 }
 0x8d3   : > { %v6378_v62 = vmul.f32 %v8589_v1, %v6361_v16 }
 0x8d4   : > { %v6184_v10 = vpop.permute.xlu1 %6183 }
 0x8d5   : > { %v6206_v17 = vmul.f32 %v6184_v10, %v6128_v15  ;;  %v6377_v10 = vmul.f32 %v8588_v48, %v6357_v28  ;;  %v6503_v15 = vsel %vm6485_vm6, %v6481_v21, 0.0 }
 0x8d7   : > { %v6298_v18 = vadd.f32 %v6285_v43, %v6206_v17  ;;  %v6273_v28 = vpop.permute.xlu2 %6272  ;;  %v6598_v43 = vmul.f32 %v14008_v42, %v6533_v44  ;;  %v6537_v42 = vld [vmem:[%s14449_s14 + $0x20] sm:$0xff] }
 0x8d8   : > { %v6287_v4 = vmul.f32 %v8577_v59, %v6273_v28 }
 0x8d9   : > { %v6390_v30 = vadd.f32 %v6377_v10, %v6298_v18 }
 0x8db   : > { %v6194_v14 = vpop.permute.xlu0 %6193 }
 0x8dc   : > { %v6208_v20 = vmul.f32 %v6194_v14, %v6130_v52  ;;  %v8604_v14 = vld [vmem:[%s14449_s14 + $0x68] sm:$0xff]  ;;  %v6602_v52 = vmul.f32 %v14118_v60, %v6537_v42 }
 0x8dd   : > { %v6449_v3 = vpop.permute.xlu1 %6448  ;;  %v8612_v60 = vld [vmem:[%s14449_s14 + $0xa8] sm:$0xff] }
 0x8de   : > { %v6469_v2 = vmul.f32 %v8601_v22, %v6449_v3  ;;  %v6501_v3 = vsel %vm6485_vm6, %v6480_v63, 0.0  ;;  %v6300_v53 = vadd.f32 %v6287_v4, %v6208_v20  ;;  %v8610_v20 = vld [vmem:[%s14449_s14 + $0x98] sm:$0xff] }
 0x8df   : > { %v6502_v24 = vadd.f32 %v6501_v3, %v6500_v38  ;;  %v6712_v38 = vsel %vm6485_vm6, %v14193_v51, 0.0  ;;  %v8613_v51 = vld [vmem:[%s14449_s14 + $0xb0] sm:$0xff] }
 0x8e0   : > { %v6482_v16 = vadd.f32 %v6469_v2, %v6390_v30  ;;  %v6659_v63 = vpop.permute.xlu2 %6658 }
 0x8e1   : > { %v6504_v6 = vadd.f32 %v6503_v15, %v6502_v24 }
 0x8e2   : > { %v6505_v32 = vsel %vm6485_vm6, %v6482_v16, 0.0 }
 0x8e3   : > { %v6506_v47 = vadd.f32 %v6505_v32, %v6504_v6 }
 0x8e4   : > { %v6457_v0 = vpop.permute.xlu0 %6456 }
 0x8e5   : > { %v6471_v27 = vmul.f32 %v8603_v12, %v6457_v0  ;;  %v6599_v0 = vmul.f32 %v14077_v46, %v6534_v9  ;;  %v8608_v46 = vld [vmem:[%s14449_s14 + $0x88] sm:$0xff]  ;;  %v6685_v12 = vmul.f32 %v8612_v60, %v6659_v63  ;;  %v8614_v9 = vld [vmem:[%s14449_s14 + $0xb8] sm:$0xff] }
 0x8e6   : > { %v6269_v7 = vpop.permute.xlu1 %6268  ;;  %v6544_v63 = vld [vmem:[%s14449_s14 + $0x58] sm:$0xff] }
 0x8e7   : > { %v6286_v58 = vmul.f32 %v8576_v39, %v6269_v7 }
 0x8e9   : > { %v6299_v56 = vadd.f32 %v6286_v58, %v6207_v35 }
 0x8eb   : > { %v6391_v49 = vadd.f32 %v6378_v62, %v6299_v56  ;;  %v6708_v56 = vsel %vm6485_vm6, %v14154_v40, 0.0 }
 0x8ed   : > { %v6627_v33 = vpop.permute.xlu0 %6626  ;;  %v6483_v55 = vadd.f32 %v6470_v23, %v6391_v49  ;;  %v6539_v23 = vld [vmem:[%s14449_s14 + $0x30] sm:$0xff] }
 0x8ee   : > { %v6677_v57 = vmul.f32 %v8604_v14, %v6627_v33  ;;  %v6541_v33 = vld [vmem:[%s14449_s14 + $0x40] sm:$0xff]  ;;  %v6604_v24 = vmul.f32 %v14213_v37, %v6539_v23  ;;  %v6543_v37 = vld [vmem:[%s14449_s14 + $0x50] sm:$0xff] }
 0x8ef   : > { %v6365_v45 = vpop.permute.xlu1 %6364  ;;  %v6507_v17 = vsel %vm6485_vm6, %v6483_v55, 0.0  ;;  %v6606_v32 = vmul.f32 %v14215_v13, %v6541_v33  ;;  %v6716_v13 = vsel %vm6485_vm6, %v14223_v54, 0.0 }
 0x8f0   : > { %v6379_v8 = vmul.f32 %v8590_v5, %v6365_v45  ;;  %v6508_v48 = vadd.f32 %v6507_v17, %v6506_v47  ;;  %v6690_v22 = vadd.f32 %v6677_v57, %v6598_v43  ;;  %v6542_v5 = vld [vmem:[%s14449_s14 + $0x48] sm:$0xff]  ;;  %v6663_v45 = vpop.permute.xlu2 %6662 }
 0x8f1   : > { %v6698_v6 = vadd.f32 %v6685_v12, %v6606_v32 }
 0x8f2   : > { %v6392_v31 = vadd.f32 %v6379_v8, %v6300_v53  ;;  %v6703_v7 = vsel %vm6485_vm6, %v6690_v22, 0.0 }
 0x8f4   : > { %v6484_v39 = vadd.f32 %v6471_v27, %v6392_v31  ;;  %v6686_v27 = vmul.f32 %v8613_v51, %v6663_v45 }
 0x8f5   : > { %v6631_v34 = vpop.permute.xlu0 %6630 }
 0x8f6   : > { %v6509_v19 = vsel %vm6485_vm6, %v6484_v39, 0.0  ;;  %v6678_v50 = vmul.f32 %v8605_v36, %v6631_v34  ;;  %v6718_v39 = vsel %vm6485_vm6, %v6698_v6, 0.0 }
 0x8f7   : > { %v6510_v29 = vadd.f32 %v6509_v19, %v6508_v48 }
 0x8f8   : > { %v6691_v1 = vadd.f32 %v6678_v50, %v6599_v0  ;;  %v6584_v28 = vpop.permute.xlu1 %6583 }
 0x8f9   : > { %v6511_v18 = vrot.slane %v6510_v29, 4  ;;  %v6607_v8 = vmul.f32 %v6584_v28, %v6542_v5 }
 0x8fa   : > { %v6704_v35 = vsel %vm6485_vm6, %v6691_v1, 0.0 }
 0x8fb   : > { %v6705_v58 = vadd.f32 %v6704_v35, %v6703_v7  ;;  %v6512_v10 = vadd.f32 %v6511_v18, %v6510_v29  ;;  %v6699_v47 = vadd.f32 %v6686_v27, %v6607_v8 }
 0x8fd   : > { %v6707_v2 = vadd.f32 %v6706_v41, %v6705_v58  ;;  %v6643_v11 = vpop.permute.xlu0 %6642  ;;  %v6513_v62 = vrot.slane %v6512_v10, 2  ;;  %v6720_v22 = vsel %vm6485_vm6, %v6699_v47, 0.0 }
 0x8fe   : > { %v6681_v26 = vmul.f32 %v8608_v46, %v6643_v11  ;;  %v6592_v46 = vpop.permute.xlu2 %6591 }
 0x8ff   : > { %v6709_v21 = vadd.f32 %v6708_v56, %v6707_v2  ;;  %v6514_v30 = vadd.f32 %v6513_v62, %v6512_v10  ;;  %v8615_v10 = vld [vmem:[%s14449_s14 + $0xc0] sm:$0xff]  ;;  %v6609_v11 = vmul.f32 %v6592_v46, %v6544_v63  ;;  %v8616_v62 = vld [vmem:[%s14449_s14 + $0xc8] sm:$0xff] }
 0x900   : > { %v6694_v59 = vadd.f32 %v6681_v26, %v6602_v52  ;;  %v6588_v57 = vpop.permute.xlu1 %6587 }
 0x901   : > { %v6515_v49 = vrot.slane %v6514_v30, 1  ;;  %v6608_v48 = vmul.f32 %v6588_v57, %v6543_v37 }
 0x902   : > { %v6710_v3 = vsel %vm6485_vm6, %v6694_v59, 0.0 }
 0x903   : > { %v6711_v40 = vadd.f32 %v6710_v3, %v6709_v21  ;;  %v6516_v16 = vadd.f32 %v6515_v49, %v6514_v30 }
 0x905   : > { %v6713_v15 = vadd.f32 %v6712_v38, %v6711_v40  ;;  %v6651_v4 = vpop.permute.xlu0 %6650  ;;  %v6518_v55 = vadd.f32 %v6517_v25, %v6516_v16 }
 0x906   : > { %v6683_v14 = vmul.f32 %v8610_v20, %v6651_v4 }
 0x907   : > { %v6520_v53 = vsel %vm6519_vm7, %v6518_v55, -inf }
 0x908   : > { %v6696_v44 = vadd.f32 %v6683_v14, %v6604_v24  ;;  %6521 = vmax.xlane.f32.xlu1 %v6520_v53  ;;  %v6737_v24 = vld [vmem:[%s14451_s16] sm:$0x1] }
 0x909   : > { %v6671_v18 = vpop.permute.xlu1 %6670 }
 0x90a   : > { %v6714_v17 = vsel %vm6485_vm6, %v6696_v44, 0.0  ;;  %v6688_v2 = vmul.f32 %v8615_v10, %v6671_v18 }
 0x90b   : > { %v6715_v31 = vadd.f32 %v6714_v17, %v6713_v15  ;;  %v6734_v15 = vld [vmem:[%s14450_s15] sm:$0x1] }
 0x90c   : > { %v6701_v26 = vadd.f32 %v6688_v2, %v6609_v11 }
 0x90d   : > { %v6717_v36 = vadd.f32 %v6716_v13, %v6715_v31  ;;  %v6667_v43 = vpop.permute.xlu0 %6666 }
 0x90e   : > { %v6687_v34 = vmul.f32 %v8614_v9, %v6667_v43  ;;  %v6724_v3 = vsel %vm6485_vm6, %v6701_v26, 0.0 }
 0x90f   : > { %v6719_v0 = vadd.f32 %v6718_v39, %v6717_v36 }
 0x910   : > { %v6700_v19 = vadd.f32 %v6687_v34, %v6608_v48 }
 0x911   : > { %v6721_v50 = vadd.f32 %v6720_v22, %v6719_v0 }
 0x912   : > { %v6722_v29 = vsel %vm6485_vm6, %v6700_v19, 0.0 }
 0x913   : > { %v6723_v1 = vadd.f32 %v6722_v29, %v6721_v50 }
 0x915   : > { %v6725_v23 = vadd.f32 %v6724_v3, %v6723_v1 }
 0x921   : > { %6674 = vperm.xlu1 %9059, %v14107_v61  }
 0x97b   : > { %v6522_v7 = vpop.xlane.xlu1 %6521 }
 0x97c   : > { %v6523_v54 = vsub.f32 %v6518_v55, %v6522_v7 }
 0x97e   : > { %v6524_v35 = vmul.f32 1.442695, %v6523_v54 }
 0x980   : > { %9065 = vpow2.f32 %v6524_v35 }
 0x986   : > { %v9066_v42 = vpop.eup %9065 }
 0x987   : > { %v6526_v58 = vsel %vm6519_vm7, %v9066_v42, 0.0 }
 0x988   : > { %6527 = vadd.xlane.f32.xlu2 %v6526_v58 }
 0x993   : > { %v6675_v52 = vpop.permute.xlu1 %6674 }
 0x994   : > { %v6689_v59 = vmul.f32 %v8616_v62, %v6675_v52 }
 0x9a0   : > { %6595 = vperm.xlu2 %9058, %v14107_v61   ;;  %v6545_v61 = vld [vmem:[%s14449_s14 + $0x60] sm:$0xff] }
 0x9fb   : > { %v6528_v41 = vpop.xlane.xlu2 %6527 }
 0x9fc   : > { %9067 = vlog2.f32 %v6528_v41 }
 0xa02   : > { %v9068_v56 = vpop.eup %9067 }
 0xa03   : > { %v6530_v21 = vmul.f32 0.6931472, %v9068_v56  ;;  %v6596_v30 = vpop.permute.xlu2 %6595 }
 0xa04   : > { %v6610_v28 = vmul.f32 %v6596_v30, %v6545_v61 }
 0xa05   : > { %v6531_v49 = vsub.f32 %v6523_v54, %v6530_v21 }
 0xa06   : > { %v6702_v25 = vadd.f32 %v6689_v59, %v6610_v28 }
 0xa07   : > { %6532 = vst.msk [vmem:[%s597_s0] sm:$0x1] %vm6519_vm7, %v6531_v49 }
 0xa08   : > { %v6726_v60 = vsel %vm6485_vm6, %v6702_v25, 0.0 }
 0xa09   : > { %v6727_v40 = vadd.f32 %v6726_v60, %v6725_v23 }
 0xa0b   : > { %v6728_v20 = vrot.slane %v6727_v40, 4 }
 0xa0d   : > { %v6729_v16 = vadd.f32 %v6728_v20, %v6727_v40 }
 0xa0f   : > { %v6730_v38 = vrot.slane %v6729_v16, 2 }
 0xa11   : > { %v6731_v33 = vadd.f32 %v6730_v38, %v6729_v16 }
 0xa13   : > { %v6732_v5 = vrot.slane %v6731_v33, 1 }
 0xa15   : > { %v6733_v4 = vadd.f32 %v6732_v5, %v6731_v33 }
 0xa17   : > { %v6735_v55 = vadd.f32 %v6734_v15, %v6733_v4 }
 0xa19   : > { %v6736_v12 = vmax.f32 %v6735_v55, 0.0 }
 0xa1b   : > { %v6738_v14 = vmul.f32 %v6737_v24, %v6736_v12 }
 0xa1d   : > { %v6739_v51 = vsel %vm6519_vm7, %v6738_v14, 0.0 }
 0xa1e   : > { %6740 = vadd.xlane.f32.xlu0 %v6739_v51 }
 0xa1f   : > { %9150 = shalt.err (!%p9147_p3)
}
 0xa20   : > { %8946 = dma.vmem_to_hbm [thread:$0]  (%p9334_p5), %s6762_s3, 16, %s6764_s27, %s6748_s25   ;;  %v6742_v45 = vld [vmem:[#allocation2] sm:$0x1]  ;;  %vm6745_vm8 = vcmask 0  }
 0xa21   : > { %s610_s4 = scalar_lea.vmem %s14454_s19, %s9358_s30 }
 0xa91   : > { %v6741_v53 = vpop.xlane.xlu0 %6740 }
 0xa92   : > { %v6743_v32 = vadd.f32 %v6742_v45, %v6741_v53 }
 0xa94   : > { %9069 = vtanh.f32 %v6743_v32 }
 0xa9a   : > { %v9070_v8 = vpop.eup %9069 }
 0xa9b   : > { %6746 = vst.msk [vmem:[%s610_s4] sm:$0x1] %vm6745_vm8, %v9070_v8 }
 0xa9c PF: > { %s15057_s2 = sld [smem:[#allocation6_spill]]  ;;  %p8952_p4 = scmp.ge.s32.totalorder %s9185_s22, 2 }
 0xa9e   : > { %p8949_p7 = pnand %p8952_p4, %p9338_p6 }
 0xaa0   : > { %p8950_p5 = pneg %p8949_p7 }
 0xaa2   : > { %s6778_s23 = sand.u32 1, %s15057_s2  }
 0xaa3   : > { %s6779_s26 = scalar_lea.sflag [#allocation4], %s6778_s23 }
 0xaa4   : > { %9168 = dma.done.wait (%p8950_p5), %s6779_s26, 16  }
 0xaa5   : > { %9170 = vsyncadd (%p8950_p5), %s6779_s26, 4294967280  ;;  %s15059_s22 = sld [smem:[#allocation8_spill]]  ;;  %s15062_s20 = smov %s9177_s21 }
 0xaa6   : > { %s15060_s27 = sld [smem:[#allocation7_spill]] }
 0xaa7   : > { %s15061_s1 = sld [smem:[#allocation9_spill]] }
 0xaab   : > { %p32_p8 = scmp.ge.s32.totalorder %s15059_s22, 4  }
 0xaac   : > { %s15063_s21 = smov %s15060_s27 }
 0xaad   :  { %34 = sbr.rel (!%p32_p8) target bundleno = 9 (0x9), region = 175 }
 0xab2   :  { %6790 = vsyncpa [#allocation4], 1 }
 0xab3   :  { %6792 = vsyncpa [#allocation4 + $0x1], 1 }

</bundles_post_ra>
